<compile_context>
chip_gen: v5e
topology: v5e:2x2
jax: 0.10.0
libtpu: 0.0.40
codegen_flags: <defaults>
</compile_context>

<pallas_src>
import functools
import math

import jax
import jax.numpy as jnp
import numpy as np
from jax.experimental import pallas as pl
from jax.experimental.pallas import tpu as pltpu


# ----------------------------------------------------------------------------
# Fused kernel: one batch element per grid step.
# Channel orders inside the kernel:
#   * q / k / low use the "slot-major raw" order  g = m*(C/2) + n*hh + f
#     (m = grouped-conv channel-multiplier slot, n = head, f = half-head dim),
#     which maps to PyTorch channel  n*hd + 2*f + m.  The k rows and the out_l
#     columns are permuted accordingly in prepare_params.
#   * v_l and the attention "high" output stay in standard PyTorch order, so
#     out_h uses unpermuted weights.
# Spatial representation: the high-res path works on the flattened padded grid
# of width Wp = W+2; valid pixels live in a contiguous window of length
# L = H*Wp - 2 (window j -> padded position j + Wp + 1).  Positions falling on
# padding columns are masked where it matters (v_h before the "low" matmul,
# "high" before out_h).
# ----------------------------------------------------------------------------
def make_fused_kernel(H, W, C, num_heads):
    Hp, Wp = H + 2, W + 2
    P = Hp * Wp
    L = P - 2 * (Wp + 1)          # = H*Wp - 2, contiguous output window
    C2 = C // 2
    hd = C // num_heads
    hh = hd // 2

    def kernel(xh_ref, xl_ref, dwq0_ref, dwq1_ref, wkv_ref, bkv_ref,
               wol_ref, bol_ref, dwo_ref, mask_ref, hi_ref, lo_ref):
        f32 = jnp.float32
        bf16 = jnp.bfloat16

        # ------------------------------------------------------------------
        # to_qkv_h: depthwise 3x3 (groups=C, channel multiplier 2), padding=1.
        # Channel-major flat-shift taps: each tap is a wide lane slice.
        # ------------------------------------------------------------------
        xp = xh_ref[0].astype(f32)            # (C, P) padded NCHW, flattened
        w0 = dwq0_ref[...]                    # (C, 9) slot-0 taps (q rows pre-scaled)
        w1 = dwq1_ref[...]                    # (C, 9) slot-1 taps
        acc0 = jnp.zeros((C, L), f32)
        acc1 = jnp.zeros((C, L), f32)
        for ky in range(3):
            for kx in range(3):
                t = ky * 3 + kx
                tap = xp[:, ky * Wp + kx: ky * Wp + kx + L]
                acc0 = acc0 + tap * w0[:, t:t + 1]
                acc1 = acc1 + tap * w1[:, t:t + 1]

        mask = mask_ref[...]                  # (1, L): 1.0 on real pixels, 0.0 on pad cols
        q0 = acc0[:C2].reshape(num_heads, hh, L).astype(bf16)
        q1 = acc1[:C2].reshape(num_heads, hh, L).astype(bf16)
        vh0 = (acc0[C2:] * mask).reshape(num_heads, hh, L).astype(bf16)
        vh1 = (acc1[C2:] * mask).reshape(num_heads, hh, L).astype(bf16)

        # ------------------------------------------------------------------
        # to_qkv_l: 1x1 conv + bias (k rows pre-permuted to raw order).
        # ------------------------------------------------------------------
        xl = xl_ref[0].astype(bf16)           # (C, N_lo)
        n_lo = xl.shape[1]
        kv = jnp.dot(wkv_ref[...], xl, preferred_element_type=f32) + bkv_ref[...]
        k0 = kv[:C2].reshape(num_heads, hh, n_lo).astype(bf16)
        k1 = kv[C2:C].reshape(num_heads, hh, n_lo).astype(bf16)
        vl = kv[C:].reshape(num_heads, hd, n_lo).astype(bf16)     # PyTorch order

        # ------------------------------------------------------------------
        # Attention.  Scores are held transposed: sT[n, h_lo, j_hi]
        # (lane axis = N_hi) so exp / reductions are lane-dense.
        # Scale is already folded into the q weights.
        # ------------------------------------------------------------------
        dims_cc1 = (((1,), (1,)), ((0,), (0,)))        # contract head-dim, batch heads
        sT = (jax.lax.dot_general(k0, q0, dims_cc1, preferred_element_type=f32)
              + jax.lax.dot_general(k1, q1, dims_cc1, preferred_element_type=f32))
        sT = sT - jnp.max(sT, axis=1, keepdims=True)
        e = jnp.exp(sT)
        p = e * pl.reciprocal(jnp.sum(e, axis=1, keepdims=True), approx=False)
        pb = p.astype(bf16)                            # (nh, N_lo, L)

        # low  = attn^T applied to v_h  -> (C, N_lo), slot-major raw channel order
        dims_cc2 = (((2,), (2,)), ((0,), (0,)))
        low0 = jax.lax.dot_general(vh0, pb, dims_cc2, preferred_element_type=f32)
        low1 = jax.lax.dot_general(vh1, pb, dims_cc2, preferred_element_type=f32)
        low_cm = jnp.concatenate([low0.reshape(C2, n_lo),
                                  low1.reshape(C2, n_lo)], axis=0)

        # high = attn applied to v_l   -> (C, L), PyTorch channel order
        dims_hi = (((2,), (1,)), ((0,), (0,)))
        high = jax.lax.dot_general(vl, pb, dims_hi, preferred_element_type=f32)
        high_cm = high.reshape(C, L) * mask            # zero the pad-column positions

        # ------------------------------------------------------------------
        # out_l: 1x1 conv + bias (columns pre-permuted to match low_cm order).
        # ------------------------------------------------------------------
        y_lo = jnp.dot(wol_ref[...], low_cm.astype(bf16),
                       preferred_element_type=f32) + bol_ref[...]
        lo_ref[0] = y_lo.astype(lo_ref.dtype)

        # ------------------------------------------------------------------
        # out_h: depthwise 3x3 on the padded flat grid, then extract the H*W
        # valid pixels and store one dense (C, H*W) slab (NCHW after reshape).
        # ------------------------------------------------------------------
        zpad = jnp.zeros((C, Wp + 1), f32)
        hp = jnp.concatenate([zpad, high_cm, zpad], axis=1)       # (C, P), zero ring
        wo = dwo_ref[...]                                          # (C, 9)
        r2 = jnp.zeros((C, L), f32)
        for ky in range(3):
            for kx in range(3):
                t = ky * 3 + kx
                r2 = r2 + hp[:, ky * Wp + kx: ky * Wp + kx + L] * wo[:, t:t + 1]
        hi_val = jnp.concatenate([r2[:, y * Wp: y * Wp + W] for y in range(H)], axis=1)
        hi_ref[0] = hi_val.astype(hi_ref.dtype)

    return kernel


def rel_mutifreq_heads_forward(high_f, low_f, params, num_heads):
    B, C, H, W = high_f.shape
    Hl, Wl = low_f.shape[2], low_f.shape[3]
    N_hi, N_lo = H * W, Hl * Wl
    Hp, Wp = H + 2, W + 2
    P = Hp * Wp
    L = P - 2 * (Wp + 1)

    # Only wrapper-side data prep: 1-pixel zero pad of the NCHW high input
    # (flattened to (B, C, Hp*Wp)); low_f reshape is free.
    xh_p = jnp.pad(high_f, ((0, 0), (0, 0), (1, 1), (1, 1))).reshape(B, C, P)
    xl = low_f.reshape(B, C, N_lo)

    # Static validity mask over the output window (pad columns -> 0).
    vmask = jnp.asarray((np.arange(L) % Wp) < W, dtype=jnp.float32).reshape(1, L)

    kernel = make_fused_kernel(H, W, C, num_heads)
    hi_flat, lo_flat = pl.pallas_call(
        kernel,
        out_shape=(jax.ShapeDtypeStruct((B, C, N_hi), high_f.dtype),
                   jax.ShapeDtypeStruct((B, C, N_lo), high_f.dtype)),
        grid=(B,),
        in_specs=[
            pl.BlockSpec((1, C, P), lambda b: (b, 0, 0)),
            pl.BlockSpec((1, C, N_lo), lambda b: (b, 0, 0)),
            pl.BlockSpec((C, 9), lambda b: (0, 0)),
            pl.BlockSpec((C, 9), lambda b: (0, 0)),
            pl.BlockSpec((2 * C, C), lambda b: (0, 0)),
            pl.BlockSpec((2 * C, 1), lambda b: (0, 0)),
            pl.BlockSpec((C, C), lambda b: (0, 0)),
            pl.BlockSpec((C, 1), lambda b: (0, 0)),
            pl.BlockSpec((C, 9), lambda b: (0, 0)),
            pl.BlockSpec((1, L), lambda b: (0, 0)),
        ],
        out_specs=(pl.BlockSpec((1, C, N_hi), lambda b: (b, 0, 0)),
                   pl.BlockSpec((1, C, N_lo), lambda b: (b, 0, 0))),
        compiler_params=pltpu.CompilerParams(dimension_semantics=("parallel",)),
    )(xh_p, xl,
      params["dwq0"], params["dwq1"],
      params["w_kv_l"], params["b_kv_l"],
      params["w_out_l"], params["b_out_l"],
      params["dwo"], vmask)

    return hi_flat.reshape(B, C, H, W), lo_flat.reshape(B, C, Hl, Wl)


# ----------------------------------------------------------------------------
# Parameters: PyTorch layout -> kernel layout (permutations, scale folding,
# bf16 pre-cast of matmul weights).
# ----------------------------------------------------------------------------
def init_pt_params(key, in_channels):
    C = in_channels
    k1, k2, k3, k4, k5, k6 = jax.random.split(key, 6)
    w_qkv_h = jax.random.normal(k1, (2 * C, 3, 3), jnp.float32) * math.sqrt(2.0 / (3 * 3 * 2 * C))
    w_qkv_l = jax.random.normal(k2, (2 * C, C), jnp.float32) * math.sqrt(2.0 / (2 * C))
    w_out_h = jax.random.normal(k3, (C, 3, 3), jnp.float32) * math.sqrt(2.0 / (3 * 3 * C))
    w_out_l = jax.random.normal(k4, (C, C), jnp.float32) * math.sqrt(2.0 / C)
    # PyTorch init zeroes the biases; small random biases here so the bias path
    # is exercised by the correctness check (forward semantics identical).
    b_qkv_l = 0.1 * jax.random.normal(k5, (2 * C,), jnp.float32)
    b_out_l = 0.1 * jax.random.normal(k6, (C,), jnp.float32)
    return {"w_qkv_h": w_qkv_h, "w_qkv_l": w_qkv_l, "b_qkv_l": b_qkv_l,
            "w_out_h": w_out_h, "w_out_l": w_out_l, "b_out_l": b_out_l}


def prepare_params(pt, num_heads):
    C = pt["w_out_l"].shape[0]
    assert C % num_heads == 0
    hd = C // num_heads
    assert hd % 2 == 0, "head_dim must be even (grouped conv channel multiplier 2)"
    hh = hd // 2
    C2 = C // 2
    scale = float(hd) ** (-0.5)

    # slot-major raw channel order:  g = m*(C/2) + n*hh + f  <->  PyTorch channel n*hd + 2f + m
    g = np.arange(C)
    m = g // C2
    rest = g % C2
    n = rest // hh
    f = rest % hh
    perm_slot = n * hd + 2 * f + m            # raw index -> PyTorch channel

    # to_qkv_h grouped conv (groups=C, multiplier 2): output 2i+m reads input i
    # with weight w_qkv_h[2i+m].  One (C, 9) tap table per multiplier slot.
    dwq0 = pt["w_qkv_h"][0::2].reshape(C, 9)
    dwq1 = pt["w_qkv_h"][1::2].reshape(C, 9)
    # Input channels [0, C/2) produce q -> fold the attention scale into them.
    row_scale = jnp.where(jnp.arange(C) < C2, scale, 1.0).astype(jnp.float32)[:, None]
    dwq0 = (dwq0 * row_scale).astype(jnp.float32)
    dwq1 = (dwq1 * row_scale).astype(jnp.float32)

    # to_qkv_l: permute k rows into slot-major raw order (matches q's dim order);
    # v_l rows stay standard.  Weight pre-cast to bf16, bias stays f32.
    wk = pt["w_qkv_l"][:C][perm_slot]
    bk = pt["b_qkv_l"][:C][perm_slot]
    wv = pt["w_qkv_l"][C:]
    bv = pt["b_qkv_l"][C:]
    w_kv_l = jnp.concatenate([wk, wv], axis=0).astype(jnp.bfloat16)          # (2C, C)
    b_kv_l = jnp.concatenate([bk, bv], axis=0).reshape(2 * C, 1).astype(jnp.float32)

    # out_l consumes the slot-major-ordered low output: permute its columns.
    w_out_l = pt["w_out_l"][:, perm_slot].astype(jnp.bfloat16)               # (C, C)
    b_out_l = pt["b_out_l"].reshape(C, 1).astype(jnp.float32)

    # out_h depthwise: standard PyTorch channel order.
    dwo = pt["w_out_h"].reshape(C, 9).astype(jnp.float32)

    return {"dwq0": dwq0, "dwq1": dwq1,
            "w_kv_l": w_kv_l, "b_kv_l": b_kv_l,
            "w_out_l": w_out_l, "b_out_l": b_out_l,
            "dwo": dwo}


# ----------------------------------------------------------------------------
# Pure-JAX reference (PyTorch semantics) for the correctness check.
# ----------------------------------------------------------------------------
def reference_forward(high_f, low_f, pt, num_heads):
    B, C, H, W = high_f.shape
    Hl, Wl = low_f.shape[2], low_f.shape[3]
    hd = C // num_heads
    scale = float(hd) ** (-0.5)
    dn = ("NCHW", "OIHW", "NCHW")

    qkv_h = jax.lax.conv_general_dilated(
        high_f, pt["w_qkv_h"][:, None, :, :], (1, 1), "SAME",
        dimension_numbers=dn, feature_group_count=C)
    q_h, v_h = qkv_h[:, :C], qkv_h[:, C:]

    qkv_l = jax.lax.conv_general_dilated(
        low_f, pt["w_qkv_l"][:, :, None, None], (1, 1), "VALID",
        dimension_numbers=dn) + pt["b_qkv_l"][None, :, None, None]
    k_l, v_l = qkv_l[:, :C], qkv_l[:, C:]

    qh = q_h.reshape(B, num_heads, hd, H * W)
    vh = v_h.reshape(B, num_heads, hd, H * W)
    kl = k_l.reshape(B, num_heads, hd, Hl * Wl)
    vl = v_l.reshape(B, num_heads, hd, Hl * Wl)

    attn = jnp.einsum("bncX,bncy->bnXy", qh, kl) * scale
    attn = jax.nn.softmax(attn, axis=-1)
    low = jnp.einsum("bnXy,bncX->bncy", attn, vh).reshape(B, C, Hl, Wl)
    high = jnp.einsum("bnXy,bncy->bncX", attn, vl).reshape(B, C, H, W)

    low_out = jax.lax.conv_general_dilated(
        low, pt["w_out_l"][:, :, None, None], (1, 1), "VALID",
        dimension_numbers=dn) + pt["b_out_l"][None, :, None, None]
    high_out = jax.lax.conv_general_dilated(
        high, pt["w_out_h"][:, None, :, :], (1, 1), "SAME",
        dimension_numbers=dn, feature_group_count=C)
    return high_out, low_out


if __name__ == "__main__":
    B, C, H, W = 2, 32, 16, 16
    num_heads = 4

    key = jax.random.PRNGKey(0)
    k_hf, k_lf, k_p = jax.random.split(key, 3)
    high_f = jax.random.normal(k_hf, (B, C, H, W), jnp.float32)
    low_f = jax.random.normal(k_lf, (B, C, H // 2, W // 2), jnp.float32)

    pt_params = init_pt_params(k_p, C)
    params = prepare_params(pt_params, num_heads)

    fwd = jax.jit(functools.partial(rel_mutifreq_heads_forward, num_heads=num_heads))
    high_out, low_out = fwd(high_f, low_f, params)
    jax.block_until_ready((high_out, low_out))

    assert high_out.shape == (B, C, H, W), high_out.shape
    assert low_out.shape == (B, C, H // 2, W // 2), low_out.shape
    assert high_out.dtype == jnp.float32 and low_out.dtype == jnp.float32

    ref_high, ref_low = reference_forward(high_f, low_f, pt_params, num_heads)
    np.testing.assert_allclose(np.asarray(high_out), np.asarray(ref_high), rtol=5e-2, atol=2e-2)
    np.testing.assert_allclose(np.asarray(low_out), np.asarray(ref_low), rtol=5e-2, atol=2e-2)

    print("KERNEL_OK")
</pallas_src>

<mosaic_0001>
module attributes {stable_mosaic.version = 11 : i64} {
  func.func @kernel(%arg0: i32, %arg1: memref<1x32x324xf32, #tpu.memory_space<vmem>>, %arg2: memref<1x32x64xf32, #tpu.memory_space<vmem>>, %arg3: memref<32x9xf32, #tpu.memory_space<vmem>>, %arg4: memref<32x9xf32, #tpu.memory_space<vmem>>, %arg5: memref<64x32xbf16, #tpu.memory_space<vmem>>, %arg6: memref<64x1xf32, #tpu.memory_space<vmem>>, %arg7: memref<32x32xbf16, #tpu.memory_space<vmem>>, %arg8: memref<32x1xf32, #tpu.memory_space<vmem>>, %arg9: memref<32x9xf32, #tpu.memory_space<vmem>>, %arg10: memref<1x286xf32, #tpu.memory_space<vmem>>, %arg11: memref<1x32x256xf32, #tpu.memory_space<vmem>>, %arg12: memref<1x32x64xf32, #tpu.memory_space<vmem>>) attributes {dimension_semantics = [#tpu.dimension_semantics<parallel>], iteration_bounds = array<i64: 2>, scalar_prefetch = 0 : i64, scratch_operands = 0 : i64, tpu.core_type = #tpu.core_type<tc>, window_params = [{transform_indices = @transform_0, window_bounds = array<i64: 1, 32, 324>}, {transform_indices = @transform_1, window_bounds = array<i64: 1, 32, 64>}, {pipeline_mode = #tpu.pipeline_mode<synchronous>, transform_indices = @transform_2, window_bounds = array<i64: 32, 9>}, {pipeline_mode = #tpu.pipeline_mode<synchronous>, transform_indices = @transform_3, window_bounds = array<i64: 32, 9>}, {pipeline_mode = #tpu.pipeline_mode<synchronous>, transform_indices = @transform_4, window_bounds = array<i64: 64, 32>}, {pipeline_mode = #tpu.pipeline_mode<synchronous>, transform_indices = @transform_5, window_bounds = array<i64: 64, 1>}, {pipeline_mode = #tpu.pipeline_mode<synchronous>, transform_indices = @transform_6, window_bounds = array<i64: 32, 32>}, {pipeline_mode = #tpu.pipeline_mode<synchronous>, transform_indices = @transform_7, window_bounds = array<i64: 32, 1>}, {pipeline_mode = #tpu.pipeline_mode<synchronous>, transform_indices = @transform_8, window_bounds = array<i64: 32, 9>}, {pipeline_mode = #tpu.pipeline_mode<synchronous>, transform_indices = @transform_9, window_bounds = array<i64: 1, 286>}, {transform_indices = @transform_10, window_bounds = array<i64: 1, 32, 256>}, {transform_indices = @transform_11, window_bounds = array<i64: 1, 32, 64>}]} {
    %c0 = arith.constant 0 : index
    %c0_0 = arith.constant 0 : index
    %c0_1 = arith.constant 0 : index
    %0 = vector.load %arg1[%c0, %c0_0, %c0_1] : memref<1x32x324xf32, #tpu.memory_space<vmem>>, vector<1x32x324xf32>
    %1 = vector.shape_cast %0 : vector<1x32x324xf32> to vector<32x324xf32>
    %c0_2 = arith.constant 0 : index
    %c0_3 = arith.constant 0 : index
    %2 = vector.load %arg3[%c0_2, %c0_3] : memref<32x9xf32, #tpu.memory_space<vmem>>, vector<32x9xf32>
    %c0_4 = arith.constant 0 : index
    %c0_5 = arith.constant 0 : index
    %3 = vector.load %arg4[%c0_4, %c0_5] : memref<32x9xf32, #tpu.memory_space<vmem>>, vector<32x9xf32>
    %cst = arith.constant 0.000000e+00 : f32
    %4 = vector.broadcast %cst : f32 to vector<32x286xf32>
    %cst_6 = arith.constant 0.000000e+00 : f32
    %5 = vector.broadcast %cst_6 : f32 to vector<32x286xf32>
    %6 = vector.extract_strided_slice %1 {offsets = [0, 0], sizes = [32, 286], strides = [1, 1]} : vector<32x324xf32> to vector<32x286xf32>
    %7 = vector.extract_strided_slice %2 {offsets = [0, 0], sizes = [32, 1], strides = [1, 1]} : vector<32x9xf32> to vector<32x1xf32>
    %8 = vector.broadcast %7 : vector<32x1xf32> to vector<32x286xf32>
    %9 = arith.mulf %6, %8 : vector<32x286xf32>
    %10 = arith.addf %4, %9 : vector<32x286xf32>
    %11 = vector.extract_strided_slice %3 {offsets = [0, 0], sizes = [32, 1], strides = [1, 1]} : vector<32x9xf32> to vector<32x1xf32>
    %12 = vector.broadcast %11 : vector<32x1xf32> to vector<32x286xf32>
    %13 = arith.mulf %6, %12 : vector<32x286xf32>
    %14 = arith.addf %5, %13 : vector<32x286xf32>
    %15 = vector.extract_strided_slice %1 {offsets = [0, 1], sizes = [32, 286], strides = [1, 1]} : vector<32x324xf32> to vector<32x286xf32>
    %16 = vector.extract_strided_slice %2 {offsets = [0, 1], sizes = [32, 1], strides = [1, 1]} : vector<32x9xf32> to vector<32x1xf32>
    %17 = vector.broadcast %16 : vector<32x1xf32> to vector<32x286xf32>
    %18 = arith.mulf %15, %17 : vector<32x286xf32>
    %19 = arith.addf %10, %18 : vector<32x286xf32>
    %20 = vector.extract_strided_slice %3 {offsets = [0, 1], sizes = [32, 1], strides = [1, 1]} : vector<32x9xf32> to vector<32x1xf32>
    %21 = vector.broadcast %20 : vector<32x1xf32> to vector<32x286xf32>
    %22 = arith.mulf %15, %21 : vector<32x286xf32>
    %23 = arith.addf %14, %22 : vector<32x286xf32>
    %24 = vector.extract_strided_slice %1 {offsets = [0, 2], sizes = [32, 286], strides = [1, 1]} : vector<32x324xf32> to vector<32x286xf32>
    %25 = vector.extract_strided_slice %2 {offsets = [0, 2], sizes = [32, 1], strides = [1, 1]} : vector<32x9xf32> to vector<32x1xf32>
    %26 = vector.broadcast %25 : vector<32x1xf32> to vector<32x286xf32>
    %27 = arith.mulf %24, %26 : vector<32x286xf32>
    %28 = arith.addf %19, %27 : vector<32x286xf32>
    %29 = vector.extract_strided_slice %3 {offsets = [0, 2], sizes = [32, 1], strides = [1, 1]} : vector<32x9xf32> to vector<32x1xf32>
    %30 = vector.broadcast %29 : vector<32x1xf32> to vector<32x286xf32>
    %31 = arith.mulf %24, %30 : vector<32x286xf32>
    %32 = arith.addf %23, %31 : vector<32x286xf32>
    %33 = vector.extract_strided_slice %1 {offsets = [0, 18], sizes = [32, 286], strides = [1, 1]} : vector<32x324xf32> to vector<32x286xf32>
    %34 = vector.extract_strided_slice %2 {offsets = [0, 3], sizes = [32, 1], strides = [1, 1]} : vector<32x9xf32> to vector<32x1xf32>
    %35 = vector.broadcast %34 : vector<32x1xf32> to vector<32x286xf32>
    %36 = arith.mulf %33, %35 : vector<32x286xf32>
    %37 = arith.addf %28, %36 : vector<32x286xf32>
    %38 = vector.extract_strided_slice %3 {offsets = [0, 3], sizes = [32, 1], strides = [1, 1]} : vector<32x9xf32> to vector<32x1xf32>
    %39 = vector.broadcast %38 : vector<32x1xf32> to vector<32x286xf32>
    %40 = arith.mulf %33, %39 : vector<32x286xf32>
    %41 = arith.addf %32, %40 : vector<32x286xf32>
    %42 = vector.extract_strided_slice %1 {offsets = [0, 19], sizes = [32, 286], strides = [1, 1]} : vector<32x324xf32> to vector<32x286xf32>
    %43 = vector.extract_strided_slice %2 {offsets = [0, 4], sizes = [32, 1], strides = [1, 1]} : vector<32x9xf32> to vector<32x1xf32>
    %44 = vector.broadcast %43 : vector<32x1xf32> to vector<32x286xf32>
    %45 = arith.mulf %42, %44 : vector<32x286xf32>
    %46 = arith.addf %37, %45 : vector<32x286xf32>
    %47 = vector.extract_strided_slice %3 {offsets = [0, 4], sizes = [32, 1], strides = [1, 1]} : vector<32x9xf32> to vector<32x1xf32>
    %48 = vector.broadcast %47 : vector<32x1xf32> to vector<32x286xf32>
    %49 = arith.mulf %42, %48 : vector<32x286xf32>
    %50 = arith.addf %41, %49 : vector<32x286xf32>
    %51 = vector.extract_strided_slice %1 {offsets = [0, 20], sizes = [32, 286], strides = [1, 1]} : vector<32x324xf32> to vector<32x286xf32>
    %52 = vector.extract_strided_slice %2 {offsets = [0, 5], sizes = [32, 1], strides = [1, 1]} : vector<32x9xf32> to vector<32x1xf32>
    %53 = vector.broadcast %52 : vector<32x1xf32> to vector<32x286xf32>
    %54 = arith.mulf %51, %53 : vector<32x286xf32>
    %55 = arith.addf %46, %54 : vector<32x286xf32>
    %56 = vector.extract_strided_slice %3 {offsets = [0, 5], sizes = [32, 1], strides = [1, 1]} : vector<32x9xf32> to vector<32x1xf32>
    %57 = vector.broadcast %56 : vector<32x1xf32> to vector<32x286xf32>
    %58 = arith.mulf %51, %57 : vector<32x286xf32>
    %59 = arith.addf %50, %58 : vector<32x286xf32>
    %60 = vector.extract_strided_slice %1 {offsets = [0, 36], sizes = [32, 286], strides = [1, 1]} : vector<32x324xf32> to vector<32x286xf32>
    %61 = vector.extract_strided_slice %2 {offsets = [0, 6], sizes = [32, 1], strides = [1, 1]} : vector<32x9xf32> to vector<32x1xf32>
    %62 = vector.broadcast %61 : vector<32x1xf32> to vector<32x286xf32>
    %63 = arith.mulf %60, %62 : vector<32x286xf32>
    %64 = arith.addf %55, %63 : vector<32x286xf32>
    %65 = vector.extract_strided_slice %3 {offsets = [0, 6], sizes = [32, 1], strides = [1, 1]} : vector<32x9xf32> to vector<32x1xf32>
    %66 = vector.broadcast %65 : vector<32x1xf32> to vector<32x286xf32>
    %67 = arith.mulf %60, %66 : vector<32x286xf32>
    %68 = arith.addf %59, %67 : vector<32x286xf32>
    %69 = vector.extract_strided_slice %1 {offsets = [0, 37], sizes = [32, 286], strides = [1, 1]} : vector<32x324xf32> to vector<32x286xf32>
    %70 = vector.extract_strided_slice %2 {offsets = [0, 7], sizes = [32, 1], strides = [1, 1]} : vector<32x9xf32> to vector<32x1xf32>
    %71 = vector.broadcast %70 : vector<32x1xf32> to vector<32x286xf32>
    %72 = arith.mulf %69, %71 : vector<32x286xf32>
    %73 = arith.addf %64, %72 : vector<32x286xf32>
    %74 = vector.extract_strided_slice %3 {offsets = [0, 7], sizes = [32, 1], strides = [1, 1]} : vector<32x9xf32> to vector<32x1xf32>
    %75 = vector.broadcast %74 : vector<32x1xf32> to vector<32x286xf32>
    %76 = arith.mulf %69, %75 : vector<32x286xf32>
    %77 = arith.addf %68, %76 : vector<32x286xf32>
    %78 = vector.extract_strided_slice %1 {offsets = [0, 38], sizes = [32, 286], strides = [1, 1]} : vector<32x324xf32> to vector<32x286xf32>
    %79 = vector.extract_strided_slice %2 {offsets = [0, 8], sizes = [32, 1], strides = [1, 1]} : vector<32x9xf32> to vector<32x1xf32>
    %80 = vector.broadcast %79 : vector<32x1xf32> to vector<32x286xf32>
    %81 = arith.mulf %78, %80 : vector<32x286xf32>
    %82 = arith.addf %73, %81 : vector<32x286xf32>
    %83 = vector.extract_strided_slice %3 {offsets = [0, 8], sizes = [32, 1], strides = [1, 1]} : vector<32x9xf32> to vector<32x1xf32>
    %84 = vector.broadcast %83 : vector<32x1xf32> to vector<32x286xf32>
    %85 = arith.mulf %78, %84 : vector<32x286xf32>
    %86 = arith.addf %77, %85 : vector<32x286xf32>
    %c0_7 = arith.constant 0 : index
    %c0_8 = arith.constant 0 : index
    %87 = vector.load %arg10[%c0_7, %c0_8] : memref<1x286xf32, #tpu.memory_space<vmem>>, vector<1x286xf32>
    %88 = vector.extract_strided_slice %82 {offsets = [0, 0], sizes = [16, 286], strides = [1, 1]} : vector<32x286xf32> to vector<16x286xf32>
    %89 = vector.shape_cast %88 : vector<16x286xf32> to vector<4x4x286xf32>
    %90 = arith.truncf %89 : vector<4x4x286xf32> to vector<4x4x286xbf16>
    %91 = vector.extract_strided_slice %86 {offsets = [0, 0], sizes = [16, 286], strides = [1, 1]} : vector<32x286xf32> to vector<16x286xf32>
    %92 = vector.shape_cast %91 : vector<16x286xf32> to vector<4x4x286xf32>
    %93 = arith.truncf %92 : vector<4x4x286xf32> to vector<4x4x286xbf16>
    %94 = vector.extract_strided_slice %82 {offsets = [16, 0], sizes = [16, 286], strides = [1, 1]} : vector<32x286xf32> to vector<16x286xf32>
    %95 = vector.broadcast %87 : vector<1x286xf32> to vector<16x286xf32>
    %96 = arith.mulf %94, %95 : vector<16x286xf32>
    %97 = vector.shape_cast %96 : vector<16x286xf32> to vector<4x4x286xf32>
    %98 = arith.truncf %97 : vector<4x4x286xf32> to vector<4x4x286xbf16>
    %99 = vector.extract_strided_slice %86 {offsets = [16, 0], sizes = [16, 286], strides = [1, 1]} : vector<32x286xf32> to vector<16x286xf32>
    %100 = vector.broadcast %87 : vector<1x286xf32> to vector<16x286xf32>
    %101 = arith.mulf %99, %100 : vector<16x286xf32>
    %102 = vector.shape_cast %101 : vector<16x286xf32> to vector<4x4x286xf32>
    %103 = arith.truncf %102 : vector<4x4x286xf32> to vector<4x4x286xbf16>
    %c0_9 = arith.constant 0 : index
    %c0_10 = arith.constant 0 : index
    %c0_11 = arith.constant 0 : index
    %104 = vector.load %arg2[%c0_9, %c0_10, %c0_11] : memref<1x32x64xf32, #tpu.memory_space<vmem>>, vector<1x32x64xf32>
    %105 = vector.shape_cast %104 : vector<1x32x64xf32> to vector<32x64xf32>
    %106 = arith.truncf %105 : vector<32x64xf32> to vector<32x64xbf16>
    %c0_12 = arith.constant 0 : index
    %c0_13 = arith.constant 0 : index
    %107 = vector.load %arg5[%c0_12, %c0_13] : memref<64x32xbf16, #tpu.memory_space<vmem>>, vector<64x32xbf16>
    %cst_14 = arith.constant dense<0.000000e+00> : vector<64x64xf32>
    %108 = tpu.matmul %107, %106, %cst_14 {dimension_numbers = #tpu.dot_dimension_numbers<[1], [0], [0], [1], [0, 0, 1, 1], [], []>} : vector<64x32xbf16>, vector<32x64xbf16>, vector<64x64xf32> -> vector<64x64xf32>
    %c0_15 = arith.constant 0 : index
    %c0_16 = arith.constant 0 : index
    %109 = vector.load %arg6[%c0_15, %c0_16] : memref<64x1xf32, #tpu.memory_space<vmem>>, vector<64x1xf32>
    %110 = vector.broadcast %109 : vector<64x1xf32> to vector<64x64xf32>
    %111 = arith.addf %108, %110 : vector<64x64xf32>
    %112 = vector.extract_strided_slice %111 {offsets = [0, 0], sizes = [16, 64], strides = [1, 1]} : vector<64x64xf32> to vector<16x64xf32>
    %113 = vector.shape_cast %112 : vector<16x64xf32> to vector<4x4x64xf32>
    %114 = arith.truncf %113 : vector<4x4x64xf32> to vector<4x4x64xbf16>
    %115 = vector.extract_strided_slice %111 {offsets = [16, 0], sizes = [16, 64], strides = [1, 1]} : vector<64x64xf32> to vector<16x64xf32>
    %116 = vector.shape_cast %115 : vector<16x64xf32> to vector<4x4x64xf32>
    %117 = arith.truncf %116 : vector<4x4x64xf32> to vector<4x4x64xbf16>
    %118 = vector.extract_strided_slice %111 {offsets = [32, 0], sizes = [32, 64], strides = [1, 1]} : vector<64x64xf32> to vector<32x64xf32>
    %119 = vector.shape_cast %118 : vector<32x64xf32> to vector<4x8x64xf32>
    %120 = arith.truncf %119 : vector<4x8x64xf32> to vector<4x8x64xbf16>
    %cst_17 = arith.constant dense<0.000000e+00> : vector<4x64x286xf32>
    %121 = tpu.matmul %114, %90, %cst_17 {dimension_numbers = #tpu.dot_dimension_numbers<[1], [1], [2], [2], [0, 0, 0, 2, 1, 2], [0], [0]>} : vector<4x4x64xbf16>, vector<4x4x286xbf16>, vector<4x64x286xf32> -> vector<4x64x286xf32>
    %cst_18 = arith.constant dense<0.000000e+00> : vector<4x64x286xf32>
    %122 = tpu.matmul %117, %93, %cst_18 {dimension_numbers = #tpu.dot_dimension_numbers<[1], [1], [2], [2], [0, 0, 0, 2, 1, 2], [0], [0]>} : vector<4x4x64xbf16>, vector<4x4x286xbf16>, vector<4x64x286xf32> -> vector<4x64x286xf32>
    %123 = arith.addf %121, %122 : vector<4x64x286xf32>
    %cst_19 = arith.constant dense<0xFF800000> : vector<4x286xf32>
    %124 = vector.multi_reduction <maximumf>, %123, %cst_19 [1] : vector<4x64x286xf32> to vector<4x286xf32>
    %125 = vector.shape_cast %124 : vector<4x286xf32> to vector<4x1x286xf32>
    %126 = vector.broadcast %125 : vector<4x1x286xf32> to vector<4x64x286xf32>
    %127 = arith.subf %123, %126 : vector<4x64x286xf32>
    %128 = math.exp %127 : vector<4x64x286xf32>
    %cst_20 = arith.constant dense<0.000000e+00> : vector<4x286xf32>
    %129 = vector.multi_reduction <add>, %128, %cst_20 [1] : vector<4x64x286xf32> to vector<4x286xf32>
    %130 = vector.shape_cast %129 : vector<4x286xf32> to vector<4x1x286xf32>
    %131 = tpu.reciprocal %130 : vector<4x1x286xf32> -> vector<4x1x286xf32>
    %132 = vector.broadcast %131 : vector<4x1x286xf32> to vector<4x64x286xf32>
    %133 = arith.mulf %128, %132 : vector<4x64x286xf32>
    %134 = arith.truncf %133 : vector<4x64x286xf32> to vector<4x64x286xbf16>
    %cst_21 = arith.constant dense<0.000000e+00> : vector<4x4x64xf32>
    %135 = tpu.matmul %98, %134, %cst_21 {dimension_numbers = #tpu.dot_dimension_numbers<[2], [2], [1], [1], [0, 0, 0, 1, 1, 1], [0], [0]>} : vector<4x4x286xbf16>, vector<4x64x286xbf16>, vector<4x4x64xf32> -> vector<4x4x64xf32>
    %cst_22 = arith.constant dense<0.000000e+00> : vector<4x4x64xf32>
    %136 = tpu.matmul %103, %134, %cst_22 {dimension_numbers = #tpu.dot_dimension_numbers<[2], [2], [1], [1], [0, 0, 0, 1, 1, 1], [0], [0]>} : vector<4x4x286xbf16>, vector<4x64x286xbf16>, vector<4x4x64xf32> -> vector<4x4x64xf32>
    %137 = vector.shape_cast %135 : vector<4x4x64xf32> to vector<16x64xf32>
    %138 = vector.shape_cast %136 : vector<4x4x64xf32> to vector<16x64xf32>
    %139 = tpu.concatenate %137, %138 in 0 : vector<16x64xf32>, vector<16x64xf32> -> vector<32x64xf32>
    %cst_23 = arith.constant dense<0.000000e+00> : vector<4x8x286xf32>
    %140 = tpu.matmul %120, %134, %cst_23 {dimension_numbers = #tpu.dot_dimension_numbers<[2], [1], [1], [2], [0, 0, 0, 1, 1, 2], [0], [0]>} : vector<4x8x64xbf16>, vector<4x64x286xbf16>, vector<4x8x286xf32> -> vector<4x8x286xf32>
    %141 = vector.shape_cast %140 : vector<4x8x286xf32> to vector<32x286xf32>
    %142 = vector.broadcast %87 : vector<1x286xf32> to vector<32x286xf32>
    %143 = arith.mulf %141, %142 : vector<32x286xf32>
    %c0_24 = arith.constant 0 : index
    %c0_25 = arith.constant 0 : index
    %144 = vector.load %arg7[%c0_24, %c0_25] : memref<32x32xbf16, #tpu.memory_space<vmem>>, vector<32x32xbf16>
    %145 = arith.truncf %139 : vector<32x64xf32> to vector<32x64xbf16>
    %cst_26 = arith.constant dense<0.000000e+00> : vector<32x64xf32>
    %146 = tpu.matmul %144, %145, %cst_26 {dimension_numbers = #tpu.dot_dimension_numbers<[1], [0], [0], [1], [0, 0, 1, 1], [], []>} : vector<32x32xbf16>, vector<32x64xbf16>, vector<32x64xf32> -> vector<32x64xf32>
    %c0_27 = arith.constant 0 : index
    %c0_28 = arith.constant 0 : index
    %147 = vector.load %arg8[%c0_27, %c0_28] : memref<32x1xf32, #tpu.memory_space<vmem>>, vector<32x1xf32>
    %148 = vector.broadcast %147 : vector<32x1xf32> to vector<32x64xf32>
    %149 = arith.addf %146, %148 : vector<32x64xf32>
    %c0_29 = arith.constant 0 : index
    %c0_30 = arith.constant 0 : index
    %c0_31 = arith.constant 0 : index
    %150 = vector.load %arg12[%c0_29, %c0_30, %c0_31] : memref<1x32x64xf32, #tpu.memory_space<vmem>>, vector<1x32x64xf32>
    %151 = vector.shape_cast %150 : vector<1x32x64xf32> to vector<32x64xf32>
    %152 = vector.shape_cast %149 : vector<32x64xf32> to vector<1x32x64xf32>
    tpu.vector_store %arg12[%c0_29, %c0_30, %c0_31], %152 {strides = array<i32>} : memref<1x32x64xf32, #tpu.memory_space<vmem>>, vector<1x32x64xf32>,
    %cst_32 = arith.constant 0.000000e+00 : f32
    %153 = vector.broadcast %cst_32 : f32 to vector<32x19xf32>
    %154 = tpu.concatenate %153, %143, %153 in 1 : vector<32x19xf32>, vector<32x286xf32>, vector<32x19xf32> -> vector<32x324xf32>
    %c0_33 = arith.constant 0 : index
    %c0_34 = arith.constant 0 : index
    %155 = vector.load %arg9[%c0_33, %c0_34] : memref<32x9xf32, #tpu.memory_space<vmem>>, vector<32x9xf32>
    %cst_35 = arith.constant 0.000000e+00 : f32
    %156 = vector.broadcast %cst_35 : f32 to vector<32x286xf32>
    %157 = vector.extract_strided_slice %154 {offsets = [0, 0], sizes = [32, 286], strides = [1, 1]} : vector<32x324xf32> to vector<32x286xf32>
    %158 = vector.extract_strided_slice %155 {offsets = [0, 0], sizes = [32, 1], strides = [1, 1]} : vector<32x9xf32> to vector<32x1xf32>
    %159 = vector.broadcast %158 : vector<32x1xf32> to vector<32x286xf32>
    %160 = arith.mulf %157, %159 : vector<32x286xf32>
    %161 = arith.addf %156, %160 : vector<32x286xf32>
    %162 = vector.extract_strided_slice %154 {offsets = [0, 1], sizes = [32, 286], strides = [1, 1]} : vector<32x324xf32> to vector<32x286xf32>
    %163 = vector.extract_strided_slice %155 {offsets = [0, 1], sizes = [32, 1], strides = [1, 1]} : vector<32x9xf32> to vector<32x1xf32>
    %164 = vector.broadcast %163 : vector<32x1xf32> to vector<32x286xf32>
    %165 = arith.mulf %162, %164 : vector<32x286xf32>
    %166 = arith.addf %161, %165 : vector<32x286xf32>
    %167 = vector.extract_strided_slice %154 {offsets = [0, 2], sizes = [32, 286], strides = [1, 1]} : vector<32x324xf32> to vector<32x286xf32>
    %168 = vector.extract_strided_slice %155 {offsets = [0, 2], sizes = [32, 1], strides = [1, 1]} : vector<32x9xf32> to vector<32x1xf32>
    %169 = vector.broadcast %168 : vector<32x1xf32> to vector<32x286xf32>
    %170 = arith.mulf %167, %169 : vector<32x286xf32>
    %171 = arith.addf %166, %170 : vector<32x286xf32>
    %172 = vector.extract_strided_slice %154 {offsets = [0, 18], sizes = [32, 286], strides = [1, 1]} : vector<32x324xf32> to vector<32x286xf32>
    %173 = vector.extract_strided_slice %155 {offsets = [0, 3], sizes = [32, 1], strides = [1, 1]} : vector<32x9xf32> to vector<32x1xf32>
    %174 = vector.broadcast %173 : vector<32x1xf32> to vector<32x286xf32>
    %175 = arith.mulf %172, %174 : vector<32x286xf32>
    %176 = arith.addf %171, %175 : vector<32x286xf32>
    %177 = vector.extract_strided_slice %154 {offsets = [0, 19], sizes = [32, 286], strides = [1, 1]} : vector<32x324xf32> to vector<32x286xf32>
    %178 = vector.extract_strided_slice %155 {offsets = [0, 4], sizes = [32, 1], strides = [1, 1]} : vector<32x9xf32> to vector<32x1xf32>
    %179 = vector.broadcast %178 : vector<32x1xf32> to vector<32x286xf32>
    %180 = arith.mulf %177, %179 : vector<32x286xf32>
    %181 = arith.addf %176, %180 : vector<32x286xf32>
    %182 = vector.extract_strided_slice %154 {offsets = [0, 20], sizes = [32, 286], strides = [1, 1]} : vector<32x324xf32> to vector<32x286xf32>
    %183 = vector.extract_strided_slice %155 {offsets = [0, 5], sizes = [32, 1], strides = [1, 1]} : vector<32x9xf32> to vector<32x1xf32>
    %184 = vector.broadcast %183 : vector<32x1xf32> to vector<32x286xf32>
    %185 = arith.mulf %182, %184 : vector<32x286xf32>
    %186 = arith.addf %181, %185 : vector<32x286xf32>
    %187 = vector.extract_strided_slice %154 {offsets = [0, 36], sizes = [32, 286], strides = [1, 1]} : vector<32x324xf32> to vector<32x286xf32>
    %188 = vector.extract_strided_slice %155 {offsets = [0, 6], sizes = [32, 1], strides = [1, 1]} : vector<32x9xf32> to vector<32x1xf32>
    %189 = vector.broadcast %188 : vector<32x1xf32> to vector<32x286xf32>
    %190 = arith.mulf %187, %189 : vector<32x286xf32>
    %191 = arith.addf %186, %190 : vector<32x286xf32>
    %192 = vector.extract_strided_slice %154 {offsets = [0, 37], sizes = [32, 286], strides = [1, 1]} : vector<32x324xf32> to vector<32x286xf32>
    %193 = vector.extract_strided_slice %155 {offsets = [0, 7], sizes = [32, 1], strides = [1, 1]} : vector<32x9xf32> to vector<32x1xf32>
    %194 = vector.broadcast %193 : vector<32x1xf32> to vector<32x286xf32>
    %195 = arith.mulf %192, %194 : vector<32x286xf32>
    %196 = arith.addf %191, %195 : vector<32x286xf32>
    %197 = vector.extract_strided_slice %154 {offsets = [0, 38], sizes = [32, 286], strides = [1, 1]} : vector<32x324xf32> to vector<32x286xf32>
    %198 = vector.extract_strided_slice %155 {offsets = [0, 8], sizes = [32, 1], strides = [1, 1]} : vector<32x9xf32> to vector<32x1xf32>
    %199 = vector.broadcast %198 : vector<32x1xf32> to vector<32x286xf32>
    %200 = arith.mulf %197, %199 : vector<32x286xf32>
    %201 = arith.addf %196, %200 : vector<32x286xf32>
    %202 = vector.extract_strided_slice %201 {offsets = [0, 0], sizes = [32, 16], strides = [1, 1]} : vector<32x286xf32> to vector<32x16xf32>
    %203 = vector.extract_strided_slice %201 {offsets = [0, 18], sizes = [32, 16], strides = [1, 1]} : vector<32x286xf32> to vector<32x16xf32>
    %204 = vector.extract_strided_slice %201 {offsets = [0, 36], sizes = [32, 16], strides = [1, 1]} : vector<32x286xf32> to vector<32x16xf32>
    %205 = vector.extract_strided_slice %201 {offsets = [0, 54], sizes = [32, 16], strides = [1, 1]} : vector<32x286xf32> to vector<32x16xf32>
    %206 = vector.extract_strided_slice %201 {offsets = [0, 72], sizes = [32, 16], strides = [1, 1]} : vector<32x286xf32> to vector<32x16xf32>
    %207 = vector.extract_strided_slice %201 {offsets = [0, 90], sizes = [32, 16], strides = [1, 1]} : vector<32x286xf32> to vector<32x16xf32>
    %208 = vector.extract_strided_slice %201 {offsets = [0, 108], sizes = [32, 16], strides = [1, 1]} : vector<32x286xf32> to vector<32x16xf32>
    %209 = vector.extract_strided_slice %201 {offsets = [0, 126], sizes = [32, 16], strides = [1, 1]} : vector<32x286xf32> to vector<32x16xf32>
    %210 = vector.extract_strided_slice %201 {offsets = [0, 144], sizes = [32, 16], strides = [1, 1]} : vector<32x286xf32> to vector<32x16xf32>
    %211 = vector.extract_strided_slice %201 {offsets = [0, 162], sizes = [32, 16], strides = [1, 1]} : vector<32x286xf32> to vector<32x16xf32>
    %212 = vector.extract_strided_slice %201 {offsets = [0, 180], sizes = [32, 16], strides = [1, 1]} : vector<32x286xf32> to vector<32x16xf32>
    %213 = vector.extract_strided_slice %201 {offsets = [0, 198], sizes = [32, 16], strides = [1, 1]} : vector<32x286xf32> to vector<32x16xf32>
    %214 = vector.extract_strided_slice %201 {offsets = [0, 216], sizes = [32, 16], strides = [1, 1]} : vector<32x286xf32> to vector<32x16xf32>
    %215 = vector.extract_strided_slice %201 {offsets = [0, 234], sizes = [32, 16], strides = [1, 1]} : vector<32x286xf32> to vector<32x16xf32>
    %216 = vector.extract_strided_slice %201 {offsets = [0, 252], sizes = [32, 16], strides = [1, 1]} : vector<32x286xf32> to vector<32x16xf32>
    %217 = vector.extract_strided_slice %201 {offsets = [0, 270], sizes = [32, 16], strides = [1, 1]} : vector<32x286xf32> to vector<32x16xf32>
    %218 = tpu.concatenate %202, %203, %204, %205, %206, %207, %208, %209, %210, %211, %212, %213, %214, %215, %216, %217 in 1 : vector<32x16xf32>, vector<32x16xf32>, vector<32x16xf32>, vector<32x16xf32>, vector<32x16xf32>, vector<32x16xf32>, vector<32x16xf32>, vector<32x16xf32>, vector<32x16xf32>, vector<32x16xf32>, vector<32x16xf32>, vector<32x16xf32>, vector<32x16xf32>, vector<32x16xf32>, vector<32x16xf32>, vector<32x16xf32> -> vector<32x256xf32>
    %c0_36 = arith.constant 0 : index
    %c0_37 = arith.constant 0 : index
    %c0_38 = arith.constant 0 : index
    %219 = vector.load %arg11[%c0_36, %c0_37, %c0_38] : memref<1x32x256xf32, #tpu.memory_space<vmem>>, vector<1x32x256xf32>
    %220 = vector.shape_cast %219 : vector<1x32x256xf32> to vector<32x256xf32>
    %221 = vector.shape_cast %218 : vector<32x256xf32> to vector<1x32x256xf32>
    tpu.vector_store %arg11[%c0_36, %c0_37, %c0_38], %221 {strides = array<i32>} : memref<1x32x256xf32, #tpu.memory_space<vmem>>, vector<1x32x256xf32>,
    return
  }
  func.func @transform_0(%arg0: i32) -> (i32, i32, i32) {
    %c0_i32 = arith.constant 0 : i32
    %c0_i32_0 = arith.constant 0 : i32
    %c0_i32_1 = arith.constant 0 : i32
    return %arg0, %c0_i32, %c0_i32_0 : i32, i32, i32
  }
  func.func @transform_1(%arg0: i32) -> (i32, i32, i32) {
    %c0_i32 = arith.constant 0 : i32
    %c0_i32_0 = arith.constant 0 : i32
    %c0_i32_1 = arith.constant 0 : i32
    return %arg0, %c0_i32, %c0_i32_0 : i32, i32, i32
  }
  func.func @transform_2(%arg0: i32) -> (i32, i32) {
    %c0_i32 = arith.constant 0 : i32
    %c0_i32_0 = arith.constant 0 : i32
    %c0_i32_1 = arith.constant 0 : i32
    return %c0_i32, %c0_i32_0 : i32, i32
  }
  func.func @transform_3(%arg0: i32) -> (i32, i32) {
    %c0_i32 = arith.constant 0 : i32
    %c0_i32_0 = arith.constant 0 : i32
    %c0_i32_1 = arith.constant 0 : i32
    return %c0_i32, %c0_i32_0 : i32, i32
  }
  func.func @transform_4(%arg0: i32) -> (i32, i32) {
    %c0_i32 = arith.constant 0 : i32
    %c0_i32_0 = arith.constant 0 : i32
    %c0_i32_1 = arith.constant 0 : i32
    return %c0_i32, %c0_i32_0 : i32, i32
  }
  func.func @transform_5(%arg0: i32) -> (i32, i32) {
    %c0_i32 = arith.constant 0 : i32
    %c0_i32_0 = arith.constant 0 : i32
    %c0_i32_1 = arith.constant 0 : i32
    return %c0_i32, %c0_i32_0 : i32, i32
  }
  func.func @transform_6(%arg0: i32) -> (i32, i32) {
    %c0_i32 = arith.constant 0 : i32
    %c0_i32_0 = arith.constant 0 : i32
    %c0_i32_1 = arith.constant 0 : i32
    return %c0_i32, %c0_i32_0 : i32, i32
  }
  func.func @transform_7(%arg0: i32) -> (i32, i32) {
    %c0_i32 = arith.constant 0 : i32
    %c0_i32_0 = arith.constant 0 : i32
    %c0_i32_1 = arith.constant 0 : i32
    return %c0_i32, %c0_i32_0 : i32, i32
  }
  func.func @transform_8(%arg0: i32) -> (i32, i32) {
    %c0_i32 = arith.constant 0 : i32
    %c0_i32_0 = arith.constant 0 : i32
    %c0_i32_1 = arith.constant 0 : i32
    return %c0_i32, %c0_i32_0 : i32, i32
  }
  func.func @transform_9(%arg0: i32) -> (i32, i32) {
    %c0_i32 = arith.constant 0 : i32
    %c0_i32_0 = arith.constant 0 : i32
    %c0_i32_1 = arith.constant 0 : i32
    return %c0_i32, %c0_i32_0 : i32, i32
  }
  func.func @transform_10(%arg0: i32) -> (i32, i32, i32) {
    %c0_i32 = arith.constant 0 : i32
    %c0_i32_0 = arith.constant 0 : i32
    %c0_i32_1 = arith.constant 0 : i32
    return %arg0, %c0_i32, %c0_i32_0 : i32, i32, i32
  }
  func.func @transform_11(%arg0: i32) -> (i32, i32, i32) {
    %c0_i32 = arith.constant 0 : i32
    %c0_i32_0 = arith.constant 0 : i32
    %c0_i32_1 = arith.constant 0 : i32
    return %arg0, %c0_i32, %c0_i32_0 : i32, i32, i32
  }
}

</mosaic_0001>

<bundles_post_ra>
// kernel: rel_mutifreq_heads_forward.1
= control target key start
LH: loop header
LB: loop body
LE: loop exit
PB: predicated region body
PF: predicated region fallthrough
CT: control target
= control target key end

     0   :  { %s7446_s17 = smov 0   ;;  %s12711_s0 = inlined_call_operand.vmem [shape: f32[2,32,324], index: 0, kind: input, shape index: {}]   ;;  %s12712_s1 = inlined_call_operand.vmem [shape: f32[2,32,64], index: 1, kind: input, shape index: {}]   ;;  %s12713_s2 = inlined_call_operand.vmem [shape: f32[32,9], index: 2, kind: input, shape index: {}]   ;;  %s12714_s3 = inlined_call_operand.vmem [shape: f32[32,9], index: 3, kind: input, shape index: {}]   ;;  %s12715_s4 = inlined_call_operand.vmem [shape: bf16[64,32], index: 4, kind: input, shape index: {}]   ;;  %s12716_s5 = inlined_call_operand.vmem [shape: f32[64,1], index: 5, kind: input, shape index: {}]   ;;  %s12717_s6 = inlined_call_operand.vmem [shape: bf16[32,32], index: 6, kind: input, shape index: {}]   ;;  %s12718_s7 = inlined_call_operand.vmem [shape: f32[32,1], index: 7, kind: input, shape index: {}]   ;;  %s12719_s8 = inlined_call_operand.vmem [shape: f32[32,9], index: 8, kind: input, shape index: {}]   ;;  %s12720_s9 = inlined_call_operand.vmem [shape: f32[1,286], index: 9, kind: input, shape index: {}]   ;;  %s12721_s10 = inlined_call_operand.vmem [shape: f32[2,32,256], index: 10, kind: output, shape index: {0}]   ;;  %s12722_s11 = inlined_call_operand.vmem [shape: f32[2,32,64], index: 11, kind: output, shape index: {1}]  }
   0x1 LB: > { %s6798_s18 = sadd.s32 4294967295, %s7354_s17   ;;  %p6802_p0 = scmp.ge.s32.totalorder %s7354_s17, 1  ;;  %s7354_s17 = sphi %s7446_s17, %s22_s17  }
   0x2   : > { %p350_p1 = scmp.lt.s32.totalorder %s7354_s17, 3 }
   0x4   : > { %p351_p2 = pnand %p6802_p0, %p350_p1 }
   0x6   : > { %354 = sbr.rel (%p351_p2) target bundleno = 4030 (0xfbe), region = 60 }
   0xb   : > { %v7457_v0 = vld [vmem:[%s12714_s3] sm:$0xff]  ;;  %v7462_v1 = vld [vmem:[%s12713_s2 + $0x10] sm:$0xff]  ;;  %v7467_v2 = vld [vmem:[%s12713_s2 + $0x8] sm:$0xff]  ;;  %v12727_v3 = vmov 0   ;;  %v12725_v4 = vmov 1   ;;  %v12723_v10 = vmov 2  }
   0xc   : > { %7008 = vset.pattern.permute.xlu2 %v12727_v3  ;;  %7007 = vset.pattern.permute.xlu1 %v12727_v3  ;;  %v7478_v5 = vld [vmem:[%s12714_s3 + $0x8] sm:$0xff]  ;;  %v7483_v6 = vld [vmem:[%s12713_s2 + $0x18] sm:$0xff]  ;;  %v7488_v7 = vld [vmem:[%s12714_s3 + $0x10] sm:$0xff]  ;;  %p400_p3 = scmp.lt.s32.totalorder %s6798_s18, 1  ;;  %s7359_s22 = smov 127   ;;  %vm1172_vm0 = vcmask 891904  }
   0xd   : > { %7010 = vset.pattern.permute.xlu0 %v12725_v4  ;;  %487 = vperm.xlu2 %7008, %v7457_v0   ;;  %v7496_v8 = vld [vmem:[%s12714_s3 + $0x18] sm:$0xff]  ;;  %v7501_v9 = vld [vmem:[%s12713_s2] sm:$0xff]  ;;  %s7360_s23 = smov 126   ;;  %s7362_s24 = smov 110   ;;  %vm1365_vm1 = vcmask 883712   ;;  %vm593_vm2 = vcmask 1039360  }
   0xe   : > { %453 = vperm.xlu1 %7007, %v7462_v1   ;;  %534 = vperm.xlu0 %7010, %v7467_v2   ;;  %s13606_s18 = smov (!%p400_p3, %s6798_s18), 1  ;;  %s7364_s25 = smov 109   ;;  %vm786_vm3 = vcmask 1031168   ;;  %vm979_vm4 = vcmask 900096   ;;  %vm2412_vm5 = vcmask 261120   ;;  %vm1558_vm6 = vcmask 752640  }
   0xf   : > { %s6968_s16 = smul.u32 96, %s13606_s18  ;;  %s7366_s26 = smov 108   ;;  %vm1751_vm7 = vcmask 744448   ;;  %vm12928_vm8 = vcmask 736256   ;;  %vm2082_vm9 = vcmask 1043456   ;;  %vm2515_vm10 = vcmask 1041408  }
  0x10   : > { %s7370_s14 = smov 91   ;;  %s6958_s15 = sshll.u32 %s13606_s18, 5  ;;  %vm2502_vm11 = vcmask 31744   ;;  %vm3562_vm12 = vcmask 244736  }
  0x11   : > { %s7533_s21 = scalar_lea.vmem %s12711_s0, %s6968_s16  ;;  %s7368_s16 = smov 92  }
  0x12   : > { %v7536_v13 = vld [vmem:[%s7533_s21] sm:$0xff]  ;;  %v7539_v14 = vld [vmem:[%s7533_s21 + $0x10] sm:$0xff]  ;;  %v7542_v15 = vld [vmem:[%s7533_s21 + $0x8] sm:$0xff]  ;;  %s409_s27 = scalar_lea.vmem %s12712_s1, %s6958_s15  ;;  %s7372_s13 = smov 90  }
  0x13   : > { %v7551_v20 = vld [vmem:[%s7533_s21 + $0x18] sm:$0xff]  ;;  %v7554_v21 = vld [vmem:[%s7533_s21 + $0x20] sm:$0xff]  ;;  %v7559_v24 = vld [vmem:[%s7533_s21 + $0x28] sm:$0xff]  ;;  %s7373_s28 = smov 19   ;;  %s7380_s19 = smov 118  }
  0x14   : > { %v7572_v30 = vld [vmem:[%s7533_s21 + $0x38] sm:$0xff]  ;;  %v7575_v32 = vld [vmem:[%s7533_s21 + $0x40] sm:$0xff]  ;;  %v7578_v33 = vld [vmem:[%s7533_s21 + $0x30] sm:$0xff]  ;;  %s7381_s20 = smov 102  }
  0x15   : > { %492 = vperm.xlu2 %7008, %v7478_v5   ;;  %v7587_v37 = vld [vmem:[%s7533_s21 + $0x50] sm:$0xff]  ;;  %v7590_v38 = vld [vmem:[%s7533_s21 + $0x58] sm:$0xff]  ;;  %v7593_v39 = vld [vmem:[%s7533_s21 + $0x48] sm:$0xff] }
  0x16   : > { %458 = vperm.xlu1 %7007, %v7483_v6   ;;  %635 = vperm.xlu0 %7010, %v7488_v7  }
  0x1d   : > { %7009 = vset.pattern.permute.xlu2 %v12725_v4 }
  0x1e   : > { %502 = vperm.xlu1 %7007, %v7496_v8   ;;  %530 = vperm.xlu2 %7009, %v7501_v9  }
  0x1f   : > { %7013 = vset.pattern.permute.xlu0 %v12723_v10 }
  0x20   : > { %727 = vperm.xlu0 %7013, %v7467_v2  }
  0x26   : > { %7011 = vset.pattern.permute.xlu1 %v12725_v4  ;;  %542 = vperm.xlu2 %7009, %v7483_v6  }
  0x27   : > { %538 = vperm.xlu1 %7011, %v7462_v1  }
  0x2e   : > { %631 = vperm.xlu2 %7009, %v7478_v5  }
  0x2f   : > { %627 = vperm.xlu1 %7011, %v7457_v0  }
  0x36   : > { %7012 = vset.pattern.permute.xlu2 %v12723_v10 }
  0x37   : > { %639 = vperm.xlu1 %7011, %v7496_v8   ;;  %723 = vperm.xlu2 %7012, %v7501_v9  }
  0x3f   : > { %7014 = vset.pattern.permute.xlu1 %v12723_v10  ;;  %735 = vperm.xlu2 %7012, %v7483_v6  }
  0x40   : > { %731 = vperm.xlu1 %7014, %v7462_v1  }
  0x67   : > { %v7519_v11 = vpop.permute.xlu2 %487 }
  0x68   : > { %12929 = vst [vmem:[#allocation2_spill] sm:$0xff] %v7519_v11 }
  0x6f   : > { %v7528_v12 = vpop.permute.xlu2 %492 }
  0x70   : > { %12930 = vst [vmem:[#allocation3_spill] sm:$0xff] %v7528_v12 }
  0x78   : > { %v531_v16 = vpop.permute.xlu2 %530 }
  0x79   : > { %v547_v17 = vmul.f32 %v531_v16, %v7539_v14  ;;  %v545_v18 = vmul.f32 %v531_v16, %v7536_v13  ;;  %v546_v19 = vmul.f32 %v531_v16, %v7542_v15 }
  0x7b   : > { %573 = vrot.lane.b32.xlu0 %v547_v17, %s7359_s22  ;;  %569 = vrot.lane.b32.xlu1 %v545_v18, %s7359_s22 }
  0x7c   : > { %571 = vrot.lane.b32.xlu2 %v546_v19, %s7359_s22 }
  0x80   : > { %v7556_v22 = vpop.permute.xlu1 %453  ;;  %v535_v23 = vpop.permute.xlu0 %534 }
  0x81   : > { %12931 = vst [vmem:[#allocation4_spill] sm:$0xff] %v7556_v22  ;;  %v550_v25 = vmul.f32 %v535_v23, %v7559_v24  ;;  %v548_v26 = vmul.f32 %v535_v23, %v7551_v20  ;;  %v549_v27 = vmul.f32 %v535_v23, %v7554_v21  ;;  %v543_v40 = vpop.permute.xlu2 %542 }
  0x82   : > { %v556_v41 = vmul.f32 %v543_v40, %v7590_v38  ;;  %v555_v42 = vmul.f32 %v543_v40, %v7587_v37  ;;  %v554_v43 = vmul.f32 %v543_v40, %v7593_v39 }
  0x83   : > { %579 = vrot.lane.b32.xlu0 %v550_v25, %s7359_s22  ;;  %575 = vrot.lane.b32.xlu1 %v548_v26, %s7359_s22 }
  0x84   : > { %577 = vrot.lane.b32.xlu2 %v549_v27, %s7359_s22 }
  0x88   : > { %v7567_v28 = vpop.permute.xlu1 %458  ;;  %v636_v52 = vpop.permute.xlu0 %635 }
  0x89   : > { %12932 = vst [vmem:[#allocation5_spill] sm:$0xff] %v7567_v28  ;;  %v632_v48 = vpop.permute.xlu2 %631  ;;  %v649_v53 = vmul.f32 %v636_v52, %v7572_v30  ;;  %v648_v54 = vmul.f32 %v636_v52, %v7578_v33  ;;  %v650_v55 = vmul.f32 %v636_v52, %v7575_v32 }
  0x8a   : > { %v646_v49 = vmul.f32 %v632_v48, %v7554_v21  ;;  %v645_v50 = vmul.f32 %v632_v48, %v7551_v20  ;;  %v647_v51 = vmul.f32 %v632_v48, %v7559_v24 }
  0x90   : > { %v7569_v29 = vpop.permute.xlu1 %502 }
  0x91   : > { %12933 = vst [vmem:[#allocation6_spill] sm:$0xff] %v7569_v29  ;;  %v724_v60 = vpop.permute.xlu2 %723 }
  0x92   : > { %v740_v61 = vmul.f32 %v724_v60, %v7539_v14  ;;  %v739_v62 = vmul.f32 %v724_v60, %v7542_v15  ;;  %v738_v63 = vmul.f32 %v724_v60, %v7536_v13  ;;  %v728_v16 = vpop.permute.xlu0 %727 }
  0x93   : > { %v743_v17 = vmul.f32 %v728_v16, %v7559_v24  ;;  %v742_v18 = vmul.f32 %v728_v16, %v7554_v21  ;;  %v741_v19 = vmul.f32 %v728_v16, %v7551_v20 }
  0x99   : > { %v539_v31 = vpop.permute.xlu1 %538 }
  0x9a   : > { %v553_v34 = vmul.f32 %v539_v31, %v7575_v32  ;;  %v552_v35 = vmul.f32 %v539_v31, %v7572_v30  ;;  %v551_v36 = vmul.f32 %v539_v31, %v7578_v33  ;;  %v736_v31 = vpop.permute.xlu2 %735 }
  0x9c   : > { %585 = vrot.lane.b32.xlu0 %v553_v34, %s7359_s22  ;;  %583 = vrot.lane.b32.xlu2 %v552_v35, %s7359_s22  ;;  %v749_v34 = vmul.f32 %v736_v31, %v7590_v38  ;;  %v748_v35 = vmul.f32 %v736_v31, %v7587_v37 }
  0x9d   : > { %581 = vrot.lane.b32.xlu1 %v551_v36, %s7359_s22  ;;  %v747_v36 = vmul.f32 %v736_v31, %v7593_v39 }
  0xa1   : > { %v628_v44 = vpop.permute.xlu1 %627 }
  0xa2   : > { %v643_v45 = vmul.f32 %v628_v44, %v7542_v15  ;;  %v642_v46 = vmul.f32 %v628_v44, %v7536_v13  ;;  %v644_v47 = vmul.f32 %v628_v44, %v7539_v14 }
  0xa4   : > { %591 = vrot.lane.b32.xlu0 %v556_v41, %s7359_s22  ;;  %589 = vrot.lane.b32.xlu2 %v555_v42, %s7359_s22 }
  0xa5   : > { %587 = vrot.lane.b32.xlu1 %v554_v43, %s7359_s22 }
  0xa9   : > { %v640_v56 = vpop.permute.xlu1 %639 }
  0xaa   : > { %v652_v57 = vmul.f32 %v640_v56, %v7587_v37  ;;  %v651_v58 = vmul.f32 %v640_v56, %v7593_v39  ;;  %v653_v59 = vmul.f32 %v640_v56, %v7590_v38 }
  0xac   : > { %668 = vrot.lane.b32.xlu0 %v643_v45, %s7359_s22  ;;  %666 = vrot.lane.b32.xlu2 %v642_v46, %s7359_s22 }
  0xad   : > { %670 = vrot.lane.b32.xlu1 %v644_v47, %s7359_s22 }
  0xb2   : > { %v732_v23 = vpop.permute.xlu1 %731 }
  0xb3   : > { %v746_v25 = vmul.f32 %v732_v23, %v7575_v32  ;;  %v745_v26 = vmul.f32 %v732_v23, %v7572_v30  ;;  %v744_v27 = vmul.f32 %v732_v23, %v7578_v33 }
  0xb4   : > { %674 = vrot.lane.b32.xlu0 %v646_v49, %s7359_s22  ;;  %672 = vrot.lane.b32.xlu2 %v645_v50, %s7359_s22 }
  0xb5   : > { %676 = vrot.lane.b32.xlu1 %v647_v51, %s7359_s22 }
  0xbc   : > { %680 = vrot.lane.b32.xlu0 %v649_v53, %s7359_s22  ;;  %678 = vrot.lane.b32.xlu2 %v648_v54, %s7359_s22 }
  0xbd   : > { %682 = vrot.lane.b32.xlu1 %v650_v55, %s7359_s22 }
  0xc4   : > { %686 = vrot.lane.b32.xlu0 %v652_v57, %s7359_s22  ;;  %684 = vrot.lane.b32.xlu2 %v651_v58, %s7359_s22 }
  0xc5   : > { %688 = vrot.lane.b32.xlu1 %v653_v59, %s7359_s22 }
  0xcc   : > { %766 = vrot.lane.b32.xlu0 %v740_v61, %s7360_s23  ;;  %764 = vrot.lane.b32.xlu2 %v739_v62, %s7360_s23 }
  0xcd   : > { %762 = vrot.lane.b32.xlu1 %v738_v63, %s7360_s23 }
  0xd4   : > { %772 = vrot.lane.b32.xlu0 %v743_v17, %s7360_s23  ;;  %770 = vrot.lane.b32.xlu2 %v742_v18, %s7360_s23 }
  0xd5   : > { %768 = vrot.lane.b32.xlu1 %v741_v19, %s7360_s23 }
  0xd6   : > { %v7651_v40 = vpop.permute.xlu2 %571 }
  0xdc   : > { %778 = vrot.lane.b32.xlu0 %v746_v25, %s7360_s23  ;;  %776 = vrot.lane.b32.xlu2 %v745_v26, %s7360_s23 }
  0xdd   : > { %774 = vrot.lane.b32.xlu1 %v744_v27, %s7360_s23 }
  0xde   : > { %v7655_v41 = vpop.permute.xlu2 %577 }
  0xdf   : > { %12934 = vst [vmem:[#allocation7_spill] sm:$0xff] %v7655_v41 }
  0xe4   : > { %784 = vrot.lane.b32.xlu0 %v749_v34, %s7360_s23  ;;  %782 = vrot.lane.b32.xlu2 %v748_v35, %s7360_s23 }
  0xe5   : > { %780 = vrot.lane.b32.xlu1 %v747_v36, %s7360_s23  ;;  %v12732_v36 = vmov 3  }
  0xec   : > { %828 = vperm.xlu0 %7013, %v7488_v7   ;;  %824 = vperm.xlu2 %7012, %v7478_v5  }
  0xed   : > { %820 = vperm.xlu1 %7014, %v7457_v0   ;;  %v7657_v42 = vpop.permute.xlu0 %573  ;;  %v7659_v43 = vpop.permute.xlu1 %569 }
  0xf4   : > { %7016 = vset.pattern.permute.xlu0 %v12732_v36  ;;  %7015 = vset.pattern.permute.xlu2 %v12732_v36 }
  0xf5   : > { %832 = vperm.xlu1 %7014, %v7496_v8   ;;  %v7663_v45 = vpop.permute.xlu0 %579  ;;  %v7665_v46 = vpop.permute.xlu1 %575 }
  0xf6   : > { %v7661_v44 = vpop.permute.xlu2 %583  ;;  %12935 = vst [vmem:[#allocation8_spill] sm:$0xff] %v7663_v45 }
  0xf7   : > { %12936 = vst [vmem:[#allocation9_spill] sm:$0xff] %v7665_v46 }
  0xfd   : > { %7017 = vset.pattern.permute.xlu1 %v12732_v36 }
  0xfe   : > { %v7667_v47 = vpop.permute.xlu2 %589 }
 0x106   : > { %v7673_v50 = vpop.permute.xlu2 %666 }
 0x107   : > { %12938 = vst [vmem:[#allocation11_spill] sm:$0xff] %v7673_v50 }
 0x10e   : > { %v7669_v48 = vpop.permute.xlu0 %585  ;;  %v7681_v54 = vpop.permute.xlu2 %672 }
 0x10f   : > { %12937 = vst [vmem:[#allocation10_spill] sm:$0xff] %v7669_v48  ;;  %v7671_v49 = vpop.permute.xlu1 %581 }
 0x110   : > { %12941 = vst [vmem:[#allocation14_spill] sm:$0xff] %v7681_v54 }
 0x116   : > { %v7675_v51 = vpop.permute.xlu0 %591  ;;  %v7689_v58 = vpop.permute.xlu2 %678 }
 0x117   : > { %12939 = vst [vmem:[#allocation12_spill] sm:$0xff] %v7675_v51  ;;  %v7677_v52 = vpop.permute.xlu1 %587 }
 0x118   : > { %12945 = vst [vmem:[#allocation18_spill] sm:$0xff] %v7689_v58 }
 0x11e   : > { %v7679_v53 = vpop.permute.xlu0 %668  ;;  %v7695_v61 = vpop.permute.xlu2 %684 }
 0x11f   : > { %12940 = vst [vmem:[#allocation13_spill] sm:$0xff] %v7679_v53  ;;  %v7683_v55 = vpop.permute.xlu1 %670 }
 0x120   : > { %12942 = vst [vmem:[#allocation15_spill] sm:$0xff] %v7683_v55 }
 0x121   : > { %12948 = vst [vmem:[#allocation21_spill] sm:$0xff] %v7695_v61 }
 0x126   : > { %v7685_v56 = vpop.permute.xlu0 %674  ;;  %v7701_v16 = vpop.permute.xlu2 %764 }
 0x127   : > { %12943 = vst [vmem:[#allocation16_spill] sm:$0xff] %v7685_v56  ;;  %v7687_v57 = vpop.permute.xlu1 %676 }
 0x128   : > { %12944 = vst [vmem:[#allocation17_spill] sm:$0xff] %v7687_v57 }
 0x12e   : > { %v7693_v60 = vpop.permute.xlu0 %680  ;;  %v7707_v19 = vpop.permute.xlu2 %770 }
 0x12f   : > { %v7691_v59 = vpop.permute.xlu1 %682  ;;  %12947 = vst [vmem:[#allocation20_spill] sm:$0xff] %v7693_v60 }
 0x130   : > { %12946 = vst [vmem:[#allocation19_spill] sm:$0xff] %v7691_v59 }
 0x131   : > { %12951 = vst [vmem:[#allocation24_spill] sm:$0xff] %v7707_v19 }
 0x136   : > { %v7699_v63 = vpop.permute.xlu0 %686  ;;  %v7715_v27 = vpop.permute.xlu2 %776 }
 0x137   : > { %v7697_v62 = vpop.permute.xlu1 %688  ;;  %12950 = vst [vmem:[#allocation23_spill] sm:$0xff] %v7699_v63 }
 0x138   : > { %12949 = vst [vmem:[#allocation22_spill] sm:$0xff] %v7697_v62 }
 0x13e   : > { %v7705_v18 = vpop.permute.xlu0 %766  ;;  %v7721_v35 = vpop.permute.xlu2 %782 }
 0x13f   : > { %v7703_v17 = vpop.permute.xlu1 %762 }
 0x146   : > { %v7711_v25 = vpop.permute.xlu0 %772  ;;  %v825_v61 = vpop.permute.xlu2 %824 }
 0x147   : > { %v7709_v23 = vpop.permute.xlu1 %768  ;;  %12953 = vst [vmem:[#allocation26_spill] sm:$0xff] %v7711_v25  ;;  %v840_v63 = vmul.f32 %v825_v61, %v7559_v24  ;;  %v839_v36 = vmul.f32 %v825_v61, %v7554_v21  ;;  %v838_v59 = vmul.f32 %v825_v61, %v7551_v20 }
 0x148   : > { %12952 = vst [vmem:[#allocation25_spill] sm:$0xff] %v7709_v23 }
 0x14e   : > { %v7719_v34 = vpop.permute.xlu0 %778 }
 0x14f   : > { %v7713_v26 = vpop.permute.xlu1 %774  ;;  %12954 = vst [vmem:[#allocation27_spill] sm:$0xff] %v7719_v34 }
 0x156   : > { %v7731_v62 = vpop.permute.xlu0 %784 }
 0x157   : > { %v7717_v31 = vpop.permute.xlu1 %780  ;;  %12955 = vst [vmem:[#allocation28_spill] sm:$0xff] %v7731_v62 }
 0x15f   : > { %v821_v10 = vpop.permute.xlu1 %820 }
 0x160   : > { %v837_v4 = vmul.f32 %v821_v10, %v7539_v14  ;;  %v836_v3 = vmul.f32 %v821_v10, %v7542_v15  ;;  %v835_v29 = vmul.f32 %v821_v10, %v7536_v13 }
 0x162   : > { %863 = vrot.lane.b32.xlu1 %v837_v4, %s7360_s23  ;;  %861 = vrot.lane.b32.xlu0 %v836_v3, %s7360_s23  ;;  %v829_v4 = vpop.permute.xlu0 %828 }
 0x163   : > { %859 = vrot.lane.b32.xlu2 %v835_v29, %s7360_s23  ;;  %v843_v3 = vmul.f32 %v829_v4, %v7575_v32  ;;  %v842_v10 = vmul.f32 %v829_v4, %v7572_v30  ;;  %v841_v29 = vmul.f32 %v829_v4, %v7578_v33 }
 0x167   : > { %v833_v61 = vpop.permute.xlu1 %832 }
 0x16a   : > { %869 = vrot.lane.b32.xlu1 %v840_v63, %s7360_s23  ;;  %867 = vrot.lane.b32.xlu0 %v839_v36, %s7360_s23  ;;  %v846_v63 = vmul.f32 %v833_v61, %v7590_v38  ;;  %v845_v36 = vmul.f32 %v833_v61, %v7587_v37 }
 0x16b   : > { %865 = vrot.lane.b32.xlu2 %v838_v59, %s7360_s23  ;;  %v844_v59 = vmul.f32 %v833_v61, %v7593_v39 }
 0x172   : > { %875 = vrot.lane.b32.xlu1 %v843_v3, %s7360_s23  ;;  %873 = vrot.lane.b32.xlu0 %v842_v10, %s7360_s23 }
 0x173   : > { %871 = vrot.lane.b32.xlu2 %v841_v29, %s7360_s23 }
 0x17a   : > { %881 = vrot.lane.b32.xlu1 %v846_v63, %s7360_s23  ;;  %879 = vrot.lane.b32.xlu0 %v845_v36, %s7360_s23 }
 0x17b   : > { %877 = vrot.lane.b32.xlu2 %v844_v59, %s7360_s23 }
 0x182   : > { %920 = vperm.xlu0 %7016, %v7467_v2   ;;  %924 = vperm.xlu1 %7017, %v7462_v1  }
 0x183   : > { %916 = vperm.xlu2 %7015, %v7501_v9  }
 0x18b   : > { %928 = vperm.xlu2 %7015, %v7483_v6  }
 0x1bd   : > { %v7756_v4 = vpop.permute.xlu2 %859 }
 0x1be   : > { %12956 = vst [vmem:[#allocation29_spill] sm:$0xff] %v7756_v4  ;;  %v12750_v4 = vmov 4  }
 0x1c5   : > { %v7758_v3 = vpop.permute.xlu2 %865 }
 0x1c6   : > { %12957 = vst [vmem:[#allocation30_spill] sm:$0xff] %v7758_v3 }
 0x1cd   : > { %v7760_v10 = vpop.permute.xlu2 %871 }
 0x1ce   : > { %12958 = vst [vmem:[#allocation31_spill] sm:$0xff] %v7760_v10 }
 0x1d4   : > { %v7762_v29 = vpop.permute.xlu0 %861  ;;  %v7764_v61 = vpop.permute.xlu1 %863 }
 0x1d5   : > { %12959 = vst [vmem:[#allocation32_spill] sm:$0xff] %v7762_v29  ;;  %v7766_v63 = vpop.permute.xlu2 %877 }
 0x1d6   : > { %12960 = vst [vmem:[#allocation33_spill] sm:$0xff] %v7764_v61 }
 0x1d7   : > { %12961 = vst [vmem:[#allocation34_spill] sm:$0xff] %v7766_v63 }
 0x1dc   : > { %v7768_v36 = vpop.permute.xlu0 %867  ;;  %v7770_v59 = vpop.permute.xlu1 %869 }
 0x1dd   : > { %12962 = vst [vmem:[#allocation35_spill] sm:$0xff] %v7768_v36  ;;  %v917_v58 = vpop.permute.xlu2 %916 }
 0x1de   : > { %12963 = vst [vmem:[#allocation36_spill] sm:$0xff] %v7770_v59  ;;  %v933_v60 = vmul.f32 %v917_v58, %v7539_v14  ;;  %v931_v54 = vmul.f32 %v917_v58, %v7536_v13  ;;  %v932_v56 = vmul.f32 %v917_v58, %v7542_v15 }
 0x1e0   : > { %959 = vrot.lane.b32.xlu0 %v933_v60, %s7362_s24  ;;  %955 = vrot.lane.b32.xlu1 %v931_v54, %s7362_s24 }
 0x1e1   : > { %957 = vrot.lane.b32.xlu2 %v932_v56, %s7362_s24 }
 0x1e4   : > { %v7778_v10 = vpop.permute.xlu0 %873  ;;  %v7780_v63 = vpop.permute.xlu1 %875 }
 0x1e5   : > { %12964 = vst [vmem:[#allocation37_spill] sm:$0xff] %v7778_v10 }
 0x1e6   : > { %12965 = vst [vmem:[#allocation38_spill] sm:$0xff] %v7780_v63 }
 0x1ec   : > { %v7782_v3 = vpop.permute.xlu0 %879  ;;  %v7784_v36 = vpop.permute.xlu1 %881 }
 0x1ed   : > { %12966 = vst [vmem:[#allocation39_spill] sm:$0xff] %v7782_v3 }
 0x1ee   : > { %12967 = vst [vmem:[#allocation40_spill] sm:$0xff] %v7784_v36 }
 0x1f4   : > { %v921_v59 = vpop.permute.xlu0 %920  ;;  %v925_v54 = vpop.permute.xlu1 %924 }
 0x1f5   : > { %v936_v57 = vmul.f32 %v921_v59, %v7559_v24  ;;  %v935_v58 = vmul.f32 %v921_v59, %v7554_v21  ;;  %v934_v12 = vmul.f32 %v921_v59, %v7551_v20  ;;  %v939_v56 = vmul.f32 %v925_v54, %v7575_v32  ;;  %v929_v59 = vpop.permute.xlu2 %928 }
 0x1f6   : > { %v938_v60 = vmul.f32 %v925_v54, %v7572_v30  ;;  %v937_v36 = vmul.f32 %v925_v54, %v7578_v33 }
 0x1f7   : > { %965 = vrot.lane.b32.xlu0 %v936_v57, %s7362_s24  ;;  %963 = vrot.lane.b32.xlu2 %v935_v58, %s7362_s24  ;;  %v942_v57 = vmul.f32 %v929_v59, %v7590_v38  ;;  %v941_v58 = vmul.f32 %v929_v59, %v7587_v37 }
 0x1f8   : > { %961 = vrot.lane.b32.xlu1 %v934_v12, %s7362_s24  ;;  %v940_v12 = vmul.f32 %v929_v59, %v7593_v39 }
 0x1ff   : > { %971 = vrot.lane.b32.xlu0 %v939_v56, %s7362_s24  ;;  %969 = vrot.lane.b32.xlu2 %v938_v60, %s7362_s24 }
 0x200   : > { %967 = vrot.lane.b32.xlu1 %v937_v36, %s7362_s24 }
 0x207   : > { %977 = vrot.lane.b32.xlu0 %v942_v57, %s7362_s24  ;;  %975 = vrot.lane.b32.xlu2 %v941_v58, %s7362_s24 }
 0x208   : > { %973 = vrot.lane.b32.xlu1 %v940_v12, %s7362_s24 }
 0x20f   : > { %1021 = vperm.xlu0 %7016, %v7488_v7   ;;  %1017 = vperm.xlu2 %7015, %v7478_v5  }
 0x210   : > { %1013 = vperm.xlu1 %7017, %v7457_v0  }
 0x217   : > { %7019 = vset.pattern.permute.xlu0 %v12750_v4  ;;  %7018 = vset.pattern.permute.xlu2 %v12750_v4 }
 0x218   : > { %1025 = vperm.xlu1 %7017, %v7496_v8  }
 0x220   : > { %7020 = vset.pattern.permute.xlu1 %v12750_v4 }
 0x23b   : > { %v7808_v36 = vpop.permute.xlu2 %957 }
 0x251   : > { %v7812_v56 = vpop.permute.xlu2 %963 }
 0x252   : > { %v7810_v54 = vpop.permute.xlu1 %955  ;;  %12968 = vst [vmem:[#allocation41_spill] sm:$0xff] %v7812_v56  ;;  %v7814_v60 = vpop.permute.xlu0 %959 }
 0x259   : > { %v7822_v12 = vpop.permute.xlu2 %969 }
 0x261   : > { %v7828_v10 = vpop.permute.xlu2 %975 }
 0x269   : > { %v7818_v57 = vpop.permute.xlu0 %965  ;;  %v1018_v53 = vpop.permute.xlu2 %1017 }
 0x26a   : > { %v7816_v59 = vpop.permute.xlu1 %961  ;;  %12970 = vst [vmem:[#allocation43_spill] sm:$0xff] %v7818_v57  ;;  %v1032_v4 = vmul.f32 %v1018_v53, %v7554_v21  ;;  %v1031_v56 = vmul.f32 %v1018_v53, %v7551_v20 }
 0x26b   : > { %12969 = vst [vmem:[#allocation42_spill] sm:$0xff] %v7816_v59  ;;  %v1033_v59 = vmul.f32 %v1018_v53, %v7559_v24 }
 0x271   : > { %v7826_v63 = vpop.permute.xlu0 %971 }
 0x272   : > { %v7820_v58 = vpop.permute.xlu1 %967  ;;  %12971 = vst [vmem:[#allocation44_spill] sm:$0xff] %v7826_v63 }
 0x279   : > { %v7838_v50 = vpop.permute.xlu0 %977 }
 0x27a   : > { %v7824_v3 = vpop.permute.xlu1 %973  ;;  %12972 = vst [vmem:[#allocation45_spill] sm:$0xff] %v7838_v50 }
 0x282   : > { %v1014_v29 = vpop.permute.xlu1 %1013 }
 0x283   : > { %v1030_v61 = vmul.f32 %v1014_v29, %v7539_v14  ;;  %v1029_v55 = vmul.f32 %v1014_v29, %v7542_v15  ;;  %v1028_v11 = vmul.f32 %v1014_v29, %v7536_v13  ;;  %v1022_v29 = vpop.permute.xlu0 %1021 }
 0x285   : > { %1056 = vrot.lane.b32.xlu1 %v1030_v61, %s7362_s24  ;;  %1054 = vrot.lane.b32.xlu0 %v1029_v55, %s7362_s24  ;;  %v1036_v55 = vmul.f32 %v1022_v29, %v7575_v32  ;;  %v1035_v61 = vmul.f32 %v1022_v29, %v7572_v30 }
 0x286   : > { %1052 = vrot.lane.b32.xlu2 %v1028_v11, %s7362_s24  ;;  %v1034_v11 = vmul.f32 %v1022_v29, %v7578_v33 }
 0x28a   : > { %v1026_v53 = vpop.permute.xlu1 %1025 }
 0x28d   : > { %1062 = vrot.lane.b32.xlu1 %v1033_v59, %s7362_s24  ;;  %1060 = vrot.lane.b32.xlu0 %v1032_v4, %s7362_s24  ;;  %v1039_v59 = vmul.f32 %v1026_v53, %v7590_v38  ;;  %v1038_v4 = vmul.f32 %v1026_v53, %v7587_v37 }
 0x28e   : > { %1058 = vrot.lane.b32.xlu2 %v1031_v56, %s7362_s24  ;;  %v1037_v56 = vmul.f32 %v1026_v53, %v7593_v39 }
 0x295   : > { %1068 = vrot.lane.b32.xlu1 %v1036_v55, %s7362_s24  ;;  %1066 = vrot.lane.b32.xlu0 %v1035_v61, %s7362_s24 }
 0x296   : > { %1064 = vrot.lane.b32.xlu2 %v1034_v11, %s7362_s24 }
 0x29d   : > { %1074 = vrot.lane.b32.xlu1 %v1039_v59, %s7362_s24  ;;  %1072 = vrot.lane.b32.xlu0 %v1038_v4, %s7362_s24 }
 0x29e   : > { %1070 = vrot.lane.b32.xlu2 %v1037_v56, %s7362_s24 }
 0x2a5   : > { %1113 = vperm.xlu0 %7019, %v7467_v2   ;;  %1117 = vperm.xlu1 %7020, %v7462_v1  }
 0x2a6   : > { %1109 = vperm.xlu2 %7018, %v7501_v9  }
 0x2ae   : > { %1121 = vperm.xlu2 %7018, %v7483_v6  }
 0x2e0   : > { %v7863_v29 = vpop.permute.xlu2 %1052 }
 0x2e1   : > { %12973 = vst [vmem:[#allocation46_spill] sm:$0xff] %v7863_v29 }
 0x2e8   : > { %v7865_v55 = vpop.permute.xlu2 %1058 }
 0x2e9   : > { %12974 = vst [vmem:[#allocation47_spill] sm:$0xff] %v7865_v55 }
 0x2f0   : > { %v7867_v61 = vpop.permute.xlu2 %1064 }
 0x2f1   : > { %12975 = vst [vmem:[#allocation48_spill] sm:$0xff] %v7867_v61 }
 0x2f7   : > { %v7869_v11 = vpop.permute.xlu0 %1054  ;;  %v7871_v53 = vpop.permute.xlu1 %1056 }
 0x2f8   : > { %12976 = vst [vmem:[#allocation49_spill] sm:$0xff] %v7869_v11  ;;  %v7873_v59 = vpop.permute.xlu2 %1070 }
 0x2f9   : > { %12977 = vst [vmem:[#allocation50_spill] sm:$0xff] %v7871_v53 }
 0x2fa   : > { %12978 = vst [vmem:[#allocation51_spill] sm:$0xff] %v7873_v59 }
 0x2ff   : > { %v7875_v4 = vpop.permute.xlu0 %1060  ;;  %v7877_v56 = vpop.permute.xlu1 %1062 }
 0x300   : > { %12979 = vst [vmem:[#allocation52_spill] sm:$0xff] %v7875_v4  ;;  %v1110_v57 = vpop.permute.xlu2 %1109 }
 0x301   : > { %12980 = vst [vmem:[#allocation53_spill] sm:$0xff] %v7877_v56  ;;  %v1126_v23 = vmul.f32 %v1110_v57, %v7539_v14  ;;  %v1124_v19 = vmul.f32 %v1110_v57, %v7536_v13  ;;  %v1125_v29 = vmul.f32 %v1110_v57, %v7542_v15 }
 0x303   : > { %1152 = vrot.lane.b32.xlu0 %v1126_v23, %s7364_s25  ;;  %1148 = vrot.lane.b32.xlu1 %v1124_v19, %s7364_s25 }
 0x304   : > { %1150 = vrot.lane.b32.xlu2 %v1125_v29, %s7364_s25 }
 0x307   : > { %v7885_v61 = vpop.permute.xlu0 %1066  ;;  %v7887_v59 = vpop.permute.xlu1 %1068 }
 0x308   : > { %12981 = vst [vmem:[#allocation54_spill] sm:$0xff] %v7885_v61 }
 0x309   : > { %12982 = vst [vmem:[#allocation55_spill] sm:$0xff] %v7887_v59 }
 0x30f   : > { %v7889_v55 = vpop.permute.xlu0 %1072  ;;  %v7891_v4 = vpop.permute.xlu1 %1074 }
 0x310   : > { %12983 = vst [vmem:[#allocation56_spill] sm:$0xff] %v7889_v55 }
 0x311   : > { %12984 = vst [vmem:[#allocation57_spill] sm:$0xff] %v7891_v4 }
 0x317   : > { %v1114_v56 = vpop.permute.xlu0 %1113  ;;  %v1118_v19 = vpop.permute.xlu1 %1117 }
 0x318   : > { %v1129_v11 = vmul.f32 %v1114_v56, %v7559_v24  ;;  %v1128_v57 = vmul.f32 %v1114_v56, %v7554_v21  ;;  %v1127_v53 = vmul.f32 %v1114_v56, %v7551_v20  ;;  %v1132_v23 = vmul.f32 %v1118_v19, %v7575_v32  ;;  %v1122_v56 = vpop.permute.xlu2 %1121 }
 0x319   : > { %v1131_v29 = vmul.f32 %v1118_v19, %v7572_v30  ;;  %v1130_v4 = vmul.f32 %v1118_v19, %v7578_v33 }
 0x31a   : > { %1158 = vrot.lane.b32.xlu0 %v1129_v11, %s7364_s25  ;;  %1156 = vrot.lane.b32.xlu2 %v1128_v57, %s7364_s25  ;;  %v1135_v11 = vmul.f32 %v1122_v56, %v7590_v38  ;;  %v1134_v57 = vmul.f32 %v1122_v56, %v7587_v37 }
 0x31b   : > { %1154 = vrot.lane.b32.xlu1 %v1127_v53, %s7364_s25  ;;  %v1133_v53 = vmul.f32 %v1122_v56, %v7593_v39 }
 0x322   : > { %1164 = vrot.lane.b32.xlu0 %v1132_v23, %s7364_s25  ;;  %1162 = vrot.lane.b32.xlu2 %v1131_v29, %s7364_s25 }
 0x323   : > { %1160 = vrot.lane.b32.xlu1 %v1130_v4, %s7364_s25 }
 0x32a   : > { %1170 = vrot.lane.b32.xlu0 %v1135_v11, %s7364_s25  ;;  %1168 = vrot.lane.b32.xlu2 %v1134_v57, %s7364_s25 }
 0x32b   : > { %1166 = vrot.lane.b32.xlu1 %v1133_v53, %s7364_s25 }
 0x332   : > { %1214 = vperm.xlu0 %7019, %v7488_v7   ;;  %1210 = vperm.xlu2 %7018, %v7478_v5  }
 0x333   : > { %1206 = vperm.xlu1 %7020, %v7457_v0  }
 0x33b   : > { %1218 = vperm.xlu1 %7020, %v7496_v8  }
 0x35e   : > { %v7915_v4 = vpop.permute.xlu2 %1150 }
 0x374   : > { %v7921_v29 = vpop.permute.xlu2 %1156 }
 0x375   : > { %v7917_v19 = vpop.permute.xlu0 %1152  ;;  %v7919_v23 = vpop.permute.xlu1 %1148  ;;  %12987 = vst [vmem:[#allocation60_spill] sm:$0xff] %v7921_v29 }
 0x376   : > { %12985 = vst [vmem:[#allocation58_spill] sm:$0xff] %v7917_v19 }
 0x377   : > { %12986 = vst [vmem:[#allocation59_spill] sm:$0xff] %v7919_v23 }
 0x37c   : > { %v7927_v57 = vpop.permute.xlu2 %1162 }
 0x384   : > { %v7938_v61 = vpop.permute.xlu2 %1168 }
 0x38c   : > { %v7923_v56 = vpop.permute.xlu0 %1158 }
 0x38d   : > { %12988 = vst [vmem:[#allocation61_spill] sm:$0xff] %v7923_v56  ;;  %v7925_v11 = vpop.permute.xlu1 %1154  ;;  %v12771_v56 = vmov 5  }
 0x38e   : > { %12989 = vst [vmem:[#allocation62_spill] sm:$0xff] %v7925_v11  ;;  %7022 = vset.pattern.permute.xlu0 %v12771_v56  ;;  %7021 = vset.pattern.permute.xlu2 %v12771_v56 }
 0x38f   : > { %7023 = vset.pattern.permute.xlu1 %v12771_v56 }
 0x394   : > { %v7929_v53 = vpop.permute.xlu0 %1164 }
 0x395   : > { %12990 = vst [vmem:[#allocation63_spill] sm:$0xff] %v7929_v53  ;;  %v7934_v55 = vsel %vm1172_vm0, %v7927_v57, %v7929_v53  ;;  %v7936_v59 = vpop.permute.xlu1 %1160 }
 0x39c   : > { %v7940_v25 = vpop.permute.xlu0 %1170 }
 0x39d   : > { %12991 = vst [vmem:[#allocation64_spill] sm:$0xff] %v7940_v25  ;;  %v7945_v11 = vsel %vm1172_vm0, %v7938_v61, %v7940_v25  ;;  %v7947_v29 = vpop.permute.xlu1 %1166  ;;  %v1211_v25 = vpop.permute.xlu2 %1210 }
 0x39e   : > { %v1225_v19 = vmul.f32 %v1211_v25, %v7554_v21  ;;  %v1226_v23 = vmul.f32 %v1211_v25, %v7559_v24  ;;  %v1224_v56 = vmul.f32 %v1211_v25, %v7551_v20 }
 0x3a5   : > { %v1207_v53 = vpop.permute.xlu1 %1206 }
 0x3a6   : > { %v1223_v46 = vmul.f32 %v1207_v53, %v7539_v14  ;;  %v1222_v41 = vmul.f32 %v1207_v53, %v7542_v15  ;;  %v1221_v45 = vmul.f32 %v1207_v53, %v7536_v13  ;;  %v1215_v53 = vpop.permute.xlu0 %1214 }
 0x3a8   : > { %1249 = vrot.lane.b32.xlu1 %v1223_v46, %s7364_s25  ;;  %1247 = vrot.lane.b32.xlu0 %v1222_v41, %s7364_s25  ;;  %v1228_v46 = vmul.f32 %v1215_v53, %v7572_v30  ;;  %v1229_v41 = vmul.f32 %v1215_v53, %v7575_v32 }
 0x3a9   : > { %1245 = vrot.lane.b32.xlu2 %v1221_v45, %s7364_s25  ;;  %v1227_v45 = vmul.f32 %v1215_v53, %v7578_v33 }
 0x3ad   : > { %v1219_v25 = vpop.permute.xlu1 %1218 }
 0x3b0   : > { %1255 = vrot.lane.b32.xlu1 %v1226_v23, %s7364_s25  ;;  %1253 = vrot.lane.b32.xlu0 %v1225_v19, %s7364_s25  ;;  %v1232_v23 = vmul.f32 %v1219_v25, %v7590_v38  ;;  %v1231_v19 = vmul.f32 %v1219_v25, %v7587_v37 }
 0x3b1   : > { %1251 = vrot.lane.b32.xlu2 %v1224_v56, %s7364_s25  ;;  %v1230_v56 = vmul.f32 %v1219_v25, %v7593_v39 }
 0x3b8   : > { %1261 = vrot.lane.b32.xlu1 %v1229_v41, %s7364_s25  ;;  %1259 = vrot.lane.b32.xlu0 %v1228_v46, %s7364_s25 }
 0x3b9   : > { %1257 = vrot.lane.b32.xlu2 %v1227_v45, %s7364_s25 }
 0x3c0   : > { %1267 = vrot.lane.b32.xlu1 %v1232_v23, %s7364_s25  ;;  %1265 = vrot.lane.b32.xlu0 %v1231_v19, %s7364_s25 }
 0x3c1   : > { %1263 = vrot.lane.b32.xlu2 %v1230_v56, %s7364_s25 }
 0x3c8   : > { %1306 = vperm.xlu0 %7022, %v7467_v2   ;;  %1310 = vperm.xlu1 %7023, %v7462_v1  }
 0x3c9   : > { %1302 = vperm.xlu2 %7021, %v7501_v9  }
 0x3d1   : > { %1314 = vperm.xlu2 %7021, %v7483_v6  }
 0x403   : > { %v1246_v53 = vpop.permute.xlu2 %1245 }
 0x40b   : > { %v1252_v46 = vpop.permute.xlu2 %1251 }
 0x413   : > { %v7980_v41 = vpop.permute.xlu2 %1257 }
 0x414   : > { %12992 = vst [vmem:[#allocation65_spill] sm:$0xff] %v7980_v41 }
 0x41a   : > { %v7982_v45 = vpop.permute.xlu0 %1247  ;;  %v7984_v25 = vpop.permute.xlu1 %1249 }
 0x41b   : > { %12993 = vst [vmem:[#allocation66_spill] sm:$0xff] %v7982_v45  ;;  %v7988_v23 = vsel %vm1172_vm0, %v1246_v53, %v7982_v45  ;;  %v1264_v19 = vpop.permute.xlu2 %1263 }
 0x41c   : > { %12994 = vst [vmem:[#allocation67_spill] sm:$0xff] %v7984_v25 }
 0x41d   : > { %12995 = vst [vmem:[#allocation68_spill] sm:$0xff] %v7988_v23 }
 0x422   : > { %v7990_v2 = vpop.permute.xlu0 %1253  ;;  %v7992_v1 = vpop.permute.xlu1 %1255 }
 0x423   : > { %12996 = vst [vmem:[#allocation69_spill] sm:$0xff] %v7990_v2  ;;  %v7996_v6 = vsel %vm1172_vm0, %v1252_v46, %v7990_v2  ;;  %v1303_v9 = vpop.permute.xlu2 %1302 }
 0x424   : > { %12997 = vst [vmem:[#allocation70_spill] sm:$0xff] %v7992_v1  ;;  %v1317_v56 = vmul.f32 %v1303_v9, %v7536_v13  ;;  %v1318_v41 = vmul.f32 %v1303_v9, %v7542_v15  ;;  %v1319_v25 = vmul.f32 %v1303_v9, %v7539_v14 }
 0x425   : > { %12998 = vst [vmem:[#allocation71_spill] sm:$0xff] %v7996_v6 }
 0x426   : > { %1345 = vrot.lane.b32.xlu0 %v1319_v25, %s7366_s26  ;;  %1341 = vrot.lane.b32.xlu1 %v1317_v56, %s7366_s26 }
 0x427   : > { %1343 = vrot.lane.b32.xlu2 %v1318_v41, %s7366_s26 }
 0x42a   : > { %v8004_v53 = vpop.permute.xlu0 %1259  ;;  %v8006_v1 = vpop.permute.xlu1 %1261 }
 0x42b   : > { %12999 = vst [vmem:[#allocation72_spill] sm:$0xff] %v8004_v53 }
 0x42c   : > { %13000 = vst [vmem:[#allocation73_spill] sm:$0xff] %v8006_v1 }
 0x432   : > { %v1266_v46 = vpop.permute.xlu0 %1265  ;;  %v8008_v6 = vpop.permute.xlu1 %1267 }
 0x433   : > { %13001 = vst [vmem:[#allocation74_spill] sm:$0xff] %v8008_v6  ;;  %v8011_v2 = vsel %vm1172_vm0, %v1264_v19, %v1266_v46  ;;  %v8015_v9 = vsel %vm1172_vm0, %v1266_v46, %v8008_v6  ;;  %v791_v6 = vsel %vm786_vm3, %v7713_v26, %v7715_v27  ;;  %v1177_v26 = vsel %vm1172_vm0, %v7936_v59, %v7927_v57 }
 0x434   : > { %13002 = vst [vmem:[#allocation75_spill] sm:$0xff] %v8011_v2  ;;  %v470_v59 = vmul.f32 %v7567_v28, %v7593_v39  ;;  %v794_v57 = vsel %vm786_vm3, %v7721_v35, %v7731_v62 }
 0x435   : > { %13003 = vst [vmem:[#allocation76_spill] sm:$0xff] %v8015_v9  ;;  %v985_v9 = vsel %vm979_vm4, %v7822_v12, %v7826_v63 }
 0x43a   : > { %v1307_v23 = vpop.permute.xlu0 %1306  ;;  %v1311_v1 = vpop.permute.xlu1 %1310 }
 0x43b   : > { %v1320_v25 = vmul.f32 %v1307_v23, %v7551_v20  ;;  %v1321_v56 = vmul.f32 %v1307_v23, %v7554_v21  ;;  %v1322_v41 = vmul.f32 %v1307_v23, %v7559_v24  ;;  %v1324_v19 = vmul.f32 %v1311_v1, %v7572_v30  ;;  %v1315_v23 = vpop.permute.xlu2 %1314 }
 0x43c   : > { %v1325_v2 = vmul.f32 %v1311_v1, %v7575_v32  ;;  %v1323_v46 = vmul.f32 %v1311_v1, %v7578_v33 }
 0x43d   : > { %1351 = vrot.lane.b32.xlu0 %v1322_v41, %s7366_s26  ;;  %1349 = vrot.lane.b32.xlu2 %v1321_v56, %s7366_s26  ;;  %v1327_v41 = vmul.f32 %v1315_v23, %v7587_v37  ;;  %v1328_v56 = vmul.f32 %v1315_v23, %v7590_v38 }
 0x43e   : > { %1347 = vrot.lane.b32.xlu1 %v1320_v25, %s7366_s26  ;;  %v1326_v25 = vmul.f32 %v1315_v23, %v7593_v39 }
 0x445   : > { %1357 = vrot.lane.b32.xlu0 %v1325_v2, %s7366_s26  ;;  %1355 = vrot.lane.b32.xlu2 %v1324_v19, %s7366_s26 }
 0x446   : > { %1353 = vrot.lane.b32.xlu1 %v1323_v46, %s7366_s26 }
 0x44d   : > { %1363 = vrot.lane.b32.xlu0 %v1328_v56, %s7366_s26  ;;  %1361 = vrot.lane.b32.xlu2 %v1327_v41, %s7366_s26  ;;  %v467_v41 = vmul.f32 %v7556_v22, %v7578_v33  ;;  %v792_v56 = vsel %vm786_vm3, %v7715_v27, %v7719_v34  ;;  %v984_v34 = vsel %vm979_vm4, %v7820_v58, %v7822_v12 }
 0x44e   : > { %1359 = vrot.lane.b32.xlu1 %v1326_v25, %s7366_s26 }
 0x455   : > { %1407 = vperm.xlu0 %7022, %v7488_v7   ;;  %1403 = vperm.xlu2 %7021, %v7478_v5   ;;  %v599_v5 = vsel %vm593_vm2, %v7661_v44, %v7669_v48  ;;  %v598_v7 = vsel %vm593_vm2, %v7671_v49, %v7661_v44 }
 0x456   : > { %1399 = vperm.xlu1 %7023, %v7457_v0   ;;  %v468_v0 = vmul.f32 %v7556_v22, %v7572_v30  ;;  %v620_v49 = vadd.f32 %v598_v7, %v467_v41  ;;  %v601_v7 = vsel %vm593_vm2, %v7667_v47, %v7675_v51 }
 0x45e   : > { %1411 = vperm.xlu1 %7023, %v7496_v8  }
 0x481   : > { %v8039_v2 = vpop.permute.xlu2 %1343 }
 0x497   : > { %v8047_v23 = vpop.permute.xlu2 %1349 }
 0x498   : > { %v1342_v1 = vpop.permute.xlu1 %1341  ;;  %v8045_v46 = vpop.permute.xlu0 %1345 }
 0x499   : > { %v8043_v19 = vsel %vm1365_vm1, %v1342_v1, %v8039_v2  ;;  %v621_v1 = vadd.f32 %v599_v5, %v468_v0  ;;  %v813_v5 = vadd.f32 %v791_v6, %v620_v49  ;;  %v987_v49 = vsel %vm979_vm4, %v7828_v10, %v7838_v50 }
 0x49a   : > { %v12793_v50 = vmov 7  }
 0x49b   : > { %v814_v53 = vadd.f32 %v792_v56, %v621_v1  ;;  %v1006_v41 = vadd.f32 %v984_v34, %v813_v5  ;;  %v600_v56 = vsel %vm593_vm2, %v7677_v52, %v7667_v47  ;;  %v793_v47 = vsel %vm786_vm3, %v7717_v31, %v7721_v35 }
 0x49c   : > { %v623_v1 = vadd.f32 %v600_v56, %v470_v59  ;;  %v1179_v31 = vsel %vm1172_vm0, %v7947_v29, %v7938_v61 }
 0x49d   : > { %v1007_v0 = vadd.f32 %v985_v9, %v814_v53  ;;  %v1199_v6 = vadd.f32 %v1177_v26, %v1006_v41  ;;  %v986_v26 = vsel %vm979_vm4, %v7824_v3, %v7828_v10 }
 0x49f   : > { %v1356_v27 = vpop.permute.xlu2 %1355  ;;  %v1200_v58 = vadd.f32 %v7934_v55, %v1007_v0 }
 0x4af   : > { %v8057_v8 = vpop.permute.xlu0 %1351 }
 0x4b0   : > { %v1348_v25 = vpop.permute.xlu1 %1347 }
 0x4b1   : > { %v8069_v44 = vsel %vm1365_vm1, %v1348_v25, %v8047_v23  ;;  %v471_v25 = vmul.f32 %v7567_v28, %v7587_v37 }
 0x4b3   : > { %v624_v9 = vadd.f32 %v601_v7, %v471_v25  ;;  %v816_v7 = vadd.f32 %v793_v47, %v623_v1  ;;  %v1362_v25 = vpop.permute.xlu2 %1361 }
 0x4b5   : > { %v817_v0 = vadd.f32 %v794_v57, %v624_v9  ;;  %v1009_v35 = vadd.f32 %v986_v26, %v816_v7 }
 0x4b7   : > { %v8089_v12 = vpop.permute.xlu0 %1357  ;;  %v1010_v41 = vadd.f32 %v987_v49, %v817_v0 }
 0x4b8   : > { %13004 = vst [vmem:[#allocation77_spill] sm:$0xff] %v8089_v12  ;;  %v1371_v34 = vsel %vm1365_vm1, %v1356_v27, %v8089_v12  ;;  %v1354_v53 = vpop.permute.xlu1 %1353 }
 0x4b9   : > { %v8101_v52 = vadd.f32 %v1371_v34, %v1200_v58  ;;  %v1370_v55 = vsel %vm1365_vm1, %v1354_v53, %v1356_v27  ;;  %v1203_v27 = vadd.f32 %v7945_v11, %v1010_v41  ;;  %v1202_v58 = vadd.f32 %v1179_v31, %v1009_v35 }
 0x4ba   : > { %v8107_v5 = vadd.f32 %v1370_v55, %v1199_v6  ;;  %v12780_v34 = vmov 6  }
 0x4bb   : > { %7025 = vset.pattern.permute.xlu0 %v12780_v34  ;;  %7024 = vset.pattern.permute.xlu2 %v12780_v34  ;;  %v1404_v9 = vpop.permute.xlu2 %1403 }
 0x4bc   : > { %13005 = vst [vmem:[#allocation78_spill] sm:$0xff] %v8107_v5  ;;  %7026 = vset.pattern.permute.xlu1 %v12780_v34  ;;  %v1419_v47 = vmul.f32 %v1404_v9, %v7559_v24  ;;  %v1418_v55 = vmul.f32 %v1404_v9, %v7554_v21  ;;  %v1417_v1 = vmul.f32 %v1404_v9, %v7551_v20 }
 0x4bf   : > { %v8116_v56 = vpop.permute.xlu0 %1363 }
 0x4c0   : > { %13006 = vst [vmem:[#allocation79_spill] sm:$0xff] %v8116_v56  ;;  %v1373_v59 = vsel %vm1365_vm1, %v1362_v25, %v8116_v56  ;;  %v1360_v57 = vpop.permute.xlu1 %1359 }
 0x4c1   : > { %v8120_v6 = vadd.f32 %v1373_v59, %v1203_v27  ;;  %v1372_v3 = vsel %vm1365_vm1, %v1360_v57, %v1362_v25  ;;  %v8197_v57 = vld [vmem:[%s7533_s21 + $0x8] sm:$0xff] }
 0x4c2   : > { %v8123_v10 = vadd.f32 %v1372_v3, %v1202_v58  ;;  %v8193_v58 = vld [vmem:[%s7533_s21] sm:$0xff] }
 0x4c3   : > { %13007 = vst [vmem:[#allocation80_spill] sm:$0xff] %v8120_v6 }
 0x4c4   : > { %13008 = vst [vmem:[#allocation81_spill] sm:$0xff] %v8123_v10 }
 0x4c8   : > { %v1400_v61 = vpop.permute.xlu1 %1399 }
 0x4c9   : > { %v1414_v29 = vmul.f32 %v1400_v61, %v7536_v13  ;;  %v1416_v11 = vmul.f32 %v1400_v61, %v7539_v14  ;;  %v1415_v53 = vmul.f32 %v1400_v61, %v7542_v15  ;;  %v1408_v13 = vpop.permute.xlu0 %1407  ;;  %v8201_v61 = vld [vmem:[%s7533_s21 + $0x10] sm:$0xff] }
 0x4ca   : > { %v1422_v14 = vmul.f32 %v1408_v13, %v7575_v32  ;;  %v1421_v15 = vmul.f32 %v1408_v13, %v7572_v30  ;;  %v1420_v49 = vmul.f32 %v1408_v13, %v7578_v33  ;;  %v8155_v30 = vld [vmem:[%s12713_s2 + $0x8] sm:$0xff]  ;;  %v8161_v32 = vld [vmem:[%s12713_s2 + $0x10] sm:$0xff]  ;;  %v8167_v33 = vld [vmem:[%s12713_s2] sm:$0xff] }
 0x4cb   : > { %1442 = vrot.lane.b32.xlu1 %v1416_v11, %s7366_s26  ;;  %1440 = vrot.lane.b32.xlu0 %v1415_v53, %s7366_s26 }
 0x4cc   : > { %1438 = vrot.lane.b32.xlu2 %v1414_v29, %s7366_s26 }
 0x4d0   : > { %v1412_v20 = vpop.permute.xlu1 %1411 }
 0x4d1   : > { %v1424_v21 = vmul.f32 %v1412_v20, %v7587_v37  ;;  %v1425_v24 = vmul.f32 %v1412_v20, %v7590_v38  ;;  %v1423_v0 = vmul.f32 %v1412_v20, %v7593_v39  ;;  %v8173_v37 = vld [vmem:[%s12713_s2 + $0x18] sm:$0xff] }
 0x4d3   : > { %1448 = vrot.lane.b32.xlu1 %v1419_v47, %s7366_s26  ;;  %1446 = vrot.lane.b32.xlu0 %v1418_v55, %s7366_s26 }
 0x4d4   : > { %1444 = vrot.lane.b32.xlu2 %v1417_v1, %s7366_s26  ;;  %v8216_v1 = vld [vmem:[%s7533_s21 + $0x18] sm:$0xff] }
 0x4d5   : > { %13021 = vst [vmem:[#allocation94_spill] sm:$0xff] %v8216_v1 }
 0x4db   : > { %1454 = vrot.lane.b32.xlu1 %v1422_v14, %s7366_s26  ;;  %1452 = vrot.lane.b32.xlu0 %v1421_v15, %s7366_s26  ;;  %v8220_v14 = vld [vmem:[%s7533_s21 + $0x20] sm:$0xff] }
 0x4dc   : > { %1450 = vrot.lane.b32.xlu2 %v1420_v49, %s7366_s26  ;;  %v8224_v49 = vld [vmem:[%s7533_s21 + $0x28] sm:$0xff] }
 0x4e3   : > { %1460 = vrot.lane.b32.xlu1 %v1425_v24, %s7366_s26  ;;  %1458 = vrot.lane.b32.xlu0 %v1424_v21, %s7366_s26  ;;  %v8231_v24 = vld [vmem:[%s7533_s21 + $0x38] sm:$0xff] }
 0x4e4   : > { %1456 = vrot.lane.b32.xlu2 %v1423_v0, %s7366_s26 }
 0x4eb   : > { %1499 = vperm.xlu0 %7025, %v8155_v30   ;;  %1503 = vperm.xlu1 %7026, %v8161_v32  }
 0x4ec   : > { %1495 = vperm.xlu2 %7024, %v8167_v33  }
 0x4f4   : > { %1507 = vperm.xlu2 %7024, %v8173_v37  }
 0x526   : > { %v8176_v38 = vpop.permute.xlu2 %1438 }
 0x527   : > { %13009 = vst [vmem:[#allocation82_spill] sm:$0xff] %v8176_v38 }
 0x52e   : > { %v8178_v39 = vpop.permute.xlu2 %1444 }
 0x52f   : > { %13010 = vst [vmem:[#allocation83_spill] sm:$0xff] %v8178_v39 }
 0x536   : > { %v8180_v26 = vpop.permute.xlu2 %1450 }
 0x537   : > { %13011 = vst [vmem:[#allocation84_spill] sm:$0xff] %v8180_v26 }
 0x53d   : > { %v8182_v7 = vpop.permute.xlu0 %1440  ;;  %v8184_v41 = vpop.permute.xlu1 %1442 }
 0x53e   : > { %13012 = vst [vmem:[#allocation85_spill] sm:$0xff] %v8182_v7  ;;  %v8186_v31 = vpop.permute.xlu2 %1456 }
 0x53f   : > { %13013 = vst [vmem:[#allocation86_spill] sm:$0xff] %v8184_v41 }
 0x540   : > { %13014 = vst [vmem:[#allocation87_spill] sm:$0xff] %v8186_v31 }
 0x545   : > { %v8188_v35 = vpop.permute.xlu0 %1446  ;;  %v8190_v27 = vpop.permute.xlu1 %1448 }
 0x546   : > { %13015 = vst [vmem:[#allocation88_spill] sm:$0xff] %v8188_v35  ;;  %v1496_v25 = vpop.permute.xlu2 %1495 }
 0x547   : > { %13016 = vst [vmem:[#allocation89_spill] sm:$0xff] %v8190_v27  ;;  %v1510_v59 = vmul.f32 %v8193_v58, %v1496_v25  ;;  %v1511_v3 = vmul.f32 %v8197_v57, %v1496_v25  ;;  %v1512_v29 = vmul.f32 %v8201_v61, %v1496_v25  ;;  %v8235_v25 = vld [vmem:[%s7533_s21 + $0x40] sm:$0xff] }
 0x548   : > { %13022 = vst [vmem:[#allocation95_spill] sm:$0xff] %v8235_v25 }
 0x549   : > { %1538 = vrot.lane.b32.xlu0 %v1512_v29, %s7368_s16  ;;  %1534 = vrot.lane.b32.xlu1 %v1510_v59, %s7368_s16 }
 0x54a   : > { %1536 = vrot.lane.b32.xlu2 %v1511_v3, %s7368_s16  ;;  %v8239_v3 = vld [vmem:[%s7533_s21 + $0x30] sm:$0xff] }
 0x54b   : > { %13023 = vst [vmem:[#allocation96_spill] sm:$0xff] %v8239_v3 }
 0x54d   : > { %v8207_v11 = vpop.permute.xlu0 %1452  ;;  %v8209_v53 = vpop.permute.xlu1 %1454 }
 0x54e   : > { %13017 = vst [vmem:[#allocation90_spill] sm:$0xff] %v8207_v11 }
 0x54f   : > { %13018 = vst [vmem:[#allocation91_spill] sm:$0xff] %v8209_v53 }
 0x555   : > { %v8211_v9 = vpop.permute.xlu0 %1458  ;;  %v8213_v47 = vpop.permute.xlu1 %1460 }
 0x556   : > { %13019 = vst [vmem:[#allocation92_spill] sm:$0xff] %v8211_v9 }
 0x557   : > { %13020 = vst [vmem:[#allocation93_spill] sm:$0xff] %v8213_v47  ;;  %v8254_v47 = vld [vmem:[%s7533_s21 + $0x48] sm:$0xff] }
 0x55d   : > { %v1500_v55 = vpop.permute.xlu0 %1499  ;;  %v1504_v21 = vpop.permute.xlu1 %1503 }
 0x55e   : > { %v1513_v13 = vmul.f32 %v8216_v1, %v1500_v55  ;;  %v1514_v15 = vmul.f32 %v8220_v14, %v1500_v55  ;;  %v1515_v20 = vmul.f32 %v8224_v49, %v1500_v55  ;;  %v1517_v0 = vmul.f32 %v8231_v24, %v1504_v21  ;;  %v1508_v55 = vpop.permute.xlu2 %1507 }
 0x55f   : > { %v1518_v59 = vmul.f32 %v8235_v25, %v1504_v21  ;;  %v1516_v29 = vmul.f32 %v8239_v3, %v1504_v21  ;;  %v1519_v31 = vmul.f32 %v8254_v47, %v1508_v55  ;;  %v8263_v21 = vld [vmem:[%s12714_s3 + $0x10] sm:$0xff] }
 0x560   : > { %1544 = vrot.lane.b32.xlu0 %v1515_v20, %s7368_s16  ;;  %1542 = vrot.lane.b32.xlu2 %v1514_v15, %s7368_s16  ;;  %v8250_v20 = vld [vmem:[%s7533_s21 + $0x58] sm:$0xff] }
 0x561   : > { %1540 = vrot.lane.b32.xlu1 %v1513_v13, %s7368_s16  ;;  %v8246_v13 = vld [vmem:[%s7533_s21 + $0x50] sm:$0xff]  ;;  %v1521_v34 = vmul.f32 %v8250_v20, %v1508_v55 }
 0x562   : > { %v1520_v15 = vmul.f32 %v8246_v13, %v1508_v55 }
 0x568   : > { %1550 = vrot.lane.b32.xlu0 %v1518_v59, %s7368_s16  ;;  %1548 = vrot.lane.b32.xlu2 %v1517_v0, %s7368_s16  ;;  %v8269_v0 = vld [vmem:[%s12714_s3 + $0x8] sm:$0xff] }
 0x569   : > { %1546 = vrot.lane.b32.xlu1 %v1516_v29, %s7368_s16 }
 0x570   : > { %1556 = vrot.lane.b32.xlu0 %v1521_v34, %s7368_s16  ;;  %1554 = vrot.lane.b32.xlu2 %v1520_v15, %s7368_s16  ;;  %v8275_v34 = vld [vmem:[%s12714_s3] sm:$0xff] }
 0x571   : > { %1552 = vrot.lane.b32.xlu1 %v1519_v31, %s7368_s16  ;;  %v8281_v31 = vld [vmem:[%s12714_s3 + $0x18] sm:$0xff] }
 0x578   : > { %1600 = vperm.xlu0 %7025, %v8263_v21   ;;  %1596 = vperm.xlu2 %7024, %v8269_v0  }
 0x579   : > { %1592 = vperm.xlu1 %7026, %v8275_v34  }
 0x580   : > { %7028 = vset.pattern.permute.xlu0 %v12793_v50  ;;  %7027 = vset.pattern.permute.xlu2 %v12793_v50 }
 0x581   : > { %1604 = vperm.xlu1 %7026, %v8281_v31  }
 0x589   : > { %7029 = vset.pattern.permute.xlu1 %v12793_v50 }
 0x5a4   : > { %v8284_v59 = vpop.permute.xlu2 %1536 }
 0x5ba   : > { %v8288_v55 = vpop.permute.xlu2 %1542 }
 0x5bb   : > { %v8286_v29 = vpop.permute.xlu1 %1534  ;;  %v8290_v15 = vpop.permute.xlu0 %1538 }
 0x5c2   : > { %v8298_v11 = vpop.permute.xlu2 %1548 }
 0x5ca   : > { %v8304_v56 = vpop.permute.xlu2 %1554 }
 0x5cb   : > { %13025 = vst [vmem:[#allocation98_spill] sm:$0xff] %v8304_v56 }
 0x5d2   : > { %v8294_v53 = vpop.permute.xlu0 %1544  ;;  %v1597_v56 = vpop.permute.xlu2 %1596 }
 0x5d3   : > { %v8292_v9 = vpop.permute.xlu1 %1540  ;;  %v1611_v12 = vmul.f32 %v8220_v14, %v1597_v56  ;;  %v1612_v50 = vmul.f32 %v8224_v49, %v1597_v56  ;;  %v1610_v35 = vmul.f32 %v8216_v1, %v1597_v56 }
 0x5da   : > { %v8302_v6 = vpop.permute.xlu0 %1550 }
 0x5db   : > { %v8296_v26 = vpop.permute.xlu1 %1546 }
 0x5e3   : > { %v8300_v10 = vpop.permute.xlu1 %1552 }
 0x5e4   : > { %13024 = vst [vmem:[#allocation97_spill] sm:$0xff] %v8300_v10  ;;  %v8314_v10 = vpop.permute.xlu0 %1556 }
 0x5e5   : > { %13026 = vst [vmem:[#allocation99_spill] sm:$0xff] %v8314_v10 }
 0x5eb   : > { %v1593_v62 = vpop.permute.xlu1 %1592 }
 0x5ec   : > { %v1607_v51 = vmul.f32 %v8193_v58, %v1593_v62  ;;  %v1608_v28 = vmul.f32 %v8197_v57, %v1593_v62  ;;  %v1609_v39 = vmul.f32 %v8201_v61, %v1593_v62  ;;  %v1601_v62 = vpop.permute.xlu0 %1600 }
 0x5ee   : > { %1635 = vrot.lane.b32.xlu1 %v1609_v39, %s7368_s16  ;;  %1633 = vrot.lane.b32.xlu0 %v1608_v28, %s7368_s16  ;;  %v1614_v28 = vmul.f32 %v8231_v24, %v1601_v62  ;;  %v1615_v39 = vmul.f32 %v8235_v25, %v1601_v62 }
 0x5ef   : > { %1631 = vrot.lane.b32.xlu2 %v1607_v51, %s7368_s16  ;;  %v1613_v51 = vmul.f32 %v8239_v3, %v1601_v62 }
 0x5f3   : > { %v1605_v56 = vpop.permute.xlu1 %1604 }
 0x5f6   : > { %1641 = vrot.lane.b32.xlu1 %v1612_v50, %s7368_s16  ;;  %1639 = vrot.lane.b32.xlu0 %v1611_v12, %s7368_s16  ;;  %v1617_v50 = vmul.f32 %v8246_v13, %v1605_v56  ;;  %v1618_v12 = vmul.f32 %v8250_v20, %v1605_v56 }
 0x5f7   : > { %1637 = vrot.lane.b32.xlu2 %v1610_v35, %s7368_s16  ;;  %v1616_v35 = vmul.f32 %v8254_v47, %v1605_v56 }
 0x5fe   : > { %1647 = vrot.lane.b32.xlu1 %v1615_v39, %s7368_s16  ;;  %1645 = vrot.lane.b32.xlu0 %v1614_v28, %s7368_s16 }
 0x5ff   : > { %1643 = vrot.lane.b32.xlu2 %v1613_v51, %s7368_s16 }
 0x606   : > { %1653 = vrot.lane.b32.xlu1 %v1618_v12, %s7368_s16  ;;  %1651 = vrot.lane.b32.xlu0 %v1617_v50, %s7368_s16 }
 0x607   : > { %1649 = vrot.lane.b32.xlu2 %v1616_v35, %s7368_s16 }
 0x60e   : > { %1692 = vperm.xlu0 %7028, %v8155_v30   ;;  %1696 = vperm.xlu1 %7029, %v8161_v32  }
 0x60f   : > { %1688 = vperm.xlu2 %7027, %v8167_v33  }
 0x617   : > { %1700 = vperm.xlu2 %7027, %v8173_v37  }
 0x649   : > { %v8339_v62 = vpop.permute.xlu2 %1631 }
 0x64a   : > { %13027 = vst [vmem:[#allocation100_spill] sm:$0xff] %v8339_v62 }
 0x651   : > { %v8341_v28 = vpop.permute.xlu2 %1637 }
 0x652   : > { %13028 = vst [vmem:[#allocation101_spill] sm:$0xff] %v8341_v28 }
 0x659   : > { %v8343_v39 = vpop.permute.xlu2 %1643 }
 0x65a   : > { %13029 = vst [vmem:[#allocation102_spill] sm:$0xff] %v8343_v39 }
 0x660   : > { %v8345_v51 = vpop.permute.xlu0 %1633  ;;  %v8347_v56 = vpop.permute.xlu1 %1635 }
 0x661   : > { %13030 = vst [vmem:[#allocation103_spill] sm:$0xff] %v8345_v51  ;;  %v8349_v50 = vpop.permute.xlu2 %1649  ;;  %v12813_v51 = vmov 8  }
 0x662   : > { %13031 = vst [vmem:[#allocation104_spill] sm:$0xff] %v8347_v56 }
 0x663   : > { %13032 = vst [vmem:[#allocation105_spill] sm:$0xff] %v8349_v50 }
 0x668   : > { %v8351_v12 = vpop.permute.xlu0 %1639  ;;  %v8353_v35 = vpop.permute.xlu1 %1641 }
 0x669   : > { %13033 = vst [vmem:[#allocation106_spill] sm:$0xff] %v8351_v12  ;;  %v1689_v10 = vpop.permute.xlu2 %1688 }
 0x66a   : > { %13034 = vst [vmem:[#allocation107_spill] sm:$0xff] %v8353_v35  ;;  %v1703_v27 = vmul.f32 %v8193_v58, %v1689_v10  ;;  %v1704_v63 = vmul.f32 %v8197_v57, %v1689_v10  ;;  %v1705_v48 = vmul.f32 %v8201_v61, %v1689_v10 }
 0x66c   : > { %1731 = vrot.lane.b32.xlu0 %v1705_v48, %s7370_s14  ;;  %1727 = vrot.lane.b32.xlu1 %v1703_v27, %s7370_s14 }
 0x66d   : > { %1729 = vrot.lane.b32.xlu2 %v1704_v63, %s7370_s14 }
 0x670   : > { %v8361_v39 = vpop.permute.xlu0 %1645  ;;  %v8363_v50 = vpop.permute.xlu1 %1647 }
 0x671   : > { %13035 = vst [vmem:[#allocation108_spill] sm:$0xff] %v8361_v39 }
 0x672   : > { %13036 = vst [vmem:[#allocation109_spill] sm:$0xff] %v8363_v50 }
 0x678   : > { %v8365_v28 = vpop.permute.xlu0 %1651  ;;  %v8367_v12 = vpop.permute.xlu1 %1653 }
 0x679   : > { %13037 = vst [vmem:[#allocation110_spill] sm:$0xff] %v8365_v28 }
 0x67a   : > { %13038 = vst [vmem:[#allocation111_spill] sm:$0xff] %v8367_v12 }
 0x680   : > { %v1693_v35 = vpop.permute.xlu0 %1692  ;;  %v1697_v48 = vpop.permute.xlu1 %1696 }
 0x681   : > { %v1706_v22 = vmul.f32 %v8216_v1, %v1693_v35  ;;  %v1707_v10 = vmul.f32 %v8220_v14, %v1693_v35  ;;  %v1708_v62 = vmul.f32 %v8224_v49, %v1693_v35  ;;  %v1710_v63 = vmul.f32 %v8231_v24, %v1697_v48  ;;  %v1701_v35 = vpop.permute.xlu2 %1700 }
 0x682   : > { %v1711_v27 = vmul.f32 %v8235_v25, %v1697_v48  ;;  %v1709_v12 = vmul.f32 %v8239_v3, %v1697_v48 }
 0x683   : > { %1737 = vrot.lane.b32.xlu0 %v1708_v62, %s7370_s14  ;;  %1735 = vrot.lane.b32.xlu2 %v1707_v10, %s7370_s14  ;;  %v1713_v62 = vmul.f32 %v8246_v13, %v1701_v35  ;;  %v1714_v10 = vmul.f32 %v8250_v20, %v1701_v35 }
 0x684   : > { %1733 = vrot.lane.b32.xlu1 %v1706_v22, %s7370_s14  ;;  %v1712_v22 = vmul.f32 %v8254_v47, %v1701_v35 }
 0x68b   : > { %1743 = vrot.lane.b32.xlu0 %v1711_v27, %s7370_s14  ;;  %1741 = vrot.lane.b32.xlu2 %v1710_v63, %s7370_s14 }
 0x68c   : > { %1739 = vrot.lane.b32.xlu1 %v1709_v12, %s7370_s14 }
 0x693   : > { %1749 = vrot.lane.b32.xlu0 %v1714_v10, %s7370_s14  ;;  %1747 = vrot.lane.b32.xlu2 %v1713_v62, %s7370_s14 }
 0x694   : > { %1745 = vrot.lane.b32.xlu1 %v1712_v22, %s7370_s14 }
 0x69b   : > { %1793 = vperm.xlu0 %7028, %v8263_v21   ;;  %1789 = vperm.xlu2 %7027, %v8269_v0  }
 0x69c   : > { %1785 = vperm.xlu1 %7029, %v8275_v34  }
 0x6a3   : > { %7031 = vset.pattern.permute.xlu0 %v12813_v51  ;;  %7030 = vset.pattern.permute.xlu2 %v12813_v51 }
 0x6a4   : > { %1797 = vperm.xlu1 %7029, %v8281_v31  }
 0x6ac   : > { %7033 = vset.pattern.permute.xlu1 %v12813_v51 }
 0x6c7   : > { %v8391_v12 = vpop.permute.xlu2 %1729 }
 0x6dd   : > { %v8395_v63 = vpop.permute.xlu2 %1735 }
 0x6de   : > { %v8393_v48 = vpop.permute.xlu1 %1727  ;;  %v8397_v27 = vpop.permute.xlu0 %1731 }
 0x6e5   : > { %v8405_v22 = vpop.permute.xlu2 %1741 }
 0x6ed   : > { %v8411_v39 = vpop.permute.xlu2 %1747 }
 0x6ee   : > { %13040 = vst [vmem:[#allocation113_spill] sm:$0xff] %v8411_v39 }
 0x6f5   : > { %v8401_v62 = vpop.permute.xlu0 %1737  ;;  %v1790_v39 = vpop.permute.xlu2 %1789 }
 0x6f6   : > { %v8399_v35 = vpop.permute.xlu1 %1733  ;;  %v1804_v45 = vmul.f32 %v8220_v14, %v1790_v39  ;;  %v1805_v51 = vmul.f32 %v8224_v49, %v1790_v39  ;;  %v1803_v5 = vmul.f32 %v8216_v1, %v1790_v39 }
 0x6fd   : > { %v8409_v50 = vpop.permute.xlu0 %1743 }
 0x6fe   : > { %v8403_v10 = vpop.permute.xlu1 %1739 }
 0x706   : > { %v8407_v28 = vpop.permute.xlu1 %1745 }
 0x707   : > { %13039 = vst [vmem:[#allocation112_spill] sm:$0xff] %v8407_v28  ;;  %v8421_v28 = vpop.permute.xlu0 %1749 }
 0x708   : > { %13041 = vst [vmem:[#allocation114_spill] sm:$0xff] %v8421_v28 }
 0x70e   : > { %v1786_v56 = vpop.permute.xlu1 %1785 }
 0x70f   : > { %v1800_v38 = vmul.f32 %v8193_v58, %v1786_v56  ;;  %v1801_v7 = vmul.f32 %v8197_v57, %v1786_v56  ;;  %v1802_v41 = vmul.f32 %v8201_v61, %v1786_v56 }
 0x711   : > { %1828 = vrot.lane.b32.xlu1 %v1802_v41, %s7370_s14  ;;  %1826 = vrot.lane.b32.xlu0 %v1801_v7, %s7370_s14  ;;  %v1794_v41 = vpop.permute.xlu0 %1793 }
 0x712   : > { %1824 = vrot.lane.b32.xlu2 %v1800_v38, %s7370_s14  ;;  %v1807_v7 = vmul.f32 %v8231_v24, %v1794_v41  ;;  %v1808_v56 = vmul.f32 %v8235_v25, %v1794_v41  ;;  %v1806_v38 = vmul.f32 %v8239_v3, %v1794_v41  ;;  %v13042_v41 = vmov 0  }
 0x716   : > { %v1798_v39 = vpop.permute.xlu1 %1797 }
 0x719   : > { %1834 = vrot.lane.b32.xlu1 %v1805_v51, %s7370_s14  ;;  %1832 = vrot.lane.b32.xlu0 %v1804_v45, %s7370_s14  ;;  %v1810_v45 = vmul.f32 %v8246_v13, %v1798_v39  ;;  %v1809_v51 = vmul.f32 %v8254_v47, %v1798_v39  ;;  %v2333_v13 = vld [vmem:[%s409_s27 + $0x18] sm:$0xff] }
 0x71a   : > { %1830 = vrot.lane.b32.xlu2 %v1803_v5, %s7370_s14  ;;  %v1811_v5 = vmul.f32 %v8250_v20, %v1798_v39 }
 0x721   : > { %1840 = vrot.lane.b32.xlu1 %v1808_v56, %s7370_s14  ;;  %1838 = vrot.lane.b32.xlu0 %v1807_v7, %s7370_s14  ;;  %v2331_v56 = vld [vmem:[%s409_s27 + $0x8] sm:$0xff] }
 0x722   : > { %1836 = vrot.lane.b32.xlu2 %v1806_v38, %s7370_s14 }
 0x729   : > { %1846 = vrot.lane.b32.xlu1 %v1811_v5, %s7370_s14  ;;  %1844 = vrot.lane.b32.xlu0 %v1810_v45, %s7370_s14 }
 0x72a   : > { %1842 = vrot.lane.b32.xlu2 %v1809_v51, %s7370_s14 }
 0x731   : > { %1889 = vperm.xlu1 %7033, %v8161_v32   ;;  %1885 = vperm.xlu0 %7031, %v8155_v30   ;;  %v2332_v32 = vld [vmem:[%s409_s27 + $0x10] sm:$0xff] }
 0x732   : > { %1881 = vperm.xlu2 %7030, %v8167_v33   ;;  %v2335_v7 = vpack.c.bf16 %v2333_v13, %v2332_v32 }
 0x734   : > { %2431 = vmatpush.bf16.msra.mxu0 %v2335_v7 }
 0x739   : > { %1893 = vperm.xlu1 %7033, %v8173_v37   ;;  %7032 = vset.pattern.permute.xlu0 %v13042_v41  ;;  %v2330_v37 = vld [vmem:[%s409_s27] sm:$0xff]  ;;  %s11990_s27 = scalar_lea.vmem %s12722_s11, %s6958_s15  ;;  %s7384_s15 = smov 114  }
 0x73a   : > { %1978 = vperm.xlu2 %7030, %v8275_v34   ;;  %443 = vperm.xlu0 %7032, %v8167_v33   ;;  %v2334_v38 = vpack.c.bf16 %v2331_v56, %v2330_v37  ;;  %v6961_v33 = vld [vmem:[%s12715_s4] sm:$0xff] }
 0x73c   : > { %2432 = vmatpush.bf16.msra.mxu0 %v2334_v38 }
 0x73f   : > { %6826 = vmatmul.msk.bf16.vlgmr.msra.gmra.mxu0 %vm2412_vm5, %v6961_v33 }
 0x742   : > { %448 = vperm.xlu0 %7032, %v8155_v30   ;;  %v6962_v30 = vld [vmem:[%s12715_s4 + $0x8] sm:$0xff] }
 0x74a   : > { %497 = vperm.xlu0 %7032, %v8263_v21  }
 0x74f   : > { %6827 = vmatmul.msk.bf16.gmra.mxu0 %vm2412_vm5, %v6962_v30 }
 0x76c   : > { %v8465_v34 = vpop.permute.xlu2 %1824 }
 0x76d   : > { %13043 = vst [vmem:[#allocation115_spill] sm:$0xff] %v8465_v34 }
 0x774   : > { %v8467_v39 = vpop.permute.xlu2 %1830 }
 0x775   : > { %13044 = vst [vmem:[#allocation116_spill] sm:$0xff] %v8467_v39 }
 0x77c   : > { %v8469_v45 = vpop.permute.xlu2 %1836 }
 0x77d   : > { %13045 = vst [vmem:[#allocation117_spill] sm:$0xff] %v8469_v45  ;;  %v2346_v45 = vld [vmem:[%s12716_s5 + $0x10] sm:$0xff] }
 0x783   : > { %v8471_v5 = vpop.permute.xlu0 %1826  ;;  %v8473_v51 = vpop.permute.xlu1 %1828 }
 0x784   : > { %13046 = vst [vmem:[#allocation118_spill] sm:$0xff] %v8471_v5  ;;  %v8475_v32 = vpop.permute.xlu2 %1842 }
 0x785   : > { %13047 = vst [vmem:[#allocation119_spill] sm:$0xff] %v8473_v51 }
 0x786   : > { %13048 = vst [vmem:[#allocation120_spill] sm:$0xff] %v8475_v32 }
 0x78b   : > { %v8477_v13 = vpop.permute.xlu0 %1832  ;;  %v8479_v7 = vpop.permute.xlu1 %1834 }
 0x78c   : > { %13049 = vst [vmem:[#allocation121_spill] sm:$0xff] %v8477_v13  ;;  %v1882_v37 = vpop.permute.xlu2 %1881 }
 0x78d   : > { %13050 = vst [vmem:[#allocation122_spill] sm:$0xff] %v8479_v7  ;;  %v1896_v56 = vmul.f32 %v8193_v58, %v1882_v37  ;;  %v1897_v38 = vmul.f32 %v8197_v57, %v1882_v37  ;;  %v1898_v33 = vmul.f32 %v8201_v61, %v1882_v37 }
 0x78f   : > { %1924 = vrot.lane.b32.xlu1 %v1898_v33, %s7372_s13  ;;  %1922 = vrot.lane.b32.xlu0 %v1897_v38, %s7372_s13 }
 0x790   : > { %1920 = vrot.lane.b32.xlu2 %v1896_v56, %s7372_s13  ;;  %v13055_v56 = vmov 8  }
 0x793   : > { %v8487_v30 = vpop.permute.xlu0 %1838  ;;  %v8489_v32 = vpop.permute.xlu1 %1840 }
 0x794   : > { %13051 = vst [vmem:[#allocation123_spill] sm:$0xff] %v8487_v30  ;;  %v8494_v28 = vpop.permute.xlu2 %1978 }
 0x795   : > { %13052 = vst [vmem:[#allocation124_spill] sm:$0xff] %v8489_v32  ;;  %v1994_v38 = vmul.f32 %v8197_v57, %v8494_v28 }
 0x797   : > { %2364 = vperm.xlu0 %7032, %v2346_v45  }
 0x79b   : > { %v8496_v39 = vpop.permute.xlu0 %1844  ;;  %v8498_v37 = vpop.permute.xlu1 %1846 }
 0x79c   : > { %13053 = vst [vmem:[#allocation125_spill] sm:$0xff] %v8496_v39 }
 0x79d   : > { %13054 = vst [vmem:[#allocation126_spill] sm:$0xff] %v8498_v37 }
 0x79f   : > { %2019 = vrot.lane.b32.xlu0 %v1994_v38, %s7372_s13 }
 0x7a0   : > { %7043 = vset.pattern.permute.xlu0 %v13055_v56 }
 0x7a3   : > { %v1886_v33 = vpop.permute.xlu0 %1885  ;;  %v1890_v32 = vpop.permute.xlu1 %1889 }
 0x7a4   : > { %v1899_v30 = vmul.f32 %v8216_v1, %v1886_v33  ;;  %v1900_v13 = vmul.f32 %v8220_v14, %v1886_v33  ;;  %v1904_v45 = vmul.f32 %v8235_v25, %v1890_v32  ;;  %v1901_v37 = vmul.f32 %v8224_v49, %v1886_v33 }
 0x7a5   : > { %v1902_v38 = vmul.f32 %v8239_v3, %v1890_v32  ;;  %v787_v3 = vsel %vm786_vm3, %v7703_v17, %v7701_v16 }
 0x7a6   : > { %1928 = vrot.lane.b32.xlu1 %v1900_v13, %s7372_s13  ;;  %1926 = vrot.lane.b32.xlu2 %v1899_v30, %s7372_s13  ;;  %v595_v13 = vsel %vm593_vm2, %v7651_v40, %v7657_v42  ;;  %v594_v30 = vsel %vm593_vm2, %v7659_v43, %v7651_v40  ;;  %v981_v40 = vsel %vm979_vm4, %v7808_v36, %v7814_v60 }
 0x7a7   : > { %1936 = vrot.lane.b32.xlu0 %v1904_v45, %s7372_s13  ;;  %v980_v43 = vsel %vm979_vm4, %v7810_v54, %v7808_v36 }
 0x7ab   : > { %v8512_v39 = vpop.permute.xlu1 %1893 }
 0x7ac   : > { %v1907_v56 = vmul.f32 %v8250_v20, %v8512_v39  ;;  %v444_v7 = vpop.permute.xlu0 %443  ;;  %v788_v20 = vsel %vm786_vm3, %v7701_v16, %v7705_v18  ;;  %v1995_v16 = vmul.f32 %v8201_v61, %v8494_v28 }
 0x7ad   : > { %v461_v34 = vmul.f32 %v8193_v58, %v444_v7  ;;  %v462_v25 = vmul.f32 %v8197_v57, %v444_v7 }
 0x7ae   : > { %1930 = vrot.lane.b32.xlu2 %v1901_v37, %s7372_s13  ;;  %1932 = vrot.lane.b32.xlu1 %v1902_v38, %s7372_s13 }
 0x7af   : > { %v614_v33 = vadd.f32 %v594_v30, %v461_v34  ;;  %v615_v45 = vadd.f32 %v595_v13, %v462_v25  ;;  %1942 = vrot.lane.b32.xlu0 %v1907_v56, %s7372_s13  ;;  %v1903_v25 = vmul.f32 %v8231_v24, %v1890_v32  ;;  %v13056_v56 = vld [vmem:[#allocation59_spill] sm:$0xff]  ;;  %v13058_v24 = vld [vmem:[#allocation8_spill] sm:$0xff]  ;;  %v13060_v32 = vld [vmem:[#allocation9_spill] sm:$0xff] }
 0x7b0   : > { %v1173_v38 = vsel %vm1172_vm0, %v13056_v56, %v7915_v4  ;;  %v13062_v56 = vld [vmem:[#allocation24_spill] sm:$0xff] }
 0x7b1   : > { %v807_v5 = vadd.f32 %v787_v3, %v614_v33  ;;  %v808_v51 = vadd.f32 %v788_v20, %v615_v45  ;;  %v13057_v3 = vld [vmem:[#allocation58_spill] sm:$0xff] }
 0x7b2   : > { %v1174_v13 = vsel %vm1172_vm0, %v7915_v4, %v13057_v3  ;;  %v1367_v4 = vsel %vm1365_vm1, %v8039_v2, %v8045_v46 }
 0x7b3   : > { %v1000_v34 = vadd.f32 %v980_v43, %v807_v5  ;;  %v1001_v37 = vadd.f32 %v981_v40, %v808_v51  ;;  %v13059_v5 = vld [vmem:[#allocation7_spill] sm:$0xff] }
 0x7b4   : > { %v449_v17 = vpop.permute.xlu0 %448  ;;  %v597_v51 = vsel %vm593_vm2, %v13059_v5, %v13058_v24  ;;  %v596_v33 = vsel %vm593_vm2, %v13060_v32, %v13059_v5  ;;  %v13063_v5 = vld [vmem:[#allocation25_spill] sm:$0xff]  ;;  %v13064_v32 = vld [vmem:[#allocation43_spill] sm:$0xff] }
 0x7b5   : > { %v464_v30 = vmul.f32 %v8216_v1, %v449_v17  ;;  %v465_v36 = vmul.f32 %v8220_v14, %v449_v17  ;;  %v1193_v54 = vadd.f32 %v1173_v38, %v1000_v34  ;;  %v1194_v45 = vadd.f32 %v1174_v13, %v1001_v37  ;;  %v13061_v34 = vld [vmem:[#allocation26_spill] sm:$0xff]  ;;  %v13065_v1 = vld [vmem:[#allocation41_spill] sm:$0xff] }
 0x7b6   : > { %1934 = vrot.lane.b32.xlu2 %v1903_v25, %s7372_s13  ;;  %2021 = vrot.lane.b32.xlu1 %v1995_v16, %s7372_s13  ;;  %v790_v38 = vsel %vm786_vm3, %v13062_v56, %v13061_v34  ;;  %v789_v25 = vsel %vm786_vm3, %v13063_v5, %v13062_v56  ;;  %v983_v2 = vsel %vm979_vm4, %v13065_v1, %v13064_v32  ;;  %v2347_v5 = vld [vmem:[%s12716_s5 + $0x18] sm:$0xff] }
 0x7b7   : > { %v617_v20 = vadd.f32 %v596_v33, %v464_v30  ;;  %v618_v40 = vadd.f32 %v597_v51, %v465_v36  ;;  %1986 = vperm.xlu0 %7043, %v8263_v21   ;;  %v1386_v43 = vadd.f32 %v8043_v19, %v1193_v54  ;;  %v1387_v16 = vadd.f32 %v1367_v4, %v1194_v45  ;;  %v13066_v30 = vld [vmem:[#allocation42_spill] sm:$0xff]  ;;  %v13067_v33 = vld [vmem:[#allocation61_spill] sm:$0xff]  ;;  %v13068_v45 = vld [vmem:[#allocation60_spill] sm:$0xff] }
 0x7b8   : > { %v982_v21 = vsel %vm979_vm4, %v13066_v30, %v13065_v1  ;;  %v1905_v19 = vmul.f32 %v8254_v47, %v8512_v39  ;;  %v1993_v51 = vmul.f32 %v8193_v58, %v8494_v28  ;;  %v1176_v4 = vsel %vm1172_vm0, %v13068_v45, %v13067_v33 }
 0x7b9   : > { %v810_v37 = vadd.f32 %v789_v25, %v617_v20  ;;  %v811_v13 = vadd.f32 %v790_v38, %v618_v40  ;;  %v13069_v20 = vld [vmem:[#allocation62_spill] sm:$0xff]  ;;  %v1369_v47 = vsel %vm1365_vm1, %v8047_v23, %v8057_v8  ;;  %v463_v25 = vmul.f32 %v8201_v61, %v444_v7 }
 0x7ba   : > { %v1175_v40 = vsel %vm1172_vm0, %v13069_v20, %v13068_v45 }
 0x7bb   : > { %v1003_v36 = vadd.f32 %v982_v21, %v810_v37  ;;  %v1004_v54 = vadd.f32 %v983_v2, %v811_v13  ;;  %v616_v23 = vadd.f32 %v7657_v42, %v463_v25 }
 0x7bc   : > { %v8609_v30 = vpop.f32.mrf.mxu0  ;;  %v8613_v42 = vpop.permute.xlu0 %497 }
 0x7bd   : > { %v1196_v1 = vadd.f32 %v1175_v40, %v1003_v36  ;;  %v1197_v56 = vadd.f32 %v1176_v4, %v1004_v54  ;;  %v809_v37 = vadd.f32 %v7705_v18, %v616_v23  ;;  %v1753_v36 = vsel %vm1751_vm7, %v8391_v12, %v8397_v27 }
 0x7be   : > { %2017 = vrot.lane.b32.xlu2 %v1993_v51, %s7372_s13  ;;  %1938 = vrot.lane.b32.xlu1 %v1905_v19, %s7372_s13 }
 0x7bf   : > { %v8591_v28 = vadd.f32 %v8069_v44, %v1196_v1  ;;  %v8593_v38 = vadd.f32 %v1369_v47, %v1197_v56  ;;  %v466_v44 = vmul.f32 %v8224_v49, %v449_v17 }
 0x7c1   : > { %v619_v13 = vadd.f32 %v13058_v24, %v466_v44  ;;  %v1559_v24 = vsel %vm1558_vm6, %v8286_v29, %v8284_v59 }
 0x7c6   : > { %1982 = vperm.xlu1 %7033, %v8269_v0   ;;  %v1002_v0 = vadd.f32 %v7814_v60, %v809_v37  ;;  %v1560_v60 = vsel %vm1558_vm6, %v8284_v59, %v8290_v15  ;;  %v1752_v59 = vsel %vm1751_vm7, %v8393_v48, %v8391_v12 }
 0x7c8   : > { %v1195_v2 = vadd.f32 %v13057_v3, %v1002_v0  ;;  %v1580_v3 = vadd.f32 %v1560_v60, %v1387_v16  ;;  %v13070_v60 = vld [vmem:[#allocation13_spill] sm:$0xff] }
 0x7ca   : > { %v1388_v7 = vadd.f32 %v8045_v46, %v1195_v2  ;;  %v1579_v46 = vadd.f32 %v1559_v24, %v1386_v43  ;;  %v1773_v16 = vadd.f32 %v1753_v36, %v1580_v3  ;;  %v1564_v24 = vsel %vm1558_vm6, %v8298_v11, %v8302_v6 }
 0x7cc   : > { %v1581_v17 = vadd.f32 %v8290_v15, %v1388_v7  ;;  %v1772_v45 = vadd.f32 %v1752_v59, %v1579_v46 }
 0x7ce   : > { %1990 = vperm.xlu1 %7033, %v8281_v31   ;;  %v812_v31 = vadd.f32 %v13061_v34, %v619_v13  ;;  %v8623_v34 = vpop.f32.mrf.mxu0  ;;  %v1774_v15 = vadd.f32 %v8397_v27, %v1581_v17  ;;  %v13071_v17 = vld [vmem:[#allocation11_spill] sm:$0xff] }
 0x7cf   : > { %v690_v3 = vsel %vm593_vm2, %v13071_v17, %v13070_v60  ;;  %v13081_v17 = vld [vmem:[#allocation78_spill] sm:$0xff] }
 0x7d0   : > { %v1005_v21 = vadd.f32 %v13064_v32, %v812_v31 }
 0x7d2   : > { %v1198_v18 = vadd.f32 %v13067_v33, %v1005_v21 }
 0x7d4   : > { %v1391_v32 = vadd.f32 %v8057_v8, %v1198_v18  ;;  %v1562_v18 = vsel %vm1558_vm6, %v8288_v55, %v8294_v53 }
 0x7d5   : > { %v1583_v46 = vadd.f32 %v1562_v18, %v8593_v38  ;;  %v1757_v38 = vsel %vm1751_vm7, %v8405_v22, %v8409_v50 }
 0x7d6   : > { %7044 = vset.pattern.permute.xlu1 %v13042_v41  ;;  %v1584_v20 = vadd.f32 %v8294_v53, %v1391_v32  ;;  %v2439_v25 = vpop.f32.mrf.mxu0  ;;  %v13072_v32 = vld [vmem:[#allocation2_spill] sm:$0xff] }
 0x7d7   : > { %2369 = vperm.xlu1 %7044, %v2347_v5   ;;  %v505_v36 = vmul.f32 %v8193_v58, %v13072_v32 }
 0x7d8   : > { %v1777_v12 = vadd.f32 %v8401_v62, %v1584_v20 }
 0x7d9   : > { %v710_v59 = vadd.f32 %v690_v3, %v505_v36 }
 0x7ea   : > { %v1921_v19 = vpop.permute.xlu2 %1920 }
 0x800   : > { %v8629_v54 = vpop.permute.xlu2 %1926 }
 0x801   : > { %v1923_v51 = vpop.permute.xlu0 %1922  ;;  %v1925_v33 = vpop.permute.xlu1 %1924 }
 0x802   : > { %v1945_v29 = vsel %vm12928_vm8, %v1921_v19, %v1923_v51  ;;  %v1946_v43 = vsel %vm12928_vm8, %v1923_v51, %v1925_v33  ;;  %v1967_v8 = vadd.f32 %v1925_v33, %v1774_v15  ;;  %v507_v15 = vmul.f32 %v8201_v61, %v13072_v32  ;;  %v13073_v51 = vld [vmem:[#allocation15_spill] sm:$0xff] }
 0x803   : > { %v1966_v4 = vadd.f32 %v1946_v43, %v1773_v16  ;;  %v1965_v27 = vadd.f32 %v1945_v29, %v1772_v45  ;;  %v691_v53 = vsel %vm593_vm2, %v13070_v60, %v13073_v51  ;;  %v1561_v16 = vsel %vm1558_vm6, %v8292_v9, %v8288_v55  ;;  %v13074_v55 = vld [vmem:[#allocation33_spill] sm:$0xff]  ;;  %v13075_v45 = vld [vmem:[#allocation32_spill] sm:$0xff] }
 0x804   : > { %v2086_v40 = vrot.slane %v1967_v8, 4  ;;  %2093 = vst [vmem:[#allocation1 + $0x10] ss:$2 sm:$0xff] %v1967_v8  ;;  %v506_v33 = vmul.f32 %v8197_v57, %v13072_v32  ;;  %v1582_v58 = vadd.f32 %v1561_v16, %v8591_v28  ;;  %v712_v61 = vadd.f32 %v13073_v51, %v507_v15  ;;  %v8684_v28 = vld [vmem:[%s12720_s9] sm:$0x7]  ;;  %v13083_v32 = vld [vmem:[#allocation66_spill] sm:$0xff] }
 0x805   : > { %v2080_v1 = vrot.slane %v1966_v4, 4  ;;  %v1586_v29 = vadd.f32 %v1564_v24, %v8101_v52  ;;  %v1755_v43 = vsel %vm1751_vm7, %v8395_v63, %v8401_v62  ;;  %v884_v57 = vsel %vm786_vm3, %v13075_v45, %v13074_v55 }
 0x806   : > { %2100 = vst [vmem:[#allocation1 + $0x30] ss:$2 sm:$0xff] %v2086_v40  ;;  %v711_v9 = vadd.f32 %v691_v53, %v506_v33  ;;  %v1776_v40 = vadd.f32 %v1755_v43, %v1583_v46  ;;  %v1754_v62 = vsel %vm1751_vm7, %v8399_v35, %v8395_v63  ;;  %v13077_v63 = vld [vmem:[#allocation50_spill] sm:$0xff]  ;;  %v13078_v35 = vld [vmem:[#allocation49_spill] sm:$0xff]  ;;  %v13082_v46 = vld [vmem:[#allocation67_spill] sm:$0xff] }
 0x807   : > { %v2083_v56 = vsel %vm2082_vm9, %v1965_v27, %v2080_v1  ;;  %v2084_v47 = vsel %vm2082_vm9, %v2080_v1, %v1965_v27  ;;  %v1779_v27 = vadd.f32 %v1757_v38, %v1586_v29  ;;  %v1270_v36 = vsel %vm1172_vm0, %v13083_v32, %v13082_v46  ;;  %v13086_v29 = vld [vmem:[#allocation85_spill] sm:$0xff] }
 0x808   : > { %v2085_v48 = vrot.slane %v2084_v47, 4  ;;  %2091 = vst [vmem:[#allocation1] ss:$2 sm:$0xff] %v2083_v56  ;;  %v1931_v5 = vpop.permute.xlu2 %1930  ;;  %v13076_v47 = vld [vmem:[#allocation29_spill] sm:$0xff]  ;;  %v8728_v38 = vperm.slane %v8684_v28, 0 }
 0x809   : > { %v2365_v23 = vpop.permute.xlu0 %2364  ;;  %v1970_v44 = vadd.f32 %v1931_v5, %v1777_v12  ;;  %v883_v12 = vsel %vm786_vm3, %v13076_v47, %v13075_v45 }
 0x80a   : > { %2098 = vst [vmem:[#allocation1 + $0x20] ss:$2 sm:$0xff] %v2085_v48  ;;  %v2440_v37 = vadd.f32 %v2439_v25, %v2365_v23  ;;  %v1563_v48 = vsel %vm1558_vm6, %v8296_v26, %v8298_v11  ;;  %v905_v23 = vadd.f32 %v13074_v55, %v712_v61  ;;  %v903_v26 = vadd.f32 %v883_v12, %v710_v59  ;;  %v13080_v11 = vld [vmem:[#allocation46_spill] sm:$0xff]  ;;  %v13090_v12 = vld [vmem:[#allocation68_spill] sm:$0xff] }
 0x80b   : > { %v8641_v13 = vld.sshfl [vmem:[#allocation1 + $0x10] sm:$0xff pattern:$0x75316420]  ;;  %v2090_v0 = vrot.slane %v1970_v44, 4  ;;  %v1076_v18 = vsel %vm979_vm4, %v13080_v11, %v13078_v35  ;;  %v1585_v3 = vadd.f32 %v1563_v48, %v13081_v17  ;;  %13084 = vst [vmem:[#allocation58_spill] sm:$0xff] %v8728_v38  ;;  %v13085_v61 = vld [vmem:[#allocation86_spill] sm:$0xff] }
 0x80c   : > { %v2466_v31 = vrot.slane %v2440_v37, 4  ;;  %2105 = vst [vmem:[#allocation1 + $0x10] ss:$2 sm:$0xff] %v1970_v44  ;;  %v2470_v21 = vpack.c.bf16 %v2440_v37, %v2440_v37  ;;  %v1077_v44 = vsel %vm979_vm4, %v13078_v35, %v13077_v63  ;;  %v8707_v37 = vperm.slane %v8684_v28, 1 }
 0x80d   : > { %v8643_v2 = vld.sshfl [vmem:[#allocation1 + $0x30] sm:$0xff pattern:$0x75316420]  ;;  %v1098_v60 = vadd.f32 %v13077_v63, %v905_v23  ;;  %v1463_v43 = vsel %vm1365_vm1, %v13086_v29, %v13085_v61  ;;  %v1096_v45 = vadd.f32 %v1076_v18, %v903_v26  ;;  %v13091_v23 = vld [vmem:[#allocation100_spill] sm:$0xff] }
 0x80e   : > { %v2471_v19 = vpack.c.bf16 %v2466_v31, %v2466_v31  ;;  %2110 = vst [vmem:[#allocation1 + $0x30] ss:$2 sm:$0xff] %v2090_v0  ;;  %v904_v0 = vadd.f32 %v884_v57, %v711_v9  ;;  %v1756_v31 = vsel %vm1751_vm7, %v8403_v10, %v8405_v22  ;;  %v13094_v18 = vld [vmem:[#allocation115_spill] sm:$0xff] }
 0x80f   : > { %13079 = vst [vmem:[#allocation59_spill] sm:$0xff] %v8707_v37  ;;  %v8720_v15 = vld.sshfl [vmem:[#allocation1] sm:$0xff pattern:$0x75316420]  ;;  %v1778_v53 = vadd.f32 %v1756_v31, %v1585_v3  ;;  %v1291_v59 = vadd.f32 %v13082_v46, %v1098_v60  ;;  %v1289_v48 = vadd.f32 %v13090_v12, %v1096_v45 }
 0x810   : > { %7034 = vxpose.binary.xlu2.c.b16.start.end [1/2] (short) (narrow) %v2471_v19, %v2470_v21, 64  ;;  %v1935_v4 = vpop.permute.xlu2 %1934  ;;  %v1097_v24 = vadd.f32 %v1077_v44, %v904_v0  ;;  %v8722_v51 = vld.sshfl [vmem:[#allocation1 + $0x8] sm:$0xff pattern:$0x75316420]  ;;  %v13092_v44 = vld [vmem:[#allocation119_spill] sm:$0xff] }
 0x811   : > { %v8645_v7 = vpop.permute.xlu0 %2019  ;;  %v8736_v9 = vld.sshfl [vmem:[#allocation1 + $0x28] sm:$0xff pattern:$0x75316420] }
 0x812   : > { %v1290_v57 = vadd.f32 %v1270_v36, %v1097_v24 }
 0x818   : > { %v1929_v8 = vpop.permute.xlu1 %1928 }
 0x819   : > { %v8686_v20 = vpop.permute.xlu0 %1936  ;;  %v1948_v52 = vsel %vm12928_vm8, %v1929_v8, %v1931_v5  ;;  %v1947_v56 = vsel %vm12928_vm8, %v8629_v54, %v1929_v8  ;;  %v1775_v5 = vadd.f32 %v1754_v62, %v1582_v58  ;;  %v8734_v8 = vld.sshfl [vmem:[#allocation1 + $0x20] sm:$0xff pattern:$0x75316420] }
 0x81a   : > { %v1950_v1 = vsel %vm12928_vm8, %v1935_v4, %v8686_v20  ;;  %v1969_v25 = vadd.f32 %v1948_v52, %v1776_v40  ;;  %v13087_v52 = vld [vmem:[#allocation82_spill] sm:$0xff] }
 0x81b   : > { %v1972_v54 = vadd.f32 %v1950_v1, %v1779_v27  ;;  %v1968_v21 = vadd.f32 %v1947_v56, %v1775_v5  ;;  %v1462_v62 = vsel %vm1365_vm1, %v13087_v52, %v13086_v29  ;;  %v1484_v27 = vadd.f32 %v13085_v61, %v1291_v59  ;;  %v13088_v1 = vld [vmem:[#allocation104_spill] sm:$0xff]  ;;  %v13089_v56 = vld [vmem:[#allocation103_spill] sm:$0xff] }
 0x81c   : > { %v2081_v19 = vrot.slane %v1969_v25, 4  ;;  %v1656_v47 = vsel %vm1558_vm6, %v13089_v56, %v13088_v1  ;;  %v1483_v5 = vadd.f32 %v1463_v43, %v1290_v57  ;;  %v1655_v63 = vsel %vm1558_vm6, %v13091_v23, %v13089_v56  ;;  %v8771_v59 = vld.sshfl [vmem:[#allocation1 + $0x30] sm:$0xff pattern:$0x75316420] }
 0x81d   : > { %v2201_v16 = vmul.f32 %v8707_v37, %v1972_v54  ;;  %v1677_v35 = vadd.f32 %v13088_v1, %v1484_v27  ;;  %v13093_v54 = vld [vmem:[#allocation118_spill] sm:$0xff]  ;;  %v1482_v31 = vadd.f32 %v1462_v62, %v1289_v48 }
 0x81e   : > { %v2087_v10 = vsel %vm2082_vm9, %v1968_v21, %v2081_v19  ;;  %v2088_v22 = vsel %vm2082_vm9, %v2081_v19, %v1968_v21  ;;  %v1849_v0 = vsel %vm1751_vm7, %v13093_v54, %v13092_v44  ;;  %v1676_v21 = vadd.f32 %v1656_v47, %v1483_v5  ;;  %v2018_v19 = vpop.permute.xlu2 %2017 }
 0x81f   : > { %v2089_v33 = vrot.slane %v2088_v22, 4  ;;  %2104 = vst [vmem:[#allocation1] ss:$2 sm:$0xff] %v2087_v10  ;;  %v2212_v25 = vrot.slane %v2201_v16, 4  ;;  %v1848_v60 = vsel %vm1751_vm7, %v13094_v18, %v13093_v54  ;;  %v1870_v17 = vadd.f32 %v13092_v44, %v1677_v35 }
 0x820   : > { %v1933_v58 = vpop.permute.xlu1 %1932  ;;  %v1675_v3 = vadd.f32 %v1655_v63, %v1482_v31  ;;  %v1869_v24 = vadd.f32 %v1849_v0, %v1676_v21  ;;  %v2041_v32 = vsel %vm12928_vm8, %v2018_v19, %v8645_v7 }
 0x821   : > { %v1949_v55 = vsel %vm12928_vm8, %v1933_v58, %v1935_v4  ;;  %2109 = vst [vmem:[#allocation1 + $0x20] ss:$2 sm:$0xff] %v2089_v33  ;;  %v8785_v1 = vpop.permute.xlu0 %1942 }
 0x822   : > { %v1971_v40 = vadd.f32 %v1949_v55, %v1778_v53  ;;  %v1868_v22 = vadd.f32 %v1848_v60, %v1675_v3  ;;  %v8769_v53 = vld.sshfl [vmem:[#allocation1 + $0x10] sm:$0xff pattern:$0x75316420] }
 0x824   : > { %v2200_v4 = vmul.f32 %v8728_v38, %v1971_v40  ;;  %v2061_v58 = vadd.f32 %v2041_v32, %v1868_v22  ;;  %v13095_v22 = vld [vmem:[#allocation96_spill] sm:$0xff] }
 0x826   : > { %v8756_v26 = vsel %vm2082_vm9, %v2200_v4, %v2212_v25  ;;  %v8759_v11 = vsel %vm2082_vm9, %v2212_v25, %v2200_v4  ;;  %v8773_v29 = vld.sshfl [vmem:[#allocation1] sm:$0xff pattern:$0x75316420]  ;;  %v8775_v43 = vld.sshfl [vmem:[#allocation1 + $0x8] sm:$0xff pattern:$0x75316420] }
 0x828   : > { %v2022_v46 = vpop.permute.xlu1 %2021  ;;  %v8779_v57 = vld.sshfl [vmem:[#allocation1 + $0x20] sm:$0xff pattern:$0x75316420]  ;;  %v8781_v40 = vld.sshfl [vmem:[#allocation1 + $0x28] sm:$0xff pattern:$0x75316420] }
 0x829   : > { %v2042_v36 = vsel %vm12928_vm8, %v8645_v7, %v2022_v46  ;;  %v2063_v10 = vadd.f32 %v2022_v46, %v1870_v17  ;;  %v8795_v46 = vpop.permute.xlu0 %1986 }
 0x82a   : > { %v2062_v16 = vadd.f32 %v2042_v36, %v1869_v24 }
 0x82b   : > { %v2145_v33 = vrot.slane %v2063_v10, 4  ;;  %2152 = vst [vmem:[#allocation1 + $0x10] ss:$2 sm:$0xff] %v2063_v10 }
 0x82c   : > { %v2140_v61 = vrot.slane %v2062_v16, 4  ;;  %v1999_v16 = vmul.f32 %v13095_v22, %v8795_v46 }
 0x82d   : > { %2159 = vst [vmem:[#allocation1 + $0x30] ss:$2 sm:$0xff] %v2145_v33 }
 0x82e   : > { %v2142_v55 = vsel %vm2082_vm9, %v2061_v58, %v2140_v61  ;;  %v2143_v7 = vsel %vm2082_vm9, %v2140_v61, %v2061_v58  ;;  %v13096_v61 = vld [vmem:[#allocation94_spill] sm:$0xff] }
 0x82f   : > { %v2144_v45 = vrot.slane %v2143_v7, 4  ;;  %2150 = vst [vmem:[#allocation1] ss:$2 sm:$0xff] %v2142_v55  ;;  %v2344_v7 = vld [vmem:[%s12716_s5] sm:$0xff] }
 0x830   : > { %v8783_v52 = vpop.permute.xlu1 %1938 }
 0x831   : > { %2157 = vst [vmem:[#allocation1 + $0x20] ss:$2 sm:$0xff] %v2144_v45  ;;  %v2441_v45 = vpop.f32.mrf.mxu0 }
 0x832   : > { %v2155_v62 = vld.sshfl [vmem:[#allocation1 + $0x10] sm:$0xff pattern:$0x75316420] }
 0x833   : > { %v2186_v27 = vpack.c.bf16 %v2155_v62, %v2155_v62 }
 0x834   : > { %v2162_v56 = vld.sshfl [vmem:[#allocation1 + $0x30] sm:$0xff pattern:$0x75316420] }
 0x835   : > { %v2498_v47 = vunpack.c.l.b16 %v2186_v27  ;;  %v2188_v12 = vpack.c.bf16 %v2162_v56, %v2162_v56 }
 0x836   : > { %v2153_v48 = vld.sshfl [vmem:[#allocation1] sm:$0xff pattern:$0x75316420]  ;;  %v2154_v5 = vld.sshfl [vmem:[#allocation1 + $0x8] sm:$0xff pattern:$0x75316420] }
 0x837   : > { %v2501_v25 = vpack.c.b16 %v2498_v47, %v2498_v47  ;;  %v2632_v4 = vunpack.c.l.b16 %v2188_v12  ;;  %v2185_v23 = vpack.c.bf16 %v2154_v5, %v2153_v48  ;;  %v2345_v48 = vld [vmem:[%s12716_s5 + $0x8] sm:$0xff]  ;;  %v13097_v5 = vld [vmem:[#allocation3_spill] sm:$0xff] }
 0x838   : > { %v1983_v63 = vpop.permute.xlu1 %1982  ;;  %v2160_v35 = vld.sshfl [vmem:[#allocation1 + $0x20] sm:$0xff pattern:$0x75316420]  ;;  %v2161_v44 = vld.sshfl [vmem:[#allocation1 + $0x28] sm:$0xff pattern:$0x75316420] }
 0x839   : > { %v1997_v54 = vmul.f32 %v8220_v14, %v1983_v63  ;;  %v1998_v0 = vmul.f32 %v8224_v49, %v1983_v63  ;;  %v2523_v31 = vsel %vm2515_vm10, %v2501_v25, 0  ;;  %v2635_v21 = vpack.c.b16 %v2632_v4, %v2632_v4  ;;  %v13098_v4 = vld [vmem:[#allocation17_spill] sm:$0xff] }
 0x83a   : > { %2590 = vmatpush.bf16.msra.mxu3 %v2523_v31  ;;  %v2496_v19 = vunpack.c.l.b16 %v2185_v23  ;;  %v2497_v18 = vunpack.c.h.b16 %v2185_v23  ;;  %v8790_v60 = vpack.c.bf16 %v2161_v44, %v2160_v35  ;;  %v1996_v55 = vmul.f32 %v13096_v61, %v1983_v63  ;;  %v13099_v63 = vld [vmem:[#allocation4_spill] sm:$0xff]  ;;  %v13100_v35 = vld [vmem:[#allocation95_spill] sm:$0xff] }
 0x83b   : > { %2027 = vrot.lane.b32.xlu1 %v1998_v0, %s7372_s13  ;;  %2025 = vrot.lane.b32.xlu0 %v1997_v54, %s7372_s13  ;;  %v2655_v17 = vsel %vm2515_vm10, %v2635_v21, 0  ;;  %v510_v25 = vmul.f32 %v8224_v49, %v13097_v5  ;;  %v469_v44 = vmul.f32 %v13100_v35, %v13099_v63  ;;  %v13101_v54 = vld [vmem:[#allocation16_spill] sm:$0xff]  ;;  %v13113_v63 = vld [vmem:[#allocation89_spill] sm:$0xff] }
 0x83c   : > { %v2499_v3 = vpack.c.b16 %v2496_v19, %v2496_v19  ;;  %v2500_v24 = vpack.c.b16 %v2497_v18, %v2497_v18  ;;  %v2630_v14 = vunpack.c.l.b16 %v8790_v60  ;;  %v693_v0 = vsel %vm593_vm2, %v13101_v54, %v13098_v4  ;;  %v13102_v31 = vld [vmem:[#allocation36_spill] sm:$0xff]  ;;  %v7334_v19 = vld [vmem:[%s7533_s21 + $0x20] sm:$0xff] }
 0x83d   : > { %v715_v23 = vadd.f32 %v13098_v4, %v510_v25  ;;  %v509_v18 = vmul.f32 %v7334_v19, %v13097_v5  ;;  %v13108_v61 = vld [vmem:[#allocation52_spill] sm:$0xff]  ;;  %v13112_v4 = vld [vmem:[#allocation69_spill] sm:$0xff] }
 0x83e   : > { %2722 = vmatpush.bf16.msrb.mxu3 %v2655_v17  ;;  %v2517_v32 = vsel %vm2515_vm10, %v2499_v3, 0  ;;  %v2520_v36 = vsel %vm2515_vm10, %v2500_v24, 0  ;;  %v2633_v10 = vpack.c.b16 %v2630_v14, %v2630_v14  ;;  %v13103_v17 = vld [vmem:[#allocation10_spill] sm:$0xff]  ;;  %v13104_v24 = vld [vmem:[#allocation35_spill] sm:$0xff]  ;;  %v13105_v14 = vld [vmem:[#allocation53_spill] sm:$0xff] }
 0x83f   : > { %2532 = vmatpush.bf16.msra.mxu1 %v2517_v32  ;;  %6967 = vmatpush.bf16.msra.mxu2 %v2517_v32  ;;  %v908_v21 = vadd.f32 %v13102_v31, %v715_v23  ;;  %v622_v3 = vadd.f32 %v13103_v17, %v469_v44  ;;  %v886_v49 = vsel %vm786_vm3, %v13104_v24, %v13102_v31  ;;  %v13116_v19 = vld [vmem:[#allocation88_spill] sm:$0xff]  ;;  %v13117_v17 = vld [vmem:[#allocation107_spill] sm:$0xff] }
 0x840   : > { %v8802_v33 = vpop.permute.xlu1 %1990  ;;  %v2649_v58 = vsel %vm2515_vm10, %v2633_v10, 0  ;;  %v13106_v10 = vld [vmem:[#allocation27_spill] sm:$0xff] }
 0x841   : > { %v1101_v32 = vadd.f32 %v13105_v14, %v908_v21  ;;  %v815_v22 = vadd.f32 %v13106_v10, %v622_v3  ;;  %v13115_v21 = vld [vmem:[#allocation47_spill] sm:$0xff] }
 0x843   : > { %2561 = vmatpush.bf16.msrb.mxu2 %v2520_v36  ;;  %2664 = vmatpush.bf16.msrb.mxu1 %v2649_v58  ;;  %v714_v36 = vadd.f32 %v693_v0, %v509_v18  ;;  %v13114_v0 = vld [vmem:[#allocation63_spill] sm:$0xff]  ;;  %v1465_v18 = vsel %vm1365_vm1, %v13116_v19, %v13113_v63 }
 0x844   : > { %2029 = vrot.lane.b32.xlu1 %v1999_v16, %s7372_s13  ;;  %2023 = vrot.lane.b32.xlu0 %v1996_v55, %s7372_s13  ;;  %v13107_v16 = vld [vmem:[#allocation14_spill] sm:$0xff]  ;;  %v1079_v55 = vsel %vm979_vm4, %v13108_v61, %v13105_v14  ;;  %v13118_v14 = vld [vmem:[#allocation77_spill] sm:$0xff] }
 0x845   : > { %v692_v58 = vsel %vm593_vm2, %v13107_v16, %v13101_v54 }
 0x849   : > { %v2370_v62 = vpop.permute.xlu1 %2369 }
 0x84a   : > { %v2442_v27 = vadd.f32 %v2441_v45, %v2370_v62  ;;  %v7335_v62 = vld [vmem:[%s7533_s21 + $0x18] sm:$0xff] }
 0x84c   : > { %2354 = vperm.xlu1 %7044, %v2344_v7   ;;  %v2467_v56 = vrot.slane %v2442_v27, 4  ;;  %v2472_v47 = vpack.c.bf16 %v2442_v27, %v2442_v27  ;;  %v13109_v7 = vld [vmem:[#allocation70_spill] sm:$0xff]  ;;  %v508_v27 = vmul.f32 %v7335_v62, %v13097_v5  ;;  %v1078_v5 = vsel %vm979_vm4, %v13115_v21, %v13108_v61  ;;  %v13121_v62 = vld [vmem:[#allocation83_spill] sm:$0xff] }
 0x84d   : > { %v1294_v45 = vadd.f32 %v13109_v7, %v1101_v32  ;;  %v1272_v23 = vsel %vm1172_vm0, %v13112_v4, %v13109_v7 }
 0x84e   : > { %v2473_v12 = vpack.c.bf16 %v2467_v56, %v2467_v56  ;;  %v907_v56 = vadd.f32 %v886_v49, %v714_v36  ;;  %v713_v44 = vadd.f32 %v692_v58, %v508_v27  ;;  %v13119_v36 = vld [vmem:[#allocation106_spill] sm:$0xff]  ;;  %v1464_v27 = vsel %vm1365_vm1, %v13121_v62, %v13116_v19 }
 0x84f   : > { %v1487_v35 = vadd.f32 %v13113_v63, %v1294_v45  ;;  %v1658_v10 = vsel %vm1558_vm6, %v13119_v36, %v13117_v17  ;;  %v13124_v63 = vld [vmem:[#allocation101_spill] sm:$0xff] }
 0x850   : > { %7045 = vxpose.binary.xlu2.c.b16.start.end [1/2] (short) (narrow) %v2473_v12, %v2472_v47, 64  ;;  %v13110_v47 = vld [vmem:[#allocation44_spill] sm:$0xff]  ;;  %v1100_v54 = vadd.f32 %v1079_v55, %v907_v56  ;;  %v13122_v56 = vld [vmem:[#allocation121_spill] sm:$0xff] }
 0x851   : > { %v1008_v12 = vadd.f32 %v13110_v47, %v815_v22  ;;  %v1680_v3 = vadd.f32 %v13117_v17, %v1487_v35  ;;  %v13120_v22 = vld [vmem:[#allocation122_spill] sm:$0xff] }
 0x852   : > { %v1293_v49 = vadd.f32 %v1272_v23, %v1100_v54  ;;  %v1851_v47 = vsel %vm1751_vm7, %v13122_v56, %v13120_v22 }
 0x853   : > { %v1201_v31 = vadd.f32 %v13114_v0, %v1008_v12  ;;  %v1873_v16 = vadd.f32 %v13120_v22, %v1680_v3 }
 0x854   : > { %2359 = vperm.xlu1 %7044, %v2345_v48   ;;  %v13111_v48 = vld [vmem:[#allocation30_spill] sm:$0xff]  ;;  %v1486_v55 = vadd.f32 %v1465_v18, %v1293_v49 }
 0x855   : > { %v885_v25 = vsel %vm786_vm3, %v13111_v48, %v13104_v24  ;;  %v1394_v32 = vadd.f32 %v13118_v14, %v1201_v31  ;;  %v13123_v48 = vld [vmem:[#allocation71_spill] sm:$0xff]  ;;  %v8875_v31 = vperm.slane %v8684_v28, 2 }
 0x856   : > { %v906_v24 = vadd.f32 %v885_v25, %v713_v44  ;;  %v1679_v4 = vadd.f32 %v1658_v10, %v1486_v55  ;;  %v6963_v28 = vld [vmem:[%s12715_s4 + $0x10] sm:$0xff] }
 0x857   : > { %v1587_v61 = vadd.f32 %v8302_v6, %v1394_v32  ;;  %v1657_v6 = vsel %vm1558_vm6, %v13124_v63, %v13119_v36  ;;  %13125 = vst [vmem:[#allocation8_spill] sm:$0xff] %v8875_v31  ;;  %6828 = vmatmul.msk.bf16.gmra.mxu0 %vm2412_vm5, %v6963_v28 }
 0x858   : > { %v1099_v58 = vadd.f32 %v1078_v5, %v906_v24  ;;  %v1872_v0 = vadd.f32 %v1851_v47, %v1679_v4 }
 0x859   : > { %v1780_v23 = vadd.f32 %v8409_v50, %v1587_v61  ;;  %v13126_v50 = vld [vmem:[#allocation116_spill] sm:$0xff] }
 0x85a   : > { %v1292_v25 = vadd.f32 %v13123_v48, %v1099_v58  ;;  %v1850_v19 = vsel %vm1751_vm7, %v13126_v50, %v13122_v56 }
 0x85b   : > { %v1973_v21 = vadd.f32 %v8686_v20, %v1780_v23 }
 0x85c   : > { %v1485_v54 = vadd.f32 %v1464_v27, %v1292_v25  ;;  %v2216_v27 = vrot.slane %v8759_v11, 4 }
 0x85d   : > { %v2202_v3 = vmul.f32 %v8875_v31, %v1973_v21 }
 0x85e   : > { %v1678_v18 = vadd.f32 %v1657_v6, %v1485_v54 }
 0x85f   : > { %v2217_v22 = vrot.slane %v2202_v3, 4 }
 0x860   : > { %v1871_v20 = vadd.f32 %v1850_v19, %v1678_v18 }
 0x8ad   : > { %v2026_v7 = vpop.permute.xlu0 %2025  ;;  %v2028_v45 = vpop.permute.xlu1 %2027 }
 0x8ae   : > { %v2066_v12 = vadd.f32 %v2028_v45, %v1873_v16  ;;  %v2044_v35 = vsel %vm12928_vm8, %v2026_v7, %v2028_v45 }
 0x8af   : > { %v2065_v17 = vadd.f32 %v2044_v35, %v1872_v0 }
 0x8b0   : > { %v2149_v44 = vrot.slane %v2066_v12, 4  ;;  %2164 = vst [vmem:[#allocation1 + $0x10] ss:$2 sm:$0xff] %v2066_v12 }
 0x8b1   : > { %v8878_v5 = vpop.trf.xlu2  ;;  %v2141_v32 = vrot.slane %v2065_v17, 4 }
 0x8b2   : > { %2169 = vst [vmem:[#allocation1 + $0x30] ss:$2 sm:$0xff] %v2149_v44  ;;  %6830 = vmatmul.msk.bf16.vlgmr.msra.gmra.mxu1 %vm2502_vm11, %v8878_v5  ;;  %6838 = vmatmul.msk.bf16.vlgmr.msra.gmra.mxu3 %vm2502_vm11, %v8878_v5  ;;  %v6964_v44 = vld [vmem:[%s12715_s4 + $0x18] sm:$0xff] }
 0x8b3   : > { %7073 = vset.pattern.permute.xlu2 %v13042_v41  ;;  %6829 = vmatmul.msk.bf16.gmra.mxu0 %vm2412_vm5, %v6964_v44 }
 0x8b6   : > { %v2024_v24 = vpop.permute.xlu0 %2023  ;;  %v8893_v49 = vpop.permute.xlu1 %2029 }
 0x8b7   : > { %v2043_v14 = vsel %vm12928_vm8, %v2024_v24, %v2026_v7  ;;  %v8896_v36 = vld.sshfl [vmem:[#allocation1 + $0x10] sm:$0xff pattern:$0x75316420] }
 0x8b8   : > { %v2064_v10 = vadd.f32 %v2043_v14, %v1871_v20  ;;  %2224 = vst [vmem:[#allocation1 + $0x10] ss:$2 sm:$0xff] %v2202_v3  ;;  %v8923_v14 = vld [vmem:[%s7533_s21 + $0x58] sm:$0xff] }
 0x8b9   : > { %v8900_v55 = vpop.trf.xlu2  ;;  %v8902_v61 = vld.sshfl [vmem:[#allocation1 + $0x30] sm:$0xff pattern:$0x75316420] }
 0x8ba   : > { %v2146_v16 = vsel %vm2082_vm9, %v2064_v10, %v2141_v32  ;;  %v2147_v58 = vsel %vm2082_vm9, %v2141_v32, %v2064_v10  ;;  %2231 = vst [vmem:[#allocation1 + $0x30] ss:$2 sm:$0xff] %v2217_v22 }
 0x8bb   : > { %v2148_v45 = vrot.slane %v2147_v58, 4  ;;  %2163 = vst [vmem:[#allocation1] ss:$2 sm:$0xff] %v2146_v16 }
 0x8bd   : > { %2168 = vst [vmem:[#allocation1 + $0x20] ss:$2 sm:$0xff] %v2148_v45  ;;  %v13128_v45 = vld [vmem:[#allocation12_spill] sm:$0xff] }
 0x8be   : > { %v2355_v62 = vpop.permute.xlu1 %2354 }
 0x8bf   : > { %v2435_v7 = vadd.f32 %v8609_v30, %v2355_v62 }
 0x8c1   : > { %v2456_v56 = vrot.slane %v2435_v7, 4  ;;  %v8906_v47 = vpop.trf.xlu2  ;;  %v2460_v25 = vpack.c.bf16 %v2435_v7, %v2435_v7  ;;  %v13129_v7 = vld [vmem:[#allocation28_spill] sm:$0xff] }
 0x8c2   : > { %v2165_v12 = vld.sshfl [vmem:[#allocation1] sm:$0xff pattern:$0x75316420]  ;;  %v2166_v48 = vld.sshfl [vmem:[#allocation1 + $0x8] sm:$0xff pattern:$0x75316420]  ;;  %6831 = vmatmul.msk.bf16.gmra.mxu1 %vm2502_vm11, %v8906_v47  ;;  %6839 = vmatmul.msk.bf16.gmra.mxu3 %vm2502_vm11, %v8906_v47 }
 0x8c3   : > { %v2461_v4 = vpack.c.bf16 %v2456_v56, %v2456_v56  ;;  %v2189_v23 = vpack.c.bf16 %v2166_v48, %v2165_v12  ;;  %2222 = vst [vmem:[#allocation1] ss:$2 sm:$0xff] %v8756_v26  ;;  %v13130_v56 = vld [vmem:[#allocation45_spill] sm:$0xff] }
 0x8c4   : > { %v2170_v63 = vld.sshfl [vmem:[#allocation1 + $0x20] sm:$0xff pattern:$0x75316420]  ;;  %v2171_v30 = vld.sshfl [vmem:[#allocation1 + $0x28] sm:$0xff pattern:$0x75316420] }
 0x8c5   : > { %7054 = vxpose.binary.xlu0.c.b16.start.end [1/2] (short) (narrow) %v2461_v4, %v2460_v25, 64  ;;  %v2762_v11 = vunpack.c.l.b16 %v2189_v23  ;;  %v2763_v6 = vunpack.c.h.b16 %v2189_v23  ;;  %v2191_v35 = vpack.c.bf16 %v2171_v30, %v2170_v63  ;;  %2229 = vst [vmem:[#allocation1 + $0x20] ss:$2 sm:$0xff] %v2216_v27  ;;  %v13131_v25 = vld [vmem:[#allocation64_spill] sm:$0xff]  ;;  %v13132_v23 = vld [vmem:[#allocation79_spill] sm:$0xff] }
 0x8c6   : > { %v2360_v54 = vpop.permute.xlu1 %2359  ;;  %v13133_v30 = vld [vmem:[#allocation99_spill] sm:$0xff] }
 0x8c7   : > { %v2437_v0 = vadd.f32 %v8623_v34, %v2360_v54  ;;  %v2765_v21 = vpack.c.b16 %v2762_v11, %v2762_v11  ;;  %v2766_v50 = vpack.c.b16 %v2763_v6, %v2763_v6  ;;  %v2894_v19 = vunpack.c.l.b16 %v2191_v35  ;;  %v13127_v34 = vld [vmem:[#allocation5_spill] sm:$0xff] }
 0x8c8   : > { %v2895_v26 = vunpack.c.h.b16 %v2191_v35  ;;  %v472_v32 = vmul.f32 %v8923_v14, %v13127_v34  ;;  %v2192_v6 = vpack.c.bf16 %v8902_v61, %v8902_v61  ;;  %v13134_v35 = vld [vmem:[#allocation114_spill] sm:$0xff] }
 0x8c9   : > { %v2457_v28 = vrot.slane %v2437_v0, 4  ;;  %v2781_v18 = vsel %vm2515_vm10, %v2765_v21, 0  ;;  %v2784_v17 = vsel %vm2515_vm10, %v2766_v50, 0  ;;  %v8920_v20 = vpop.trf.xlu2  ;;  %v2897_v3 = vpack.c.b16 %v2894_v19, %v2894_v19 }
 0x8ca   : > { %2796 = vmatpush.bf16.msrb.mxu0 %v2781_v18  ;;  %2825 = vmatpush.bf16.msra.mxu1 %v2784_v17  ;;  %v2898_v24 = vpack.c.b16 %v2895_v26, %v2895_v26  ;;  %v2462_v22 = vpack.c.bf16 %v2437_v0, %v2437_v0  ;;  %v625_v62 = vadd.f32 %v13128_v45, %v472_v32  ;;  %v2631_v21 = vunpack.c.h.b16 %v8790_v60  ;;  %v8949_v18 = vld.sshfl [vmem:[#allocation1 + $0x10] sm:$0xff pattern:$0x75316420] }
 0x8cb   : > { %v2463_v10 = vpack.c.bf16 %v2457_v28, %v2457_v28  ;;  %v2913_v16 = vsel %vm2515_vm10, %v2897_v3, 0  ;;  %v2896_v50 = vunpack.c.l.b16 %v2192_v6  ;;  %13135 = vst [vmem:[#allocation7_spill] sm:$0xff] %v8949_v18  ;;  %v2190_v3 = vpack.c.bf16 %v8896_v36, %v8896_v36  ;;  %v8972_v36 = vld [vmem:[%s7533_s21 + $0x48] sm:$0xff] }
 0x8cc   : > { %v2916_v58 = vsel %vm2515_vm10, %v2898_v24, 0  ;;  %2928 = vmatpush.bf16.msra.mxu3 %v2913_v16  ;;  %v818_v27 = vadd.f32 %v13129_v7, %v625_v62  ;;  %v2634_v26 = vpack.c.b16 %v2631_v21, %v2631_v21  ;;  %v8960_v24 = vld [vmem:[%s7533_s21 + $0x50] sm:$0xff]  ;;  %v2126_v32 = vpack.c.bf16 %v8722_v51, %v8720_v15 }
 0x8cd   : > { %7063 = vxpose.binary.xlu1.c.b16.start.end [1/2] (short) (narrow) %v2463_v10, %v2462_v22, 64  ;;  %v2899_v28 = vpack.c.b16 %v2896_v50, %v2896_v50  ;;  %v1906_v34 = vmul.f32 %v8960_v24, %v8512_v39  ;;  %v2127_v10 = vpack.c.bf16 %v8641_v13, %v8641_v13  ;;  %v2764_v16 = vunpack.c.l.b16 %v2190_v3 }
 0x8ce   : > { %2957 = vmatpush.bf16.msra.mxu0 %v2916_v58  ;;  %v1011_v12 = vadd.f32 %v13130_v56, %v818_v27  ;;  %v2652_v61 = vsel %vm2515_vm10, %v2634_v26, 0  ;;  %v3027_v58 = vunpack.c.h.b16 %v2126_v32  ;;  %v2002_v7 = vmul.f32 %v8972_v36, %v8802_v33 }
 0x8cf   : > { %v2919_v60 = vsel %vm2515_vm10, %v2899_v28, 0  ;;  %v3028_v45 = vunpack.c.l.b16 %v2127_v10  ;;  %v2767_v62 = vpack.c.b16 %v2764_v16, %v2764_v16  ;;  %v3026_v50 = vunpack.c.l.b16 %v2126_v32  ;;  %v13139_v32 = vld [vmem:[#allocation98_spill] sm:$0xff]  ;;  %v13140_v16 = vld [vmem:[#allocation97_spill] sm:$0xff] }
 0x8d0   : > { %v1204_v4 = vadd.f32 %v13131_v25, %v1011_v12  ;;  %v3030_v39 = vpack.c.b16 %v3027_v58, %v3027_v58  ;;  %v1566_v10 = vsel %vm1558_vm6, %v13139_v32, %v13133_v30  ;;  %v1565_v58 = vsel %vm1558_vm6, %v13140_v16, %v13139_v32  ;;  %v9109_v32 = vld.sshfl [vmem:[#allocation1 + $0x20] sm:$0xff pattern:$0x75316420] }
 0x8d1   : > { %v8932_v48 = vpop.trf.xlu2  ;;  %v3031_v27 = vpack.c.b16 %v3028_v45, %v3028_v45  ;;  %v2787_v13 = vsel %vm2515_vm10, %v2767_v62, 0  ;;  %v3029_v28 = vpack.c.b16 %v3026_v50, %v3026_v50  ;;  %v13142_v62 = vld [vmem:[#allocation113_spill] sm:$0xff]  ;;  %13150 = vst [vmem:[#allocation60_spill] sm:$0xff] %v9109_v32 }
 0x8d2   : > { %6832 = vmatmul.msk.bf16.gmra.mxu1 %vm2502_vm11, %v8932_v48  ;;  %6840 = vmatmul.msk.bf16.gmra.mxu3 %vm2502_vm11, %v8932_v48  ;;  %v1397_v63 = vadd.f32 %v13132_v23, %v1204_v4  ;;  %v3048_v51 = vsel %vm2515_vm10, %v3030_v39, 0  ;;  %v9005_v23 = vld.sshfl [vmem:[#allocation1 + $0x30] sm:$0xff pattern:$0x75316420]  ;;  %v13143_v39 = vld [vmem:[#allocation112_spill] sm:$0xff] }
 0x8d3   : > { %v3051_v56 = vsel %vm2515_vm10, %v3031_v27, 0  ;;  %13136 = vst [vmem:[#allocation9_spill] sm:$0xff] %v9005_v23  ;;  %v1758_v27 = vsel %vm1751_vm7, %v13143_v39, %v13142_v62 }
 0x8d4   : > { %v1590_v11 = vadd.f32 %v13133_v30, %v1397_v63 }
 0x8d6   : > { %v1783_v44 = vadd.f32 %v13134_v35, %v1590_v11 }
 0x8d8   : > { %v1976_v0 = vadd.f32 %v8785_v1, %v1783_v44 }
 0x8d9   : > { %v8944_v54 = vpop.trf.xlu2 }
 0x8da   : > { %v2205_v19 = vmul.f32 %v8875_v31, %v1976_v0 }
 0x8dc   : > { %2236 = vst [vmem:[#allocation1 + $0x10] ss:$2 sm:$0xff] %v2205_v19  ;;  %v2221_v4 = vrot.slane %v2205_v19, 4 }
 0x8de   : > { %2241 = vst [vmem:[#allocation1 + $0x30] ss:$2 sm:$0xff] %v2221_v4 }
 0x8e1   : > { %v7041_v17 = vpop.trf.xlu2 }
 0x8e2   : > { %6833 = vmatmul.msk.bf16.vlgmr.msra.gmra.mxu2 %vm2502_vm11, %v7041_v17  ;;  %6841 = vmatmul.msk.bf16.gmra.mxu3 %vm2502_vm11, %v7041_v17 }
 0x8e3   : > { %6842 = vmatmul.msk.bf16.vlgmr.msrb.gmra.mxu1 %vm2502_vm11, %v8900_v55  ;;  %2693 = vmatpush.bf16.msra.mxu2 %v2652_v61 }
 0x8e4   : > { %2986 = vmatpush.bf16.msrb.mxu1 %v2919_v60 }
 0x8e9   : > { %v8968_v22 = vpop.trf.xlu2  ;;  %1940 = vrot.lane.b32.xlu2 %v1906_v34, %s7372_s13 }
 0x8f1   : > { %2035 = vrot.lane.b32.xlu2 %v2002_v7, %s7372_s13  ;;  %v8977_v15 = vpop.trf.xlu2  ;;  %v1759_v7 = vsel %vm1751_vm7, %v13142_v62, %v13134_v35  ;;  %v2003_v62 = vmul.f32 %v8960_v24, %v8802_v33 }
 0x8f2   : > { %6850 = vmatmul.msk.bf16.vlgmr.msrb.gmra.mxu3 %vm2502_vm11, %v8900_v55  ;;  %6834 = vmatmul.msk.bf16.vlgmr.msrb.gmra.mxu2 %vm2502_vm11, %v8878_v5  ;;  %v2351_v5 = vld [vmem:[%s12716_s5 + $0x38] sm:$0xff] }
 0x8f3   : > { %6843 = vmatmul.msk.bf16.gmra.mxu1 %vm2502_vm11, %v8920_v20  ;;  %2854 = vmatpush.bf16.msrb.mxu2 %v2787_v13  ;;  %v13144_v13 = vld [vmem:[#allocation80_spill] sm:$0xff] }
 0x8f4   : > { %3089 = vmatpush.bf16.msrb.mxu3 %v3048_v51  ;;  %6854 = vmatmul.msk.bf16.vlgmr.msrb.gmra.mxu0 %vm2502_vm11, %v8977_v15  ;;  %v1589_v51 = vadd.f32 %v1566_v10, %v13144_v13  ;;  %v9111_v10 = vld.sshfl [vmem:[#allocation1 + $0x28] sm:$0xff pattern:$0x75316420] }
 0x8f5   : > { %3118 = vmatpush.bf16.msrb.mxu0 %v3051_v56  ;;  %v13145_v56 = vld [vmem:[#allocation81_spill] sm:$0xff]  ;;  %13151 = vst [vmem:[#allocation62_spill] sm:$0xff] %v9111_v10  ;;  %v2133_v10 = vpack.c.bf16 %v8771_v59, %v8771_v59 }
 0x8f6   : > { %v1782_v30 = vadd.f32 %v1759_v7, %v1589_v51 }
 0x8f9   : > { %v8990_v12 = vpop.trf.xlu2  ;;  %2389 = vperm.xlu2 %7073, %v2351_v5   ;;  %v1588_v5 = vadd.f32 %v1565_v58, %v13145_v56 }
 0x8fb   : > { %v1781_v4 = vadd.f32 %v1758_v27, %v1588_v5  ;;  %v2348_v27 = vld [vmem:[%s12716_s5 + $0x20] sm:$0xff] }
 0x901   : > { %v8995_v25 = vpop.trf.xlu2 }
 0x902   : > { %6851 = vmatmul.msk.bf16.gmra.mxu3 %vm2502_vm11, %v8920_v20  ;;  %6835 = vmatmul.msk.bf16.gmra.mxu2 %vm2502_vm11, %v8906_v47  ;;  %v9021_v47 = vpack.c.bf16 %v8736_v9, %v8734_v8  ;;  %v2129_v8 = vpack.c.bf16 %v8643_v2, %v8643_v2  ;;  %v9040_v9 = vpack.c.bf16 %v8775_v43, %v8773_v29  ;;  %v3045_v2 = vsel %vm2515_vm10, %v3029_v28, 0 }
 0x903   : > { %6844 = vmatmul.msk.bf16.gmra.mxu1 %vm2502_vm11, %v8944_v54 }
 0x904   : > { %6855 = vmatmul.msk.bf16.gmra.mxu0 %vm2502_vm11, %v8995_v25  ;;  %v3158_v44 = vunpack.c.l.b16 %v9021_v47  ;;  %v3160_v19 = vunpack.c.l.b16 %v2129_v8  ;;  %v3290_v26 = vunpack.c.l.b16 %v9040_v9  ;;  %v3291_v39 = vunpack.c.h.b16 %v9040_v9 }
 0x906   : > { %v3161_v0 = vpack.c.b16 %v3158_v44, %v3158_v44  ;;  %v3163_v61 = vpack.c.b16 %v3160_v19, %v3160_v19  ;;  %v3293_v60 = vpack.c.b16 %v3290_v26, %v3290_v26  ;;  %v3294_v56 = vpack.c.b16 %v3291_v39, %v3291_v39 }
 0x908   : > { %v3309_v29 = vsel %vm2515_vm10, %v3293_v60, 0  ;;  %v3312_v9 = vsel %vm2515_vm10, %v3294_v56, 0  ;;  %v2004_v56 = vmul.f32 %v8923_v14, %v8802_v33  ;;  %v5469_v33 = vld [vmem:[%s12718_s7 + $0x18] sm:$0xff] }
 0x909   : > { %v9007_v63 = vpop.trf.xlu2 }
 0x911   : > { %v9009_v11 = vpop.trf.xlu2 }
 0x912   : > { %6852 = vmatmul.msk.bf16.gmra.mxu3 %vm2502_vm11, %v8944_v54  ;;  %6836 = vmatmul.msk.bf16.gmra.mxu2 %vm2502_vm11, %v8932_v48  ;;  %v3177_v48 = vsel %vm2515_vm10, %v3161_v0, 0 }
 0x913   : > { %6845 = vmatmul.msk.bf16.gmra.mxu1 %vm2502_vm11, %v8968_v22 }
 0x914   : > { %6856 = vmatmul.msk.bf16.gmra.mxu0 %vm2502_vm11, %v9009_v11 }
 0x919   : > { %v9023_v6 = vpop.trf.xlu2 }
 0x921   : > { %v9026_v21 = vpop.trf.xlu2 }
 0x922   : > { %6853 = vmatmul.msk.bf16.gmra.mxu3 %vm2502_vm11, %v8968_v22  ;;  %6837 = vmatmul.msk.bf16.gmra.mxu2 %vm2502_vm11, %v7041_v17 }
 0x923   : > { %6858 = vmatmul.msk.bf16.vlgmr.msra.gmra.mxu1 %vm2502_vm11, %v8977_v15 }
 0x924   : > { %3192 = vmatpush.bf16.msra.mxu1 %v3177_v48  ;;  %6857 = vmatmul.msk.bf16.gmra.mxu0 %vm2502_vm11, %v9026_v21 }
 0x929   : > { %v9061_v3 = vpop.trf.xlu2 }
 0x92c   : > { %7072 = vset.pattern.permute.xlu0 %v13042_v41  ;;  %v3183_v41 = vsel %vm2515_vm10, %v3163_v61, 0  ;;  %v9099_v61 = vpop.f32.mrf.mxu0 }
 0x92d   : > { %13147 = vst [vmem:[#allocation41_spill] sm:$0xff] %v9099_v61 }
 0x92f   : > { %v9044_v17 = vpop.f32.mrf.mxu1 }
 0x930   : > { %13137 = vst [vmem:[#allocation26_spill] sm:$0xff] %v9044_v17 }
 0x932   : > { %6846 = vmatmul.msk.bf16.vlgmr.msra.gmra.mxu2 %vm2502_vm11, %v8900_v55  ;;  %6866 = vmatmul.msk.bf16.vlgmr.msra.gmra.mxu3 %vm2502_vm11, %v8990_v12 }
 0x933   : > { %6859 = vmatmul.msk.bf16.gmra.mxu1 %vm2502_vm11, %v8995_v25  ;;  %3060 = vmatpush.bf16.msra.mxu2 %v3045_v2  ;;  %v9103_v2 = vld.sshfl [vmem:[#allocation1] sm:$0xff pattern:$0x75316420] }
 0x934   : > { %3250 = vmatpush.bf16.msra.mxu3 %v3183_v41  ;;  %6870 = vmatmul.msk.bf16.vlgmr.msra.gmra.mxu0 %vm2502_vm11, %v8990_v12  ;;  %13148 = vst [vmem:[#allocation42_spill] sm:$0xff] %v9103_v2  ;;  %v9121_v58 = vpop.f32.mrf.mxu0 }
 0x935   : > { %3324 = vmatpush.bf16.msra.mxu0 %v3309_v29  ;;  %v9057_v43 = vpop.f32.mrf.mxu3  ;;  %13153 = vst [vmem:[#allocation11_spill] sm:$0xff] %v9121_v58 }
 0x937   : > { %v9059_v55 = vpop.f32.mrf.mxu1 }
 0x938   : > { %13138 = vst [vmem:[#allocation24_spill] sm:$0xff] %v9059_v55  ;;  %v13206_v55 = vld [vmem:[#allocation55_spill] sm:$0xff] }
 0x93c   : > { %v9138_v51 = vpop.f32.mrf.mxu0 }
 0x93d   : > { %v9063_v34 = vpop.f32.mrf.mxu3  ;;  %13155 = vst [vmem:[#allocation15_spill] sm:$0xff] %v9138_v51 }
 0x93f   : > { %v9071_v45 = vpop.f32.mrf.mxu1 }
 0x940   : > { %13141 = vst [vmem:[#allocation25_spill] sm:$0xff] %v9071_v45  ;;  %v13200_v45 = vld [vmem:[#allocation31_spill] sm:$0xff] }
 0x942   : > { %6847 = vmatmul.msk.bf16.gmra.mxu2 %vm2502_vm11, %v8920_v20  ;;  %6867 = vmatmul.msk.bf16.gmra.mxu3 %vm2502_vm11, %v9007_v63 }
 0x943   : > { %6860 = vmatmul.msk.bf16.gmra.mxu1 %vm2502_vm11, %v9009_v11  ;;  %v1941_v35 = vpop.permute.xlu2 %1940 }
 0x944   : > { %6871 = vmatmul.msk.bf16.gmra.mxu0 %vm2502_vm11, %v9007_v63  ;;  %v1951_v44 = vsel %vm12928_vm8, %v8783_v52, %v1941_v35  ;;  %v1952_v0 = vsel %vm12928_vm8, %v1941_v35, %v8785_v1  ;;  %v9105_v1 = vld.sshfl [vmem:[#allocation1 + $0x8] sm:$0xff pattern:$0x75316420]  ;;  %v2350_v35 = vld [vmem:[%s12716_s5 + $0x30] sm:$0xff] }
 0x945   : > { %v1974_v48 = vadd.f32 %v1951_v44, %v1781_v4  ;;  %v1975_v20 = vadd.f32 %v1952_v0, %v1782_v30  ;;  %v9093_v8 = vpop.f32.mrf.mxu3  ;;  %13149 = vst [vmem:[#allocation61_spill] sm:$0xff] %v9105_v1  ;;  %v9143_v30 = vld [vmem:[%s7533_s21 + $0x38] sm:$0xff]  ;;  %v9164_v0 = vpop.f32.mrf.mxu0  ;;  %v3424_v1 = vunpack.c.l.b16 %v2133_v10 }
 0x946   : > { %v2000_v4 = vmul.f32 %v9143_v30, %v8795_v46  ;;  %13157 = vst [vmem:[#allocation32_spill] sm:$0xff] %v9164_v0 }
 0x947   : > { %v2204_v50 = vmul.f32 %v8707_v37, %v1975_v20  ;;  %v9096_v19 = vpop.f32.mrf.mxu1  ;;  %v2203_v26 = vmul.f32 %v8728_v38, %v1974_v48  ;;  %v9171_v20 = vld [vmem:[%s7533_s21 + $0x40] sm:$0xff] }
 0x948   : > { %13146 = vst [vmem:[#allocation43_spill] sm:$0xff] %v9096_v19 }
 0x949   : > { %v2213_v28 = vrot.slane %v2204_v50, 4  ;;  %v2001_v50 = vmul.f32 %v9171_v20, %v8795_v46 }
 0x94b   : > { %v2218_v60 = vsel %vm2082_vm9, %v2203_v26, %v2213_v28  ;;  %v2219_v52 = vsel %vm2082_vm9, %v2213_v28, %v2203_v26  ;;  %v3159_v26 = vunpack.c.h.b16 %v9021_v47 }
 0x94c   : > { %v2220_v41 = vrot.slane %v2219_v52, 4  ;;  %2235 = vst [vmem:[#allocation1] ss:$2 sm:$0xff] %v2218_v60  ;;  %v5466_v60 = vld [vmem:[%s12718_s7] sm:$0xff] }
 0x94d   : > { %v9107_v29 = vpop.f32.mrf.mxu3 }
 0x94e   : > { %2240 = vst [vmem:[#allocation1 + $0x20] ss:$2 sm:$0xff] %v2220_v41 }
 0x94f   : > { %v9113_v16 = vpop.f32.mrf.mxu1 }
 0x950   : > { %13152 = vst [vmem:[#allocation13_spill] sm:$0xff] %v9113_v16 }
 0x952   : > { %6848 = vmatmul.msk.bf16.gmra.mxu2 %vm2502_vm11, %v8944_v54  ;;  %6868 = vmatmul.msk.bf16.gmra.mxu3 %vm2502_vm11, %v9023_v6 }
 0x953   : > { %6861 = vmatmul.msk.bf16.gmra.mxu1 %vm2502_vm11, %v9026_v21 }
 0x954   : > { %6872 = vmatmul.msk.bf16.gmra.mxu0 %vm2502_vm11, %v9023_v6 }
 0x955   : > { %v9127_v7 = vpop.f32.mrf.mxu3 }
 0x957   : > { %2037 = vrot.lane.b32.xlu1 %v2003_v62, %s7372_s13  ;;  %v9130_v54 = vpop.f32.mrf.mxu1 }
 0x958   : > { %13154 = vst [vmem:[#allocation2_spill] sm:$0xff] %v9130_v54 }
 0x95d   : > { %v9136_v13 = vpop.f32.mrf.mxu3 }
 0x95f   : > { %2374 = vperm.xlu1 %7044, %v2348_v27  }
 0x960   : > { %v9140_v5 = vpop.f32.mrf.mxu1 }
 0x962   : > { %6849 = vmatmul.msk.bf16.gmra.mxu2 %vm2502_vm11, %v8968_v22  ;;  %6869 = vmatmul.msk.bf16.gmra.mxu3 %vm2502_vm11, %v9061_v3 }
 0x963   : > { %6874 = vmatmul.msk.bf16.vlgmr.msrb.gmra.mxu1 %vm2502_vm11, %v8990_v12  ;;  %2031 = vrot.lane.b32.xlu0 %v2000_v4, %s7372_s13  ;;  %v2132_v12 = vpack.c.bf16 %v8781_v40, %v8779_v57  ;;  %v3162_v40 = vpack.c.b16 %v3159_v26, %v3159_v26  ;;  %v2349_v26 = vld [vmem:[%s12716_s5 + $0x28] sm:$0xff] }
 0x964   : > { %3353 = vmatpush.bf16.msrb.mxu1 %v3312_v9  ;;  %6873 = vmatmul.msk.bf16.gmra.mxu0 %vm2502_vm11, %v9061_v3 }
 0x965   : > { %v9160_v44 = vpop.f32.mrf.mxu2  ;;  %v9162_v22 = vpop.f32.mrf.mxu3  ;;  %v3422_v28 = vunpack.c.l.b16 %v2132_v12  ;;  %v3423_v57 = vunpack.c.h.b16 %v2132_v12  ;;  %v3180_v4 = vsel %vm2515_vm10, %v3162_v40, 0 }
 0x966   : > { %13156 = vst [vmem:[#allocation33_spill] sm:$0xff] %v9160_v44 }
 0x967   : > { %2384 = vperm.xlu1 %7044, %v2350_v35   ;;  %v3425_v62 = vpack.c.b16 %v3422_v28, %v3422_v28  ;;  %v3426_v27 = vpack.c.b16 %v3423_v57, %v3423_v57  ;;  %v5597_v28 = vld [vmem:[%s12719_s8 + $0x10] sm:$0xff] }
 0x968   : > { %v9168_v48 = vpop.f32.mrf.mxu1 }
 0x969   : > { %v3441_v9 = vsel %vm2515_vm10, %v3425_v62, 0  ;;  %v3444_v14 = vsel %vm2515_vm10, %v3426_v27, 0 }
 0x96b   : > { %2033 = vrot.lane.b32.xlu0 %v2001_v50, %s7372_s13 }
 0x96d   : > { %v9180_v52 = vpop.f32.mrf.mxu2  ;;  %v9182_v41 = vpop.f32.mrf.mxu3 }
 0x96e   : > { %13158 = vst [vmem:[#allocation29_spill] sm:$0xff] %v9180_v52  ;;  %v3427_v52 = vpack.c.b16 %v3424_v1, %v3424_v1 }
 0x96f   : > { %5472 = vperm.xlu1 %7044, %v5466_v60  }
 0x970   : > { %v9184_v39 = vpop.f32.mrf.mxu1  ;;  %v3447_v59 = vsel %vm2515_vm10, %v3427_v52, 0 }
 0x971   : > { %13159 = vst [vmem:[#allocation50_spill] sm:$0xff] %v9184_v39  ;;  %v9186_v46 = vpop.trf.xlu0  ;;  %v9188_v47 = vpop.f32.mrf.mxu0  ;;  %v13232_v39 = vld [vmem:[#allocation57_spill] sm:$0xff] }
 0x972   : > { %13160 = vst [vmem:[#allocation49_spill] sm:$0xff] %v9188_v47  ;;  %6862 = vmatmul.msk.bf16.vlgmr.msrb.gmra.mxu2 %vm2502_vm11, %v8977_v15  ;;  %6882 = vmatmul.msk.bf16.vlgmr.msrb.gmra.mxu3 %vm2502_vm11, %v9186_v46  ;;  %v13228_v47 = vld [vmem:[#allocation109_spill] sm:$0xff] }
 0x973   : > { %6875 = vmatmul.msk.bf16.gmra.mxu1 %vm2502_vm11, %v9007_v63  ;;  %3221 = vmatpush.bf16.msrb.mxu2 %v3180_v4 }
 0x974   : > { %3456 = vmatpush.bf16.msrb.mxu3 %v3441_v9  ;;  %2039 = vrot.lane.b32.xlu0 %v2004_v56, %s7372_s13  ;;  %v13168_v9 = vmov 1  }
 0x975   : > { %6886 = vmatmul.msk.bf16.vlgmr.msrb.gmra.mxu0 %vm2502_vm11, %v9186_v46  ;;  %v9207_v15 = vpop.f32.mrf.mxu2  ;;  %v9209_v35 = vpop.f32.mrf.mxu3 }
 0x976   : > { %13161 = vst [vmem:[#allocation46_spill] sm:$0xff] %v9209_v35  ;;  %3485 = vmatpush.bf16.msrb.mxu0 %v3444_v14 }
 0x977   : > { %5487 = vperm.xlu1 %7044, %v5469_v33  }
 0x978   : > { %v9211_v63 = vpop.f32.mrf.mxu1 }
 0x979   : > { %13162 = vst [vmem:[#allocation78_spill] sm:$0xff] %v9211_v63  ;;  %v9213_v12 = vpop.trf.xlu0  ;;  %v9215_v50 = vpop.f32.mrf.mxu0  ;;  %v13230_v63 = vld [vmem:[#allocation56_spill] sm:$0xff] }
 0x97a   : > { %13163 = vst [vmem:[#allocation67_spill] sm:$0xff] %v9215_v50  ;;  %v9262_v58 = vpop.trf.xlu1 }
 0x97c   : > { %2379 = vperm.xlu0 %7072, %v2349_v26  }
 0x97d   : > { %v9223_v60 = vpop.f32.mrf.mxu2  ;;  %v9225_v57 = vpop.f32.mrf.mxu3 }
 0x97e   : > { %13164 = vst [vmem:[#allocation66_spill] sm:$0xff] %v9225_v57 }
 0x97f   : > { %5611 = vperm.xlu1 %7044, %v5597_v28  }
 0x980   : > { %v9227_v40 = vpop.f32.mrf.mxu1 }
 0x981   : > { %13165 = vst [vmem:[#allocation86_spill] sm:$0xff] %v9227_v40  ;;  %v9229_v62 = vpop.trf.xlu0  ;;  %v9231_v27 = vpop.f32.mrf.mxu0 }
 0x982   : > { %13166 = vst [vmem:[#allocation85_spill] sm:$0xff] %v9231_v27  ;;  %6863 = vmatmul.msk.bf16.gmra.mxu2 %vm2502_vm11, %v8995_v25  ;;  %6883 = vmatmul.msk.bf16.gmra.mxu3 %vm2502_vm11, %v9229_v62  ;;  %v9284_v2 = vpop.trf.xlu1  ;;  %v13201_v27 = vld [vmem:[#allocation38_spill] sm:$0xff] }
 0x983   : > { %6876 = vmatmul.msk.bf16.gmra.mxu1 %vm2502_vm11, %v9023_v6 }
 0x985   : > { %6887 = vmatmul.msk.bf16.gmra.mxu0 %vm2502_vm11, %v9229_v62  ;;  %v9241_v56 = vpop.f32.mrf.mxu2  ;;  %v9243_v4 = vpop.f32.mrf.mxu3 }
 0x986   : > { %13167 = vst [vmem:[#allocation82_spill] sm:$0xff] %v9243_v4 }
 0x987   : > { %7075 = vset.pattern.permute.xlu1 %v13168_v9 }
 0x988   : > { %v9246_v33 = vpop.f32.mrf.mxu1 }
 0x989   : > { %13169 = vst [vmem:[#allocation104_spill] sm:$0xff] %v9246_v33  ;;  %v9248_v14 = vpop.trf.xlu0  ;;  %v9250_v25 = vpop.f32.mrf.mxu0 }
 0x98a   : > { %13170 = vst [vmem:[#allocation103_spill] sm:$0xff] %v9250_v25 }
 0x98d   : > { %v9252_v26 = vpop.f32.mrf.mxu2  ;;  %v9254_v28 = vpop.f32.mrf.mxu3 }
 0x98e   : > { %13171 = vst [vmem:[#allocation68_spill] sm:$0xff] %v9254_v28  ;;  %v13199_v28 = vld [vmem:[#allocation37_spill] sm:$0xff] }
 0x990   : > { %v9256_v6 = vpop.f32.mrf.mxu1 }
 0x991   : > { %13172 = vst [vmem:[#allocation100_spill] sm:$0xff] %v9256_v6  ;;  %v9258_v0 = vpop.trf.xlu0  ;;  %v9260_v51 = vpop.f32.mrf.mxu0 }
 0x992   : > { %13173 = vst [vmem:[#allocation119_spill] sm:$0xff] %v9260_v51  ;;  %6864 = vmatmul.msk.bf16.gmra.mxu2 %vm2502_vm11, %v9009_v11  ;;  %6884 = vmatmul.msk.bf16.gmra.mxu3 %vm2502_vm11, %v9258_v0 }
 0x993   : > { %6877 = vmatmul.msk.bf16.gmra.mxu1 %vm2502_vm11, %v9061_v3 }
 0x995   : > { %6888 = vmatmul.msk.bf16.gmra.mxu0 %vm2502_vm11, %v9258_v0  ;;  %v9272_v61 = vpop.f32.mrf.mxu2  ;;  %v9274_v9 = vpop.f32.mrf.mxu3 }
 0x996   : > { %13174 = vst [vmem:[#allocation118_spill] sm:$0xff] %v9274_v9 }
 0x998   : > { %v9278_v32 = vpop.f32.mrf.mxu1 }
 0x999   : > { %13175 = vst [vmem:[#allocation115_spill] sm:$0xff] %v9278_v32  ;;  %v9280_v23 = vpop.trf.xlu0  ;;  %v9282_v11 = vpop.f32.mrf.mxu0 }
 0x99a   : > { %13176 = vst [vmem:[#allocation96_spill] sm:$0xff] %v9282_v11 }
 0x99d   : > { %v9286_v3 = vpop.f32.mrf.mxu2  ;;  %v9288_v18 = vpop.f32.mrf.mxu3 }
 0x99e   : > { %13177 = vst [vmem:[#allocation94_spill] sm:$0xff] %v9288_v18 }
 0x9a0   : > { %v9290_v44 = vpop.f32.mrf.mxu1 }
 0x9a1   : > { %13178 = vst [vmem:[#allocation3_spill] sm:$0xff] %v9290_v44  ;;  %v9292_v54 = vpop.trf.xlu0  ;;  %v9294_v16 = vpop.f32.mrf.mxu0 }
 0x9a2   : > { %13179 = vst [vmem:[#allocation17_spill] sm:$0xff] %v9294_v16  ;;  %6865 = vmatmul.msk.bf16.gmra.mxu2 %vm2502_vm11, %v9026_v21  ;;  %6885 = vmatmul.msk.bf16.gmra.mxu3 %vm2502_vm11, %v9292_v54  ;;  %v9309_v44 = vpop.trf.xlu1  ;;  %v2131_v21 = vpack.c.bf16 %v8769_v53, %v8769_v53 }
 0x9a3   : > { %6890 = vmatmul.msk.bf16.vlgmr.msra.gmra.mxu1 %vm2502_vm11, %v9213_v12 }
 0x9a4   : > { %3514 = vmatpush.bf16.msra.mxu1 %v3447_v59  ;;  %v3292_v18 = vunpack.c.l.b16 %v2131_v21 }
 0x9a5   : > { %6889 = vmatmul.msk.bf16.gmra.mxu0 %vm2502_vm11, %v9292_v54  ;;  %v9305_v1 = vpop.f32.mrf.mxu2  ;;  %v9307_v10 = vpop.f32.mrf.mxu3 }
 0x9a6   : > { %13180 = vst [vmem:[#allocation4_spill] sm:$0xff] %v9307_v10  ;;  %v3295_v59 = vpack.c.b16 %v3292_v18, %v3292_v18 }
 0x9a8   : > { %v9313_v16 = vpop.f32.mrf.mxu1  ;;  %v3315_v53 = vsel %vm2515_vm10, %v3295_v59, 0 }
 0x9a9   : > { %13181 = vst [vmem:[#allocation95_spill] sm:$0xff] %v9313_v16  ;;  %v9315_v11 = vpop.f32.mrf.mxu0 }
 0x9aa   : > { %13182 = vst [vmem:[#allocation16_spill] sm:$0xff] %v9315_v11  ;;  %v9321_v9 = vpop.trf.xlu1  ;;  %v7341_v11 = vld [vmem:[%s7533_s21 + $0x30] sm:$0xff] }
 0x9ad   : > { %v9317_v51 = vpop.f32.mrf.mxu2  ;;  %v9319_v52 = vpop.f32.mrf.mxu3 }
 0x9ae   : > { %13183 = vst [vmem:[#allocation36_spill] sm:$0xff] %v9319_v52 }
 0x9b0   : > { %v9323_v19 = vpop.f32.mrf.mxu1 }
 0x9b1   : > { %13184 = vst [vmem:[#allocation10_spill] sm:$0xff] %v9323_v19  ;;  %v9325_v10 = vpop.f32.mrf.mxu0 }
 0x9b2   : > { %13185 = vst [vmem:[#allocation35_spill] sm:$0xff] %v9325_v10  ;;  %6878 = vmatmul.msk.bf16.vlgmr.msra.gmra.mxu2 %vm2502_vm11, %v9186_v46  ;;  %6898 = vmatmul.msk.bf16.vlgmr.msra.gmra.mxu3 %vm2502_vm11, %v9213_v12  ;;  %v9344_v46 = vpop.trf.xlu1 }
 0x9b3   : > { %6891 = vmatmul.msk.bf16.gmra.mxu1 %vm2502_vm11, %v9248_v14  ;;  %3382 = vmatpush.bf16.msra.mxu2 %v3315_v53  ;;  %v513_v53 = vmul.f32 %v9171_v20, %v8613_v42  ;;  %v13194_v20 = vld [vmem:[#allocation20_spill] sm:$0xff] }
 0x9b5   : > { %6902 = vmatmul.msk.bf16.vlgmr.msra.gmra.mxu0 %vm2502_vm11, %v9262_v58  ;;  %v9336_v18 = vpop.f32.mrf.mxu2  ;;  %v9338_v21 = vpop.f32.mrf.mxu3 }
 0x9b6   : > { %13186 = vst [vmem:[#allocation53_spill] sm:$0xff] %v9336_v18  ;;  %v511_v18 = vmul.f32 %v7341_v11, %v8613_v42 }
 0x9b7   : > { %13187 = vst [vmem:[#allocation27_spill] sm:$0xff] %v9338_v21  ;;  %v512_v21 = vmul.f32 %v9143_v30, %v8613_v42 }
 0x9b8   : > { %v9340_v10 = vpop.f32.mrf.mxu1 }
 0x9b9   : > { %13188 = vst [vmem:[#allocation14_spill] sm:$0xff] %v9340_v10  ;;  %v9342_v19 = vpop.f32.mrf.mxu0 }
 0x9ba   : > { %13189 = vst [vmem:[#allocation52_spill] sm:$0xff] %v9342_v19  ;;  %v13196_v19 = vld [vmem:[#allocation19_spill] sm:$0xff]  ;;  %v9373_v30 = vpop.trf.xlu1 }
 0x9bb   : > { %v695_v11 = vsel %vm593_vm2, %v13194_v20, %v13196_v19  ;;  %v718_v42 = vadd.f32 %v13196_v19, %v513_v53 }
 0x9bd   : > { %v9346_v16 = vpop.f32.mrf.mxu2  ;;  %v9348_v59 = vpop.f32.mrf.mxu3  ;;  %v911_v19 = vadd.f32 %v13201_v27, %v718_v42 }
 0x9be   : > { %13190 = vst [vmem:[#allocation70_spill] sm:$0xff] %v9346_v16 }
 0x9bf   : > { %13191 = vst [vmem:[#allocation44_spill] sm:$0xff] %v9348_v59  ;;  %v13195_v59 = vld [vmem:[#allocation18_spill] sm:$0xff] }
 0x9c0   : > { %v9352_v52 = vpop.f32.mrf.mxu1  ;;  %v694_v16 = vsel %vm593_vm2, %v13195_v59, %v13194_v20  ;;  %v887_v59 = vsel %vm786_vm3, %v13200_v45, %v13199_v28  ;;  %v888_v20 = vsel %vm786_vm3, %v13199_v28, %v13201_v27  ;;  %v1104_v28 = vadd.f32 %v13206_v55, %v911_v19 }
 0x9c1   : > { %13192 = vst [vmem:[#allocation30_spill] sm:$0xff] %v9352_v52  ;;  %v9358_v10 = vpop.f32.mrf.mxu0 }
 0x9c2   : > { %13193 = vst [vmem:[#allocation69_spill] sm:$0xff] %v9358_v10  ;;  %6879 = vmatmul.msk.bf16.gmra.mxu2 %vm2502_vm11, %v9229_v62  ;;  %6899 = vmatmul.msk.bf16.gmra.mxu3 %vm2502_vm11, %v9248_v14  ;;  %v716_v10 = vadd.f32 %v694_v16, %v511_v18  ;;  %v717_v62 = vadd.f32 %v695_v11, %v512_v21  ;;  %v9392_v11 = vpop.trf.xlu0 }
 0x9c3   : > { %6892 = vmatmul.msk.bf16.gmra.mxu1 %vm2502_vm11, %v9280_v23 }
 0x9c4   : > { %v909_v16 = vadd.f32 %v887_v59, %v716_v10  ;;  %v910_v18 = vadd.f32 %v888_v20, %v717_v62  ;;  %v9405_v62 = vpop.trf.xlu1  ;;  %v13209_v59 = vld [vmem:[#allocation72_spill] sm:$0xff]  ;;  %v13210_v20 = vld [vmem:[#allocation65_spill] sm:$0xff] }
 0x9c5   : > { %6903 = vmatmul.msk.bf16.gmra.mxu0 %vm2502_vm11, %v9309_v44  ;;  %v9377_v52 = vpop.f32.mrf.mxu2  ;;  %v9379_v25 = vpop.f32.mrf.mxu3 }
 0x9c6   : > { %13197 = vst [vmem:[#allocation89_spill] sm:$0xff] %v9377_v52  ;;  %v13204_v52 = vld [vmem:[#allocation54_spill] sm:$0xff] }
 0x9c7   : > { %13198 = vst [vmem:[#allocation63_spill] sm:$0xff] %v9379_v25  ;;  %v13205_v25 = vld [vmem:[#allocation48_spill] sm:$0xff]  ;;  %v1081_v45 = vsel %vm979_vm4, %v13204_v52, %v13206_v55 }
 0x9c8   : > { %v9388_v53 = vpop.f32.mrf.mxu1  ;;  %v1080_v4 = vsel %vm979_vm4, %v13205_v25, %v13204_v52  ;;  %v1103_v27 = vadd.f32 %v1081_v45, %v910_v18  ;;  %v13215_v18 = vld [vmem:[#allocation84_spill] sm:$0xff] }
 0x9c9   : > { %13202 = vst [vmem:[#allocation47_spill] sm:$0xff] %v9388_v53  ;;  %v9390_v21 = vpop.f32.mrf.mxu0  ;;  %v1102_v50 = vadd.f32 %v1080_v4, %v909_v16  ;;  %v13211_v53 = vld [vmem:[#allocation73_spill] sm:$0xff]  ;;  %v13214_v16 = vld [vmem:[#allocation90_spill] sm:$0xff] }
 0x9ca   : > { %13203 = vst [vmem:[#allocation88_spill] sm:$0xff] %v9390_v21  ;;  %v1273_v21 = vsel %vm1172_vm0, %v13210_v20, %v13209_v59  ;;  %v1274_v25 = vsel %vm1172_vm0, %v13209_v59, %v13211_v53  ;;  %v1297_v55 = vadd.f32 %v13211_v53, %v1104_v28  ;;  %v1466_v45 = vsel %vm1365_vm1, %v13215_v18, %v13214_v16  ;;  %v13216_v59 = vld [vmem:[#allocation91_spill] sm:$0xff] }
 0x9cb   : > { %v1295_v52 = vadd.f32 %v1273_v21, %v1102_v50  ;;  %v1296_v19 = vadd.f32 %v1274_v25, %v1103_v27  ;;  %v1467_v53 = vsel %vm1365_vm1, %v13214_v16, %v13216_v59  ;;  %v13218_v20 = vld [vmem:[#allocation23_spill] sm:$0xff]  ;;  %v13219_v25 = vld [vmem:[#allocation21_spill] sm:$0xff]  ;;  %v13222_v16 = vld [vmem:[#allocation6_spill] sm:$0xff] }
 0x9cc   : > { %v1490_v50 = vadd.f32 %v13216_v59, %v1297_v55  ;;  %v514_v55 = vmul.f32 %v8972_v36, %v13222_v16  ;;  %v13224_v59 = vld [vmem:[#allocation34_spill] sm:$0xff]  ;;  %v9459_v36 = vpop.trf.xlu1 }
 0x9cd   : > { %v9401_v42 = vpop.f32.mrf.mxu2  ;;  %v9403_v10 = vpop.f32.mrf.mxu3  ;;  %v1489_v27 = vadd.f32 %v1467_v53, %v1296_v19  ;;  %v13225_v53 = vld [vmem:[#allocation40_spill] sm:$0xff] }
 0x9ce   : > { %13207 = vst [vmem:[#allocation107_spill] sm:$0xff] %v9401_v42 }
 0x9cf   : > { %13208 = vst [vmem:[#allocation77_spill] sm:$0xff] %v9403_v10  ;;  %v13220_v10 = vld [vmem:[#allocation22_spill] sm:$0xff] }
 0x9d0   : > { %v9413_v17 = vpop.f32.mrf.mxu1  ;;  %v697_v18 = vsel %vm593_vm2, %v13218_v20, %v13220_v10  ;;  %v13233_v10 = vld [vmem:[#allocation123_spill] sm:$0xff] }
 0x9d1   : > { %13212 = vst [vmem:[#allocation106_spill] sm:$0xff] %v9413_v17  ;;  %v9416_v4 = vpop.f32.mrf.mxu0  ;;  %v13227_v17 = vld [vmem:[#allocation102_spill] sm:$0xff] }
 0x9d2   : > { %13213 = vst [vmem:[#allocation122_spill] sm:$0xff] %v9416_v4  ;;  %6880 = vmatmul.msk.bf16.gmra.mxu2 %vm2502_vm11, %v9258_v0  ;;  %6900 = vmatmul.msk.bf16.gmra.mxu3 %vm2502_vm11, %v9280_v23  ;;  %v1488_v0 = vadd.f32 %v1466_v45, %v1295_v52  ;;  %v696_v4 = vsel %vm593_vm2, %v13219_v25, %v13218_v20  ;;  %v13223_v45 = vld [vmem:[#allocation39_spill] sm:$0xff] }
 0x9d3   : > { %6893 = vmatmul.msk.bf16.gmra.mxu1 %vm2502_vm11, %v9392_v11  ;;  %v515_v52 = vmul.f32 %v8960_v24, %v13222_v16  ;;  %v889_v19 = vsel %vm786_vm3, %v13224_v59, %v13223_v45  ;;  %v890_v25 = vsel %vm786_vm3, %v13223_v45, %v13225_v53  ;;  %v1683_v24 = vadd.f32 %v13228_v47, %v1490_v50 }
 0x9d4   : > { %v719_v35 = vadd.f32 %v696_v4, %v514_v55  ;;  %v13235_v4 = vld [vmem:[#allocation124_spill] sm:$0xff] }
 0x9d5   : > { %6904 = vmatmul.msk.bf16.gmra.mxu0 %vm2502_vm11, %v9344_v46  ;;  %v2032_v21 = vpop.permute.xlu0 %2031  ;;  %v9433_v28 = vpop.f32.mrf.mxu2  ;;  %v720_v59 = vadd.f32 %v697_v18, %v515_v52  ;;  %v1853_v50 = vsel %vm1751_vm7, %v13233_v10, %v13235_v4 }
 0x9d6   : > { %13217 = vst [vmem:[#allocation83_spill] sm:$0xff] %v9433_v28  ;;  %v9441_v42 = vpop.f32.mrf.mxu3  ;;  %v13226_v28 = vld [vmem:[#allocation108_spill] sm:$0xff]  ;;  %v912_v33 = vadd.f32 %v889_v19, %v719_v35  ;;  %v2045_v35 = vsel %vm12928_vm8, %v8893_v49, %v2032_v21 }
 0x9d7   : > { %13221 = vst [vmem:[#allocation121_spill] sm:$0xff] %v9441_v42  ;;  %v1659_v20 = vsel %vm1558_vm6, %v13227_v17, %v13226_v28  ;;  %v1660_v42 = vsel %vm1558_vm6, %v13226_v28, %v13228_v47  ;;  %v913_v40 = vadd.f32 %v890_v25, %v720_v59  ;;  %v13231_v17 = vld [vmem:[#allocation51_spill] sm:$0xff]  ;;  %v1083_v28 = vsel %vm979_vm4, %v13230_v63, %v13232_v39 }
 0x9d8   : > { %v9461_v57 = vpop.f32.mrf.mxu1  ;;  %v1681_v32 = vadd.f32 %v1659_v20, %v1488_v0  ;;  %v1682_v45 = vadd.f32 %v1660_v42, %v1489_v27  ;;  %v1082_v53 = vsel %vm979_vm4, %v13231_v17, %v13230_v63  ;;  %v1876_v42 = vadd.f32 %v13235_v4, %v1683_v24  ;;  %v13236_v20 = vld [vmem:[#allocation92_spill] sm:$0xff]  ;;  %v13237_v59 = vld [vmem:[#allocation87_spill] sm:$0xff]  ;;  %v13238_v17 = vld [vmem:[#allocation93_spill] sm:$0xff] }
 0x9d9   : > { %13229 = vst [vmem:[#allocation71_spill] sm:$0xff] %v9461_v57  ;;  %v9464_v6 = vpop.f32.mrf.mxu0  ;;  %v13234_v57 = vld [vmem:[#allocation117_spill] sm:$0xff]  ;;  %v1105_v52 = vadd.f32 %v1082_v53, %v912_v33  ;;  %v1106_v63 = vadd.f32 %v1083_v28, %v913_v40  ;;  %v1469_v49 = vsel %vm1365_vm1, %v13236_v20, %v13238_v17  ;;  %v13240_v4 = vld [vmem:[#allocation76_spill] sm:$0xff]  ;;  %v13242_v53 = vld [vmem:[#allocation110_spill] sm:$0xff] }
 0x9da   : > { %v1852_v47 = vsel %vm1751_vm7, %v13234_v57, %v13233_v10  ;;  %v1875_v27 = vadd.f32 %v1853_v50, %v1682_v45  ;;  %v1468_v10 = vsel %vm1365_vm1, %v13237_v59, %v13236_v20  ;;  %v13239_v45 = vld [vmem:[#allocation75_spill] sm:$0xff]  ;;  %v13243_v28 = vld [vmem:[#allocation105_spill] sm:$0xff]  ;;  %v13247_v59 = vld [vmem:[#allocation120_spill] sm:$0xff] }
 0x9db   : > { %v1874_v0 = vadd.f32 %v1852_v47, %v1681_v32  ;;  %v1298_v47 = vadd.f32 %v13239_v45, %v1105_v52  ;;  %v1299_v33 = vadd.f32 %v13240_v4, %v1106_v63  ;;  %v1661_v50 = vsel %vm1558_vm6, %v13243_v28, %v13242_v53  ;;  %v2038_v63 = vpop.permute.xlu1 %2037 }
 0x9dd   : > { %v2034_v18 = vpop.permute.xlu0 %2033  ;;  %v9481_v55 = vpop.f32.mrf.mxu2  ;;  %v2067_v32 = vadd.f32 %v2045_v35, %v1874_v0  ;;  %v9506_v0 = vld.sshfl [vmem:[#allocation1 + $0x10] sm:$0xff pattern:$0x75316420]  ;;  %v1492_v52 = vadd.f32 %v1469_v49, %v1299_v33 }
 0x9de   : > { %v2046_v19 = vsel %vm12928_vm8, %v2032_v21, %v2034_v18  ;;  %v2069_v25 = vadd.f32 %v2034_v18, %v1876_v42  ;;  %v9484_v57 = vpop.f32.mrf.mxu3  ;;  %v13244_v42 = vld [vmem:[#allocation111_spill] sm:$0xff]  ;;  %13245 = vst [vmem:[#allocation116_spill] sm:$0xff] %v9506_v0 }
 0x9df   : > { %v2068_v24 = vadd.f32 %v2046_v19, %v1875_v27  ;;  %v1662_v18 = vsel %vm1558_vm6, %v13242_v53, %v13244_v42  ;;  %v1491_v27 = vadd.f32 %v1468_v10, %v1298_v47  ;;  %v2265_v10 = vmul.f32 %v8728_v38, %v2067_v32  ;;  %v9521_v47 = vld.sshfl [vmem:[#allocation1 + $0x30] sm:$0xff pattern:$0x75316420]  ;;  %v2036_v53 = vpop.permute.xlu2 %2035 }
 0x9e0   : > { %v2267_v40 = vmul.f32 %v8875_v31, %v2069_v25  ;;  %v9495_v21 = vpop.f32.mrf.mxu1  ;;  %v13246_v25 = vld [vmem:[#allocation125_spill] sm:$0xff]  ;;  %13249 = vst [vmem:[#allocation5_spill] sm:$0xff] %v9521_v47  ;;  %v1685_v33 = vadd.f32 %v1662_v18, %v1492_v52 }
 0x9e1   : > { %13241 = vst [vmem:[#allocation101_spill] sm:$0xff] %v9495_v21  ;;  %v2266_v20 = vmul.f32 %v8707_v37, %v2068_v24  ;;  %v9504_v35 = vpop.f32.mrf.mxu0  ;;  %v1854_v45 = vsel %vm1751_vm7, %v13247_v59, %v13246_v25  ;;  %v13248_v24 = vld [vmem:[#allocation126_spill] sm:$0xff] }
 0x9e2   : > { %v2282_v19 = vrot.slane %v2267_v40, 4  ;;  %6881 = vmatmul.msk.bf16.gmra.mxu2 %vm2502_vm11, %v9292_v54  ;;  %6901 = vmatmul.msk.bf16.gmra.mxu3 %vm2502_vm11, %v9392_v11  ;;  %2289 = vst [vmem:[#allocation1 + $0x10] ss:$2 sm:$0xff] %v2267_v40  ;;  %v1855_v4 = vsel %vm1751_vm7, %v13246_v25, %v13248_v24  ;;  %v1684_v54 = vadd.f32 %v1661_v50, %v1491_v27  ;;  %v9532_v25 = vld.sshfl [vmem:[#allocation1 + $0x8] sm:$0xff pattern:$0x75316420] }
 0x9e3   : > { %v2277_v49 = vrot.slane %v2266_v20, 4  ;;  %6906 = vmatmul.msk.bf16.vlgmr.msrb.gmra.mxu1 %vm2502_vm11, %v9262_v58  ;;  %v2047_v40 = vsel %vm12928_vm8, %v2036_v53, %v2038_v63  ;;  %v9530_v20 = vld.sshfl [vmem:[#allocation1] sm:$0xff pattern:$0x75316420]  ;;  %13252 = vst [vmem:[#allocation45_spill] sm:$0xff] %v9532_v25  ;;  %v1878_v50 = vadd.f32 %v1855_v4, %v1685_v33 }
 0x9e4   : > { %2296 = vst [vmem:[#allocation1 + $0x30] ss:$2 sm:$0xff] %v2282_v19  ;;  %v1877_v0 = vadd.f32 %v1854_v45, %v1684_v54 }
 0x9e5   : > { %v2279_v28 = vsel %vm2082_vm9, %v2265_v10, %v2277_v49  ;;  %v2280_v59 = vsel %vm2082_vm9, %v2277_v49, %v2265_v10  ;;  %6905 = vmatmul.msk.bf16.gmra.mxu0 %vm2502_vm11, %v9405_v62  ;;  %v9528_v32 = vpop.f32.mrf.mxu2  ;;  %13251 = vst [vmem:[#allocation28_spill] sm:$0xff] %v9530_v20  ;;  %v9540_v10 = vld.sshfl [vmem:[#allocation1 + $0x20] sm:$0xff pattern:$0x75316420] }
 0x9e6   : > { %13250 = vst [vmem:[#allocation12_spill] sm:$0xff] %v9528_v32  ;;  %v2281_v18 = vrot.slane %v2280_v59, 4  ;;  %v9534_v27 = vpop.permute.xlu0 %2039  ;;  %v9536_v52 = vpop.f32.mrf.mxu3  ;;  %v9542_v49 = vld.sshfl [vmem:[#allocation1 + $0x28] sm:$0xff pattern:$0x75316420]  ;;  %v2070_v53 = vadd.f32 %v2047_v40, %v1877_v0 }
 0x9e7   : > { %13253 = vst [vmem:[#allocation64_spill] sm:$0xff] %v9536_v52  ;;  %v2048_v19 = vsel %vm12928_vm8, %v2038_v63, %v9534_v27 }
 0x9e8   : > { %2287 = vst [vmem:[#allocation1] ss:$2 sm:$0xff] %v2279_v28  ;;  %v2071_v47 = vadd.f32 %v2048_v19, %v1878_v50  ;;  %v9544_v21 = vpop.f32.mrf.mxu1  ;;  %v2268_v54 = vmul.f32 %v8728_v38, %v2070_v53 }
 0x9e9   : > { %13254 = vst [vmem:[#allocation79_spill] sm:$0xff] %v9540_v10  ;;  %v9546_v45 = vpop.f32.mrf.mxu0 }
 0x9ea   : > { %13255 = vst [vmem:[#allocation99_spill] sm:$0xff] %v9542_v49  ;;  %v2269_v4 = vmul.f32 %v8707_v37, %v2071_v47 }
 0x9eb   : > { %13256 = vst [vmem:[#allocation114_spill] sm:$0xff] %v9544_v21 }
 0x9ec   : > { %2294 = vst [vmem:[#allocation1 + $0x20] ss:$2 sm:$0xff] %v2281_v18  ;;  %v2278_v33 = vrot.slane %v2269_v4, 4 }
 0x9ed   : > { %13257 = vst [vmem:[#allocation98_spill] sm:$0xff] %v9546_v45  ;;  %v9550_v28 = vpop.f32.mrf.mxu2 }
 0x9ee   : > { %13258 = vst [vmem:[#allocation97_spill] sm:$0xff] %v9550_v28  ;;  %v9553_v63 = vsel %vm2082_vm9, %v2268_v54, %v2278_v33  ;;  %v9556_v59 = vsel %vm2082_vm9, %v2278_v33, %v2268_v54  ;;  %v9558_v0 = vpop.f32.mrf.mxu3 }
 0x9ef   : > { %13259 = vst [vmem:[#allocation113_spill] sm:$0xff] %v9558_v0  ;;  %v13302_v0 = vld [vmem:[#allocation68_spill] sm:$0xff] }
 0x9f0   : > { %v9560_v40 = vpop.f32.mrf.mxu1 }
 0x9f1   : > { %13260 = vst [vmem:[#allocation112_spill] sm:$0xff] %v9560_v40 }
 0x9f2   : > { %v3120_v50 = vpop.f32.mrf.mxu0  ;;  %6894 = vmatmul.msk.bf16.vlgmr.msrb.gmra.mxu2 %vm2502_vm11, %v9213_v12  ;;  %6914 = vmatmul.msk.bf16.vlgmr.msrb.gmra.mxu3 %vm2502_vm11, %v9284_v2 }
 0x9f3   : > { %6907 = vmatmul.msk.bf16.gmra.mxu1 %vm2502_vm11, %v9309_v44 }
 0x9f5   : > { %6918 = vmatmul.msk.bf16.vlgmr.msrb.gmra.mxu0 %vm2502_vm11, %v9284_v2  ;;  %v9570_v47 = vpop.f32.mrf.mxu2 }
 0x9f6   : > { %13261 = vst [vmem:[#allocation80_spill] sm:$0xff] %v9570_v47  ;;  %v3091_v18 = vpop.f32.mrf.mxu3 }
 0x9f7   : > { %v9588_v37 = vadd.f32 %v3091_v18, %v9207_v15 }
 0x9f8   : > { %v9572_v19 = vpop.f32.mrf.mxu1 }
 0x9f9   : > { %13262 = vst [vmem:[#allocation81_spill] sm:$0xff] %v9572_v19 }
 0x9fa   : > { %v3122_v53 = vpop.f32.mrf.mxu0 }
 0x9fd   : > { %v9574_v4 = vpop.f32.mrf.mxu2 }
 0x9fe   : > { %13263 = vst [vmem:[#allocation20_spill] sm:$0xff] %v9574_v4  ;;  %v3093_v54 = vpop.f32.mrf.mxu3 }
 0x9ff   : > { %v9583_v38 = vadd.f32 %v3093_v54, %v9223_v60 }
 0xa00   : > { %v9576_v33 = vpop.f32.mrf.mxu1 }
 0xa01   : > { %13264 = vst [vmem:[#allocation18_spill] sm:$0xff] %v9576_v33 }
 0xa02   : > { %v3125_v12 = vpop.f32.mrf.mxu0  ;;  %6895 = vmatmul.msk.bf16.gmra.mxu2 %vm2502_vm11, %v9248_v14  ;;  %6915 = vmatmul.msk.bf16.gmra.mxu3 %vm2502_vm11, %v9321_v9  ;;  %v3549_v14 = vmax.f32 %v9588_v37, %v9583_v38 }
 0xa03   : > { %6908 = vmatmul.msk.bf16.gmra.mxu1 %vm2502_vm11, %v9344_v46 }
 0xa05   : > { %6919 = vmatmul.msk.bf16.gmra.mxu0 %vm2502_vm11, %v9321_v9  ;;  %v9592_v49 = vpop.f32.mrf.mxu2 }
 0xa06   : > { %13265 = vst [vmem:[#allocation19_spill] sm:$0xff] %v9592_v49  ;;  %v3096_v10 = vpop.f32.mrf.mxu3  ;;  %v9619_v49 = vadd.f32 %v3122_v53, %v9063_v34 }
 0xa07   : > { %v9597_v47 = vadd.f32 %v3096_v10, %v9241_v56 }
 0xa08   : > { %v9599_v60 = vpop.f32.mrf.mxu1 }
 0xa09   : > { %13266 = vst [vmem:[#allocation37_spill] sm:$0xff] %v9599_v60  ;;  %v3550_v54 = vmax.f32 %v3549_v14, %v9597_v47 }
 0xa0a   : > { %v3127_v4 = vpop.f32.mrf.mxu0 }
 0xa0b   : > { %v9632_v21 = vadd.f32 %v3127_v4, %v9107_v29 }
 0xa0d   : > { %v9602_v33 = vpop.f32.mrf.mxu2  ;;  %v3568_v29 = vsel %vm3562_vm12, %v9632_v21, -inf }
 0xa0e   : > { %13267 = vst [vmem:[#allocation31_spill] sm:$0xff] %v9602_v33  ;;  %v3098_v15 = vpop.f32.mrf.mxu3 }
 0xa10   : > { %v9604_v18 = vpop.f32.mrf.mxu1 }
 0xa11   : > { %13268 = vst [vmem:[#allocation38_spill] sm:$0xff] %v9604_v18  ;;  %v9625_v18 = vadd.f32 %v3125_v12, %v9093_v8 }
 0xa12   : > { %v3130_v19 = vpop.f32.mrf.mxu0  ;;  %6896 = vmatmul.msk.bf16.gmra.mxu2 %vm2502_vm11, %v9280_v23  ;;  %6916 = vmatmul.msk.bf16.gmra.mxu3 %vm2502_vm11, %v9373_v30  ;;  %v9622_v23 = vadd.f32 %v3120_v50, %v9057_v43 }
 0xa13   : > { %6909 = vmatmul.msk.bf16.gmra.mxu1 %vm2502_vm11, %v9405_v62  ;;  %v3566_v43 = vsel %vm3562_vm12, %v9625_v18, -inf  ;;  %v9639_v8 = vadd.f32 %v3130_v19, %v9127_v7  ;;  %v9653_v7 = vadd.f32 %v3098_v15, %v9252_v26 }
 0xa14   : > { %v3563_v34 = vsel %vm3562_vm12, %v9622_v23, -inf }
 0xa15   : > { %6920 = vmatmul.msk.bf16.gmra.mxu0 %vm2502_vm11, %v9373_v30  ;;  %v9614_v56 = vpop.f32.mrf.mxu2  ;;  %v3570_v19 = vsel %vm3562_vm12, %v9639_v8, -inf }
 0xa16   : > { %13269 = vst [vmem:[#allocation54_spill] sm:$0xff] %v9614_v56  ;;  %v3101_v10 = vpop.f32.mrf.mxu3  ;;  %v3564_v56 = vsel %vm3562_vm12, %v9619_v49, -inf }
 0xa17   : > { %v3565_v50 = vmax.f32 %v3563_v34, %v3564_v56  ;;  %v9665_v34 = vadd.f32 %v3101_v10, %v9272_v61 }
 0xa18   : > { %v9616_v14 = vpop.f32.mrf.mxu1 }
 0xa19   : > { %13270 = vst [vmem:[#allocation48_spill] sm:$0xff] %v9616_v14  ;;  %v3567_v12 = vmax.f32 %v3565_v50, %v3566_v43  ;;  %v3551_v43 = vmax.f32 %v3550_v54, %v9653_v7 }
 0xa1a   : > { %v3132_v33 = vpop.f32.mrf.mxu0 }
 0xa1b   : > { %v9648_v4 = vadd.f32 %v3132_v33, %v9136_v13  ;;  %v3569_v13 = vmax.f32 %v3567_v12, %v3568_v29  ;;  %v3552_v12 = vmax.f32 %v3551_v43, %v9665_v34  ;;  %v7342_v43 = vld [vmem:[%s7533_s21 + $0x58] sm:$0xff]  ;;  %s7377_s21 = smov 106  }
 0xa1d   : > { %v9627_v60 = vpop.f32.mrf.mxu2  ;;  %v3571_v26 = vmax.f32 %v3569_v13, %v3570_v19 }
 0xa1e   : > { %13271 = vst [vmem:[#allocation55_spill] sm:$0xff] %v9627_v60  ;;  %v3103_v40 = vpop.f32.mrf.mxu3 }
 0xa20   : > { %v3194_v14 = vpop.f32.mrf.mxu1 }
 0xa22   : > { %v3135_v53 = vpop.f32.mrf.mxu0  ;;  %6897 = vmatmul.msk.bf16.gmra.mxu2 %vm2502_vm11, %v9392_v11  ;;  %6917 = vmatmul.msk.bf16.gmra.mxu3 %vm2502_vm11, %v9459_v36 }
 0xa23   : > { %6922 = vmatmul.msk.bf16.vlgmr.msra.gmra.mxu1 %vm2502_vm11, %v9284_v2  ;;  %v9658_v11 = vadd.f32 %v3135_v53, %v9162_v22  ;;  %v3572_v2 = vsel %vm3562_vm12, %v9648_v4, -inf  ;;  %v9671_v22 = vadd.f32 %v3103_v40, %v9286_v3 }
 0xa24   : > { %v3573_v53 = vmax.f32 %v3571_v26, %v3572_v2 }
 0xa25   : > { %6921 = vmatmul.msk.bf16.gmra.mxu0 %vm2502_vm11, %v9459_v36  ;;  %v9662_v56 = vpop.f32.mrf.mxu2  ;;  %v3574_v50 = vsel %vm3562_vm12, %v9658_v11, -inf  ;;  %v3553_v13 = vmax.f32 %v3552_v12, %v9671_v22 }
 0xa26   : > { %13272 = vst [vmem:[#allocation72_spill] sm:$0xff] %v9662_v56  ;;  %v3106_v33 = vpop.f32.mrf.mxu3  ;;  %v3575_v19 = vmax.f32 %v3573_v53, %v3574_v50  ;;  %v13274_v53 = vld [vmem:[#allocation22_spill] sm:$0xff] }
 0xa27   : > { %v9677_v61 = vadd.f32 %v3106_v33, %v9305_v1  ;;  %v516_v1 = vmul.f32 %v7342_v43, %v13222_v16  ;;  %v9693_v33 = vadd.f32 %v3194_v14, %v9140_v5 }
 0xa28   : > { %v3196_v15 = vpop.f32.mrf.mxu1 }
 0xa29   : > { %v9684_v54 = vadd.f32 %v3196_v15, %v9168_v48 }
 0xa2a   : > { %v3137_v29 = vpop.f32.mrf.mxu0 }
 0xa2b   : > { %v9680_v10 = vadd.f32 %v3137_v29, %v9182_v41  ;;  %v3554_v41 = vmax.f32 %v3553_v13, %v9677_v61  ;;  %v721_v29 = vadd.f32 %v13274_v53, %v516_v1  ;;  %v3584_v12 = vmax.f32 %v9693_v33, %v9684_v54  ;;  %v13277_v53 = vld [vmem:[#allocation74_spill] sm:$0xff] }
 0xa2d   : > { %v3576_v3 = vsel %vm3562_vm12, %v9680_v10, -inf  ;;  %v9688_v40 = vpop.f32.mrf.mxu2 }
 0xa2e   : > { %13273 = vst [vmem:[#allocation65_spill] sm:$0xff] %v9688_v40  ;;  %v3577_v2 = vmax.f32 %v3575_v19, %v3576_v3  ;;  %v3108_v26 = vpop.f32.mrf.mxu3  ;;  %v13275_v3 = vld [vmem:[#allocation50_spill] sm:$0xff] }
 0xa2f   : > { %v9697_v50 = vadd.f32 %v3108_v26, %v9317_v51  ;;  %v13276_v51 = vld [vmem:[#allocation40_spill] sm:$0xff] }
 0xa30   : > { %v3578_v48 = vrot.slane %v3577_v2, 4  ;;  %v3199_v15 = vpop.f32.mrf.mxu1  ;;  %v914_v14 = vadd.f32 %v13276_v51, %v721_v29 }
 0xa31   : > { %v3555_v19 = vmax.f32 %v3554_v41, %v9697_v50  ;;  %v9704_v40 = vadd.f32 %v3199_v15, %v13275_v3 }
 0xa32   : > { %v3579_v16 = vmax.f32 %v3577_v2, %v3578_v48  ;;  %v9706_v5 = vpop.f32.mrf.mxu0  ;;  %6910 = vmatmul.msk.bf16.vlgmr.msra.gmra.mxu2 %vm2502_vm11, %v9262_v58  ;;  %v1107_v1 = vadd.f32 %v13232_v39, %v914_v14 }
 0xa33   : > { %v3556_v13 = vrot.slane %v3555_v19, 4  ;;  %v9712_v26 = vmax.f32 %v3584_v12, %v9704_v40  ;;  %6923 = vmatmul.msk.bf16.gmra.mxu1 %vm2502_vm11, %v9321_v9 }
 0xa34   : > { %v3580_v43 = vrot.slane %v3579_v16, 2  ;;  %v1300_v58 = vadd.f32 %v13277_v53, %v1107_v1 }
 0xa35   : > { %v3557_v41 = vmax.f32 %v3555_v19, %v3556_v13  ;;  %v9717_v15 = vpop.f32.mrf.mxu2 }
 0xa36   : > { %v3581_v2 = vmax.f32 %v3579_v16, %v3580_v43  ;;  %v9719_v48 = vpop.f32.mrf.mxu3  ;;  %v1493_v12 = vadd.f32 %v13238_v17, %v1300_v58 }
 0xa37   : > { %v3558_v3 = vrot.slane %v3557_v41, 2 }
 0xa38   : > { %v3582_v29 = vrot.slane %v3581_v2, 1  ;;  %v3201_v51 = vpop.f32.mrf.mxu1  ;;  %v1686_v9 = vadd.f32 %v13244_v42, %v1493_v12 }
 0xa39   : > { %v3559_v56 = vmax.f32 %v3557_v41, %v3558_v3 }
 0xa3a   : > { %v3583_v60 = vmax.f32 %v3581_v2, %v3582_v29  ;;  %v9723_v25 = vpop.f32.mrf.mxu0  ;;  %v1879_v43 = vadd.f32 %v13248_v24, %v1686_v9 }
 0xa3b   : > { %v3560_v39 = vrot.slane %v3559_v56, 1 }
 0xa3c   : > { %v3727_v19 = vsub.f32 %v9622_v23, %v3583_v60  ;;  %v3730_v16 = vsub.f32 %v9619_v49, %v3583_v60  ;;  %v3733_v14 = vsub.f32 %v9625_v18, %v3583_v60  ;;  %v3736_v13 = vsub.f32 %v9632_v21, %v3583_v60 }
 0xa3d   : > { %v3739_v1 = vsub.f32 %v9639_v8, %v3583_v60  ;;  %v9732_v17 = vpop.f32.mrf.mxu2  ;;  %v9734_v58 = vmax.f32 %v3559_v56, %v3560_v39  ;;  %v3742_v23 = vsub.f32 %v9648_v4, %v3583_v60  ;;  %v2072_v18 = vadd.f32 %v9534_v27, %v1879_v43 }
 0xa3e   : > { %v3825_v41 = vmul.f32 1.442695, %v3727_v19  ;;  %v3831_v2 = vmul.f32 1.442695, %v3730_v16  ;;  %v3837_v53 = vmul.f32 1.442695, %v3733_v14  ;;  %v9736_v42 = vpop.f32.mrf.mxu3  ;;  %v3745_v21 = vsub.f32 %v9658_v11, %v3583_v60 }
 0xa3f   : > { %v3843_v49 = vmul.f32 1.442695, %v3736_v13  ;;  %v3726_v24 = vsub.f32 %v9588_v37, %v9734_v58  ;;  %v3748_v3 = vsub.f32 %v9680_v10, %v3583_v60  ;;  %v3849_v29 = vmul.f32 1.442695, %v3739_v1  ;;  %v13278_v60 = vld [vmem:[#allocation78_spill] sm:$0xff] }
 0xa40   : > { %7098 = vpow2.f32 %v3825_v41  ;;  %v3204_v8 = vpop.f32.mrf.mxu1  ;;  %v3732_v56 = vsub.f32 %v9597_v47, %v9734_v58  ;;  %v3855_v27 = vmul.f32 1.442695, %v3742_v23  ;;  %v3729_v4 = vsub.f32 %v9583_v38, %v9734_v58  ;;  %v13279_v19 = vld [vmem:[#allocation86_spill] sm:$0xff] }
 0xa41   : > { %7100 = vpow2.f32 %v3831_v2  ;;  %v3861_v37 = vmul.f32 1.442695, %v3745_v21  ;;  %v9755_v11 = vadd.f32 %v3201_v51, %v13278_v60  ;;  %v2270_v47 = vmul.f32 %v8875_v31, %v2072_v18 }
 0xa42   : > { %7102 = vpow2.f32 %v3837_v53  ;;  %v9746_v12 = vpop.f32.mrf.mxu0  ;;  %6911 = vmatmul.msk.bf16.gmra.mxu2 %vm2502_vm11, %v9309_v44  ;;  %v3867_v10 = vmul.f32 1.442695, %v3748_v3  ;;  %v3823_v44 = vmul.f32 1.442695, %v3726_v24  ;;  %v9763_v16 = vadd.f32 %v3204_v8, %v13279_v19 }
 0xa43   : > { %7104 = vpow2.f32 %v3843_v49  ;;  %6924 = vmatmul.msk.bf16.gmra.mxu1 %vm2502_vm11, %v9373_v30  ;;  %v3829_v51 = vmul.f32 1.442695, %v3729_v4  ;;  %v3586_v1 = vmax.f32 %v9712_v26, %v9755_v11  ;;  %v2286_v53 = vrot.slane %v2270_v47, 4  ;;  %v9784_v24 = vld.sshfl [vmem:[#allocation1 + $0x10] sm:$0xff pattern:$0x75316420] }
 0xa44   : > { %7106 = vpow2.f32 %v3849_v29  ;;  %13280 = vst [vmem:[#allocation73_spill] sm:$0xff] %v9784_v24  ;;  %v3735_v26 = vsub.f32 %v9653_v7, %v9734_v58  ;;  %v3835_v60 = vmul.f32 1.442695, %v3732_v56  ;;  %v2285_v7 = vrot.slane %v9556_v59, 4 }
 0xa45   : > { %v9758_v9 = vpop.f32.mrf.mxu2  ;;  %7108 = vpow2.f32 %v3855_v27  ;;  %v3587_v18 = vmax.f32 %v3586_v1, %v9763_v16  ;;  %2301 = vst [vmem:[#allocation1 + $0x10] ss:$2 sm:$0xff] %v2270_v47  ;;  %v9792_v27 = vld.sshfl [vmem:[#allocation1 + $0x30] sm:$0xff pattern:$0x75316420]  ;;  %v3738_v59 = vsub.f32 %v9665_v34, %v9734_v58 }
 0xa46   : > { %v9760_v39 = vpop.eup %7098  ;;  %v9765_v38 = vpop.f32.mrf.mxu3  ;;  %7110 = vpow2.f32 %v3861_v37  ;;  %13281 = vst [vmem:[#allocation90_spill] sm:$0xff] %v9792_v27  ;;  %v2298_v27 = vld.sshfl [vmem:[#allocation1 + $0x28] sm:$0xff pattern:$0x75316420] }
 0xa47   : > { %v9767_v14 = vpop.eup %7100  ;;  %v4039_v30 = vsel %vm3562_vm12, %v9760_v39, 0.0  ;;  %7112 = vpow2.f32 %v3867_v10  ;;  %v13282_v10 = vld [vmem:[#allocation104_spill] sm:$0xff]  ;;  %2306 = vst [vmem:[#allocation1 + $0x30] ss:$2 sm:$0xff] %v2286_v53 }
 0xa48   : > { %v9771_v13 = vpop.eup %7102  ;;  %v4040_v43 = vsel %vm3562_vm12, %v9767_v14, 0.0  ;;  %v3206_v41 = vpop.f32.mrf.mxu1  ;;  %7114 = vpow2.f32 %v3823_v44 }
 0xa49   : > { %v9777_v2 = vpop.eup %7104  ;;  %v4041_v23 = vadd.f32 %v4040_v43, %v4039_v30  ;;  %v4042_v49 = vsel %vm3562_vm12, %v9771_v13, 0.0  ;;  %7116 = vpow2.f32 %v3829_v51  ;;  %v9797_v44 = vadd.f32 %v3206_v41, %v13282_v10  ;;  %v9808_v43 = vld.sshfl [vmem:[#allocation1] sm:$0xff pattern:$0x75316420] }
 0xa4a   : > { %v9782_v21 = vpop.f32.mrf.mxu0  ;;  %v9786_v8 = vpop.eup %7106  ;;  %v4044_v29 = vsel %vm3562_vm12, %v9777_v2, 0.0  ;;  %13283 = vst [vmem:[#allocation84_spill] sm:$0xff] %v9808_v43  ;;  %v9812_v41 = vld.sshfl [vmem:[#allocation1 + $0x8] sm:$0xff pattern:$0x75316420]  ;;  %7118 = vpow2.f32 %v3835_v60  ;;  %v3741_v60 = vsub.f32 %v9671_v22, %v9734_v58 }
 0xa4b   : > { %v4043_v3 = vadd.f32 %v4042_v49, %v4041_v23  ;;  %v9794_v4 = vpop.eup %7108  ;;  %v4046_v47 = vsel %vm3562_vm12, %v9786_v8, 0.0  ;;  %v3841_v23 = vmul.f32 1.442695, %v3735_v26  ;;  %13284 = vst [vmem:[#allocation91_spill] sm:$0xff] %v9812_v41  ;;  %v3588_v26 = vmax.f32 %v3587_v18, %v9797_v44 }
 0xa4c   : > { %v9801_v30 = vpop.eup %7110  ;;  %v4048_v53 = vsel %vm3562_vm12, %v9794_v4, 0.0  ;;  %2300 = vst [vmem:[#allocation1] ss:$2 sm:$0xff] %v9553_v63 }
 0xa4d   : > { %v4045_v37 = vadd.f32 %v4044_v29, %v4043_v3  ;;  %v9799_v19 = vpop.f32.mrf.mxu2  ;;  %v9810_v1 = vpop.eup %7112  ;;  %v2297_v29 = vld.sshfl [vmem:[#allocation1 + $0x20] sm:$0xff pattern:$0x75316420]  ;;  %v4050_v24 = vsel %vm3562_vm12, %v9801_v30, 0.0  ;;  %7120 = vpow2.f32 %v3841_v23 }
 0xa4e   : > { %v9806_v51 = vpop.f32.mrf.mxu3  ;;  %v9814_v49 = vpop.eup %7114  ;;  %2305 = vst [vmem:[#allocation1 + $0x20] ss:$2 sm:$0xff] %v2285_v7  ;;  %v4052_v18 = vsel %vm3562_vm12, %v9810_v1, 0.0 }
 0xa4f   : > { %v4047_v56 = vadd.f32 %v4046_v47, %v4045_v37  ;;  %13285 = vst [vmem:[#allocation23_spill] sm:$0xff] %v9814_v49  ;;  %v9821_v10 = vpop.eup %7116  ;;  %v13287_v37 = vld [vmem:[#allocation100_spill] sm:$0xff]  ;;  %v9907_v28 = vadd.f32 %v9806_v51, %v13302_v0  ;;  %v13305_v51 = vld [vmem:[#allocation43_spill] sm:$0xff] }
 0xa50   : > { %v3209_v3 = vpop.f32.mrf.mxu1  ;;  %13286 = vst [vmem:[#allocation21_spill] sm:$0xff] %v9821_v10  ;;  %v9846_v7 = vpop.eup %7118 }
 0xa51   : > { %v4049_v31 = vadd.f32 %v4048_v53, %v4047_v56  ;;  %v9825_v47 = vadd.f32 %v3209_v3, %v13287_v37  ;;  %v4026_v56 = vadd.f32 %v9821_v10, %v9814_v49  ;;  %v3847_v3 = vmul.f32 1.442695, %v3738_v59  ;;  %13289 = vst [vmem:[#allocation39_spill] sm:$0xff] %v9846_v7  ;;  %v13294_v49 = vld [vmem:[#allocation49_spill] sm:$0xff] }
 0xa52   : > { %v9829_v41 = vpop.f32.mrf.mxu0  ;;  %6912 = vmatmul.msk.bf16.gmra.mxu2 %vm2502_vm11, %v9344_v46  ;;  %v3853_v10 = vmul.f32 1.442695, %v3741_v60  ;;  %v3747_v60 = vsub.f32 %v9697_v50, %v9734_v58  ;;  %v13297_v50 = vld [vmem:[#allocation24_spill] sm:$0xff] }
 0xa53   : > { %v4051_v63 = vadd.f32 %v4050_v24, %v4049_v31  ;;  %v3589_v34 = vmax.f32 %v3588_v26, %v9825_v47  ;;  %6925 = vmatmul.msk.bf16.gmra.mxu1 %vm2502_vm11, %v9459_v36  ;;  %v9844_v31 = vpack.c.bf16 %v2298_v27, %v2297_v29  ;;  %v3744_v26 = vsub.f32 %v9677_v61, %v9734_v58  ;;  %v9856_v27 = vpop.eup %7120  ;;  %v13292_v29 = vld [vmem:[#allocation46_spill] sm:$0xff] }
 0xa54   : > { %v4027_v37 = vadd.f32 %v9846_v7, %v4026_v56  ;;  %7122 = vpow2.f32 %v3847_v3  ;;  %13291 = vst [vmem:[#allocation34_spill] sm:$0xff] %v9856_v27  ;;  %v9884_v58 = vadd.f32 %v9732_v17, %v13297_v50  ;;  %v13301_v50 = vld [vmem:[#allocation25_spill] sm:$0xff] }
 0xa55   : > { %v4053_v53 = vadd.f32 %v4052_v18, %v4051_v63  ;;  %v9842_v46 = vpop.f32.mrf.mxu2  ;;  %13288 = vst [vmem:[#allocation6_spill] sm:$0xff] %v9844_v31  ;;  %v13290_v63 = vld [vmem:[#allocation115_spill] sm:$0xff]  ;;  %v9860_v18 = vadd.f32 %v9719_v48, %v13292_v29  ;;  %v13293_v31 = vld [vmem:[#allocation66_spill] sm:$0xff]  ;;  %7124 = vpow2.f32 %v3853_v10  ;;  %v9872_v48 = vadd.f32 %v9706_v5, %v13294_v49 }
 0xa56   : > { %v3262_v24 = vpop.f32.mrf.mxu3  ;;  %v9864_v61 = vadd.f32 %v9736_v42, %v13293_v31  ;;  %v13295_v29 = vld [vmem:[#allocation26_spill] sm:$0xff]  ;;  %v13296_v31 = vld [vmem:[#allocation67_spill] sm:$0xff]  ;;  %v9903_v7 = vadd.f32 %v9758_v9, %v13301_v50 }
 0xa57   : > { %v4054_v36 = vrot.slane %v4053_v53, 4  ;;  %v9876_v42 = vadd.f32 %v9717_v15, %v13295_v29  ;;  %v13299_v49 = vld [vmem:[#allocation82_spill] sm:$0xff] }
 0xa58   : > { %v3211_v22 = vpop.f32.mrf.mxu1  ;;  %v3611_v5 = vsel %vm3562_vm12, %v9864_v61, -inf  ;;  %v9894_v15 = vadd.f32 %v9765_v38, %v13299_v49 }
 0xa59   : > { %v4055_v43 = vadd.f32 %v4054_v36, %v4053_v53  ;;  %v9852_v23 = vadd.f32 %v3211_v22, %v13290_v63  ;;  %v4028_v53 = vadd.f32 %v9856_v27, %v4027_v37  ;;  %v3859_v36 = vmul.f32 1.442695, %v3744_v26  ;;  %v13300_v27 = vld [vmem:[#allocation85_spill] sm:$0xff] }
 0xa5a   : > { %v9854_v59 = vpop.f32.mrf.mxu0  ;;  %v9886_v26 = vpop.eup %7122  ;;  %v3610_v37 = vsel %vm3562_vm12, %v9860_v18, -inf  ;;  %v9899_v17 = vadd.f32 %v9746_v12, %v13300_v27  ;;  %v3613_v9 = vsel %vm3562_vm12, %v9894_v15, -inf  ;;  %v9925_v27 = vadd.f32 %v9799_v19, %v13305_v51  ;;  %v13307_v51 = vld [vmem:[#allocation119_spill] sm:$0xff] }
 0xa5b   : > { %v3590_v56 = vmax.f32 %v3589_v34, %v9852_v23  ;;  %v4056_v3 = vrot.slane %v4055_v43, 2  ;;  %v9880_v34 = vadd.f32 %v9723_v25, %v13296_v31  ;;  %13298 = vst [vmem:[#allocation108_spill] sm:$0xff] %v9886_v26  ;;  %v3865_v25 = vmul.f32 1.442695, %v3747_v60  ;;  %v9915_v12 = vpop.eup %7124 }
 0xa5c   : > { %v4029_v31 = vadd.f32 %v9886_v26, %v4028_v53  ;;  %7126 = vpow2.f32 %v3859_v36  ;;  %v3536_v60 = vmax.f32 %v9876_v42, %v9884_v58  ;;  %v3612_v53 = vmax.f32 %v3610_v37, %v3611_v5  ;;  %13303 = vst [vmem:[#allocation102_spill] sm:$0xff] %v9915_v12  ;;  %v13306_v5 = vld [vmem:[#allocation118_spill] sm:$0xff] }
 0xa5d   : > { %v3591_v22 = vrot.slane %v3590_v56, 4  ;;  %v3074_v63 = vpop.f32.mrf.mxu2  ;;  %v4057_v20 = vadd.f32 %v4056_v3, %v4055_v43  ;;  %v13304_v43 = vld [vmem:[#allocation103_spill] sm:$0xff]  ;;  %v9931_v49 = vadd.f32 %v3262_v24, %v13306_v5  ;;  %7128 = vpow2.f32 %v3865_v25 }
 0xa5e   : > { %v3264_v10 = vpop.f32.mrf.mxu3  ;;  %v9921_v0 = vadd.f32 %v9782_v21, %v13304_v43  ;;  %v3615_v21 = vsel %vm3562_vm12, %v9907_v28, -inf  ;;  %v3614_v19 = vmax.f32 %v3612_v53, %v3613_v9  ;;  %v13310_v9 = vld [vmem:[#allocation94_spill] sm:$0xff] }
 0xa5f   : > { %v3592_v29 = vmax.f32 %v3590_v56, %v3591_v22  ;;  %v3631_v56 = vmax.f32 %v9872_v48, %v9880_v34  ;;  %v4030_v22 = vadd.f32 %v9915_v12, %v4029_v31  ;;  %v4058_v50 = vrot.slane %v4057_v20, 1  ;;  %v13308_v31 = vld [vmem:[#allocation13_spill] sm:$0xff] }
 0xa60   : > { %v3616_v53 = vmax.f32 %v3614_v19, %v3615_v21  ;;  %v13311_v21 = vld [vmem:[#allocation96_spill] sm:$0xff] }
 0xa61   : > { %v3593_v38 = vrot.slane %v3592_v29, 2  ;;  %v3632_v37 = vmax.f32 %v3631_v56, %v9899_v17 }
 0xa62   : > { %6913 = vmatmul.msk.bf16.gmra.mxu2 %vm2502_vm11, %v9405_v62  ;;  %v3341_v36 = vpop.f32.mrf.mxu0  ;;  %v3537_v62 = vmax.f32 %v3536_v60, %v9903_v7  ;;  %v9943_v60 = vpop.eup %7126 }
 0xa63   : > { %v3594_v3 = vmax.f32 %v3592_v29, %v3593_v38  ;;  %v9937_v29 = vadd.f32 %v9829_v41, %v13307_v51  ;;  %v9941_v38 = vadd.f32 %v9842_v46, %v13308_v31  ;;  %13309 = vst [vmem:[#allocation109_spill] sm:$0xff] %v9943_v60  ;;  %v3633_v24 = vmax.f32 %v3632_v37, %v9921_v0 }
 0xa64   : > { %v3538_v25 = vmax.f32 %v3537_v62, %v9925_v27  ;;  %v4031_v12 = vadd.f32 %v9943_v60, %v4030_v22  ;;  %v3617_v41 = vsel %vm3562_vm12, %v9931_v49, -inf  ;;  %v9953_v51 = vadd.f32 %v3264_v10, %v13310_v9  ;;  %v13312_v10 = vld [vmem:[#allocation2_spill] sm:$0xff] }
 0xa65   : > { %v3595_v43 = vrot.slane %v3594_v3, 1  ;;  %v3077_v26 = vpop.f32.mrf.mxu2  ;;  %v9955_v46 = vadd.f32 %v4058_v50, %v4057_v20  ;;  %v3634_v22 = vmax.f32 %v3633_v24, %v9937_v29  ;;  %v9970_v20 = vadd.f32 %v3074_v63, %v13312_v10  ;;  %v9972_v50 = vpop.f32.mrf.mxu1  ;;  %v13314_v24 = vld [vmem:[#allocation4_spill] sm:$0xff] }
 0xa66   : > { %v3267_v56 = vpop.f32.mrf.mxu3  ;;  %v3539_v62 = vmax.f32 %v3538_v25, %v9941_v38  ;;  %v3618_v63 = vmax.f32 %v3616_v53, %v3617_v41 }
 0xa67   : > { %v9947_v5 = vmax.f32 %v3594_v3, %v3595_v43  ;;  %v9967_v43 = vadd.f32 %v9854_v59, %v13311_v21  ;;  %v9983_v25 = vadd.f32 %v3267_v56, %v13314_v24  ;;  %v13315_v21 = vld [vmem:[#allocation33_spill] sm:$0xff]  ;;  %7130 = vrcp.f32 %v9955_v46 }
 0xa68   : > { %v9987_v10 = vadd.f32 %v3077_v26, %v13315_v21  ;;  %v3540_v56 = vmax.f32 %v3539_v62, %v9970_v20  ;;  %vm4234_vm14 = vweird.f32 %v9955_v46 }
 0xa69   : > { %v3749_v31 = vsub.f32 %v9693_v33, %v9947_v5  ;;  %v3752_v37 = vsub.f32 %v9684_v54, %v9947_v5  ;;  %v3755_v3 = vsub.f32 %v9704_v40, %v9947_v5  ;;  %v9974_v33 = vpop.eup %7128  ;;  %v3758_v54 = vsub.f32 %v9755_v11, %v9947_v5 }
 0xa6a   : > { %13313 = vst [vmem:[#allocation56_spill] sm:$0xff] %v9974_v33  ;;  %v3761_v40 = vsub.f32 %v9763_v16, %v9947_v5  ;;  %v3767_v19 = vsub.f32 %v9825_v47, %v9947_v5  ;;  %v4032_v59 = vadd.f32 %v9974_v33, %v4031_v12  ;;  %v3619_v16 = vsel %vm3562_vm12, %v9953_v51, -inf  ;;  %v3343_v45 = vpop.f32.mrf.mxu0  ;;  %v13316_v12 = vld [vmem:[#allocation17_spill] sm:$0xff] }
 0xa6b   : > { %v3869_v9 = vmul.f32 1.442695, %v3749_v31  ;;  %v3875_v60 = vmul.f32 1.442695, %v3752_v37  ;;  %v3881_v11 = vmul.f32 1.442695, %v3755_v3  ;;  %v3635_v47 = vmax.f32 %v3634_v22, %v9967_v43 }
 0xa6c   : > { %v9995_v53 = vadd.f32 %v3341_v36, %v13316_v12  ;;  %v3764_v26 = vsub.f32 %v9797_v44, %v9947_v5  ;;  %v3887_v31 = vmul.f32 1.442695, %v3758_v54  ;;  %v3621_v37 = vsel %vm3562_vm12, %v9983_v25, -inf  ;;  %v13318_v22 = vld [vmem:[#allocation29_spill] sm:$0xff]  ;;  %v13319_v12 = vld [vmem:[#allocation36_spill] sm:$0xff] }
 0xa6d   : > { %v3079_v52 = vpop.f32.mrf.mxu2  ;;  %7132 = vpow2.f32 %v3869_v9  ;;  %v3620_v3 = vmax.f32 %v3618_v63, %v3619_v16  ;;  %v3541_v24 = vmax.f32 %v3540_v56, %v9987_v10  ;;  %v13317_v9 = vld [vmem:[#allocation16_spill] sm:$0xff]  ;;  %v3893_v36 = vmul.f32 1.442695, %v3761_v40  ;;  %v10013_v63 = vpop.eup %7130 }
 0xa6e   : > { %v3269_v41 = vpop.f32.mrf.mxu3  ;;  %7134 = vpow2.f32 %v3875_v60  ;;  %v10003_v21 = vadd.f32 %v3343_v45, %v13317_v9  ;;  %v10006_v62 = vadd.f32 %v3079_v52, %v13318_v22  ;;  %v4033_v44 = vrot.slane %v4032_v59, 4 }
 0xa6f   : > { %7136 = vpow2.f32 %v3881_v11  ;;  %v10009_v33 = vadd.f32 %v3269_v41, %v13319_v12  ;;  %v3636_v60 = vmax.f32 %v3635_v47, %v9995_v53  ;;  %v3622_v54 = vmax.f32 %v3620_v3, %v3621_v37  ;;  %v10021_v11 = vpop.f32.mrf.mxu1 }
 0xa70   : > { %v3542_v32 = vmax.f32 %v3541_v24, %v10006_v62  ;;  %v3770_v45 = vsub.f32 %v9852_v23, %v9947_v5  ;;  %7138 = vpow2.f32 %v3887_v31  ;;  %v3899_v16 = vmul.f32 1.442695, %v3764_v26 }
 0xa71   : > { %v3623_v52 = vsel %vm3562_vm12, %v10009_v33, -inf  ;;  %v3637_v56 = vmax.f32 %v3636_v60, %v10003_v21  ;;  %7140 = vpow2.f32 %v3893_v36  ;;  %v3905_v3 = vmul.f32 1.442695, %v3767_v19 }
 0xa72   : > { %v3543_v47 = vrot.slane %v3542_v32, 4  ;;  %v3624_v41 = vmax.f32 %v3622_v54, %v3623_v52  ;;  %v4034_v24 = vadd.f32 %v4033_v44, %v4032_v59  ;;  %v4230_v31 = vmul.f32 %v10013_v63, %v9955_v46 }
 0xa73   : > { %v10019_v40 = vpop.eup %7132  ;;  %7142 = vpow2.f32 %v3899_v16  ;;  %v3911_v9 = vmul.f32 1.442695, %v3770_v45  ;;  %v3638_v60 = vrot.slane %v3637_v56, 4  ;;  %vm4235_vm13 = vweird.f32 %v10013_v63 }
 0xa74   : > { %13320 = vst [vmem:[#allocation51_spill] sm:$0xff] %v10019_v40  ;;  %v10024_v37 = vpop.eup %7134  ;;  %v3544_v5 = vmax.f32 %v3542_v32, %v3543_v47  ;;  %v3625_v22 = vrot.slane %v3624_v41, 4  ;;  %7144 = vpow2.f32 %v3905_v3  ;;  %v4231_v32 = vsub.f32 1.0, %v4230_v31  ;;  %vm10064_vm15 = vmor %vm4234_vm14, %vm4235_vm13 }
 0xa75   : > { %13321 = vst [vmem:[#allocation57_spill] sm:$0xff] %v10024_v37  ;;  %v4060_v23 = vadd.f32 %v10024_v37, %v10019_v40  ;;  %v10028_v26 = vpop.eup %7136  ;;  %v4035_v44 = vrot.slane %v4034_v24, 2  ;;  %7146 = vpow2.f32 %v3911_v9  ;;  %v3639_v45 = vmax.f32 %v3637_v56, %v3638_v60 }
 0xa76   : > { %13322 = vst [vmem:[#allocation123_spill] sm:$0xff] %v10028_v26  ;;  %v3545_v54 = vrot.slane %v3544_v5, 2  ;;  %v10033_v52 = vpop.eup %7138  ;;  %v3626_v47 = vmax.f32 %v3624_v41, %v3625_v22 }
 0xa77   : > { %v4061_v12 = vadd.f32 %v10028_v26, %v4060_v23  ;;  %13323 = vst [vmem:[#allocation117_spill] sm:$0xff] %v10033_v52  ;;  %v10036_v36 = vpop.eup %7140  ;;  %v10042_v26 = vpop.f32.mrf.mxu1  ;;  %v3640_v9 = vrot.slane %v3639_v45, 2 }
 0xa78   : > { %v3546_v59 = vmax.f32 %v3544_v5, %v3545_v54  ;;  %13324 = vst [vmem:[#allocation124_spill] sm:$0xff] %v10036_v36  ;;  %v3627_v5 = vrot.slane %v3626_v47, 2  ;;  %v4232_v54 = vmul.f32 %v10013_v63, %v4231_v32 }
 0xa79   : > { %v4062_v19 = vadd.f32 %v10033_v52, %v4061_v12  ;;  %v10039_v40 = vpop.eup %7142  ;;  %v4036_v12 = vadd.f32 %v4035_v44, %v4034_v24  ;;  %v3641_v24 = vmax.f32 %v3639_v45, %v3640_v9  ;;  %v4240_v44 = vand.u32 2147483648, %v9955_v46 }
 0xa7a   : > { %v3547_v37 = vrot.slane %v3546_v59, 1  ;;  %13325 = vst [vmem:[#allocation92_spill] sm:$0xff] %v10039_v40  ;;  %v10044_v3 = vpop.eup %7144 }
 0xa7b   : > { %v4063_v16 = vadd.f32 %v10036_v36, %v4062_v19  ;;  %13326 = vst [vmem:[#allocation87_spill] sm:$0xff] %v10044_v3  ;;  %v10050_v22 = vpop.eup %7146  ;;  %v4037_v60 = vrot.slane %v4036_v12, 1  ;;  %v3628_v19 = vmax.f32 %v3626_v47, %v3627_v5  ;;  %v4238_v47 = vand.u32 2147483647, %v9955_v46 }
 0xa7c   : > { %v10048_v41 = vmax.f32 %v3546_v59, %v3547_v37  ;;  %v10060_v59 = vpop.f32.mrf.mxu0  ;;  %v3642_v9 = vrot.slane %v3641_v24, 1  ;;  %v4241_v46 = vor.u32 1.1754944e-38, %v4240_v44 }
 0xa7d   : > { %v4064_v23 = vadd.f32 %v10039_v40, %v4063_v16  ;;  %v4233_v16 = vadd.f32 %v10013_v63, %v4232_v54  ;;  %v10068_v45 = vadd.f32 %v4037_v60, %v4036_v12  ;;  %v3629_v54 = vrot.slane %v3628_v19, 1  ;;  %v10081_v60 = vpop.f32.mrf.mxu2 }
 0xa7e   : > { %v3725_v32 = vsub.f32 %v9876_v42, %v10048_v41  ;;  %v3728_v37 = vsub.f32 %v9884_v58, %v10048_v41  ;;  %v3731_v42 = vsub.f32 %v9903_v7, %v10048_v41  ;;  %vm4239_vm9 = vcmp.eq.f32.partialorder %v4238_v47, 8.507059e+37 }
 0xa7f   : > { %v4065_v31 = vadd.f32 %v10044_v3, %v4064_v23  ;;  %v4237_v58 = vsel %vm10064_vm15, %v10013_v63, %v4233_v16  ;;  %v10075_v36 = vpop.f32.mrf.mxu1  ;;  %v3737_v7 = vsub.f32 %v9941_v38, %v10048_v41  ;;  %v10083_v3 = vpop.f32.mrf.mxu3  ;;  %7148 = vrcp.f32 %v10068_v45 }
 0xa80   : > { %v3821_v40 = vmul.f32 1.442695, %v3725_v32  ;;  %v10085_v63 = vsel %vm4239_vm9, %v4241_v46, %v4237_v58  ;;  %v3740_v16 = vsub.f32 %v9970_v20, %v10048_v41  ;;  %v3833_v32 = vmul.f32 1.442695, %v3731_v42 }
 0xa81   : > { %v4066_v56 = vadd.f32 %v10050_v22, %v4065_v31  ;;  %v10090_v44 = vmax.f32 %v3628_v19, %v3629_v54  ;;  %v3743_v38 = vsub.f32 %v9987_v10, %v10048_v41  ;;  %v4389_v5 = vmul.f32 %v9801_v30, %v10085_v63 }
 0xa82   : > { %7150 = vpow2.f32 %v3821_v40  ;;  %v3845_v20 = vmul.f32 1.442695, %v3737_v7  ;;  %v3851_v10 = vmul.f32 1.442695, %v3740_v16  ;;  %vm4220_vm15 = vweird.f32 %v10068_v45 }
 0xa83   : > { %v4067_v52 = vrot.slane %v4066_v56, 4  ;;  %v3754_v19 = vsub.f32 %v9864_v61, %v10090_v44  ;;  %v3757_v40 = vsub.f32 %v9894_v15, %v10090_v44  ;;  %v3746_v61 = vsub.f32 %v10006_v62, %v10048_v41 }
 0xa84   : > { %v10108_v42 = vpop.f32.mrf.mxu0  ;;  %v4478_v15 = vpack.c.bf16 %v4389_v5, %v4389_v5 }
 0xa85   : > { %v4068_v23 = vadd.f32 %v4067_v52, %v4066_v56  ;;  %v3734_v52 = vsub.f32 %v9925_v27, %v10048_v41  ;;  %v3827_v56 = vmul.f32 1.442695, %v3728_v37  ;;  %v10092_v37 = vmax.f32 %v3641_v24, %v3642_v9  ;;  %v10113_v54 = vpop.eup %7148  ;;  %v10129_v16 = vpop.f32.mrf.mxu2 }
 0xa86   : > { %v4392_v24 = vmul.f32 %v9810_v1, %v10085_v63  ;;  %v3879_v9 = vmul.f32 1.442695, %v3754_v19  ;;  %vm4221_vm9 = vweird.f32 %v10113_v54 }
 0xa87   : > { %v4069_v31 = vrot.slane %v4068_v23, 2  ;;  %7152 = vpow2.f32 %v3827_v56  ;;  %v3839_v47 = vmul.f32 1.442695, %v3734_v52  ;;  %v3773_v30 = vsub.f32 %v9872_v48, %v10092_v37  ;;  %v10119_v52 = vpop.f32.mrf.mxu1 }
 0xa88   : > { %7154 = vpow2.f32 %v3833_v32  ;;  %v4480_v46 = vpack.c.bf16 %v4392_v24, %v4392_v24  ;;  %v3760_v48 = vsub.f32 %v9907_v28, %v10090_v44  ;;  %v3776_v62 = vsub.f32 %v9880_v34, %v10092_v37  ;;  %v10131_v32 = vpop.f32.mrf.mxu3 }
 0xa89   : > { %v4070_v12 = vadd.f32 %v4069_v31, %v4068_v23  ;;  %v3751_v23 = vsub.f32 %v9860_v18, %v10090_v44  ;;  %v3857_v18 = vmul.f32 1.442695, %v3743_v38  ;;  %v10117_v31 = vpop.eup %7150  ;;  %v3917_v41 = vmul.f32 1.442695, %v3773_v30  ;;  %v13332_v38 = vld [vmem:[#allocation3_spill] sm:$0xff] }
 0xa8a   : > { %13329 = vst [vmem:[#allocation93_spill] sm:$0xff] %v10117_v31  ;;  %v3779_v28 = vsub.f32 %v9899_v17, %v10092_v37  ;;  %v4578_v19 = vunpack.c.l.b16 %v4480_v46  ;;  %v3923_v17 = vmul.f32 1.442695, %v3776_v62  ;;  %v3782_v46 = vsub.f32 %v9921_v0, %v10092_v37 }
 0xa8b   : > { %v4071_v27 = vrot.slane %v4070_v12, 1  ;;  %v3873_v1 = vmul.f32 1.442695, %v3751_v23  ;;  %v3863_v23 = vmul.f32 1.442695, %v3746_v61 }
 0xa8d   : > { %v10100_v58 = vadd.f32 %v4071_v27, %v4070_v12  ;;  %v10121_v56 = vpop.eup %7152  ;;  %v3885_v12 = vmul.f32 1.442695, %v3757_v40  ;;  %v3763_v40 = vsub.f32 %v9931_v49, %v10090_v44  ;;  %v10157_v49 = vpop.f32.mrf.mxu0 }
 0xa8e   : > { %13330 = vst [vmem:[#allocation75_spill] sm:$0xff] %v10121_v56  ;;  %v4013_v7 = vadd.f32 %v10121_v56, %v10117_v31  ;;  %v10133_v27 = vpop.eup %7154  ;;  %v3772_v31 = vsub.f32 %v10009_v33, %v10090_v44 }
 0xa8f   : > { %7156 = vrcp.f32 %v10100_v58  ;;  %13331 = vst [vmem:[#allocation76_spill] sm:$0xff] %v10133_v27  ;;  %v3897_v0 = vmul.f32 1.442695, %v3763_v40  ;;  %vm4248_vm11 = vweird.f32 %v10100_v58 }
 0xa90   : > { %7158 = vpow2.f32 %v3839_v47  ;;  %v10137_v47 = vadd.f32 %v9972_v50, %v13332_v38  ;;  %v4014_v5 = vadd.f32 %v10133_v27, %v4013_v7  ;;  %v3891_v50 = vmul.f32 1.442695, %v3760_v48 }
 0xa91   : > { %7160 = vpow2.f32 %v3845_v20  ;;  %v4575_v20 = vunpack.c.l.b16 %v4478_v15  ;;  %v4252_v15 = vand.u32 2147483647, %v10100_v58 }
 0xa92   : > { %7162 = vpow2.f32 %v3851_v10 }
 0xa93   : > { %7164 = vpow2.f32 %v3857_v18  ;;  %v10150_v61 = vpack.c.b16 %v4578_v19, %v4575_v20  ;;  %vm4253_vm13 = vcmp.eq.f32.partialorder %v4252_v15, 8.507059e+37 }
 0xa94   : > { %7166 = vpow2.f32 %v3873_v1 }
 0xa95   : > { %v7157_v34 = vpop.eup %7156  ;;  %7168 = vpow2.f32 %v3879_v9  ;;  %13334 = vst [vmem:[#allocation105_spill] sm:$0xff] %v10150_v61  ;;  %v10167_v7 = vsel %vm3562_vm12, %v10150_v61, 0  ;;  %v4383_v61 = vmul.f32 %v9786_v8, %v10085_v63 }
 0xa96   : > { %v10142_v24 = vpop.eup %7158  ;;  %v4244_v10 = vmul.f32 %v7157_v34, %v10100_v58  ;;  %7170 = vpow2.f32 %v3885_v12  ;;  %v4254_v12 = vand.u32 2147483648, %v10100_v58  ;;  %13335 = vst [vmem:[#allocation111_spill] sm:$0xff] %v10167_v7  ;;  %vm4249_vm10 = vweird.f32 %v7157_v34  ;;  %4644 = vmatpush.bf16.xpose.msra.mxu0 %v10167_v7  ;;  %v10192_v7 = vpop.f32.mrf.mxu2 }
 0xa97   : > { %13333 = vst [vmem:[#allocation110_spill] sm:$0xff] %v10142_v24  ;;  %v10147_v30 = vpop.eup %7160  ;;  %7172 = vpow2.f32 %v3917_v41  ;;  %v4015_v18 = vadd.f32 %v10142_v24, %v4014_v5  ;;  %v3766_v41 = vsub.f32 %v9953_v51, %v10090_v44  ;;  %v3769_v51 = vsub.f32 %v9983_v25, %v10090_v44  ;;  %vm4250_vm14 = vmor %vm4248_vm11, %vm4249_vm10  ;;  %v13347_v44 = vld [vmem:[#allocation14_spill] sm:$0xff] }
 0xa98   : > { %v10152_v1 = vpop.eup %7162  ;;  %v4245_v9 = vsub.f32 1.0, %v4244_v10  ;;  %7174 = vpow2.f32 %v3863_v23  ;;  %v10179_v10 = vpop.f32.mrf.mxu1  ;;  %vm10417_vm10 = vmor %vm4220_vm15, %vm4221_vm9 }
 0xa99   : > { %v10159_v48 = vpop.eup %7164  ;;  %v4016_v62 = vadd.f32 %v10147_v30, %v4015_v18  ;;  %7176 = vpow2.f32 %v3891_v50 }
 0xa9a   : > { %v10169_v38 = vpop.eup %7166  ;;  %v4246_v5 = vmul.f32 %v7157_v34, %v4245_v9  ;;  %7178 = vpow2.f32 %v3923_v17  ;;  %v4255_v17 = vor.u32 1.1754944e-38, %v4254_v12  ;;  %v3929_v12 = vmul.f32 1.442695, %v3779_v28 }
 0xa9b   : > { %13336 = vst [vmem:[#allocation125_spill] sm:$0xff] %v10169_v38  ;;  %v10172_v23 = vpop.eup %7168  ;;  %v4017_v20 = vadd.f32 %v10152_v1, %v4016_v62  ;;  %v4086_v19 = vsel %vm3562_vm12, %v10169_v38, 0.0  ;;  %7180 = vpow2.f32 %v3897_v0  ;;  %v4386_v38 = vmul.f32 %v9794_v4, %v10085_v63 }
 0xa9c   : > { %13337 = vst [vmem:[#allocation120_spill] sm:$0xff] %v10172_v23  ;;  %v10181_v18 = vpop.eup %7170  ;;  %v4247_v9 = vadd.f32 %v7157_v34, %v4246_v5  ;;  %v4087_v40 = vsel %vm3562_vm12, %v10172_v23, 0.0  ;;  %v10194_v5 = vpop.f32.mrf.mxu3  ;;  %v3903_v23 = vmul.f32 1.442695, %v3766_v41  ;;  %v4474_v4 = vpack.c.bf16 %v4383_v61, %v4383_v61 }
 0xa9d   : > { %13338 = vst [vmem:[#allocation126_spill] sm:$0xff] %v10181_v18  ;;  %v10186_v50 = vpop.eup %7172  ;;  %v4018_v25 = vadd.f32 %v10159_v48, %v4017_v20  ;;  %v4088_v62 = vadd.f32 %v4087_v40, %v4086_v19  ;;  %v4089_v8 = vsel %vm3562_vm12, %v10181_v18, 0.0  ;;  %v3785_v28 = vsub.f32 %v9937_v29, %v10092_v37 }
 0xa9e   : > { %13339 = vst [vmem:[#allocation22_spill] sm:$0xff] %v10186_v50  ;;  %v10196_v58 = vpop.eup %7174  ;;  %v4251_v15 = vsel %vm4250_vm14, %v7157_v34, %v4247_v9  ;;  %v13343_v34 = vld [vmem:[#allocation95_spill] sm:$0xff]  ;;  %7182 = vpow2.f32 %v3903_v23  ;;  %v10235_v23 = vadd.f32 %v10075_v36, %v13347_v44  ;;  %v10247_v36 = vpop.f32.mrf.mxu2 }
 0xa9f   : > { %v10200_v56 = vsel %vm4253_vm13, %v4255_v17, %v4251_v15  ;;  %v4019_v20 = vadd.f32 %v10196_v58, %v4018_v25  ;;  %v10205_v19 = vpop.eup %7176  ;;  %v10213_v41 = vadd.f32 %v10021_v11, %v13343_v34  ;;  %v4090_v0 = vadd.f32 %v4089_v8, %v4088_v62  ;;  %v13346_v34 = vld [vmem:[#allocation10_spill] sm:$0xff] }
 0xaa0   : > { %13340 = vst [vmem:[#allocation50_spill] sm:$0xff] %v10200_v56  ;;  %v10209_v40 = vmul.f32 %v10050_v22, %v10200_v56  ;;  %v10215_v9 = vpop.eup %7178  ;;  %v3935_v17 = vmul.f32 1.442695, %v3782_v46  ;;  %v4476_v15 = vpack.c.bf16 %v4386_v38, %v4386_v38  ;;  %v3909_v22 = vmul.f32 1.442695, %v3769_v51  ;;  %v10221_v56 = vpop.f32.mrf.mxu0 }
 0xaa1   : > { %13341 = vst [vmem:[#allocation40_spill] sm:$0xff] %v10205_v19  ;;  %v4020_v25 = vrot.slane %v4019_v20, 4  ;;  %7184 = vpow2.f32 %v3929_v12  ;;  %v4091_v61 = vsel %vm3562_vm12, %v10205_v19, 0.0  ;;  %v10225_v8 = vpop.eup %7180  ;;  %v3644_v29 = vmax.f32 %v10137_v47, %v10213_v41  ;;  %v3370_v12 = vpop.f32.mrf.mxu1 }
 0xaa2   : > { %13342 = vst [vmem:[#allocation74_spill] sm:$0xff] %v10209_v40  ;;  %v4569_v40 = vunpack.c.l.b16 %v4474_v4  ;;  %v4572_v62 = vunpack.c.l.b16 %v4476_v15  ;;  %v4092_v46 = vadd.f32 %v4091_v61, %v4090_v0  ;;  %v10231_v33 = vadd.f32 %v10042_v26, %v13346_v34 }
 0xaa3   : > { %13344 = vst [vmem:[#allocation78_spill] sm:$0xff] %v10215_v9  ;;  %v4021_v11 = vadd.f32 %v4020_v25, %v4019_v20  ;;  %v3941_v20 = vmul.f32 1.442695, %v3785_v28  ;;  %v4107_v4 = vadd.f32 %v10215_v9, %v10186_v50  ;;  %7186 = vpow2.f32 %v3909_v22 }
 0xaa4   : > { %13345 = vst [vmem:[#allocation86_spill] sm:$0xff] %v10225_v8  ;;  %v10237_v51 = vpack.c.b16 %v4572_v62, %v4569_v40  ;;  %v3915_v25 = vmul.f32 1.442695, %v3772_v31  ;;  %7188 = vpow2.f32 %v3935_v17  ;;  %v4093_v15 = vsel %vm3562_vm12, %v10225_v8, 0.0  ;;  %v10249_v40 = vpop.f32.mrf.mxu3  ;;  %v10251_v61 = vpop.eup %7182  ;;  %v13351_v17 = vld [vmem:[#allocation7_spill] sm:$0xff] }
 0xaa5   : > { %v4022_v38 = vrot.slane %v4021_v11, 2  ;;  %13350 = vst [vmem:[#allocation115_spill] sm:$0xff] %v10251_v61  ;;  %v3788_v28 = vsub.f32 %v9967_v43, %v10092_v37  ;;  %v4094_v22 = vadd.f32 %v4093_v15, %v4092_v46  ;;  %v4377_v31 = vmul.f32 %v9771_v13, %v10085_v63  ;;  %v13353_v15 = vld [vmem:[#allocation30_spill] sm:$0xff] }
 0xaa6   : > { %13348 = vst [vmem:[#allocation104_spill] sm:$0xff] %v10237_v51  ;;  %v10245_v26 = vsel %vm3562_vm12, %v10237_v51, 0  ;;  %v3645_v44 = vmax.f32 %v3644_v29, %v10231_v33  ;;  %v4380_v43 = vmul.f32 %v9777_v2, %v10085_v63  ;;  %7190 = vpow2.f32 %v3915_v25 }
 0xaa7   : > { %v4023_v0 = vadd.f32 %v4022_v38, %v4021_v11  ;;  %13349 = vst [vmem:[#allocation100_spill] sm:$0xff] %v10245_v26  ;;  %4645 = vmatpush.bf16.xpose.msra.mxu0 %v10245_v26  ;;  %v2258_v11 = vpack.c.bf16 %v13351_v17, %v13351_v17  ;;  %v10260_v62 = vpop.eup %7184  ;;  %v4216_v38 = vmul.f32 %v10113_v54, %v10068_v45  ;;  %7192 = vpow2.f32 %v3941_v20 }
 0xaa8   : > { %13352 = vst [vmem:[#allocation46_spill] sm:$0xff] %v10260_v62  ;;  %v4108_v46 = vadd.f32 %v10260_v62, %v4107_v4  ;;  %v10270_v13 = vadd.f32 %v10119_v52, %v13353_v15  ;;  %v4470_v51 = vpack.c.bf16 %v4377_v31, %v4377_v31  ;;  %v4095_v17 = vsel %vm3562_vm12, %v10251_v61, 0.0  ;;  %v10279_v62 = vpop.f32.mrf.mxu0  ;;  %v13355_v15 = vld [vmem:[#allocation47_spill] sm:$0xff] }
 0xaa9   : > { %v4024_v34 = vrot.slane %v4023_v0, 1  ;;  %v3646_v26 = vmax.f32 %v3645_v44, %v10235_v23  ;;  %v4472_v9 = vpack.c.bf16 %v4380_v43, %v4380_v43  ;;  %v10275_v50 = vpop.eup %7186  ;;  %v3791_v2 = vsub.f32 %v9995_v53, %v10092_v37 }
 0xaaa   : > { %v3947_v29 = vmul.f32 1.442695, %v3788_v28  ;;  %v4096_v4 = vadd.f32 %v4095_v17, %v4094_v22  ;;  %v4563_v25 = vunpack.c.l.b16 %v4470_v51  ;;  %v10281_v52 = vpop.eup %7188  ;;  %v4217_v31 = vsub.f32 1.0, %v4216_v38  ;;  %v13356_v38 = vld [vmem:[#allocation106_spill] sm:$0xff] }
 0xaab   : > { %13354 = vst [vmem:[#allocation66_spill] sm:$0xff] %v10281_v52  ;;  %v10283_v20 = vadd.f32 %v4024_v34, %v4023_v0  ;;  %v10287_v19 = vadd.f32 %v10179_v10, %v13355_v15  ;;  %v10289_v44 = vunpack.c.l.b16 %v2258_v11  ;;  %v3794_v43 = vsub.f32 %v10003_v21, %v10092_v37  ;;  %v3372_v34 = vpop.f32.mrf.mxu1 }
 0xaac   : > { %v4109_v53 = vadd.f32 %v10281_v52, %v4108_v46  ;;  %v3647_v51 = vmax.f32 %v3646_v26, %v10270_v13  ;;  %v4566_v28 = vunpack.c.l.b16 %v4472_v9  ;;  %v4097_v22 = vsel %vm3562_vm12, %v10275_v50, 0.0  ;;  %v10304_v17 = vpop.eup %7190  ;;  %v13366_v52 = vld [vmem:[#allocation53_spill] sm:$0xff] }
 0xaad   : > { %v10298_v0 = vadd.f32 %v3370_v12, %v13356_v38  ;;  %v4371_v10 = vmul.f32 %v9760_v39, %v10085_v63  ;;  %v4374_v11 = vmul.f32 %v9767_v14, %v10085_v63  ;;  %7194 = vpow2.f32 %v3947_v29  ;;  %v10308_v9 = vpop.eup %7192  ;;  %v3233_v39 = vpop.f32.mrf.mxu2  ;;  %v13360_v29 = vld [vmem:[#allocation71_spill] sm:$0xff] }
 0xaae   : > { %v3953_v21 = vmul.f32 1.442695, %v3791_v2  ;;  %v4098_v37 = vadd.f32 %v4097_v22, %v4096_v4  ;;  %v10306_v26 = vpack.c.b16 %v4566_v28, %v4563_v25  ;;  %13358 = vst [vmem:[#allocation26_spill] sm:$0xff] %v10308_v9  ;;  %7196 = vrcp.f32 %v10283_v20  ;;  %v10312_v38 = vpop.f32.mrf.mxu3 }
 0xaaf   : > { %v3648_v12 = vmax.f32 %v3647_v51, %v10287_v19  ;;  %v4466_v46 = vpack.c.bf16 %v4371_v10, %v4371_v10  ;;  %v4468_v15 = vpack.c.bf16 %v4374_v11, %v4374_v11  ;;  %v4218_v14 = vmul.f32 %v10113_v54, %v4217_v31  ;;  %v13361_v11 = vld [vmem:[#allocation52_spill] sm:$0xff] }
 0xab0   : > { %13357 = vst [vmem:[#allocation49_spill] sm:$0xff] %v10306_v26  ;;  %v4110_v63 = vadd.f32 %v10308_v9, %v4109_v53  ;;  %v10318_v2 = vsel %vm3562_vm12, %v10306_v26, 0  ;;  %v10321_v4 = vadd.f32 %v3372_v34, %v13360_v29  ;;  %v4099_v25 = vsel %vm3562_vm12, %v10304_v17, 0.0 }
 0xab1   : > { %13359 = vst [vmem:[#allocation67_spill] sm:$0xff] %v10318_v2  ;;  %4646 = vmatpush.bf16.xpose.msra.mxu0 %v10318_v2  ;;  %v3649_v51 = vmax.f32 %v3648_v12, %v10298_v0  ;;  %v4557_v28 = vunpack.c.l.b16 %v4466_v46  ;;  %v4560_v22 = vunpack.c.l.b16 %v4468_v15  ;;  %7198 = vpow2.f32 %v3953_v21  ;;  %v13363_v21 = vld [vmem:[#allocation35_spill] sm:$0xff]  ;;  %v3499_v15 = vpop.f32.mrf.mxu0 }
 0xab2   : > { %v4100_v31 = vadd.f32 %v4099_v25, %v4098_v37  ;;  %v3959_v10 = vmul.f32 1.442695, %v3794_v43  ;;  %v10332_v34 = vadd.f32 %v10108_v42, %v13361_v11  ;;  %v4226_v12 = vand.u32 2147483648, %v10068_v45 }
 0xab3   : > { %v3650_v29 = vmax.f32 %v3649_v51, %v10321_v4  ;;  %v10335_v26 = vpop.eup %7194  ;;  %v10341_v37 = vadd.f32 %v10060_v59, %v13363_v21  ;;  %v10343_v46 = vpack.c.b16 %v4560_v22, %v4557_v28  ;;  %v10348_v42 = vadd.f32 %v10113_v54, %v4218_v14  ;;  %v13365_v51 = vld [vmem:[#allocation70_spill] sm:$0xff]  ;;  %v13367_v28 = vld [vmem:[#allocation27_spill] sm:$0xff]  ;;  %v13368_v21 = vld [vmem:[#allocation44_spill] sm:$0xff] }
 0xab4   : > { %13362 = vst [vmem:[#allocation24_spill] sm:$0xff] %v10335_v26  ;;  %v10345_v43 = vpop.eup %7196  ;;  %v4111_v25 = vadd.f32 %v10335_v26, %v4110_v63  ;;  %v10353_v11 = vadd.f32 %v10129_v16, %v13365_v51  ;;  %v4101_v2 = vrot.slane %v4100_v31, 4  ;;  %v10357_v59 = vadd.f32 %v10081_v60, %v13366_v52  ;;  %v13369_v16 = vld [vmem:[#allocation69_spill] sm:$0xff] }
 0xab5   : > { %13364 = vst [vmem:[#allocation82_spill] sm:$0xff] %v10343_v46  ;;  %v3651_v53 = vrot.slane %v3650_v29, 4  ;;  %v10361_v22 = vadd.f32 %v10083_v3, %v13367_v28  ;;  %v10365_v14 = vadd.f32 %v10131_v32, %v13368_v21  ;;  %7200 = vpow2.f32 %v3959_v10  ;;  %v13371_v3 = vld [vmem:[#allocation89_spill] sm:$0xff]  ;;  %v13372_v32 = vld [vmem:[#allocation63_spill] sm:$0xff] }
 0xab6   : > { %v3691_v63 = vmax.f32 %v10341_v37, %v10332_v34  ;;  %v10371_v51 = vadd.f32 %v10157_v49, %v13369_v16  ;;  %v4202_v60 = vmul.f32 %v10345_v43, %v10283_v20  ;;  %v10379_v52 = vadd.f32 %v10192_v7, %v13371_v3  ;;  %v3235_v16 = vpop.f32.mrf.mxu2  ;;  %v3470_v3 = vpop.f32.mrf.mxu3 }
 0xab7   : > { %v3652_v26 = vmax.f32 %v3650_v29, %v3651_v53  ;;  %v10373_v9 = vpop.eup %7198  ;;  %v10383_v10 = vadd.f32 %v10194_v5, %v13372_v32  ;;  %v10387_v28 = vsel %vm3562_vm12, %v10343_v46, 0  ;;  %v3597_v53 = vmax.f32 %v10357_v59, %v10353_v11  ;;  %v13374_v29 = vld [vmem:[#allocation88_spill] sm:$0xff]  ;;  %v13375_v46 = vld [vmem:[#allocation107_spill] sm:$0xff] }
 0xab8   : > { %13370 = vst [vmem:[#allocation85_spill] sm:$0xff] %v10373_v9  ;;  %v4112_v49 = vadd.f32 %v10373_v9, %v4111_v25  ;;  %v10394_v21 = vadd.f32 %v10221_v56, %v13374_v29  ;;  %v4102_v5 = vadd.f32 %v4101_v2, %v4100_v31  ;;  %v3678_v32 = vmax.f32 %v10361_v22, %v10365_v14  ;;  %v13376_v25 = vld [vmem:[#allocation77_spill] sm:$0xff] }
 0xab9   : > { %13373 = vst [vmem:[#allocation25_spill] sm:$0xff] %v10387_v28  ;;  %4647 = vmatpush.bf16.xpose.msra.mxu0 %v10387_v28  ;;  %v3653_v7 = vrot.slane %v3652_v26, 2  ;;  %v10401_v18 = vadd.f32 %v10247_v36, %v13375_v46  ;;  %v10405_v9 = vadd.f32 %v10249_v40, %v13376_v25  ;;  %v4224_v56 = vand.u32 2147483647, %v10068_v45  ;;  %v13377_v28 = vld [vmem:[#allocation122_spill] sm:$0xff]  ;;  %v13380_v25 = vld [vmem:[#allocation83_spill] sm:$0xff]  ;;  %v3502_v27 = vpop.f32.mrf.mxu0 }
 0xaba   : > { %v3692_v29 = vmax.f32 %v3691_v63, %v10371_v51  ;;  %v10411_v24 = vadd.f32 %v10279_v62, %v13377_v28  ;;  %v4203_v31 = vsub.f32 1.0, %v4202_v60  ;;  %v3598_v40 = vmax.f32 %v3597_v53, %v10379_v52 }
 0xabb   : > { %v3654_v2 = vmax.f32 %v3652_v26, %v3653_v7  ;;  %v3679_v46 = vmax.f32 %v3678_v32, %v10383_v10  ;;  %v10424_v63 = vadd.f32 %v3233_v39, %v13380_v25  ;;  %v10426_v62 = vpop.eup %7200  ;;  %v10432_v26 = vor.u32 1.1754944e-38, %v4226_v12 }
 0xabc   : > { %13381 = vst [vmem:[#allocation68_spill] sm:$0xff] %v10426_v62  ;;  %v3693_v28 = vmax.f32 %v3692_v29, %v10394_v21  ;;  %v10436_v53 = vadd.f32 %v10426_v62, %v4112_v49  ;;  %v4103_v7 = vrot.slane %v4102_v5, 2  ;;  %v3599_v39 = vmax.f32 %v3598_v40, %v10401_v18 }
 0xabd   : > { %v3655_v60 = vrot.slane %v3654_v2, 1  ;;  %v3680_v32 = vmax.f32 %v3679_v46, %v10405_v9  ;;  %vm4206_vm11 = vweird.f32 %v10283_v20  ;;  %v4210_v25 = vand.u32 2147483647, %v10283_v20  ;;  %v13383_v46 = vld [vmem:[#allocation121_spill] sm:$0xff] }
 0xabe   : > { %v3694_v61 = vmax.f32 %v3693_v28, %v10411_v24  ;;  %v4204_v12 = vmul.f32 %v10345_v43, %v4203_v31  ;;  %v4212_v29 = vand.u32 2147483648, %v10283_v20  ;;  %v3600_v49 = vmax.f32 %v3599_v39, %v10424_v63 }
 0xabf   : > { %v10443_v45 = vmax.f32 %v3654_v2, %v3655_v60  ;;  %v10449_v62 = vadd.f32 %v3499_v15, %v9464_v6  ;;  %v13382_v40 = vpack.c.b16 %v10289_v44, %v10289_v44  ;;  %v10457_v8 = vadd.f32 %v10312_v38, %v13383_v46  ;;  %v3238_v6 = vpop.f32.mrf.mxu2  ;;  %v3473_v15 = vpop.f32.mrf.mxu3 }
 0xac0   : > { %vm10465_vm13 = vcmp.eq.f32.partialorder %v4224_v56, 8.507059e+37  ;;  %vm4207_vm14 = vweird.f32 %v10345_v43  ;;  %v4104_v44 = vadd.f32 %v4103_v7, %v4102_v5  ;;  %v4205_v56 = vadd.f32 %v10345_v43, %v4204_v12  ;;  %v13388_v12 = vld [vmem:[#allocation98_spill] sm:$0xff] }
 0xac1   : > { %6926 = vmatmul.msk.bf16.vlgmr.msra.gmra.mxu0 %vm3562_vm12, %v13382_v40  ;;  %v3774_v2 = vsub.f32 %v10137_v47, %v10443_v45  ;;  %v3777_v31 = vsub.f32 %v10213_v41, %v10443_v45  ;;  %v3780_v28 = vsub.f32 %v10231_v33, %v10443_v45  ;;  %v3783_v38 = vsub.f32 %v10235_v23, %v10443_v45  ;;  %v3504_v23 = vpop.f32.mrf.mxu0  ;;  %vm10500_vm15 = vmor %vm4206_vm11, %vm4207_vm14 }
 0xac2   : > { %v10473_v47 = vadd.f32 %v3502_v27, %v9504_v35  ;;  %v10476_v40 = vadd.f32 %v3235_v16, %v9481_v55  ;;  %v10479_v33 = vadd.f32 %v3470_v3, %v9484_v57  ;;  %v3786_v46 = vsub.f32 %v10270_v13, %v10443_v45  ;;  %v13386_v27 = vld [vmem:[#allocation12_spill] sm:$0xff] }
 0xac3   : > { %v3919_v39 = vmul.f32 1.442695, %v3774_v2  ;;  %v3925_v41 = vmul.f32 1.442695, %v3777_v31  ;;  %v3931_v5 = vmul.f32 1.442695, %v3780_v28  ;;  %v3695_v7 = vmax.f32 %v3694_v61, %v10449_v62 }
 0xac4   : > { %v3681_v35 = vmax.f32 %v3680_v32, %v10457_v8  ;;  %v10487_v2 = vadd.f32 %v3238_v6, %v13386_v27  ;;  %v13387_v55 = vld [vmem:[#allocation64_spill] sm:$0xff]  ;;  %v3937_v57 = vmul.f32 1.442695, %v3783_v38  ;;  %v10494_v31 = vadd.f32 %v3504_v23, %v13388_v12  ;;  %v13393_v27 = vld [vmem:[#allocation97_spill] sm:$0xff] }
 0xac5   : > { %7202 = vpow2.f32 %v3919_v39  ;;  %v10490_v16 = vadd.f32 %v3473_v15, %v13387_v55  ;;  %v3696_v3 = vmax.f32 %v3695_v7, %v10473_v47  ;;  %vm10504_vm9 = vcmp.eq.f32.partialorder %v4210_v25, 8.507059e+37  ;;  %v10512_v15 = vpop.f32.mrf.mxu1  ;;  %v13394_v12 = vld [vmem:[#allocation113_spill] sm:$0xff] }
 0xac6   : > { %7204 = vpow2.f32 %v3925_v41  ;;  %v3789_v32 = vsub.f32 %v10287_v19, %v10443_v45  ;;  %v3601_v28 = vmax.f32 %v3600_v49, %v10476_v40  ;;  %v3682_v6 = vmax.f32 %v3681_v35, %v10479_v33 }
 0xac7   : > { %v4209_v20 = vsel %vm10500_vm15, %v10345_v43, %v4205_v56  ;;  %7206 = vpow2.f32 %v3931_v5  ;;  %v3943_v38 = vmul.f32 1.442695, %v3786_v46  ;;  %v3697_v25 = vmax.f32 %v3696_v3, %v10494_v31  ;;  %v3240_v23 = vpop.f32.mrf.mxu2  ;;  %v3475_v49 = vpop.f32.mrf.mxu3 }
 0xac8   : > { %v4213_v39 = vor.u32 1.1754944e-38, %v4212_v29  ;;  %v4105_v41 = vrot.slane %v4104_v44, 1  ;;  %v3602_v7 = vmax.f32 %v3601_v28, %v10487_v2  ;;  %v3683_v19 = vmax.f32 %v3682_v6, %v10490_v16 }
 0xac9   : > { %7208 = vpow2.f32 %v3937_v57  ;;  %v3698_v35 = vrot.slane %v3697_v25, 4  ;;  %v10521_v55 = vadd.f32 %v3240_v23, %v13393_v27  ;;  %v10524_v61 = vadd.f32 %v3475_v49, %v13394_v12 }
 0xaca   : > { %v13395_v29 = vsel %vm10417_vm10, %v10113_v54, %v10348_v42  ;;  %v4114_v46 = vrot.slane %v10436_v53, 4  ;;  %v10541_v5 = vsel %vm10504_vm9, %v4213_v39, %v4209_v20  ;;  %v3949_v57 = vmul.f32 1.442695, %v3789_v32 }
 0xacb   : > { %v10526_v43 = vpop.eup %7202  ;;  %v10536_v56 = vsel %vm10465_vm13, %v10432_v26, %v13395_v29  ;;  %7210 = vpow2.f32 %v3943_v38  ;;  %v3699_v28 = vmax.f32 %v3697_v25, %v3698_v35  ;;  %v3603_v36 = vmax.f32 %v3602_v7, %v10521_v55  ;;  %v13396_v38 = vld [vmem:[#allocation56_spill] sm:$0xff] }
 0xacc   : > { %v10543_v3 = vpop.eup %7204  ;;  %v3684_v54 = vmax.f32 %v3683_v19, %v10524_v61  ;;  %v3792_v42 = vsub.f32 %v10298_v0, %v10443_v45  ;;  %v10553_v13 = vadd.f32 %v4105_v41, %v4104_v44  ;;  %v4391_v25 = vmul.f32 %v13396_v38, %v10536_v56 }
 0xacd   : > { %v4120_v26 = vadd.f32 %v10543_v3, %v10526_v43  ;;  %v10551_v60 = vpop.eup %7206  ;;  %v3700_v6 = vrot.slane %v3699_v28, 2  ;;  %v3604_v32 = vrot.slane %v3603_v36, 4  ;;  %v4115_v39 = vadd.f32 %v4114_v46, %v10436_v53  ;;  %v10566_v27 = vpop.f32.mrf.mxu1 }
 0xace   : > { %v3685_v20 = vrot.slane %v3684_v54, 4  ;;  %v4390_v7 = vmul.f32 %v10196_v58, %v10541_v5  ;;  %v3795_v23 = vsub.f32 %v10321_v4, %v10443_v45  ;;  %7212 = vpow2.f32 %v3949_v57  ;;  %v13397_v4 = vld [vmem:[#allocation109_spill] sm:$0xff] }
 0xacf   : > { %v4121_v0 = vadd.f32 %v10551_v60, %v4120_v26  ;;  %v10561_v19 = vpop.eup %7208  ;;  %v3701_v44 = vmax.f32 %v3699_v28, %v3700_v6  ;;  %v3605_v41 = vmax.f32 %v3603_v36, %v3604_v32  ;;  %v3955_v49 = vmul.f32 1.442695, %v3792_v42 }
 0xad0   : > { %v3686_v12 = vmax.f32 %v3684_v54, %v3685_v20  ;;  %v4387_v53 = vmul.f32 %v10159_v48, %v10541_v5  ;;  %7214 = vrcp.f32 %v10553_v13  ;;  %v4388_v45 = vmul.f32 %v13397_v4, %v10536_v56 }
 0xad1   : > { %v4122_v35 = vadd.f32 %v10561_v19, %v4121_v0  ;;  %v10570_v58 = vpop.eup %7210  ;;  %v3702_v29 = vrot.slane %v3701_v44, 1  ;;  %v3606_v46 = vrot.slane %v3605_v41, 2  ;;  %v4116_v57 = vrot.slane %v4115_v39, 2 }
 0xad2   : > { %v10578_v42 = vpack.c.bf16 %v4388_v45, %v4387_v53  ;;  %v10580_v54 = vpack.c.bf16 %v4391_v25, %v4390_v7  ;;  %7216 = vpow2.f32 %v3955_v49  ;;  %v3961_v48 = vmul.f32 1.442695, %v3795_v23 }
 0xad3   : > { %v4123_v28 = vadd.f32 %v10570_v58, %v4122_v35  ;;  %v10576_v36 = vmax.f32 %v3701_v44, %v3702_v29  ;;  %v3687_v26 = vrot.slane %v3686_v12, 2  ;;  %v3607_v0 = vmax.f32 %v3605_v41, %v3606_v46 }
 0xad4   : > { %v10582_v6 = vpop.eup %7212  ;;  %v4117_v44 = vadd.f32 %v4116_v57, %v4115_v39  ;;  %v4573_v49 = vunpack.c.l.b16 %v10578_v42  ;;  %v4576_v53 = vunpack.c.l.b16 %v10580_v54  ;;  %7218 = vpow2.f32 %v3961_v48 }
 0xad5   : > { %v3798_v32 = vsub.f32 %v10341_v37, %v10576_v36  ;;  %v3801_v20 = vsub.f32 %v10332_v34, %v10576_v36  ;;  %v3804_v38 = vsub.f32 %v10371_v51, %v10576_v36  ;;  %v4124_v35 = vadd.f32 %v10582_v6, %v4123_v28  ;;  %v10601_v4 = vpop.f32.mrf.mxu1 }
 0xad6   : > { %v10591_v25 = vpop.eup %7214  ;;  %v3807_v37 = vsub.f32 %v10394_v21, %v10576_v36  ;;  %v3608_v29 = vrot.slane %v3607_v0, 1  ;;  %v3688_v51 = vmax.f32 %v3686_v12, %v3687_v26  ;;  %v4118_v39 = vrot.slane %v4117_v44, 1  ;;  %v13399_v12 = vld [vmem:[#allocation42_spill] sm:$0xff]  ;;  %v13400_v26 = vld [vmem:[#allocation61_spill] sm:$0xff] }
 0xad7   : > { %v3967_v7 = vmul.f32 1.442695, %v3798_v32  ;;  %v3973_v23 = vmul.f32 1.442695, %v3801_v20  ;;  %v3979_v34 = vmul.f32 1.442695, %v3804_v38  ;;  %v4272_v46 = vmul.f32 %v10591_v25, %v10553_v13 }
 0xad8   : > { %v10597_v41 = vpop.eup %7216  ;;  %v3810_v57 = vsub.f32 %v10411_v24, %v10576_v36  ;;  %v10606_v28 = vmax.f32 %v3607_v0, %v3608_v29  ;;  %v10608_v21 = vpack.c.b16 %v4576_v53, %v4573_v49  ;;  %v3985_v48 = vmul.f32 1.442695, %v3807_v37  ;;  %v13402_v37 = vld [vmem:[#allocation9_spill] sm:$0xff] }
 0xad9   : > { %7220 = vpow2.f32 %v3967_v7  ;;  %v4125_v45 = vadd.f32 %v10597_v41, %v4124_v35  ;;  %v2257_v32 = vpack.c.bf16 %v13400_v26, %v13399_v12  ;;  %v3689_v7 = vrot.slane %v3688_v51, 1 }
 0xada   : > { %7222 = vpow2.f32 %v3973_v23  ;;  %13398 = vst [vmem:[#allocation103_spill] sm:$0xff] %v10608_v21  ;;  %v3750_v20 = vsub.f32 %v10357_v59, %v10606_v28  ;;  %v3753_v38 = vsub.f32 %v10353_v11, %v10606_v28  ;;  %4618 = vmatpush.bf16.xpose.msrb.mxu2 %v10608_v21  ;;  %v10617_v35 = vpop.eup %7218  ;;  %v10619_v24 = vadd.f32 %v4118_v39, %v4117_v44 }
 0xadb   : > { %7224 = vpow2.f32 %v3979_v34  ;;  %v4273_v0 = vsub.f32 1.0, %v4272_v46  ;;  %v4126_v49 = vadd.f32 %v10617_v35, %v4125_v45  ;;  %v3991_v53 = vmul.f32 1.442695, %v3810_v57 }
 0xadc   : > { %v2260_v34 = vpack.c.bf16 %v13402_v37, %v13402_v37  ;;  %v3813_v11 = vsub.f32 %v10449_v62, %v10576_v36  ;;  %v3871_v29 = vmul.f32 1.442695, %v3750_v20  ;;  %v4531_v12 = vunpack.c.l.b16 %v2257_v32 }
 0xadd   : > { %7226 = vpow2.f32 %v3985_v48  ;;  %v3877_v39 = vmul.f32 1.442695, %v3753_v38  ;;  %v10632_v46 = vmax.f32 %v3688_v51, %v3689_v7  ;;  %v3756_v45 = vsub.f32 %v10379_v52, %v10606_v28  ;;  %v10645_v38 = vpop.f32.mrf.mxu1 }
 0xade   : > { %7228 = vrcp.f32 %v10619_v24  ;;  %v4274_v57 = vmul.f32 %v10591_v25, %v4273_v0  ;;  %v4127_v37 = vrot.slane %v4126_v49, 4  ;;  %v4532_v62 = vunpack.c.h.b16 %v2257_v32 }
 0xadf   : > { %v10621_v23 = vpop.eup %7220  ;;  %7230 = vpow2.f32 %v3991_v53  ;;  %v10640_v20 = vunpack.c.l.b16 %v2260_v34  ;;  %v3816_v48 = vsub.f32 %v10473_v47, %v10576_v36  ;;  %v10647_v7 = vpack.c.b16 %v4531_v12, %v4531_v12 }
 0xae0   : > { %13401 = vst [vmem:[#allocation43_spill] sm:$0xff] %v10621_v23  ;;  %v10626_v59 = vpop.eup %7222  ;;  %7232 = vpow2.f32 %v3871_v29  ;;  %v3997_v52 = vmul.f32 1.442695, %v3813_v11  ;;  %v3797_v0 = vsub.f32 %v10361_v22, %v10632_v46  ;;  %v3800_v32 = vsub.f32 %v10365_v14, %v10632_v46  ;;  %v13407_v22 = vld [vmem:[#allocation45_spill] sm:$0xff] }
 0xae1   : > { %13403 = vst [vmem:[#allocation118_spill] sm:$0xff] %v10626_v59  ;;  %v4167_v44 = vadd.f32 %v10626_v59, %v10621_v23  ;;  %v10638_v26 = vpop.eup %7224  ;;  %7234 = vpow2.f32 %v3877_v39  ;;  %v3883_v53 = vmul.f32 1.442695, %v3756_v45  ;;  %v4275_v34 = vadd.f32 %v10591_v25, %v4274_v57  ;;  %v13406_v39 = vld [vmem:[#allocation28_spill] sm:$0xff] }
 0xae2   : > { %13404 = vst [vmem:[#allocation119_spill] sm:$0xff] %v10638_v26  ;;  %vm4277_vm10 = vweird.f32 %v10591_v25  ;;  %v4282_v47 = vand.u32 2147483648, %v10553_v13  ;;  %v3759_v11 = vsub.f32 %v10401_v18, %v10606_v28  ;;  %v10660_v12 = vpack.c.b16 %v4532_v62, %v4532_v62 }
 0xae3   : > { %v4168_v51 = vadd.f32 %v10638_v26, %v4167_v44  ;;  %v10656_v29 = vpop.eup %7226  ;;  %v4128_v44 = vadd.f32 %v4127_v37, %v4126_v49  ;;  %v10664_v21 = vpack.c.bf16 %v13407_v22, %v13406_v39  ;;  %v3819_v45 = vsub.f32 %v10494_v31, %v10576_v36 }
 0xae4   : > { %13405 = vst [vmem:[#allocation13_spill] sm:$0xff] %v10656_v29  ;;  %v10666_v14 = vpop.eup %7228  ;;  %vm4276_vm11 = vweird.f32 %v10553_v13  ;;  %v4280_v49 = vand.u32 2147483647, %v10553_v13  ;;  %7236 = vpow2.f32 %v3997_v52  ;;  %v4003_v18 = vmul.f32 1.442695, %v3816_v48 }
 0xae5   : > { %v4169_v57 = vadd.f32 %v10656_v29, %v4168_v51  ;;  %v10673_v37 = vpop.eup %7230  ;;  %v3965_v62 = vmul.f32 1.442695, %v3797_v0  ;;  %v3971_v59 = vmul.f32 1.442695, %v3800_v32  ;;  %vm10677_vm13 = vmor %vm4276_vm11, %vm4277_vm10  ;;  %7238 = vpow2.f32 %v3883_v53 }
 0xae6   : > { %13408 = vst [vmem:[#allocation94_spill] sm:$0xff] %v10673_v37  ;;  %v10681_v22 = vpop.eup %7232  ;;  %v3803_v31 = vsub.f32 %v10383_v10, %v10632_v46  ;;  %v4279_v13 = vsel %vm10677_vm13, %v10591_v25, %v4275_v34  ;;  %v4283_v36 = vor.u32 1.1754944e-38, %v4282_v47  ;;  %v4129_v51 = vrot.slane %v4128_v44, 2  ;;  %v10698_v34 = vpop.f32.mrf.mxu2 }
 0xae7   : > { %13411 = vst [vmem:[#allocation96_spill] sm:$0xff] %v10681_v22  ;;  %v10688_v48 = vpop.eup %7234  ;;  %v3762_v52 = vsub.f32 %v10424_v63, %v10606_v28  ;;  %v3889_v0 = vmul.f32 1.442695, %v3759_v11  ;;  %7240 = vpow2.f32 %v3965_v62  ;;  %v4170_v32 = vadd.f32 %v10673_v37, %v4169_v57  ;;  %v10707_v57 = vpop.f32.mrf.mxu1 }
 0xae8   : > { %13412 = vst [vmem:[#allocation2_spill] sm:$0xff] %v10688_v48  ;;  %7242 = vpow2.f32 %v3971_v59  ;;  %v4574_v53 = vunpack.c.h.b16 %v10578_v42  ;;  %vm4281_vm14 = vcmp.eq.f32.partialorder %v4280_v49, 8.507059e+37  ;;  %v10696_v10 = vmul.f32 %v10666_v14, %v10619_v24 }
 0xae9   : > { %7244 = vpow2.f32 %v4003_v18  ;;  %v4009_v25 = vmul.f32 1.442695, %v3819_v45  ;;  %v10700_v47 = vsel %vm4281_vm14, %v4283_v36, %v4279_v13  ;;  %v4073_v63 = vadd.f32 %v10688_v48, %v10681_v22 }
 0xaea   : > { %v3806_v11 = vsub.f32 %v10405_v9, %v10632_v46  ;;  %v3977_v59 = vmul.f32 1.442695, %v3803_v31  ;;  %v4577_v42 = vunpack.c.h.b16 %v10580_v54  ;;  %v10709_v49 = vpop.eup %7236  ;;  %v4130_v62 = vadd.f32 %v4129_v51, %v4128_v44  ;;  %v13416_v9 = vld [vmem:[#allocation108_spill] sm:$0xff]  ;;  %v13417_v54 = vld [vmem:[#allocation102_spill] sm:$0xff] }
 0xaeb   : > { %13413 = vst [vmem:[#allocation4_spill] sm:$0xff] %v10709_v49  ;;  %v3765_v45 = vsub.f32 %v10476_v40, %v10606_v28  ;;  %7246 = vpow2.f32 %v3889_v0  ;;  %v3895_v18 = vmul.f32 1.442695, %v3762_v52  ;;  %v10713_v39 = vpop.eup %7238  ;;  %v4171_v13 = vadd.f32 %v10709_v49, %v4170_v32 }
 0xaec   : > { %13414 = vst [vmem:[#allocation33_spill] sm:$0xff] %v10713_v39  ;;  %v10716_v36 = vpack.c.b16 %v4577_v42, %v4574_v53  ;;  %v4382_v31 = vmul.f32 %v13416_v9, %v10536_v56  ;;  %v4385_v23 = vmul.f32 %v13417_v54, %v10536_v56  ;;  %7248 = vpow2.f32 %v4009_v25 }
 0xaed   : > { %v10722_v48 = vpop.eup %7240  ;;  %v3768_v40 = vsub.f32 %v10487_v2, %v10606_v28  ;;  %v3771_v44 = vsub.f32 %v10521_v55, %v10606_v28  ;;  %v3809_v51 = vsub.f32 %v10457_v8, %v10632_v46  ;;  %v4074_v0 = vadd.f32 %v10713_v39, %v4073_v63 }
 0xaee   : > { %13415 = vst [vmem:[#allocation17_spill] sm:$0xff] %v10716_v36  ;;  %v10730_v52 = vpop.eup %7242  ;;  %7250 = vpow2.f32 %v3977_v59  ;;  %v3983_v32 = vmul.f32 1.442695, %v3806_v11  ;;  %4631 = vmatpush.bf16.xpose.msra.mxu3 %v10716_v36  ;;  %v4413_v53 = vmul.f32 %v10275_v50, %v10700_v47  ;;  %v4131_v2 = vrot.slane %v4130_v62, 1 }
 0xaef   : > { %13418 = vst [vmem:[#allocation16_spill] sm:$0xff] %v10722_v48  ;;  %v10736_v25 = vpop.eup %7244  ;;  %7252 = vpow2.f32 %v3895_v18  ;;  %v3901_v42 = vmul.f32 1.442695, %v3765_v45  ;;  %v3812_v55 = vsub.f32 %v10479_v33, %v10632_v46  ;;  %v4416_v28 = vmul.f32 %v10304_v17, %v10700_v47 }
 0xaf0   : > { %13419 = vst [vmem:[#allocation29_spill] sm:$0xff] %v10730_v52  ;;  %v4172_v8 = vadd.f32 %v10736_v25, %v4171_v13  ;;  %v4494_v63 = vpack.c.bf16 %v4413_v53, %v4413_v53  ;;  %v4381_v11 = vmul.f32 %v10147_v30, %v10541_v5  ;;  %v3907_v50 = vmul.f32 1.442695, %v3768_v40  ;;  %v10758_v40 = vpop.f32.mrf.mxu2 }
 0xaf1   : > { %v10745_v59 = vpop.eup %7246  ;;  %v3989_v9 = vmul.f32 1.442695, %v3809_v51  ;;  %v4154_v18 = vadd.f32 %v10730_v52, %v10722_v48  ;;  %v4384_v45 = vmul.f32 %v10152_v1, %v10541_v5  ;;  %7254 = vpow2.f32 %v3983_v32 }
 0xaf2   : > { %13420 = vst [vmem:[#allocation36_spill] sm:$0xff] %v10745_v59  ;;  %v4075_v33 = vadd.f32 %v10745_v59, %v4074_v0  ;;  %v4496_v13 = vpack.c.bf16 %v4416_v28, %v4416_v28  ;;  %v4699_v54 = vunpack.c.l.b16 %v4494_v63  ;;  %v10752_v17 = vpop.eup %7248  ;;  %v10754_v53 = vadd.f32 %v4131_v2, %v4130_v62  ;;  %v10763_v28 = vpop.f32.mrf.mxu1 }
 0xaf3   : > { %13421 = vst [vmem:[#allocation3_spill] sm:$0xff] %v10752_v17  ;;  %7256 = vpow2.f32 %v3901_v42  ;;  %v3815_v30 = vsub.f32 %v10490_v16, %v10632_v46  ;;  %v4473_v51 = vpack.c.bf16 %v4382_v31, %v4381_v11  ;;  %v4173_v1 = vadd.f32 %v10752_v17, %v4172_v8  ;;  %v13436_v8 = vld [vmem:[#allocation110_spill] sm:$0xff] }
 0xaf4   : > { %v10760_v36 = vpop.eup %7250  ;;  %v3995_v52 = vmul.f32 1.442695, %v3812_v55  ;;  %v4702_v0 = vunpack.c.l.b16 %v4496_v13  ;;  %v4475_v32 = vpack.c.bf16 %v4385_v23, %v4384_v45  ;;  %7258 = vpow2.f32 %v3989_v9  ;;  %v13425_v23 = vld [vmem:[#allocation39_spill] sm:$0xff]  ;;  %v13433_v55 = vld [vmem:[#allocation86_spill] sm:$0xff] }
 0xaf5   : > { %13422 = vst [vmem:[#allocation95_spill] sm:$0xff] %v10760_v36  ;;  %v10765_v63 = vpop.eup %7252  ;;  %v4155_v62 = vadd.f32 %v10760_v36, %v4154_v18  ;;  %v4567_v2 = vunpack.c.l.b16 %v4473_v51  ;;  %v4568_v42 = vunpack.c.h.b16 %v4473_v51  ;;  %7260 = vpow2.f32 %v3907_v50 }
 0xaf6   : > { %13423 = vst [vmem:[#allocation10_spill] sm:$0xff] %v10765_v63  ;;  %v4076_v16 = vadd.f32 %v10765_v63, %v4075_v33  ;;  %v10769_v48 = vpack.c.b16 %v4702_v0, %v4699_v54  ;;  %v4570_v31 = vunpack.c.l.b16 %v4475_v32  ;;  %v4571_v11 = vunpack.c.h.b16 %v4475_v32  ;;  %v13429_v54 = vld [vmem:[#allocation34_spill] sm:$0xff] }
 0xaf7   : > { %v4376_v45 = vmul.f32 %v13425_v23, %v10536_v56  ;;  %v10775_v13 = vpop.eup %7254  ;;  %v3913_v9 = vmul.f32 1.442695, %v3771_v44  ;;  %v4379_v51 = vmul.f32 %v13429_v54, %v10536_v56  ;;  %7262 = vrcp.f32 %v10754_v53 }
 0xaf8   : > { %13424 = vst [vmem:[#allocation14_spill] sm:$0xff] %v10769_v48  ;;  %v10779_v18 = vsel %vm3562_vm12, %v10769_v48, 0  ;;  %v10781_v33 = vpack.c.b16 %v4570_v31, %v4567_v2  ;;  %v3818_v50 = vsub.f32 %v10524_v61, %v10632_v46  ;;  %v4156_v32 = vadd.f32 %v10775_v13, %v4155_v62  ;;  %v13434_v46 = vld [vmem:[#allocation115_spill] sm:$0xff]  ;;  %v13438_v48 = vld [vmem:[#allocation114_spill] sm:$0xff] }
 0xaf9   : > { %13426 = vst [vmem:[#allocation7_spill] sm:$0xff] %v10775_v13  ;;  %v10785_v0 = vpop.eup %7256  ;;  %4768 = vmatpush.bf16.xpose.msrb.mxu0 %v10779_v18  ;;  %v10792_v44 = vpack.c.b16 %v4571_v11, %v4568_v42  ;;  %v4174_v23 = vrot.slane %v4173_v1, 4  ;;  %7264 = vpow2.f32 %v3995_v52  ;;  %v4001_v31 = vmul.f32 1.442695, %v3815_v30  ;;  %v13435_v42 = vld [vmem:[#allocation76_spill] sm:$0xff]  ;;  %v13437_v52 = vld [vmem:[#allocation101_spill] sm:$0xff] }
 0xafa   : > { %13427 = vst [vmem:[#allocation30_spill] sm:$0xff] %v10779_v18  ;;  %v4077_v2 = vadd.f32 %v10785_v0, %v4076_v16  ;;  %4619 = vmatpush.bf16.xpose.msrb.mxu2 %v10781_v33  ;;  %v10796_v54 = vpop.eup %7258  ;;  %v4407_v61 = vmul.f32 %v13433_v55, %v10700_v47  ;;  %v4410_v62 = vmul.f32 %v13434_v46, %v10700_v47  ;;  %7266 = vpow2.f32 %v3913_v9  ;;  %v13439_v18 = vld [vmem:[#allocation112_spill] sm:$0xff] }
 0xafb   : > { %13428 = vst [vmem:[#allocation47_spill] sm:$0xff] %v10781_v33  ;;  %4632 = vmatpush.bf16.xpose.msra.mxu3 %v10792_v44  ;;  %v4375_v11 = vmul.f32 %v13435_v42, %v10541_v5  ;;  %v4378_v16 = vmul.f32 %v13436_v8, %v10541_v5  ;;  %v10809_v30 = vadd.f32 %v10512_v15, %v13437_v52  ;;  %v10819_v46 = vpop.eup %7260  ;;  %7268 = vpow2.f32 %v4001_v31 }
 0xafc   : > { %13430 = vst [vmem:[#allocation106_spill] sm:$0xff] %v10785_v0  ;;  %v10813_v33 = vadd.f32 %v10566_v27, %v13438_v48  ;;  %v10817_v55 = vadd.f32 %v10601_v4, %v13439_v18  ;;  %v4157_v42 = vadd.f32 %v10796_v54, %v4156_v32  ;;  %v4490_v8 = vpack.c.bf16 %v4407_v61, %v4407_v61  ;;  %v3531_v48 = vpop.f32.mrf.mxu1 }
 0xafd   : > { %13431 = vst [vmem:[#allocation71_spill] sm:$0xff] %v10792_v44  ;;  %v10822_v44 = vpop.f32.mrf.mxu2  ;;  %v4492_v22 = vpack.c.bf16 %v4410_v62, %v4410_v62  ;;  %v4469_v13 = vpack.c.bf16 %v4376_v45, %v4375_v11  ;;  %v4175_v15 = vadd.f32 %v4174_v23, %v4173_v1  ;;  %v4078_v52 = vadd.f32 %v10819_v46, %v4077_v2  ;;  %v10825_v9 = vpop.eup %7262  ;;  %v13441_v1 = vld [vmem:[#allocation81_spill] sm:$0xff]  ;;  %v13444_v11 = vld [vmem:[#allocation18_spill] sm:$0xff] }
 0xafe   : > { %13432 = vst [vmem:[#allocation52_spill] sm:$0xff] %v10796_v54  ;;  %v4007_v27 = vmul.f32 1.442695, %v3818_v50  ;;  %v4693_v36 = vunpack.c.l.b16 %v4490_v8  ;;  %v4471_v18 = vpack.c.bf16 %v4379_v51, %v4378_v16  ;;  %v3704_v32 = vsel %vm3562_vm12, %v10809_v30, -inf  ;;  %v13442_v50 = vld [vmem:[#allocation23_spill] sm:$0xff] }
 0xaff   : > { %v4696_v4 = vunpack.c.l.b16 %v4492_v22  ;;  %v4561_v59 = vunpack.c.l.b16 %v4469_v13  ;;  %v10827_v39 = vpop.eup %7264  ;;  %v3705_v45 = vsel %vm3562_vm12, %v10813_v33, -inf  ;;  %v10835_v23 = vadd.f32 %v10645_v38, %v13441_v1 }
 0xb00   : > { %13440 = vst [vmem:[#allocation35_spill] sm:$0xff] %v10827_v39  ;;  %v4370_v2 = vmul.f32 %v13442_v50, %v10536_v56  ;;  %v4158_v31 = vadd.f32 %v10827_v39, %v4157_v42  ;;  %v3707_v22 = vsel %vm3562_vm12, %v10817_v55, -inf  ;;  %v4564_v61 = vunpack.c.l.b16 %v4471_v18  ;;  %v10844_v62 = vpop.eup %7266 }
 0xb01   : > { %v10842_v51 = vpack.c.b16 %v4696_v4, %v4693_v36  ;;  %7270 = vpow2.f32 %v4007_v27  ;;  %v10848_v16 = vadd.f32 %v10707_v57, %v13444_v11  ;;  %v4562_v38 = vunpack.c.h.b16 %v4469_v13  ;;  %v10857_v36 = vpop.eup %7268  ;;  %v13448_v13 = vld [vmem:[#allocation21_spill] sm:$0xff] }
 0xb02   : > { %v4565_v8 = vunpack.c.h.b16 %v4471_v18  ;;  %v4176_v1 = vrot.slane %v4175_v15, 2  ;;  %v4079_v50 = vadd.f32 %v10844_v62, %v4078_v52  ;;  %v10855_v39 = vpack.c.b16 %v4564_v61, %v4561_v59  ;;  %v13449_v11 = vld [vmem:[#allocation37_spill] sm:$0xff]  ;;  %v13451_v61 = vld [vmem:[#allocation40_spill] sm:$0xff] }
 0xb03   : > { %13443 = vst [vmem:[#allocation70_spill] sm:$0xff] %v10842_v51  ;;  %v10853_v42 = vsel %vm3562_vm12, %v10842_v51, 0  ;;  %v3706_v4 = vmax.f32 %v3704_v32, %v3705_v45  ;;  %v3709_v27 = vsel %vm3562_vm12, %v10835_v23, -inf  ;;  %v4373_v18 = vmul.f32 %v13448_v13, %v10536_v56  ;;  %v13450_v32 = vld [vmem:[#allocation126_spill] sm:$0xff] }
 0xb04   : > { %13445 = vst [vmem:[#allocation53_spill] sm:$0xff] %v10853_v42  ;;  %4769 = vmatpush.bf16.xpose.msrb.mxu0 %v10853_v42  ;;  %v10862_v57 = vpack.c.b16 %v4565_v8, %v4562_v38  ;;  %vm4291_vm15 = vweird.f32 %v10666_v14  ;;  %v4159_v52 = vadd.f32 %v10857_v36, %v4158_v31  ;;  %v10870_v59 = vadd.f32 %v10763_v28, %v13449_v11  ;;  %v13452_v31 = vld [vmem:[#allocation93_spill] sm:$0xff]  ;;  %v13453_v28 = vld [vmem:[#allocation75_spill] sm:$0xff]  ;;  %v13454_v42 = vld [vmem:[#allocation38_spill] sm:$0xff]  ;;  %v3533_v0 = vpop.f32.mrf.mxu1 }
 0xb05   : > { %13446 = vst [vmem:[#allocation27_spill] sm:$0xff] %v10855_v39  ;;  %4620 = vmatpush.bf16.xpose.msrb.mxu2 %v10855_v39  ;;  %v4401_v45 = vmul.f32 %v13450_v32, %v10700_v47  ;;  %v4404_v38 = vmul.f32 %v13451_v61, %v10700_v47  ;;  %v4300_v8 = vmul.f32 %v10825_v9, %v10754_v53  ;;  %vm4290_vm9 = vweird.f32 %v10619_v24  ;;  %v10887_v61 = vpop.f32.mrf.mxu2 }
 0xb06   : > { %13447 = vst [vmem:[#allocation44_spill] sm:$0xff] %v10862_v57  ;;  %v3708_v56 = vmax.f32 %v3706_v4, %v3707_v22  ;;  %4633 = vmatpush.bf16.xpose.msra.mxu3 %v10862_v57  ;;  %v4369_v13 = vmul.f32 %v13452_v31, %v10541_v5  ;;  %v4372_v11 = vmul.f32 %v13453_v28, %v10541_v5  ;;  %v4080_v39 = vrot.slane %v4079_v50, 4  ;;  %vm10931_vm11 = vmor %vm4290_vm9, %vm4291_vm15 }
 0xb07   : > { %v4177_v51 = vadd.f32 %v4176_v1, %v4175_v15  ;;  %v3711_v32 = vsel %vm3562_vm12, %v10848_v16, -inf  ;;  %v10890_v54 = vadd.f32 %v3531_v48, %v13454_v42  ;;  %v10892_v22 = vpop.eup %7270  ;;  %v13455_v4 = vsub.f32 1.0, %v10696_v10 }
 0xb08   : > { %v3710_v57 = vmax.f32 %v3708_v56, %v3709_v27  ;;  %v4486_v5 = vpack.c.bf16 %v4401_v45, %v4401_v45  ;;  %v4488_v28 = vpack.c.bf16 %v4404_v38, %v4404_v38  ;;  %v4160_v15 = vadd.f32 %v10892_v22, %v4159_v52  ;;  %v13456_v27 = vld [vmem:[#allocation48_spill] sm:$0xff] }
 0xb09   : > { %v4288_v31 = vmul.f32 %v10666_v14, %v13455_v4  ;;  %v3713_v1 = vsel %vm3562_vm12, %v10870_v59, -inf  ;;  %v4465_v63 = vpack.c.bf16 %v4370_v2, %v4369_v13  ;;  %v4467_v29 = vpack.c.bf16 %v4373_v18, %v4372_v11 }
 0xb0a   : > { %v4301_v26 = vsub.f32 1.0, %v4300_v8  ;;  %v3712_v48 = vmax.f32 %v3710_v57, %v3711_v32  ;;  %v4687_v42 = vunpack.c.l.b16 %v4486_v5  ;;  %v4690_v49 = vunpack.c.l.b16 %v4488_v28 }
 0xb0b   : > { %v4178_v37 = vrot.slane %v4177_v51, 1  ;;  %v4081_v17 = vadd.f32 %v4080_v39, %v4079_v50  ;;  %v3715_v10 = vsel %vm3562_vm12, %v10890_v54, -inf  ;;  %v10903_v45 = vadd.f32 %v3533_v0, %v13456_v27 }
 0xb0c   : > { %v3714_v38 = vmax.f32 %v3712_v48, %v3713_v1  ;;  %v10905_v56 = vpack.c.b16 %v4690_v49, %v4687_v42  ;;  %v4555_v52 = vunpack.c.l.b16 %v4465_v63  ;;  %v4558_v4 = vunpack.c.l.b16 %v4467_v29  ;;  %v13466_v1 = vld [vmem:[#allocation125_spill] sm:$0xff]  ;;  %v13467_v42 = vld [vmem:[#allocation120_spill] sm:$0xff] }
 0xb0d   : > { %v4289_v2 = vadd.f32 %v10666_v14, %v4288_v31  ;;  %v4161_v18 = vrot.slane %v4160_v15, 4  ;;  %v4556_v8 = vunpack.c.h.b16 %v4465_v63  ;;  %v4559_v57 = vunpack.c.h.b16 %v4467_v29 }
 0xb0e   : > { %13457 = vst [vmem:[#allocation69_spill] sm:$0xff] %v10905_v56  ;;  %v4296_v13 = vand.u32 2147483648, %v10619_v24  ;;  %v3716_v11 = vmax.f32 %v3714_v38, %v3715_v10  ;;  %v10911_v39 = vsel %vm3562_vm12, %v10905_v56, 0  ;;  %v10913_v50 = vpack.c.b16 %v4558_v4, %v4555_v52 }
 0xb0f   : > { %13458 = vst [vmem:[#allocation89_spill] sm:$0xff] %v10911_v39  ;;  %v13460_v0 = vand.u32 2147483647, %v10619_v24  ;;  %v4302_v32 = vmul.f32 %v10825_v9, %v4301_v26  ;;  %v4082_v31 = vrot.slane %v4081_v17, 2  ;;  %4770 = vmatpush.bf16.xpose.msrb.mxu0 %v10911_v39  ;;  %v10923_v29 = vpack.c.b16 %v4559_v57, %v4556_v8  ;;  %v13496_v39 = vld [vmem:[#allocation22_spill] sm:$0xff] }
 0xb10   : > { %13459 = vst [vmem:[#allocation63_spill] sm:$0xff] %v10913_v50  ;;  %v3717_v63 = vsel %vm3562_vm12, %v10903_v45, -inf  ;;  %v10935_v28 = vadd.f32 %v4178_v37, %v4177_v51  ;;  %4621 = vmatpush.bf16.xpose.msrb.mxu2 %v10913_v50  ;;  %v4395_v48 = vmul.f32 %v13466_v1, %v10700_v47  ;;  %v4398_v10 = vmul.f32 %v13467_v42, %v10700_v47  ;;  %v10948_v37 = vpop.f32.mrf.mxu2 }
 0xb11   : > { %vm10917_vm10 = vcmp.eq.f32.partialorder %v13460_v0, 8.507059e+37  ;;  %13463 = vst [vmem:[#allocation88_spill] sm:$0xff] %v10923_v29  ;;  %v3718_v26 = vmax.f32 %v3716_v11, %v3717_v63  ;;  %v4293_v27 = vsel %vm10931_vm11, %v10666_v14, %v4289_v2  ;;  %vm4304_vm13 = vweird.f32 %v10754_v53  ;;  %4634 = vmatpush.bf16.xpose.msra.mxu3 %v10923_v29  ;;  %v13468_v14 = vld [vmem:[#allocation50_spill] sm:$0xff]  ;;  %v13469_v2 = vld [vmem:[#allocation87_spill] sm:$0xff] }
 0xb12   : > { %v4308_v24 = vand.u32 2147483647, %v10754_v53  ;;  %v4162_v38 = vadd.f32 %v4161_v18, %v4160_v15  ;;  %vm4305_vm14 = vweird.f32 %v10825_v9  ;;  %v4310_v51 = vand.u32 2147483648, %v10754_v53  ;;  %v13470_v15 = vld [vmem:[#allocation20_spill] sm:$0xff] }
 0xb13   : > { %v3719_v52 = vrot.slane %v3718_v26, 4  ;;  %v4482_v4 = vpack.c.bf16 %v4395_v48, %v4395_v48  ;;  %v4303_v47 = vadd.f32 %v10825_v9, %v4302_v32  ;;  %v4083_v8 = vadd.f32 %v4082_v31, %v4081_v17  ;;  %v13471_v48 = vld [vmem:[#allocation124_spill] sm:$0xff]  ;;  %vm10974_vm15 = vmor %vm4304_vm13, %vm4305_vm14 }
 0xb14   : > { %v4484_v57 = vpack.c.bf16 %v4398_v10, %v4398_v10  ;;  %v10955_v11 = vmul.f32 %v13469_v2, %v13468_v14  ;;  %7272 = vrcp.f32 %v10935_v28  ;;  %v10960_v18 = vadd.f32 %v10758_v40, %v13470_v15  ;;  %v13472_v17 = vld [vmem:[#allocation92_spill] sm:$0xff]  ;;  %v13475_v10 = vld [vmem:[#allocation123_spill] sm:$0xff] }
 0xb15   : > { %v3720_v0 = vmax.f32 %v3718_v26, %v3719_v52  ;;  %v4681_v63 = vunpack.c.l.b16 %v4482_v4  ;;  %v4163_v5 = vrot.slane %v4162_v38, 2  ;;  %v10964_v42 = vmul.f32 %v13471_v48, %v13468_v14  ;;  %v13476_v4 = vld [vmem:[#allocation117_spill] sm:$0xff]  ;;  %v13477_v15 = vld [vmem:[#allocation80_spill] sm:$0xff] }
 0xb16   : > { %v4684_v1 = vunpack.c.l.b16 %v4484_v57  ;;  %v10968_v32 = vmul.f32 %v13472_v17, %v13468_v14  ;;  %v4297_v31 = vor.u32 1.1754944e-38, %v4296_v13  ;;  %v10980_v52 = vmul.f32 %v13475_v10, %v13468_v14 }
 0xb17   : > { %v3721_v26 = vrot.slane %v3720_v0, 2  ;;  %v10984_v57 = vmul.f32 %v13476_v4, %v13468_v14  ;;  %v4307_v13 = vsel %vm10974_vm15, %v10825_v9, %v4303_v47  ;;  %v4084_v2 = vrot.slane %v4083_v8, 1  ;;  %4622 = vmatmul.bf16.vlgmr.msrb.gmra.mxu2 %v10647_v7  ;;  %v13479_v47 = vld [vmem:[#allocation19_spill] sm:$0xff] }
 0xb18   : > { %v10991_v53 = vadd.f32 %v10698_v34, %v13477_v15  ;;  %v10993_v48 = vpack.c.b16 %v4684_v1, %v4681_v63  ;;  %v10998_v17 = vsel %vm10917_vm10, %v4297_v31, %v4293_v27  ;;  %vm4309_vm9 = vcmp.eq.f32.partialorder %v4308_v24, 8.507059e+37  ;;  %4635 = vmatmul.bf16.vlgmr.msra.gmra.mxu3 %v10660_v12 }
 0xb19   : > { %v4311_v10 = vor.u32 1.1754944e-38, %v4310_v51  ;;  %v3722_v4 = vmax.f32 %v3720_v0, %v3721_v26  ;;  %v4164_v40 = vadd.f32 %v4163_v5, %v4162_v38  ;;  %v3658_v9 = vsel %vm3562_vm12, %v10960_v18, -inf  ;;  %v13481_v51 = vld [vmem:[#allocation31_spill] sm:$0xff]  ;;  %v3396_v0 = vpop.f32.mrf.mxu2  ;;  %v13482_v5 = vld [vmem:[#allocation68_spill] sm:$0xff] }
 0xb1a   : > { %13478 = vst [vmem:[#allocation107_spill] sm:$0xff] %v10993_v48  ;;  %v11005_v34 = vadd.f32 %v10822_v44, %v13479_v47  ;;  %v11009_v7 = vsel %vm3562_vm12, %v10993_v48, 0  ;;  %v11011_v49 = vpop.eup %7272  ;;  %v11016_v12 = vadd.f32 %v4084_v2, %v4083_v8  ;;  %v3657_v38 = vsel %vm3562_vm12, %v10991_v53, -inf }
 0xb1b   : > { %13480 = vst [vmem:[#allocation77_spill] sm:$0xff] %v11009_v7  ;;  %v11013_v27 = vsel %vm4309_vm9, %v4311_v10, %v4307_v13  ;;  %v3723_v24 = vrot.slane %v3722_v4, 1  ;;  %4771 = vmatpush.bf16.xpose.msrb.mxu0 %v11009_v7  ;;  %v11022_v44 = vadd.f32 %v10887_v61, %v13481_v51  ;;  %v4660_v63 = vpack.c.b16 %v10640_v20, %v10640_v20 }
 0xb1c   : > { %v4438_v1 = vmul.f32 %v13482_v5, %v10998_v17  ;;  %v3659_v31 = vmax.f32 %v3657_v38, %v3658_v9  ;;  %v4439_v8 = vmul.f32 %v10617_v35, %v11013_v27  ;;  %v11033_v2 = vmul.f32 %v11011_v49, %v10935_v28 }
 0xb1d   : > { %v3724_v26 = vmax.f32 %v3722_v4, %v3723_v24  ;;  %v4165_v61 = vrot.slane %v4164_v40, 1  ;;  %v3660_v15 = vsel %vm3562_vm12, %v11005_v34, -inf  ;;  %7274 = vrcp.f32 %v11016_v12  ;;  %v13483_v24 = vld [vmem:[#allocation85_spill] sm:$0xff] }
 0xb1e   : > { %v11044_v35 = vsel %vm3562_vm12, %v11022_v44, -inf  ;;  %v4435_v38 = vmul.f32 %v13483_v24, %v10998_v17  ;;  %vm4346_vm10 = vweird.f32 %v10935_v28  ;;  %vm4347_vm11 = vweird.f32 %v11011_v49 }
 0xb1f   : > { %v3799_v20 = vsub.f32 %v10809_v30, %v3724_v26  ;;  %v3802_v10 = vsub.f32 %v10813_v33, %v3724_v26  ;;  %v3805_v9 = vsub.f32 %v10817_v55, %v3724_v26  ;;  %v3808_v4 = vsub.f32 %v10835_v23, %v3724_v26  ;;  %v13484_v23 = vld [vmem:[#allocation54_spill] sm:$0xff]  ;;  %vm11189_vm14 = vmor %vm4346_vm10, %vm4347_vm11 }
 0xb20   : > { %v3811_v47 = vsub.f32 %v10848_v16, %v3724_v26  ;;  %v4436_v33 = vmul.f32 %v10597_v41, %v11013_v27  ;;  %v11051_v55 = vadd.f32 %v4165_v61, %v4164_v40  ;;  %v11055_v13 = vadd.f32 %v10948_v37, %v13484_v23 }
 0xb21   : > { %v3969_v51 = vmul.f32 1.442695, %v3799_v20  ;;  %v3975_v5 = vmul.f32 1.442695, %v3802_v10  ;;  %v3981_v30 = vmul.f32 1.442695, %v3805_v9  ;;  %v3814_v48 = vsub.f32 %v10870_v59, %v3724_v26 }
 0xb22   : > { %v3987_v56 = vmul.f32 1.442695, %v3808_v4  ;;  %6927 = vmatmul.msk.bf16.vlgmr.msrb.gmra.mxu0 %vm3562_vm12, %v4660_v63  ;;  %v3817_v16 = vsub.f32 %v10890_v54, %v3724_v26  ;;  %v11060_v20 = vpack.c.bf16 %v4436_v33, %v4435_v38  ;;  %v13485_v10 = vld [vmem:[#allocation26_spill] sm:$0xff]  ;;  %v3993_v41 = vmul.f32 1.442695, %v3811_v47  ;;  %v13486_v63 = vld [vmem:[#allocation24_spill] sm:$0xff] }
 0xb23   : > { %7276 = vpow2.f32 %v3969_v51  ;;  %v4429_v9 = vmul.f32 %v13485_v10, %v10998_v17  ;;  %v11064_v40 = vpack.c.bf16 %v4439_v8, %v4438_v1  ;;  %v4430_v37 = vmul.f32 %v10570_v58, %v11013_v27  ;;  %v11073_v4 = vpop.eup %7274  ;;  %v3399_v1 = vpop.f32.mrf.mxu2 }
 0xb24   : > { %7278 = vpow2.f32 %v3975_v5  ;;  %v4821_v59 = vunpack.c.l.b16 %v11060_v20  ;;  %v4432_v61 = vmul.f32 %v13486_v63, %v10998_v17  ;;  %v4433_v54 = vmul.f32 %v10582_v6, %v11013_v27 }
 0xb25   : > { %7280 = vpow2.f32 %v3981_v30  ;;  %v3820_v24 = vsub.f32 %v10903_v45, %v3724_v26  ;;  %v3999_v47 = vmul.f32 1.442695, %v3814_v48  ;;  %v4824_v8 = vunpack.c.l.b16 %v11064_v40  ;;  %v13489_v48 = vld [vmem:[#allocation55_spill] sm:$0xff] }
 0xb26   : > { %7282 = vpow2.f32 %v3987_v56  ;;  %v3661_v51 = vmax.f32 %v3659_v31, %v3660_v15  ;;  %v4005_v5 = vmul.f32 1.442695, %v3817_v16  ;;  %v11081_v33 = vpack.c.bf16 %v4430_v37, %v4429_v9  ;;  %v13491_v9 = vld [vmem:[#allocation72_spill] sm:$0xff] }
 0xb27   : > { %7284 = vpow2.f32 %v3993_v41  ;;  %v11079_v30 = vpack.c.b16 %v4824_v8, %v4821_v59  ;;  %v11083_v6 = vpack.c.bf16 %v4433_v54, %v4432_v61  ;;  %v4343_v45 = vsub.f32 1.0, %v11033_v2  ;;  %v13493_v8 = vld [vmem:[#allocation66_spill] sm:$0xff] }
 0xb28   : > { %7286 = vrcp.f32 %v11051_v55  ;;  %v3663_v56 = vmax.f32 %v3661_v51, %v11044_v35  ;;  %v11091_v26 = vadd.f32 %v3396_v0, %v13489_v48  ;;  %v3664_v15 = vsel %vm3562_vm12, %v11055_v13, -inf }
 0xb29   : > { %13487 = vst [vmem:[#allocation122_spill] sm:$0xff] %v11079_v30  ;;  %v11085_v23 = vpop.eup %7276  ;;  %7288 = vpow2.f32 %v3999_v47  ;;  %v4011_v16 = vmul.f32 1.442695, %v3820_v24  ;;  %4866 = vmatpush.bf16.xpose.msrb.mxu1 %v11079_v30  ;;  %v11105_v0 = vadd.f32 %v3399_v1, %v13491_v9  ;;  %v4424_v41 = vmul.f32 %v10551_v60, %v11013_v27  ;;  %v13492_v1 = vld [vmem:[#allocation46_spill] sm:$0xff] }
 0xb2a   : > { %13488 = vst [vmem:[#allocation83_spill] sm:$0xff] %v11085_v23  ;;  %v11093_v31 = vpop.eup %7278  ;;  %v4180_v10 = vsel %vm3562_vm12, %v11085_v23, 0.0  ;;  %v4427_v37 = vmul.f32 %v10561_v19, %v11013_v27  ;;  %7290 = vpow2.f32 %v4005_v5  ;;  %v4815_v61 = vunpack.c.l.b16 %v11081_v33 }
 0xb2b   : > { %13490 = vst [vmem:[#allocation121_spill] sm:$0xff] %v11093_v31  ;;  %v11100_v2 = vpop.eup %7280  ;;  %v4181_v35 = vsel %vm3562_vm12, %v11093_v31, 0.0  ;;  %v4818_v54 = vunpack.c.l.b16 %v11083_v6  ;;  %v3666_v47 = vsel %vm3562_vm12, %v11091_v26, -inf  ;;  %v4423_v60 = vmul.f32 %v13492_v1, %v10998_v17  ;;  %v13497_v31 = vld [vmem:[#allocation78_spill] sm:$0xff] }
 0xb2c   : > { %v11111_v59 = vpop.eup %7282  ;;  %v4182_v63 = vadd.f32 %v4181_v35, %v4180_v10  ;;  %v4183_v24 = vsel %vm3562_vm12, %v11100_v2, 0.0  ;;  %v4426_v19 = vmul.f32 %v13493_v8, %v10998_v17  ;;  %v4258_v5 = vmul.f32 %v11073_v4, %v11016_v12 }
 0xb2d   : > { %v11123_v51 = vpop.eup %7284  ;;  %v3665_v48 = vmax.f32 %v3663_v56, %v3664_v15  ;;  %7292 = vpow2.f32 %v4011_v16  ;;  %v4185_v9 = vsel %vm3562_vm12, %v11111_v59, 0.0  ;;  %v3668_v1 = vsel %vm3562_vm12, %v11105_v0, -inf  ;;  %v3401_v16 = vpop.f32.mrf.mxu2 }
 0xb2e   : > { %v4184_v10 = vadd.f32 %v4183_v24, %v4182_v63  ;;  %v11127_v35 = vpop.eup %7286  ;;  %v11134_v58 = vpack.c.bf16 %v4424_v41, %v4423_v60  ;;  %v11136_v8 = vpack.c.bf16 %v4427_v37, %v4426_v19  ;;  %v11141_v63 = vpack.c.b16 %v4818_v54, %v4815_v61  ;;  %v13495_v41 = vld [vmem:[#allocation65_spill] sm:$0xff] }
 0xb2f   : > { %v11138_v38 = vpop.eup %7288  ;;  %v3667_v15 = vmax.f32 %v3665_v48, %v3666_v47  ;;  %v4344_v24 = vmul.f32 %v11011_v49, %v4343_v45  ;;  %v4268_v50 = vand.u32 2147483648, %v11016_v12  ;;  %v4187_v7 = vsel %vm3562_vm12, %v11123_v51, 0.0 }
 0xb30   : > { %v4186_v56 = vadd.f32 %v4185_v9, %v4184_v10  ;;  %13494 = vst [vmem:[#allocation12_spill] sm:$0xff] %v11141_v63  ;;  %v11148_v60 = vadd.f32 %v3401_v16, %v13495_v41  ;;  %v11150_v37 = vpop.eup %7290  ;;  %v4259_v19 = vsub.f32 1.0, %v4258_v5  ;;  %v4328_v10 = vmul.f32 %v11127_v35, %v11051_v55 }
 0xb31   : > { %v3669_v48 = vmax.f32 %v3667_v15, %v3668_v1  ;;  %4867 = vmatpush.bf16.xpose.msrb.mxu1 %v11141_v63  ;;  %v4189_v45 = vsel %vm3562_vm12, %v11138_v38, 0.0  ;;  %v4809_v54 = vunpack.c.l.b16 %v11134_v58  ;;  %v4812_v9 = vunpack.c.l.b16 %v11136_v8 }
 0xb32   : > { %v4188_v47 = vadd.f32 %v4187_v7, %v4186_v56  ;;  %v3670_v61 = vsel %vm3562_vm12, %v11148_v60, -inf  ;;  %v4418_v7 = vmul.f32 %v10526_v43, %v11013_v27  ;;  %v4421_v1 = vmul.f32 %v10543_v3, %v11013_v27 }
 0xb33   : > { %v11161_v16 = vpop.eup %7292  ;;  %v3671_v41 = vmax.f32 %v3669_v48, %v3670_v61  ;;  %v4345_v56 = vadd.f32 %v11011_v49, %v4344_v24  ;;  %v4191_v15 = vsel %vm3562_vm12, %v11150_v37, 0.0  ;;  %v4417_v63 = vmul.f32 %v13496_v39, %v10998_v17 }
 0xb34   : > { %v4190_v5 = vadd.f32 %v4189_v45, %v4188_v47  ;;  %v4420_v23 = vmul.f32 %v13497_v31, %v10998_v17  ;;  %v13498_v47 = vand.u32 2147483648, %v10935_v28  ;;  %v4260_v45 = vmul.f32 %v11073_v4, %v4259_v19 }
 0xb35   : > { %v3672_v61 = vrot.slane %v3671_v41, 4  ;;  %v13499_v3 = vand.u32 2147483647, %v10935_v28  ;;  %v4329_v24 = vsub.f32 1.0, %v4328_v10  ;;  %v4193_v39 = vsel %vm3562_vm12, %v11161_v16, 0.0 }
 0xb36   : > { %v4353_v48 = vor.u32 1.1754944e-38, %v13498_v47  ;;  %v4192_v43 = vadd.f32 %v4191_v15, %v4190_v5  ;;  %v4497_v30 = vpack.c.bf16 %v4418_v7, %v4417_v63  ;;  %v4499_v29 = vpack.c.bf16 %v4421_v1, %v4420_v23 }
 0xb37   : > { %vm11179_vm13 = vcmp.eq.f32.partialorder %v13499_v3, 8.507059e+37  ;;  %v4266_v31 = vand.u32 2147483647, %v11016_v12  ;;  %v3673_v5 = vmax.f32 %v3671_v41, %v3672_v61  ;;  %v11194_v15 = vpack.c.b16 %v4812_v9, %v4809_v54 }
 0xb38   : > { %v4194_v19 = vadd.f32 %v4193_v39, %v4192_v43  ;;  %v4349_v10 = vsel %vm11189_vm14, %v11011_v49, %v4345_v56  ;;  %vm4262_vm15 = vweird.f32 %v11016_v12  ;;  %vm4263_vm9 = vweird.f32 %v11073_v4  ;;  %v13517_v12 = vld [vmem:[#allocation13_spill] sm:$0xff] }
 0xb39   : > { %13504 = vst [vmem:[#allocation64_spill] sm:$0xff] %v11194_v15  ;;  %v4269_v23 = vor.u32 1.1754944e-38, %v4268_v50  ;;  %v4261_v28 = vadd.f32 %v11073_v4, %v4260_v45  ;;  %v4338_v63 = vand.u32 2147483648, %v11051_v55  ;;  %v3674_v1 = vrot.slane %v3673_v5, 2  ;;  %4868 = vmatpush.bf16.xpose.msrb.mxu1 %v11194_v15  ;;  %vm11231_vm14 = vmor %vm4262_vm15, %vm4263_vm9 }
 0xb3a   : > { %v4195_v7 = vrot.slane %v4194_v19, 4  ;;  %v4330_v54 = vmul.f32 %v11127_v35, %v4329_v24  ;;  %vm4333_vm10 = vweird.f32 %v11127_v35  ;;  %v4803_v9 = vunpack.c.l.b16 %v4497_v30 }
 0xb3b   : > { %v4806_v41 = vunpack.c.l.b16 %v4499_v29  ;;  %vm11206_vm11 = vcmp.eq.f32.partialorder %v4266_v31, 8.507059e+37  ;;  %v3675_v50 = vmax.f32 %v3673_v5, %v3674_v1  ;;  %v4822_v47 = vunpack.c.h.b16 %v11060_v20 }
 0xb3c   : > { %v4196_v56 = vadd.f32 %v4195_v7, %v4194_v19  ;;  %v4825_v45 = vunpack.c.h.b16 %v11064_v40  ;;  %v4816_v43 = vunpack.c.h.b16 %v11081_v33  ;;  %v4819_v61 = vunpack.c.h.b16 %v11083_v6 }
 0xb3d   : > { %v4810_v3 = vunpack.c.h.b16 %v11134_v58  ;;  %v4813_v24 = vunpack.c.h.b16 %v11136_v8  ;;  %v3676_v17 = vrot.slane %v3675_v50, 1  ;;  %v4804_v15 = vunpack.c.h.b16 %v4497_v30 }
 0xb3e   : > { %v4197_v39 = vrot.slane %v4196_v56, 2  ;;  %v11216_v31 = vpack.c.b16 %v4825_v45, %v4822_v47  ;;  %v4331_v19 = vadd.f32 %v11127_v35, %v4330_v54  ;;  %v11219_v5 = vpack.c.b16 %v4819_v61, %v4816_v43 }
 0xb3f   : > { %v11221_v20 = vpack.c.b16 %v4813_v24, %v4810_v3  ;;  %v4807_v40 = vunpack.c.h.b16 %v4499_v29  ;;  %v11225_v33 = vsel %vm11179_vm13, %v4353_v48, %v4349_v10  ;;  %v3677_v6 = vmax.f32 %v3675_v50, %v3676_v17  ;;  %v13514_v17 = vld [vmem:[#allocation4_spill] sm:$0xff] }
 0xb40   : > { %v4198_v30 = vadd.f32 %v4197_v39, %v4196_v56  ;;  %v11235_v8 = vpack.c.b16 %v4806_v41, %v4803_v9  ;;  %v4265_v29 = vsel %vm11231_vm14, %v11073_v4, %v4261_v28  ;;  %vm4332_vm8 = vweird.f32 %v11051_v55 }
 0xb41   : > { %v4336_v48 = vand.u32 2147483647, %v11051_v55  ;;  %v11242_v27 = vpack.c.b16 %v4807_v40, %v4804_v15  ;;  %vm11246_vm13 = vmor %vm4332_vm8, %vm4333_vm10  ;;  %v3775_v7 = vsub.f32 %v10991_v53, %v3677_v6  ;;  %v3778_v1 = vsub.f32 %v10960_v18, %v3677_v6 }
 0xb42   : > { %v4199_v10 = vrot.slane %v4198_v30, 1  ;;  %v3781_v54 = vsub.f32 %v11005_v34, %v3677_v6  ;;  %4869 = vmatpush.bf16.xpose.msrb.mxu1 %v11235_v8  ;;  %v4335_v55 = vsel %vm11246_vm13, %v11127_v35, %v4331_v19  ;;  %v4339_v4 = vor.u32 1.1754944e-38, %v4338_v63 }
 0xb43   : > { %v3784_v15 = vsub.f32 %v11022_v44, %v3677_v6  ;;  %v3787_v28 = vsub.f32 %v11055_v13, %v3677_v6  ;;  %v3790_v41 = vsub.f32 %v11091_v26, %v3677_v6  ;;  %v3921_v53 = vmul.f32 1.442695, %v3775_v7 }
 0xb44   : > { %v11259_v9 = vadd.f32 %v4199_v10, %v4198_v30  ;;  %v3927_v56 = vmul.f32 1.442695, %v3778_v1  ;;  %v11264_v18 = vsel %vm11206_vm11, %v4269_v23, %v4265_v29  ;;  %vm4337_vm8 = vcmp.eq.f32.partialorder %v4336_v48, 8.507059e+37  ;;  %v13516_v29 = vld [vmem:[#allocation119_spill] sm:$0xff] }
 0xb45   : > { %v3793_v34 = vsub.f32 %v11105_v0, %v3677_v6  ;;  %v3933_v50 = vmul.f32 1.442695, %v3781_v54  ;;  %v11267_v35 = vsel %vm4337_vm8, %v4339_v4, %v4335_v55  ;;  %v3796_v44 = vsub.f32 %v11148_v60, %v3677_v6 }
 0xb46   : > { %7294 = vrcp.f32 %v11259_v9  ;;  %v3939_v13 = vmul.f32 1.442695, %v3784_v15  ;;  %v3945_v63 = vmul.f32 1.442695, %v3787_v28  ;;  %v13511_v26 = vunpack.c.l.b16 %v10664_v21 }
 0xb47   : > { %7296 = vpow2.f32 %v3921_v53  ;;  %v4415_v23 = vmul.f32 %v10844_v62, %v11264_v18  ;;  %v3951_v49 = vmul.f32 1.442695, %v3790_v41  ;;  %v4462_v0 = vmul.f32 %v10892_v22, %v11267_v35  ;;  %v13512_v62 = vld [vmem:[#allocation3_spill] sm:$0xff]  ;;  %v13513_v22 = vld [vmem:[#allocation94_spill] sm:$0xff] }
 0xb48   : > { %v4782_v47 = vpack.c.b16 %v13511_v26, %v13511_v26  ;;  %7298 = vpow2.f32 %v3927_v56  ;;  %v3957_v45 = vmul.f32 1.442695, %v3793_v34  ;;  %v4460_v60 = vmul.f32 %v10736_v25, %v11225_v33  ;;  %v13518_v41 = vld [vmem:[#allocation10_spill] sm:$0xff] }
 0xb49   : > { %7300 = vpow2.f32 %v3933_v50  ;;  %v3963_v43 = vmul.f32 1.442695, %v3796_v44  ;;  %v4412_v61 = vmul.f32 %v10819_v46, %v11264_v18  ;;  %v4459_v3 = vmul.f32 %v10857_v36, %v11267_v35  ;;  %v13515_v46 = vld [vmem:[#allocation74_spill] sm:$0xff] }
 0xb4a   : > { %4870 = vmatmul.bf16.vlgmr.msrb.gmra.mxu1 %v4782_v47  ;;  %7302 = vpow2.f32 %v3939_v13  ;;  %v4463_v24 = vmul.f32 %v13512_v62, %v11225_v33  ;;  %v4454_v39 = vmul.f32 %v13513_v22, %v11225_v33  ;;  %v11290_v19 = vmul.f32 %v13514_v17, %v11225_v33  ;;  %v13519_v22 = vld [vmem:[#allocation106_spill] sm:$0xff] }
 0xb4b   : > { %7304 = vpow2.f32 %v3945_v63  ;;  %v4493_v40 = vpack.c.bf16 %v4412_v61, %v10955_v11  ;;  %v4495_v58 = vpack.c.bf16 %v4415_v23, %v13515_v46  ;;  %v4525_v30 = vpack.c.bf16 %v4460_v60, %v4459_v3 }
 0xb4c   : > { %v11292_v25 = vpop.eup %7294  ;;  %7306 = vpow2.f32 %v3951_v49  ;;  %v4527_v6 = vpack.c.bf16 %v4463_v24, %v4462_v0  ;;  %v11300_v48 = vmul.f32 %v13516_v29, %v11225_v33  ;;  %v11304_v10 = vmul.f32 %v13517_v12, %v11225_v33  ;;  %v13520_v29 = vld [vmem:[#allocation52_spill] sm:$0xff] }
 0xb4d   : > { %v11296_v36 = vpop.eup %7296  ;;  %7308 = vpow2.f32 %v3957_v45  ;;  %v4697_v1 = vunpack.c.l.b16 %v4493_v40  ;;  %v4700_v54 = vunpack.c.l.b16 %v4495_v58  ;;  %v4698_v15 = vunpack.c.h.b16 %v4493_v40 }
 0xb4e   : > { %v11306_v7 = vpop.eup %7298  ;;  %7310 = vpow2.f32 %v3963_v43  ;;  %v4133_v11 = vsel %vm3562_vm12, %v11296_v36, 0.0  ;;  %v4701_v28 = vunpack.c.h.b16 %v4495_v58  ;;  %v4406_v53 = vmul.f32 %v13518_v41, %v11264_v18  ;;  %v13521_v41 = vld [vmem:[#allocation35_spill] sm:$0xff] }
 0xb4f   : > { %v11310_v55 = vpop.eup %7300  ;;  %v4134_v4 = vsel %vm3562_vm12, %v11306_v7, 0.0  ;;  %v11320_v34 = vmul.f32 %v11292_v25, %v11259_v9  ;;  %v11322_v44 = vpack.c.b16 %v4700_v54, %v4697_v1  ;;  %v4945_v13 = vunpack.c.l.b16 %v4525_v30 }
 0xb50   : > { %v11316_v56 = vpop.eup %7302  ;;  %v4135_v50 = vadd.f32 %v4134_v4, %v4133_v11  ;;  %v4136_v26 = vsel %vm3562_vm12, %v11310_v55, 0.0  ;;  %v11330_v23 = vpack.c.b16 %v4701_v28, %v4698_v15  ;;  %v4948_v49 = vunpack.c.l.b16 %v4527_v6  ;;  %v5468_v4 = vld [vmem:[%s12718_s7 + $0x10] sm:$0xff]  ;;  %v11362_v15 = vpop.f32.mrf.mxu0 }
 0xb51   : > { %v11324_v63 = vpop.eup %7304  ;;  %v4138_v47 = vsel %vm3562_vm12, %v11316_v56, 0.0  ;;  %4742 = vmatpush.bf16.xpose.msra.mxu2 %v11322_v44  ;;  %v4946_v43 = vunpack.c.h.b16 %v4525_v30  ;;  %v4949_v61 = vunpack.c.h.b16 %v4527_v6  ;;  %v4409_v17 = vmul.f32 %v13519_v22, %v11264_v18  ;;  %5482 = vperm.xlu0 %7072, %v5468_v4   ;;  %v13525_v4 = vld [vmem:[#allocation7_spill] sm:$0xff] }
 0xb52   : > { %v11332_v0 = vpop.eup %7306  ;;  %v4137_v45 = vadd.f32 %v4136_v26, %v4135_v50  ;;  %v4140_v60 = vsel %vm3562_vm12, %v11324_v63, 0.0  ;;  %4755 = vmatpush.bf16.xpose.msrb.mxu3 %v11330_v23  ;;  %v11342_v24 = vpack.c.b16 %v4948_v49, %v4945_v13  ;;  %v4489_v40 = vpack.c.bf16 %v4406_v53, %v10964_v42  ;;  %v13522_v13 = vld [vmem:[#allocation33_spill] sm:$0xff] }
 0xb53   : > { %v11337_v3 = vpop.eup %7308  ;;  %v4142_v62 = vsel %vm3562_vm12, %v11332_v0, 0.0  ;;  %v11351_v6 = vpack.c.b16 %v4949_v61, %v4946_v43  ;;  %v4453_v12 = vmul.f32 %v13520_v29, %v11267_v35  ;;  %v4491_v1 = vpack.c.bf16 %v4409_v17, %v10968_v32  ;;  %v11372_v32 = vld [vmem:[%s12719_s8 + $0x8] sm:$0xff] }
 0xb54   : > { %v11347_v46 = vpop.eup %7310  ;;  %v4139_v58 = vadd.f32 %v4138_v47, %v4137_v45  ;;  %v4144_v30 = vsel %vm3562_vm12, %v11337_v3, 0.0  ;;  %4990 = vmatpush.bf16.xpose.msra.mxu0 %v11342_v24  ;;  %v4691_v54 = vunpack.c.l.b16 %v4489_v40  ;;  %v4692_v42 = vunpack.c.h.b16 %v4489_v40  ;;  %v13523_v45 = vld [vmem:[#allocation36_spill] sm:$0xff]  ;;  %5648 = vperm.xlu1 %7075, %v11372_v32  }
 0xb55   : > { %v4146_v11 = vsel %vm3562_vm12, %v11347_v46, 0.0  ;;  %5003 = vmatpush.bf16.xpose.msra.mxu1 %v11351_v6  ;;  %v4456_v53 = vmul.f32 %v13521_v41, %v11267_v35  ;;  %v4521_v50 = vpack.c.bf16 %v4454_v39, %v4453_v12  ;;  %v4400_v26 = vmul.f32 %v13522_v13, %v11264_v18 }
 0xb56   : > { %v4141_v28 = vadd.f32 %v4140_v60, %v4139_v58  ;;  %v4694_v47 = vunpack.c.l.b16 %v4491_v1  ;;  %v4695_v49 = vunpack.c.h.b16 %v4491_v1  ;;  %v4403_v43 = vmul.f32 %v13523_v45, %v11264_v18  ;;  %v13524_v60 = vld [vmem:[#allocation95_spill] sm:$0xff] }
 0xb57   : > { %v4447_v61 = vmul.f32 %v13524_v60, %v11267_v35  ;;  %v4523_v22 = vpack.c.bf16 %v11290_v19, %v4456_v53  ;;  %v4939_v17 = vunpack.c.l.b16 %v4521_v50  ;;  %v4940_v40 = vunpack.c.h.b16 %v4521_v50 }
 0xb58   : > { %v4143_v39 = vadd.f32 %v4142_v62, %v4141_v28  ;;  %v11380_v58 = vpack.c.b16 %v4694_v47, %v4691_v54  ;;  %v11382_v29 = vpack.c.b16 %v4695_v49, %v4692_v42  ;;  %v4485_v12 = vpack.c.bf16 %v4400_v26, %v10980_v52  ;;  %v13526_v47 = vld [vmem:[#allocation96_spill] sm:$0xff] }
 0xb59   : > { %v4487_v1 = vpack.c.bf16 %v4403_v43, %v10984_v57  ;;  %v4942_v13 = vunpack.c.l.b16 %v4523_v22  ;;  %v4943_v45 = vunpack.c.h.b16 %v4523_v22  ;;  %v4450_v60 = vmul.f32 %v13525_v4, %v11267_v35  ;;  %v4651_v43 = vpop.f32.mrf.mxu0  ;;  %5606 = vperm.xlu0 %7072, %v11372_v32  }
 0xb5a   : > { %v4145_v41 = vadd.f32 %v4144_v30, %v4143_v39  ;;  %4743 = vmatpush.bf16.xpose.msra.mxu2 %v11380_v58  ;;  %4756 = vmatpush.bf16.xpose.msrb.mxu3 %v11382_v29  ;;  %v4685_v19 = vunpack.c.l.b16 %v4485_v12  ;;  %v4686_v54 = vunpack.c.h.b16 %v4485_v12  ;;  %v4517_v57 = vpack.c.bf16 %v11300_v48, %v4447_v61  ;;  %v13528_v48 = vld [vmem:[#allocation57_spill] sm:$0xff] }
 0xb5b   : > { %v4688_v62 = vunpack.c.l.b16 %v4487_v1  ;;  %v4689_v28 = vunpack.c.h.b16 %v4487_v1  ;;  %v11390_v53 = vpack.c.b16 %v4942_v13, %v4939_v17  ;;  %v11392_v52 = vpack.c.b16 %v4943_v45, %v4940_v40  ;;  %v13529_v17 = vld [vmem:[#allocation2_spill] sm:$0xff] }
 0xb5c   : > { %v4147_v42 = vadd.f32 %v4146_v11, %v4145_v41  ;;  %v4519_v26 = vpack.c.bf16 %v11304_v10, %v4450_v60  ;;  %v4394_v49 = vmul.f32 %v13526_v47, %v11264_v18  ;;  %v13527_v11 = vld [vmem:[#allocation51_spill] sm:$0xff]  ;;  %v4396_v61 = vmul.f32 %v13528_v48, %v13468_v14  ;;  %v13530_v41 = vld [vmem:[#allocation16_spill] sm:$0xff] }
 0xb5d   : > { %v11395_v30 = vpack.c.b16 %v4688_v62, %v4685_v19  ;;  %v11397_v50 = vpack.c.b16 %v4689_v28, %v4686_v54  ;;  %4991 = vmatpush.bf16.xpose.msra.mxu0 %v11390_v53  ;;  %5004 = vmatpush.bf16.xpose.msra.mxu1 %v11392_v52  ;;  %v4393_v22 = vmul.f32 %v13527_v11, %v13468_v14  ;;  %v4357_v10 = vsub.f32 1.0, %v11320_v34  ;;  %v13531_v19 = vld [vmem:[#allocation29_spill] sm:$0xff]  ;;  %v13532_v28 = vld [vmem:[#allocation43_spill] sm:$0xff]  ;;  %v13533_v34 = vld [vmem:[#allocation118_spill] sm:$0xff] }
 0xb5e   : > { %v4148_v39 = vrot.slane %v4147_v42, 4  ;;  %v4397_v40 = vmul.f32 %v13529_v17, %v11264_v18  ;;  %v4933_v12 = vunpack.c.l.b16 %v4517_v57  ;;  %v4934_v1 = vunpack.c.h.b16 %v4517_v57 }
 0xb5f   : > { %v4441_v13 = vmul.f32 %v13530_v41, %v11267_v35  ;;  %v4936_v4 = vunpack.c.l.b16 %v4519_v26  ;;  %v4937_v60 = vunpack.c.h.b16 %v4519_v26  ;;  %v4444_v62 = vmul.f32 %v13531_v19, %v11267_v35 }
 0xb60   : > { %v4149_v45 = vadd.f32 %v4148_v39, %v4147_v42  ;;  %v4481_v54 = vpack.c.bf16 %v4394_v49, %v4393_v22  ;;  %v4483_v14 = vpack.c.bf16 %v4397_v40, %v4396_v61  ;;  %v4442_v18 = vmul.f32 %v13532_v28, %v11225_v33  ;;  %v13534_v40 = vld [vmem:[#allocation60_spill] sm:$0xff] }
 0xb61   : > { %v4445_v57 = vmul.f32 %v13533_v34, %v11225_v33  ;;  %v4358_v43 = vmul.f32 %v11292_v25, %v4357_v10  ;;  %v11423_v39 = vpack.c.b16 %v4936_v4, %v4933_v12  ;;  %v11425_v35 = vpack.c.b16 %v4937_v60, %v4934_v1  ;;  %v13535_v10 = vld [vmem:[#allocation62_spill] sm:$0xff] }
 0xb62   : > { %v4150_v47 = vrot.slane %v4149_v45, 2  ;;  %4744 = vmatpush.bf16.xpose.msra.mxu2 %v11395_v30  ;;  %4757 = vmatpush.bf16.xpose.msrb.mxu3 %v11397_v50  ;;  %v4513_v42 = vpack.c.bf16 %v4442_v18, %v4441_v13  ;;  %v4679_v11 = vunpack.c.l.b16 %v4481_v54  ;;  %v4682_v22 = vunpack.c.l.b16 %v4483_v14 }
 0xb63   : > { %v4515_v49 = vpack.c.bf16 %v4445_v57, %v4444_v62  ;;  %v4680_v48 = vunpack.c.h.b16 %v4481_v54  ;;  %v4683_v61 = vunpack.c.h.b16 %v4483_v14  ;;  %v2259_v41 = vpack.c.bf16 %v13535_v10, %v13534_v40  ;;  %v13537_v54 = vld [vmem:[#allocation79_spill] sm:$0xff] }
 0xb64   : > { %v4151_v26 = vadd.f32 %v4150_v47, %v4149_v45  ;;  %v4927_v33 = vunpack.c.l.b16 %v4513_v42  ;;  %v13536_v13 = vmov 1   ;;  %v4928_v45 = vunpack.c.h.b16 %v4513_v42  ;;  %v13538_v14 = vld [vmem:[#allocation99_spill] sm:$0xff] }
 0xb65   : > { %4992 = vmatpush.bf16.xpose.msra.mxu0 %v11423_v39  ;;  %5005 = vmatpush.bf16.xpose.msra.mxu1 %v11425_v35  ;;  %v4930_v1 = vunpack.c.l.b16 %v4515_v49  ;;  %v4931_v4 = vunpack.c.h.b16 %v4515_v49  ;;  %v11434_v60 = vpack.c.b16 %v4682_v22, %v4679_v11  ;;  %v11436_v19 = vpack.c.b16 %v4683_v61, %v4680_v48  ;;  %v13539_v22 = vld [vmem:[#allocation17_spill] sm:$0xff] }
 0xb66   : > { %v4152_v17 = vrot.slane %v4151_v26, 1  ;;  %7074 = vset.pattern.permute.xlu0 %v13536_v13  ;;  %v4359_v62 = vadd.f32 %v11292_v25, %v4358_v43  ;;  %vm4361_vm15 = vweird.f32 %v11292_v25  ;;  %v2263_v28 = vpack.c.bf16 %v13538_v14, %v13537_v54  ;;  %v13541_v54 = vld [vmem:[#allocation71_spill] sm:$0xff]  ;;  %v13542_v14 = vld [vmem:[#allocation100_spill] sm:$0xff] }
 0xb67   : > { %v4366_v18 = vand.u32 2147483648, %v11259_v9  ;;  %vm4360_vm9 = vweird.f32 %v11259_v9  ;;  %v4364_v47 = vand.u32 2147483647, %v11259_v9  ;;  %v11448_v34 = vpack.c.b16 %v4930_v1, %v4927_v33  ;;  %v13540_v9 = vld [vmem:[#allocation111_spill] sm:$0xff] }
 0xb68   : > { %v11432_v12 = vadd.f32 %v4152_v17, %v4151_v26  ;;  %v11451_v57 = vpack.c.b16 %v4931_v4, %v4928_v45  ;;  %v4655_v43 = vunpack.c.l.b16 %v2259_v41  ;;  %v4656_v42 = vunpack.c.h.b16 %v2259_v41  ;;  %vm4362_vm10 = vmor %vm4360_vm9, %vm4361_vm15 }
 0xb69   : > { %v4363_v26 = vsel %vm4362_vm10, %v11292_v25, %v4359_v62  ;;  %v4903_v49 = vunpack.c.l.b16 %v2263_v28  ;;  %v4367_v11 = vor.u32 1.1754944e-38, %v4366_v18  ;;  %v4904_v48 = vunpack.c.h.b16 %v2263_v28 }
 0xb6a   : > { %7312 = vrcp.f32 %v11432_v12  ;;  %4745 = vmatpush.bf16.xpose.msra.mxu2 %v11434_v60  ;;  %4758 = vmatpush.bf16.xpose.msrb.mxu3 %v11436_v19  ;;  %vm4365_vm11 = vcmp.eq.f32.partialorder %v4364_v47, 8.507059e+37  ;;  %v4658_v17 = vpack.c.b16 %v4655_v43, %v4655_v43  ;;  %v4659_v33 = vpack.c.b16 %v4656_v42, %v4656_v42 }
 0xb6b   : > { %v11458_v40 = vsel %vm4365_vm11, %v4367_v11, %v4363_v26  ;;  %v4906_v25 = vpack.c.b16 %v4903_v49, %v4903_v49  ;;  %v4907_v1 = vpack.c.b16 %v4904_v48, %v4904_v48  ;;  %vm4318_vm14 = vweird.f32 %v11432_v12 }
 0xb6c   : > { %v4461_v45 = vmul.f32 %v11150_v37, %v11458_v40  ;;  %v4464_v4 = vmul.f32 %v11161_v16, %v11458_v40  ;;  %v4322_v37 = vand.u32 2147483647, %v11432_v12  ;;  %v4324_v16 = vand.u32 2147483648, %v11432_v12 }
 0xb6d   : > { %4993 = vmatpush.bf16.xpose.msra.mxu0 %v11448_v34  ;;  %5006 = vmatpush.bf16.xpose.msra.mxu1 %v11451_v57  ;;  %v4455_v43 = vmul.f32 %v11123_v51, %v11458_v40  ;;  %v4458_v11 = vmul.f32 %v11138_v38, %v11458_v40  ;;  %vm5267_vm9 = vcmask 523264   ;;  %vm5590_vm10 = vcmask 400384  }
 0xb6e   : > { %v4526_v28 = vpack.c.bf16 %v4461_v45, %v4461_v45  ;;  %v4528_v18 = vpack.c.bf16 %v4464_v4, %v4464_v4  ;;  %vm4323_vm15 = vcmp.eq.f32.partialorder %v4322_v37, 8.507059e+37  ;;  %v13545_v4 = vld [vmem:[#allocation84_spill] sm:$0xff] }
 0xb70   : > { %v7313_v61 = vpop.eup %7312  ;;  %v4947_v26 = vunpack.c.l.b16 %v4526_v28  ;;  %v4950_v49 = vunpack.c.l.b16 %v4528_v18  ;;  %v4449_v28 = vmul.f32 %v11100_v2, %v11458_v40  ;;  %v4452_v18 = vmul.f32 %v11111_v59, %v11458_v40 }
 0xb71   : > { %v4314_v10 = vmul.f32 %v7313_v61, %v11432_v12  ;;  %4746 = vmatmul.bf16.vlgmr.msra.gmra.mxu2 %v4658_v17  ;;  %4759 = vmatmul.bf16.vlgmr.msrb.gmra.mxu3 %v4659_v33  ;;  %vm4319_vm13 = vweird.f32 %v7313_v61  ;;  %v13544_v12 = vld [vmem:[#allocation67_spill] sm:$0xff]  ;;  %v4780_v2 = vunpack.c.h.b16 %v10664_v21 }
 0xb72   : > { %4879 = vmatpush.bf16.xpose.msrb.mxu2 %v11216_v31  ;;  %vm4320_vm8 = vmor %vm4318_vm14, %vm4319_vm13  ;;  %v11480_v51 = vpack.c.b16 %v4950_v49, %v4947_v26  ;;  %vm6638_vm13 = vcmask 392192  }
 0xb73   : > { %v4315_v41 = vsub.f32 1.0, %v4314_v10  ;;  %v13543_v10 = vld [vmem:[#allocation44_spill] sm:$0xff] }
 0xb74   : > { %4994 = vmatmul.bf16.vlgmr.msra.gmra.mxu0 %v4906_v25  ;;  %5007 = vmatmul.bf16.vlgmr.msra.gmra.mxu1 %v4907_v1  ;;  %v4524_v25 = vpack.c.bf16 %v4458_v11, %v4458_v11  ;;  %v4518_v11 = vpack.c.bf16 %v4449_v28, %v4449_v28 }
 0xb75   : > { %5055 = vmatpush.bf16.xpose.msrb.mxu0 %v13539_v22  ;;  %5068 = vmatpush.bf16.xpose.msrb.mxu1 %v13540_v9  ;;  %v4316_v62 = vmul.f32 %v7313_v61, %v4315_v41  ;;  %v4325_v9 = vor.u32 1.1754944e-38, %v4324_v16 }
 0xb77   : > { %v4317_v47 = vadd.f32 %v7313_v61, %v4316_v62  ;;  %v13546_v62 = vld [vmem:[#allocation91_spill] sm:$0xff] }
 0xb79   : > { %v4321_v42 = vsel %vm4320_vm8, %v7313_v61, %v4317_v47  ;;  %v4522_v61 = vpack.c.bf16 %v4455_v43, %v4455_v43  ;;  %v4944_v43 = vunpack.c.l.b16 %v4524_v25  ;;  %v13550_v25 = vld [vmem:[#allocation30_spill] sm:$0xff]  ;;  %vm6608_vm8 = vcmask 818176  }
 0xb7a   : > { %4880 = vmatpush.bf16.xpose.msrb.mxu2 %v11219_v5  ;;  %v4326_v48 = vsel %vm4323_vm15, %v4325_v9, %v4321_v42  ;;  %v4520_v9 = vpack.c.bf16 %v4452_v18, %v4452_v18  ;;  %v4935_v18 = vunpack.c.l.b16 %v4518_v11  ;;  %vm6652_vm15 = vcmask 785408  }
 0xb7b   : > { %v4437_v17 = vmul.f32 %v11337_v3, %v4326_v48  ;;  %v4440_v33 = vmul.f32 %v11347_v46, %v4326_v48  ;;  %v4431_v38 = vmul.f32 %v11324_v63, %v4326_v48  ;;  %v4434_v45 = vmul.f32 %v11332_v0, %v4326_v48  ;;  %v13547_v3 = vld [vmem:[#allocation73_spill] sm:$0xff] }
 0xb7c   : > { %v2323_v46 = vpack.c.bf16 %v13547_v3, %v13547_v3  ;;  %v4941_v16 = vunpack.c.l.b16 %v4522_v61  ;;  %v11497_v63 = vsel %vm3562_vm12, %v11480_v51, 0  ;;  %v4422_v3 = vmul.f32 %v11306_v7, %v4326_v48 }
 0xb7d   : > { %5056 = vmatpush.bf16.xpose.msrb.mxu0 %v13541_v54  ;;  %5069 = vmatpush.bf16.xpose.msrb.mxu1 %v13542_v14  ;;  %v4510_v41 = vpack.c.bf16 %v4437_v17, %v4437_v17  ;;  %v4512_v1 = vpack.c.bf16 %v4440_v33, %v4440_v33  ;;  %v11486_v14 = vpack.c.bf16 %v13546_v62, %v13545_v4  ;;  %v13548_v33 = vld [vmem:[#allocation88_spill] sm:$0xff] }
 0xb7e   : > { %v4506_v42 = vpack.c.bf16 %v4431_v38, %v4431_v38  ;;  %v4508_v26 = vpack.c.bf16 %v4434_v45, %v4434_v45  ;;  %v5029_v49 = vunpack.c.l.b16 %v2323_v46  ;;  %v11510_v61 = vpack.c.b16 %v4944_v43, %v4941_v16 }
 0xb7f   : > { %v4823_v47 = vunpack.c.l.b16 %v4510_v41  ;;  %v4826_v37 = vunpack.c.l.b16 %v4512_v1  ;;  %v5028_v59 = vunpack.c.h.b16 %v11486_v14  ;;  %v13551_v41 = vld [vmem:[#allocation122_spill] sm:$0xff]  ;;  %v4425_v38 = vmul.f32 %v11310_v55, %v4326_v48  ;;  %v13552_v55 = vld [vmem:[#allocation83_spill] sm:$0xff] }
 0xb80   : > { %v4817_v21 = vunpack.c.l.b16 %v4506_v42  ;;  %v4820_v1 = vunpack.c.l.b16 %v4508_v26  ;;  %v4428_v45 = vmul.f32 %v11316_v56, %v4326_v48  ;;  %v4783_v4 = vpack.c.b16 %v4780_v2, %v4780_v2  ;;  %v13553_v42 = vld [vmem:[#allocation121_spill] sm:$0xff] }
 0xb81   : > { %v11499_v0 = vpack.c.b16 %v4826_v37, %v4823_v47  ;;  %v4419_v62 = vmul.f32 %v11296_v36, %v4326_v48  ;;  %v5031_v46 = vpack.c.b16 %v5028_v59, %v5028_v59  ;;  %v5032_v28 = vpack.c.b16 %v5029_v49, %v5029_v49 }
 0xb82   : > { %4881 = vmatpush.bf16.xpose.msrb.mxu2 %v11221_v20  ;;  %v4938_v47 = vunpack.c.l.b16 %v4520_v9  ;;  %v11521_v37 = vsel %vm3562_vm12, %v11510_v61, 0  ;;  %v4443_v16 = vmul.f32 %v13552_v55, %v11458_v40  ;;  %v4500_v43 = vpack.c.bf16 %v4422_v3, %v4422_v3  ;;  %v13558_v55 = vld [vmem:[#allocation5_spill] sm:$0xff] }
 0xb83   : > { %v11506_v17 = vsel %vm3562_vm12, %v11499_v0, 0  ;;  %v4498_v56 = vpack.c.bf16 %v4419_v62, %v4419_v62  ;;  %v4446_v26 = vmul.f32 %v13553_v42, %v11458_v40  ;;  %v11527_v36 = vpack.c.b16 %v4820_v1, %v4817_v21 }
 0xb84   : > { %4892 = vmatpush.bf16.xpose.msra.mxu3 %v11506_v17  ;;  %v4502_v7 = vpack.c.bf16 %v4425_v38, %v4425_v38  ;;  %v4504_v48 = vpack.c.bf16 %v4428_v45, %v4428_v45  ;;  %v4808_v59 = vunpack.c.l.b16 %v4500_v43  ;;  %v11531_v49 = vpack.c.b16 %v4938_v47, %v4935_v18  ;;  %v2303_v43 = vld.sshfl [vmem:[#allocation1 + $0x8] sm:$0xff pattern:$0x75316420] }
 0xb85   : > { %5057 = vmatpush.bf16.xpose.msrb.mxu0 %v13543_v10  ;;  %5070 = vmatpush.bf16.xpose.msrb.mxu1 %v13544_v12  ;;  %v13549_v12 = vld [vmem:[#allocation25_spill] sm:$0xff]  ;;  %v4805_v2 = vunpack.c.l.b16 %v4498_v56  ;;  %v4514_v11 = vpack.c.bf16 %v4443_v16, %v4443_v16  ;;  %v4516_v40 = vpack.c.bf16 %v4446_v26, %v4446_v26  ;;  %v11539_v21 = vsel %vm3562_vm12, %v11527_v36, 0 }
 0xb86   : > { %v4811_v1 = vunpack.c.l.b16 %v4502_v7  ;;  %v4814_v38 = vunpack.c.l.b16 %v4504_v48  ;;  %v11544_v45 = vsel %vm3562_vm12, %v11531_v49, 0  ;;  %v2264_v16 = vpack.c.bf16 %v13558_v55, %v13558_v55  ;;  %v2302_v56 = vld.sshfl [vmem:[#allocation1] sm:$0xff pattern:$0x75316420]  ;;  %v13559_v48 = vld [vmem:[#allocation90_spill] sm:$0xff] }
 0xb87   : > { %v11533_v9 = vpack.c.b16 %v4808_v59, %v4805_v2  ;;  %v4932_v62 = vunpack.c.l.b16 %v4516_v40  ;;  %v2325_v2 = vpack.c.bf16 %v13559_v48, %v13559_v48  ;;  %v11567_v59 = vpack.c.bf16 %v2303_v43, %v2302_v56  ;;  %v13562_v56 = vld [vmem:[#allocation103_spill] sm:$0xff] }
 0xb88   : > { %v11546_v3 = vpack.c.b16 %v4814_v38, %v4811_v1  ;;  %v13560_v38 = vld [vmem:[#allocation77_spill] sm:$0xff] }
 0xb89   : > { %v5131_v55 = vunpack.c.l.b16 %v11567_v59 }
 0xb8a   : > { %4882 = vmatpush.bf16.xpose.msrb.mxu2 %v11242_v27  ;;  %v11555_v47 = vsel %vm3562_vm12, %v11546_v3, 0 }
 0xb8c   : > { %4893 = vmatpush.bf16.xpose.msra.mxu3 %v11539_v21 }
 0xb8d   : > { %5058 = vmatpush.bf16.xpose.msrb.mxu0 %v13548_v33  ;;  %5071 = vmatpush.bf16.xpose.msrb.mxu1 %v13549_v12  ;;  %v13554_v12 = vld [vmem:[#allocation53_spill] sm:$0xff] }
 0xb91   : > { %4883 = vmatmul.bf16.vlgmr.msrb.gmra.mxu2 %v4783_v4  ;;  %v4929_v4 = vunpack.c.l.b16 %v4514_v11 }
 0xb92   : > { %5016 = vmatpush.bf16.xpose.msra.mxu2 %v11497_v63 }
 0xb93   : > { %v11551_v18 = vpack.c.b16 %v4932_v62, %v4929_v4  ;;  %v13561_v4 = vld [vmem:[#allocation116_spill] sm:$0xff] }
 0xb94   : > { %5059 = vmatmul.bf16.vlgmr.msrb.gmra.mxu0 %v5031_v46  ;;  %6930 = vmatmul.msk.bf16.vlgmr.msrb.gmra.mxu1 %vm3562_vm12, %v5032_v28  ;;  %v13556_v46 = vld [vmem:[#allocation89_spill] sm:$0xff]  ;;  %v13557_v28 = vld [vmem:[#allocation64_spill] sm:$0xff]  ;;  %v2262_v62 = vpack.c.bf16 %v13561_v4, %v13561_v4 }
 0xb95   : > { %5120 = vmatpush.bf16.xpose.msra.mxu0 %v13550_v25  ;;  %5146 = vmatpush.bf16.xpose.msra.mxu1 %v13551_v41  ;;  %v13555_v25 = vld [vmem:[#allocation12_spill] sm:$0xff]  ;;  %v11562_v26 = vsel %vm3562_vm12, %v11551_v18, 0  ;;  %v11600_v4 = vld [vmem:[%s12719_s8] sm:$0xff] }
 0xb96   : > { %4894 = vmatpush.bf16.xpose.msra.mxu3 %v11555_v47  ;;  %5644 = vperm.xlu0 %7074, %v11600_v4  }
 0xb9a   : > { %5017 = vmatpush.bf16.xpose.msra.mxu2 %v11521_v37  ;;  %v4623_v42 = vpop.f32.mrf.mxu2 }
 0xb9b   : > { %v4636_v7 = vpop.f32.mrf.mxu3 }
 0xb9c   : > { %v4637_v11 = vadd.f32 %v4636_v7, %v4623_v42  ;;  %v4781_v42 = vunpack.c.l.b16 %v2262_v62  ;;  %v2307_v62 = vld.sshfl [vmem:[#allocation1 + $0x20] sm:$0xff pattern:$0x75316420] }
 0xb9d   : > { %5121 = vmatpush.bf16.xpose.msra.mxu0 %v13554_v12  ;;  %5147 = vmatpush.bf16.xpose.msra.mxu1 %v13555_v25  ;;  %v4905_v12 = vunpack.c.l.b16 %v2264_v16  ;;  %v11582_v16 = vsel %vm3562_vm12, %v11533_v9, 0 }
 0xb9e   : > { %v4650_v1 = vadd.f32 %v11362_v15, %v4637_v11  ;;  %4895 = vmatpush.bf16.xpose.msra.mxu3 %v11582_v16  ;;  %v5134_v11 = vpack.c.b16 %v5131_v55, %v5131_v55  ;;  %v13564_v55 = vld [vmem:[#allocation27_spill] sm:$0xff] }
 0xb9f   : > { %v11570_v40 = vpop.f32.mrf.mxu0  ;;  %v4908_v15 = vpack.c.b16 %v4905_v12, %v4905_v12  ;;  %v5467_v12 = vld [vmem:[%s12718_s7 + $0x8] sm:$0xff] }
 0xba0   : > { %5237 = vst [vmem:[#allocation1] ss:$2 sm:$0xff] %v4650_v1  ;;  %v4784_v1 = vpack.c.b16 %v4781_v42, %v4781_v42  ;;  %5477 = vperm.xlu2 %7073, %v5467_v12   ;;  %v13566_v12 = vld [vmem:[#allocation63_spill] sm:$0xff] }
 0xba2   : > { %5018 = vmatpush.bf16.xpose.msra.mxu2 %v11544_v45  ;;  %v4625_v43 = vpop.f32.mrf.mxu2 }
 0xba3   : > { %v4638_v7 = vpop.f32.mrf.mxu3  ;;  %v13565_v43 = vld [vmem:[#allocation6_spill] sm:$0xff] }
 0xba4   : > { %v5079_v42 = vunpack.c.l.b16 %v13565_v43  ;;  %v11613_v7 = vld [vmem:[%s12719_s8 + $0x18] sm:$0xff] }
 0xba5   : > { %5122 = vmatpush.bf16.xpose.msra.mxu0 %v13556_v46  ;;  %5148 = vmatpush.bf16.xpose.msra.mxu1 %v13557_v28  ;;  %v5081_v46 = vunpack.c.l.b16 %v2325_v2 }
 0xba6   : > { %5042 = vmatpush.bf16.xpose.msrb.mxu3 %v13562_v56  ;;  %5656 = vperm.xlu1 %7075, %v11613_v7  }
 0xba7   : > { %v5084_v48 = vpack.c.b16 %v5081_v46, %v5081_v46  ;;  %v4775_v2 = vpop.f32.mrf.mxu0  ;;  %6928 = vmatmul.msk.bf16.vlgmr.msra.gmra.mxu3 %vm3562_vm12, %v4784_v1  ;;  %v2308_v46 = vld.sshfl [vmem:[#allocation1 + $0x28] sm:$0xff pattern:$0x75316420]  ;;  %v5027_v1 = vunpack.c.l.b16 %v11486_v14  ;;  %v13568_v14 = vmov 3  }
 0xba8   : > { %5601 = vperm.xlu2 %7073, %v11600_v4   ;;  %v5082_v2 = vpack.c.b16 %v5079_v42, %v5079_v42 }
 0xbaa   : > { %5019 = vmatpush.bf16.xpose.msra.mxu2 %v11562_v26 }
 0xbad   : > { %5123 = vmatpush.bf16.xpose.msra.mxu0 %v13560_v38  ;;  %5149 = vmatpush.bf16.xpose.msra.mxu1 %v11235_v8  ;;  %v13563_v38 = vld [vmem:[#allocation47_spill] sm:$0xff] }
 0xbae   : > { %5043 = vmatpush.bf16.xpose.msrb.mxu3 %v13563_v38 }
 0xbb0   : > { %5616 = vperm.xlu2 %7073, %v11613_v7  }
 0xbb1   : > { %6929 = vmatmul.msk.bf16.vlgmr.msra.gmra.mxu2 %vm3562_vm12, %v4908_v15  ;;  %v2328_v15 = vpack.c.bf16 %v2308_v46, %v2307_v62  ;;  %v13567_v62 = vmov 2  }
 0xbb2   : > { %5094 = vmatpush.bf16.xpose.msrb.mxu2 %v11322_v44  ;;  %7078 = vset.pattern.permute.xlu0 %v13567_v62 }
 0xbb3   : > { %5744 = vperm.xlu0 %7078, %v11372_v32   ;;  %7079 = vset.pattern.permute.xlu1 %v13567_v62 }
 0xbb4   : > { %6931 = vmatmul.msk.bf16.vlgmr.msra.gmra.mxu0 %vm3562_vm12, %v5084_v48  ;;  %5150 = vmatmul.bf16.vlgmr.msra.gmra.mxu1 %v5134_v11  ;;  %v5183_v48 = vunpack.c.l.b16 %v2328_v15  ;;  %v5184_v11 = vunpack.c.h.b16 %v2328_v15  ;;  %v13569_v15 = vld [vmem:[#allocation41_spill] sm:$0xff] }
 0xbb5   : > { %5198 = vmatpush.bf16.xpose.msrb.mxu0 %v11342_v24  ;;  %5211 = vmatpush.bf16.xpose.msrb.mxu1 %v11351_v6 }
 0xbb6   : > { %5044 = vmatpush.bf16.xpose.msrb.mxu3 %v13564_v55  ;;  %v5187_v46 = vpack.c.b16 %v5184_v11, %v5184_v11 }
 0xbb8   : > { %7076 = vset.pattern.permute.xlu2 %v13536_v13  ;;  %v2375_v13 = vpop.permute.xlu1 %2374 }
 0xbb9   : > { %v2445_v42 = vadd.f32 %v13569_v15, %v2375_v13 }
 0xbba   : > { %5095 = vmatpush.bf16.xpose.msrb.mxu2 %v11380_v58 }
 0xbbb   : > { %7082 = vset.pattern.permute.xlu0 %v13568_v14 }
 0xbbd   : > { %5199 = vmatpush.bf16.xpose.msrb.mxu0 %v11390_v53  ;;  %5212 = vmatpush.bf16.xpose.msrb.mxu1 %v11392_v52 }
 0xbbe   : > { %5045 = vmatpush.bf16.xpose.msrb.mxu3 %v13566_v12 }
 0xbc2   : > { %5096 = vmatpush.bf16.xpose.msrb.mxu2 %v11395_v30 }
 0xbc5   : > { %5200 = vmatpush.bf16.xpose.msrb.mxu0 %v11423_v39  ;;  %5213 = vmatpush.bf16.xpose.msrb.mxu1 %v11425_v35 }
 0xbc6   : > { %5107 = vmatpush.bf16.xpose.msra.mxu3 %v11330_v23 }
 0xbca   : > { %5097 = vmatpush.bf16.xpose.msrb.mxu2 %v11434_v60 }
 0xbcd   : > { %5201 = vmatpush.bf16.xpose.msrb.mxu0 %v11448_v34  ;;  %5214 = vmatpush.bf16.xpose.msrb.mxu1 %v11451_v57 }
 0xbce   : > { %5108 = vmatpush.bf16.xpose.msra.mxu3 %v11382_v29 }
 0xbd1   : > { %5098 = vmatmul.bf16.vlgmr.msrb.gmra.mxu2 %v5082_v2 }
 0xbd2   : > { %5159 = vmatpush.bf16.xpose.msra.mxu2 %v11216_v31 }
 0xbd4   : > { %5215 = vmatmul.bf16.vlgmr.msrb.gmra.mxu1 %v5187_v46  ;;  %v13580_v46 = vld [vmem:[#allocation32_spill] sm:$0xff] }
 0xbd5   : > { %5288 = vmatpush.bf16.msra.mxu0 %v13539_v22  ;;  %5334 = vmatpush.bf16.msra.mxu1 %v11330_v23  ;;  %v5186_v22 = vpack.c.b16 %v5183_v48, %v5183_v48  ;;  %v5030_v23 = vpack.c.b16 %v5027_v1, %v5027_v1  ;;  %v13570_v48 = vld [vmem:[#allocation11_spill] sm:$0xff] }
 0xbd6   : > { %5109 = vmatpush.bf16.xpose.msra.mxu3 %v11397_v50 }
 0xbd7   : > { %5202 = vmatmul.bf16.vlgmr.msrb.gmra.mxu0 %v5186_v22  ;;  %5046 = vmatmul.bf16.vlgmr.msrb.gmra.mxu3 %v5030_v23 }
 0xbd9   : > { %5289 = vmatpush.bf16.msra.mxu0 %v13541_v54  ;;  %5335 = vmatpush.bf16.msra.mxu1 %v11382_v29  ;;  %v11637_v54 = vld [vmem:[%s12719_s8 + $0x10] sm:$0xff]  ;;  %v2380_v29 = vpop.permute.xlu0 %2379 }
 0xbda   : > { %5160 = vmatpush.bf16.xpose.msra.mxu2 %v11219_v5  ;;  %5748 = vperm.xlu1 %7079, %v11637_v54  }
 0xbdb   : > { %5652 = vperm.xlu2 %7076, %v11637_v54   ;;  %5844 = vperm.xlu0 %7082, %v11637_v54  }
 0xbdd   : > { %5290 = vmatpush.bf16.msra.mxu0 %v13543_v10  ;;  %5336 = vmatpush.bf16.msra.mxu1 %v11397_v50  ;;  %v11643_v10 = vpop.f32.mrf.mxu1  ;;  %v13571_v50 = vmov 4  }
 0xbde   : > { %5110 = vmatpush.bf16.xpose.msra.mxu3 %v11436_v19 }
 0xbe1   : > { %5291 = vmatpush.bf16.msra.mxu0 %v13548_v33  ;;  %5337 = vmatpush.bf16.msra.mxu1 %v11436_v19  ;;  %v2447_v33 = vadd.f32 %v13570_v48, %v2380_v29  ;;  %v13574_v19 = vmov 6  }
 0xbe2   : > { %5161 = vmatpush.bf16.xpose.msra.mxu2 %v11221_v20  ;;  %7080 = vset.pattern.permute.xlu1 %v13568_v14 }
 0xbe3   : > { %7077 = vset.pattern.permute.xlu2 %v13567_v62  ;;  %5836 = vperm.xlu1 %7080, %v11600_v4   ;;  %v11661_v11 = vpack.c.bf16 %v2447_v33, %v2447_v33  ;;  %v2390_v62 = vpop.permute.xlu2 %2389 }
 0xbe4   : > { %5740 = vperm.xlu2 %7077, %v11600_v4   ;;  %7083 = vset.pattern.permute.xlu0 %v13571_v50  ;;  %v2452_v23 = vadd.f32 %v13580_v46, %v2390_v62 }
 0xbe5   : > { %5321 = vmatpush.bf16.msrb.mxu0 %v11322_v44  ;;  %5393 = vmatpush.bf16.msrb.mxu1 %v11499_v0  ;;  %v11657_v44 = vpack.c.bf16 %v2445_v42, %v2445_v42  ;;  %v4873_v0 = vpop.f32.mrf.mxu1 }
 0xbe6   : > { %6938 = vmatmul.msk.bf16.vlgmr.msra.gmra.mxu1 %vm5267_vm9, %v11661_v11  ;;  %5932 = vperm.xlu0 %7083, %v11600_v4  }
 0xbe7   : > { %6935 = vmatmul.msk.bf16.vlgmr.msra.gmra.mxu0 %vm5267_vm9, %v11657_v44  ;;  %5172 = vmatpush.bf16.xpose.msrb.mxu3 %v11506_v17 }
 0xbe9   : > { %5322 = vmatpush.bf16.msrb.mxu0 %v11380_v58  ;;  %5394 = vmatpush.bf16.msrb.mxu1 %v11527_v36  ;;  %v5132_v58 = vunpack.c.h.b16 %v11567_v59  ;;  %v13572_v36 = vmov 5  }
 0xbea   : > { %5162 = vmatpush.bf16.xpose.msra.mxu2 %v11242_v27 }
 0xbeb   : > { %5848 = vperm.xlu1 %7080, %v11613_v7  }
 0xbec   : > { %5752 = vperm.xlu2 %7077, %v11613_v7  }
 0xbed   : > { %5323 = vmatpush.bf16.msrb.mxu0 %v11395_v30  ;;  %5395 = vmatpush.bf16.msrb.mxu1 %v11546_v3  ;;  %v5135_v30 = vpack.c.b16 %v5132_v58, %v5132_v58 }
 0xbee   : > { %7087 = vset.pattern.permute.xlu0 %v13572_v36 }
 0xbef   : > { %6032 = vperm.xlu0 %7087, %v11372_v32   ;;  %5173 = vmatpush.bf16.xpose.msrb.mxu3 %v11539_v21 }
 0xbf1   : > { %5324 = vmatpush.bf16.msrb.mxu0 %v11434_v60  ;;  %5396 = vmatpush.bf16.msrb.mxu1 %v11533_v9  ;;  %v2385_v60 = vpop.permute.xlu1 %2384  ;;  %v13573_v9 = vld [vmem:[#allocation15_spill] sm:$0xff]  ;;  %v5008_v59 = vpop.f32.mrf.mxu1 }
 0xbf2   : > { %5224 = vmatpush.bf16.xpose.msrb.mxu2 %v11497_v63  ;;  %v5080_v63 = vunpack.c.h.b16 %v13565_v43  ;;  %v2450_v3 = vadd.f32 %v13573_v9, %v2385_v60 }
 0xbf3   : > { %5163 = vmatmul.bf16.vlgmr.msra.gmra.mxu2 %v5135_v30  ;;  %7084 = vset.pattern.permute.xlu1 %v13571_v50 }
 0xbf4   : > { %7081 = vset.pattern.permute.xlu2 %v13568_v14  ;;  %5936 = vperm.xlu1 %7084, %v11372_v32   ;;  %v4747_v43 = vpop.f32.mrf.mxu2  ;;  %v4760_v2 = vpop.f32.mrf.mxu3 }
 0xbf5   : > { %5380 = vmatpush.bf16.msra.mxu0 %v11216_v31  ;;  %v5083_v31 = vpack.c.b16 %v5080_v63, %v5080_v63  ;;  %5840 = vperm.xlu2 %7081, %v11372_v32   ;;  %v4761_v1 = vadd.f32 %v4760_v2, %v4747_v43  ;;  %v13588_v43 = vld [vmem:[#allocation8_spill] sm:$0xff] }
 0xbf7   : > { %5111 = vmatmul.bf16.vlgmr.msra.gmra.mxu3 %v5083_v31  ;;  %6937 = vmatmul.msk.bf16.vlgmr.msrb.gmra.mxu0 %vm5267_vm9, %v11661_v11  ;;  %v4774_v22 = vadd.f32 %v11570_v40, %v4761_v1  ;;  %v13581_v40 = vld [vmem:[#allocation105_spill] sm:$0xff] }
 0xbf8   : > { %7091 = vset.pattern.permute.xlu0 %v13574_v19  ;;  %5174 = vmatpush.bf16.xpose.msrb.mxu3 %v11555_v47  ;;  %v13577_v47 = vmov 7  }
 0xbf9   : > { %5381 = vmatpush.bf16.msra.mxu0 %v11219_v5  ;;  %v11691_v5 = vpack.c.bf16 %v2450_v3, %v2450_v3  ;;  %6132 = vperm.xlu0 %7091, %v11637_v54   ;;  %5239 = vst [vmem:[#allocation1 + $0x1] ss:$2 sm:$0xff] %v4774_v22  ;;  %v5010_v29 = vpop.f32.mrf.mxu1 }
 0xbfa   : > { %5225 = vmatpush.bf16.xpose.msrb.mxu2 %v11521_v37  ;;  %v11776_v30 = vpop.permute.xlu2 %5477 }
 0xbfb   : > { %6942 = vmatmul.msk.bf16.vlgmr.msrb.gmra.mxu1 %vm5267_vm9, %v11691_v5 }
 0xbfc   : > { %5944 = vperm.xlu1 %7084, %v11613_v7   ;;  %v4762_v14 = vpop.f32.mrf.mxu3 }
 0xbfd   : > { %5382 = vmatpush.bf16.msra.mxu0 %v11221_v20  ;;  %v2309_v20 = vld.sshfl [vmem:[#allocation1 + $0x30] sm:$0xff pattern:$0x75316420]  ;;  %7085 = vset.pattern.permute.xlu2 %v13571_v50  ;;  %v11798_v14 = vpop.permute.xlu1 %5472 }
 0xbfe   : > { %v2329_v17 = vpack.c.bf16 %v2309_v20, %v2309_v20  ;;  %5940 = vperm.xlu2 %7085, %v11637_v54  }
 0xc00   : > { %v5185_v37 = vunpack.c.l.b16 %v2329_v17  ;;  %5175 = vmatpush.bf16.xpose.msrb.mxu3 %v11582_v16  ;;  %v11778_v3 = vld.sshfl [vmem:[#allocation1] sm:$0xff pattern:$0x75316420] }
 0xc01   : > { %5383 = vmatpush.bf16.msra.mxu0 %v11242_v27  ;;  %v2304_v27 = vld.sshfl [vmem:[#allocation1 + $0x10] sm:$0xff pattern:$0x75316420]  ;;  %7092 = vset.pattern.permute.xlu0 %v13577_v47 }
 0xc02   : > { %5226 = vmatpush.bf16.xpose.msrb.mxu2 %v11544_v45  ;;  %v2327_v21 = vpack.c.bf16 %v2304_v27, %v2304_v27  ;;  %v5188_v45 = vpack.c.b16 %v5185_v37, %v5185_v37 }
 0xc04   : > { %7088 = vset.pattern.permute.xlu1 %v13572_v36 }
 0xc05   : > { %5439 = vmatpush.bf16.msrb.mxu0 %v11480_v51  ;;  %v13575_v51 = vld [vmem:[#allocation14_spill] sm:$0xff]  ;;  %6036 = vperm.xlu1 %7088, %v11637_v54  }
 0xc06   : > { %7086 = vset.pattern.permute.xlu2 %v13572_v36 }
 0xc07   : > { %6941 = vmatmul.msk.bf16.vlgmr.msra.gmra.mxu0 %vm5267_vm9, %v11691_v5  ;;  %6028 = vperm.xlu2 %7086, %v11600_v4  }
 0xc08   : > { %5275 = vmatpush.bf16.msra.mxu3 %v13562_v56  ;;  %v13579_v56 = vld [vmem:[#allocation107_spill] sm:$0xff] }
 0xc09   : > { %5440 = vmatpush.bf16.msrb.mxu0 %v11510_v61  ;;  %v13576_v61 = vld [vmem:[#allocation70_spill] sm:$0xff] }
 0xc0a   : > { %5227 = vmatpush.bf16.xpose.msrb.mxu2 %v11562_v26  ;;  %v11721_v26 = vpop.f32.mrf.mxu0 }
 0xc0c   : > { %5276 = vmatpush.bf16.msra.mxu3 %v13563_v38  ;;  %v4749_v38 = vpop.f32.mrf.mxu2 }
 0xc0d   : > { %5441 = vmatpush.bf16.msrb.mxu0 %v11531_v49  ;;  %v5133_v49 = vunpack.c.l.b16 %v2327_v21  ;;  %7089 = vset.pattern.permute.xlu1 %v13574_v19 }
 0xc0e   : > { %6124 = vperm.xlu1 %7089, %v11600_v4  }
 0xc0f   : > { %v5136_v16 = vpack.c.b16 %v5133_v49, %v5133_v49  ;;  %6040 = vperm.xlu2 %7086, %v11613_v7  }
 0xc10   : > { %5277 = vmatpush.bf16.msra.mxu3 %v13564_v55  ;;  %v13582_v55 = vld [vmem:[#allocation104_spill] sm:$0xff] }
 0xc11   : > { %5442 = vmatpush.bf16.msrb.mxu0 %v11551_v18  ;;  %6933 = vmatmul.msk.bf16.vlgmr.msrb.gmra.mxu2 %vm3562_vm12, %v5188_v45  ;;  %v13578_v18 = vld [vmem:[#allocation69_spill] sm:$0xff]  ;;  %v5073_v15 = vpop.f32.mrf.mxu1 }
 0xc12   : > { %5347 = vmatpush.bf16.msra.mxu2 %v13575_v51  ;;  %6932 = vmatmul.msk.bf16.vlgmr.msrb.gmra.mxu3 %vm3562_vm12, %v5136_v16  ;;  %v4997_v13 = vpop.f32.mrf.mxu0  ;;  %vm5565_vm12 = vcmask 154624  }
 0xc14   : > { %5278 = vmatpush.bf16.msra.mxu3 %v13566_v12 }
 0xc16   : > { %5348 = vmatpush.bf16.msra.mxu2 %v13576_v61  ;;  %6136 = vperm.xlu1 %7089, %v11613_v7  }
 0xc17   : > { %7090 = vset.pattern.permute.xlu2 %v13574_v19  ;;  %v13586_v19 = vld [vmem:[#allocation59_spill] sm:$0xff] }
 0xc18   : > { %5301 = vmatpush.bf16.msrb.mxu3 %v13581_v40  ;;  %6128 = vperm.xlu2 %7090, %v11372_v32  }
 0xc19   : > { %v5075_v42 = vpop.f32.mrf.mxu1 }
 0xc1a   : > { %5349 = vmatpush.bf16.msra.mxu2 %v13578_v18  ;;  %v5060_v12 = vpop.f32.mrf.mxu0 }
 0xc1c   : > { %5302 = vmatpush.bf16.msrb.mxu3 %v13582_v55  ;;  %v11802_v55 = vpop.permute.xlu0 %5482 }
 0xc1e   : > { %5350 = vmatpush.bf16.msra.mxu2 %v13579_v56  ;;  %7093 = vset.pattern.permute.xlu1 %v13577_v47 }
 0xc1f   : > { %6224 = vperm.xlu1 %7093, %v11372_v32  }
 0xc20   : > { %7094 = vset.pattern.permute.xlu2 %v13577_v47 }
 0xc21   : > { %6939 = vmatmul.msk.bf16.vlgmr.msra.gmra.mxu2 %vm5267_vm9, %v11661_v11  ;;  %6228 = vperm.xlu2 %7094, %v11637_v54  }
 0xc22   : > { %5413 = vmatpush.bf16.msrb.mxu2 %v11342_v24  ;;  %v2477_v24 = vpack.c.bf16 %v2452_v23, %v2452_v23  ;;  %6934 = vmatmul.msk.bf16.vlgmr.msra.gmra.mxu3 %vm5267_vm9, %v11657_v44  ;;  %v5062_v7 = vpop.f32.mrf.mxu0 }
 0xc24   : > { %6945 = vmatmul.msk.bf16.vlgmr.msrb.gmra.mxu0 %vm5267_vm9, %v2477_v24 }
 0xc26   : > { %5414 = vmatpush.bf16.msrb.mxu2 %v11390_v53  ;;  %v13583_v53 = vld [vmem:[#allocation49_spill] sm:$0xff] }
 0xc27   : > { %5303 = vmatpush.bf16.msrb.mxu3 %v13583_v53 }
 0xc2a   : > { %5415 = vmatpush.bf16.msrb.mxu2 %v11423_v39  ;;  %v13584_v39 = vld [vmem:[#allocation82_spill] sm:$0xff] }
 0xc2b   : > { %5304 = vmatpush.bf16.msrb.mxu3 %v13584_v39 }
 0xc2e   : > { %5416 = vmatpush.bf16.msrb.mxu2 %v11448_v34  ;;  %v4884_v34 = vpop.f32.mrf.mxu2 }
 0xc2f   : > { %5367 = vmatpush.bf16.msra.mxu3 %v13551_v41  ;;  %v13585_v41 = vmov 8  }
 0xc30   : > { %7095 = vset.pattern.permute.xlu2 %v13585_v41 }
 0xc31   : > { %6943 = vmatmul.msk.bf16.vlgmr.msrb.gmra.mxu2 %vm5267_vm9, %v2477_v24  ;;  %v5125_v32 = vpop.f32.mrf.mxu0 }
 0xc32   : > { %6936 = vmatmul.msk.bf16.vlgmr.msrb.gmra.mxu3 %vm5267_vm9, %v11657_v44 }
 0xc33   : > { %5368 = vmatpush.bf16.msra.mxu3 %v13555_v25  ;;  %v11768_v25 = vpop.f32.mrf.mxu1 }
 0xc36   : > { %v4886_v48 = vpop.f32.mrf.mxu2 }
 0xc37   : > { %5369 = vmatpush.bf16.msra.mxu3 %v13557_v28  ;;  %v5009_v28 = vadd.f32 %v5008_v59, %v11721_v26  ;;  %v13587_v26 = vld [vmem:[#allocation58_spill] sm:$0xff] }
 0xc3b   : > { %5370 = vmatpush.bf16.msra.mxu3 %v11235_v8  ;;  %v4885_v8 = vadd.f32 %v4884_v34, %v11643_v10  ;;  %v5153_v44 = vpop.f32.mrf.mxu1  ;;  %v11806_v34 = vpop.permute.xlu1 %5487 }
 0xc3e   : > { %v5021_v54 = vpop.f32.mrf.mxu2 }
 0xc3f   : > { %5426 = vmatpush.bf16.msrb.mxu3 %v11351_v6  ;;  %v5022_v33 = vadd.f32 %v5021_v54, %v5009_v28  ;;  %v5127_v6 = vpop.f32.mrf.mxu0  ;;  %v11809_v54 = vpop.permute.xlu0 %5606 }
 0xc41   : > { %5243 = vst [vmem:[#allocation1 + $0x11] ss:$2 sm:$0xff] %v5022_v33 }
 0xc42   : > { %6940 = vmatmul.msk.bf16.vlgmr.msra.gmra.mxu3 %vm5267_vm9, %v11691_v5  ;;  %v11780_v5 = vpop.permute.xlu2 %5601 }
 0xc43   : > { %5427 = vmatpush.bf16.msrb.mxu3 %v11392_v52  ;;  %v4897_v52 = vpop.f32.mrf.mxu3  ;;  %v11813_v6 = vpop.permute.xlu1 %5611 }
 0xc44   : > { %v4898_v0 = vadd.f32 %v4897_v52, %v4885_v8 }
 0xc46   : > { %5241 = vst [vmem:[#allocation1 + $0x10] ss:$2 sm:$0xff] %v4898_v0 }
 0xc47   : > { %5428 = vmatpush.bf16.msrb.mxu3 %v11425_v35  ;;  %v5023_v35 = vpop.f32.mrf.mxu2 }
 0xc4a   : > { %v11785_v45 = vpop.permute.xlu2 %5616 }
 0xc4b   : > { %5429 = vmatpush.bf16.msrb.mxu3 %v11451_v57  ;;  %v4899_v11 = vpop.f32.mrf.mxu3 }
 0xc51   : > { %v5216_v58 = vpop.f32.mrf.mxu1 }
 0xc52   : > { %6944 = vmatmul.msk.bf16.vlgmr.msrb.gmra.mxu3 %vm5267_vm9, %v2477_v24  ;;  %v11792_v56 = vpop.permute.xlu2 %5652 }
 0xc54   : > { %v5203_v57 = vpop.f32.mrf.mxu0  ;;  %v5099_v50 = vpop.f32.mrf.mxu2 }
 0xc55   : > { %v5217_v24 = vadd.f32 %v5216_v58, %v5203_v57  ;;  %v11815_v57 = vpop.permute.xlu0 %5644 }
 0xc59   : > { %v5218_v60 = vpop.f32.mrf.mxu1 }
 0xc5a   : > { %v5047_v31 = vpop.f32.mrf.mxu3  ;;  %v11796_v29 = vpop.permute.xlu2 %5740 }
 0xc5b   : > { %v5061_v36 = vadd.f32 %v5060_v12, %v5047_v31 }
 0xc5c   : > { %v5205_v63 = vpop.f32.mrf.mxu0  ;;  %v5101_v9 = vpop.f32.mrf.mxu2 }
 0xc5d   : > { %v5074_v10 = vadd.f32 %v5073_v15, %v5061_v36  ;;  %v5245_v15 = vld.sshfl [vmem:[#allocation1 + $0x10] sm:$0xff pattern:$0x75316420]  ;;  %v11823_v63 = vpop.permute.xlu1 %5648  ;;  %v11828_v9 = vpop.permute.xlu0 %5744 }
 0xc5e   : > { %v5464_v58 = vpack.c.bf16 %v5245_v15, %v11778_v3 }
 0xc5f   : > { %5252 = vst [vmem:[#allocation1] ss:$2 sm:$0xff] %v5074_v10 }
 0xc62   : > { %v5049_v51 = vpop.f32.mrf.mxu3  ;;  %v11804_v39 = vpop.permute.xlu2 %5752 }
 0xc63   : > { %v5339_v27 = vpop.f32.mrf.mxu1 }
 0xc64   : > { %v5293_v20 = vpop.f32.mrf.mxu0  ;;  %v5452_v21 = vmul.f32 %v5339_v27, %v13586_v19  ;;  %v6966_v27 = vld [vmem:[%s12717_s6 + $0x8] sm:$0xff] }
 0xc65   : > { %v5449_v17 = vmul.f32 %v5293_v20, %v13586_v19  ;;  %v11837_v51 = vpop.permute.xlu0 %5844 }
 0xc67   : > { %5543 = vrot.lane.b32.xlu0 %v5449_v17, %s7373_s28  ;;  %v11832_v17 = vpop.permute.xlu1 %5656 }
 0xc6a   : > { %v11811_v33 = vpop.permute.xlu2 %5840 }
 0xc6b   : > { %v5341_v61 = vpop.f32.mrf.mxu1 }
 0xc6c   : > { %v5295_v37 = vpop.f32.mrf.mxu0 }
 0xc6f   : > { %5549 = vrot.lane.b32.xlu0 %v5452_v21, %s7373_s28 }
 0xc74   : > { %v5326_v49 = vpop.f32.mrf.mxu0 }
 0xc75   : > { %v5451_v18 = vmul.f32 %v5326_v49, %v13587_v26  ;;  %v11844_v49 = vpop.permute.xlu1 %5748 }
 0xc76   : > { %v5164_v47 = vpop.f32.mrf.mxu2 }
 0xc77   : > { %5547 = vrot.lane.b32.xlu2 %v5451_v18, %s7373_s28  ;;  %6220 = vperm.xlu0 %7092, %v11600_v4   ;;  %v5165_v7 = vadd.f32 %v5164_v47, %v11768_v25  ;;  %v11817_v25 = vpop.permute.xlu2 %5940 }
 0xc78   : > { %v5398_v59 = vpop.f32.mrf.mxu1 }
 0xc79   : > { %v5456_v2 = vmul.f32 %v5398_v59, %v13588_v43 }
 0xc7a   : > { %v5112_v16 = vpop.f32.mrf.mxu3 }
 0xc7b   : > { %v5113_v1 = vadd.f32 %v5112_v16, %v5099_v50  ;;  %5557 = vrot.lane.b32.xlu1 %v5456_v2, %s7373_s28  ;;  %v6965_v50 = vld [vmem:[%s12717_s6] sm:$0xff]  ;;  %v11847_v16 = vpop.permute.xlu0 %5932 }
 0xc7c   : > { %v5328_v46 = vpop.f32.mrf.mxu0 }
 0xc7d   : > { %v5126_v22 = vadd.f32 %v5125_v32, %v5113_v1  ;;  %v11852_v1 = vpop.permute.xlu1 %5836 }
 0xc7e   : > { %v5166_v62 = vpop.f32.mrf.mxu2 }
 0xc7f   : > { %5254 = vst [vmem:[#allocation1 + $0x1] ss:$2 sm:$0xff] %v5126_v22  ;;  %7096 = vset.pattern.permute.xlu0 %v13585_v41  ;;  %v11830_v10 = vpop.permute.xlu2 %6028 }
 0xc80   : > { %v5400_v23 = vpop.f32.mrf.mxu1 }
 0xc82   : > { %v5114_v13 = vpop.f32.mrf.mxu3 }
 0xc83   : > { %v11858_v23 = vpop.permute.xlu0 %6032 }
 0xc84   : > { %v5385_v38 = vpop.f32.mrf.mxu0 }
 0xc85   : > { %v5455_v4 = vmul.f32 %v5385_v38, %v13586_v19  ;;  %v11862_v38 = vpop.permute.xlu1 %5848 }
 0xc86   : > { %v5259_v52 = vld.sshfl [vmem:[#allocation1] sm:$0xff pattern:$0x75316420] }
 0xc87   : > { %5555 = vrot.lane.b32.xlu0 %v5455_v4, %s7373_s28  ;;  %v11840_v47 = vpop.permute.xlu2 %6040 }
 0xc8c   : > { %v5387_v12 = vpop.f32.mrf.mxu0 }
 0xc8f   : > { %v11850_v2 = vpop.permute.xlu2 %6128 }
 0xc94   : > { %v5229_v40 = vpop.f32.mrf.mxu2 }
 0xc95   : > { %v5230_v53 = vadd.f32 %v5229_v40, %v5217_v24  ;;  %v5177_v42 = vpop.f32.mrf.mxu3  ;;  %v11866_v40 = vpop.permute.xlu0 %6132 }
 0xc96   : > { %v5178_v48 = vadd.f32 %v5177_v42, %v5165_v7  ;;  %v11872_v7 = vpop.permute.xlu1 %5936 }
 0xc97   : > { %5258 = vst [vmem:[#allocation1 + $0x11] ss:$2 sm:$0xff] %v5230_v53  ;;  %v11860_v13 = vpop.permute.xlu2 %6228 }
 0xc98   : > { %5256 = vst [vmem:[#allocation1 + $0x10] ss:$2 sm:$0xff] %v5178_v48 }
 0xc9c   : > { %v5231_v32 = vpop.f32.mrf.mxu2 }
 0xc9d   : > { %v5179_v8 = vpop.f32.mrf.mxu3 }
 0xc9f   : > { %v5260_v0 = vld.sshfl [vmem:[#allocation1 + $0x10] sm:$0xff pattern:$0x75316420] }
 0xca0   : > { %v5465_v35 = vpack.c.bf16 %v5260_v0, %v5259_v52 }
 0xca1   : > { %v5444_v28 = vpop.f32.mrf.mxu0 }
 0xca2   : > { %5512 = vmatpush.bf16.msra.mxu1 %v5465_v35  ;;  %v5459_v59 = vmul.f32 %v5444_v28, %v13588_v43  ;;  %v11883_v28 = vpop.permute.xlu1 %5944 }
 0xca4   : > { %v5352_v44 = vpop.f32.mrf.mxu2 }
 0xca5   : > { %v5280_v60 = vpop.f32.mrf.mxu3  ;;  %v5453_v22 = vmul.f32 %v5352_v44, %v13588_v43 }
 0xca6   : > { %5513 = vmatpush.bf16.msra.mxu1 %v5464_v58  ;;  %v5448_v36 = vmul.f32 %v5280_v60, %v13587_v26 }
 0xca8   : > { %5541 = vrot.lane.b32.xlu2 %v5448_v36, %s7373_s28 }
 0xca9   : > { %v5446_v11 = vpop.f32.mrf.mxu0  ;;  %6954 = vmatmul.msk.bf16.vlgmr.msra.gmra.mxu1 %vm2412_vm5, %v6965_v50 }
 0xcaa   : > { %v11900_v35 = vpop.permute.xlu1 %6036 }
 0xcac   : > { %v5354_v31 = vpop.f32.mrf.mxu2 }
 0xcad   : > { %v5282_v3 = vpop.f32.mrf.mxu3 }
 0xcb2   : > { %v11911_v60 = vpop.permute.xlu1 %6124 }
 0xcb4   : > { %v5418_v20 = vpop.f32.mrf.mxu2 }
 0xcb5   : > { %v5306_v37 = vpop.f32.mrf.mxu3  ;;  %v5457_v24 = vmul.f32 %v5418_v20, %v13587_v26 }
 0xcb6   : > { %v5450_v61 = vmul.f32 %v5306_v37, %v13588_v43 }
 0xcb8   : > { %5545 = vrot.lane.b32.xlu1 %v5450_v61, %s7373_s28 }
 0xcb9   : > { %6955 = vmatmul.msk.bf16.gmra.mxu1 %vm2412_vm5, %v6966_v27 }
 0xcba   : > { %v11922_v20 = vpop.permute.xlu1 %6136 }
 0xcbc   : > { %v5420_v21 = vpop.f32.mrf.mxu2 }
 0xcbd   : > { %v5308_v18 = vpop.f32.mrf.mxu3 }
 0xcc0   : > { %5563 = vrot.lane.b32.xlu1 %v5459_v59, %s7373_s28 }
 0xcc5   : > { %v5372_v62 = vpop.f32.mrf.mxu3 }
 0xcc6   : > { %v5454_v46 = vmul.f32 %v5372_v62, %v13587_v26 }
 0xcc8   : > { %5553 = vrot.lane.b32.xlu2 %v5454_v46, %s7373_s28  ;;  %5551 = vrot.lane.b32.xlu1 %v5453_v22, %s7373_s28  ;;  %v11944_v46 = vpop.permute.xlu1 %6224 }
 0xccd   : > { %v5374_v4 = vpop.f32.mrf.mxu3 }
 0xcd0   : > { %5559 = vrot.lane.b32.xlu2 %v5457_v24, %s7373_s28 }
 0xcd1   : > { %v5548_v43 = vpop.permute.xlu2 %5547 }
 0xcd2   : > { %v11869_v12 = vsel %vm5565_vm12, 0.0, %v5548_v43 }
 0xcd3   : > { %v5758_v42 = vmul.f32 %v11828_v9, %v11869_v12  ;;  %v5662_v26 = vmul.f32 %v11823_v63, %v11869_v12  ;;  %v6046_v11 = vmul.f32 %v11858_v23, %v11869_v12  ;;  %v5950_v58 = vmul.f32 %v11872_v7, %v11869_v12 }
 0xcd4   : > { %v5854_v50 = vmul.f32 %v11811_v33, %v11869_v12  ;;  %v6142_v27 = vmul.f32 %v11850_v2, %v11869_v12 }
 0xcd5   : > { %v5431_v53 = vpop.f32.mrf.mxu3  ;;  %5785 = vrot.lane.b32.xlu1 %v5758_v42, %s7360_s23 }
 0xcd6   : > { %v5458_v15 = vmul.f32 %v5431_v53, %v13586_v19 }
 0xcd8   : > { %5561 = vrot.lane.b32.xlu0 %v5458_v15, %s7373_s28  ;;  %5689 = vrot.lane.b32.xlu2 %v5662_v26, %s7359_s22  ;;  %s6959_s28 = sshll.u32 %s13606_s18, 6 }
 0xcd9   : > { %v11881_v48 = vpop.permute.xlu0 %5543 }
 0xcdd   : > { %v5433_v32 = vpop.f32.mrf.mxu3 }
 0xce1   : > { %v11885_v19 = vpop.permute.xlu0 %5549 }
 0xce2   : > { %v11889_v8 = vsel %vm5565_vm12, %v5548_v43, %v11885_v19 }
 0xce3   : > { %v5855_v44 = vmul.f32 %v11811_v33, %v11889_v8  ;;  %v5759_v52 = vmul.f32 %v11828_v9, %v11889_v8  ;;  %v5663_v0 = vmul.f32 %v11823_v63, %v11889_v8  ;;  %v6143_v31 = vmul.f32 %v11850_v2, %v11889_v8 }
 0xce4   : > { %v6047_v36 = vmul.f32 %v11858_v23, %v11889_v8  ;;  %v5951_v3 = vmul.f32 %v11872_v7, %v11889_v8 }
 0xce5   : > { %5883 = vrot.lane.b32.xlu1 %v5855_v44, %s7362_s24  ;;  %5787 = vrot.lane.b32.xlu2 %v5759_v52, %s7360_s23 }
 0xce6   : > { %5691 = vrot.lane.b32.xlu0 %v5663_v0, %s7359_s22 }
 0xce9   : > { %v11938_v62 = vpop.permute.xlu0 %6220 }
 0xced   : > { %6073 = vrot.lane.b32.xlu1 %v6046_v11, %s7366_s26  ;;  %5977 = vrot.lane.b32.xlu2 %v5950_v58, %s7364_s25  ;;  %v5558_v15 = vpop.permute.xlu1 %5557 }
 0xcee   : > { %5881 = vrot.lane.b32.xlu0 %v5854_v50, %s7362_s24 }
 0xcf5   : > { %6171 = vrot.lane.b32.xlu1 %v6143_v31, %s7368_s16  ;;  %6075 = vrot.lane.b32.xlu2 %v6047_v36, %s7366_s26 }
 0xcf6   : > { %5979 = vrot.lane.b32.xlu0 %v5951_v3, %s7364_s25 }
 0xcf9   : > { %v11953_v43 = vpop.permute.xlu0 %5555 }
 0xcfa   : > { %v5571_v42 = vsel %vm5565_vm12, %v11953_v43, %v5558_v15 }
 0xcfb   : > { %v11965_v44 = vsel %vm5590_vm10, %v5571_v42, 0.0 }
 0xcfc   : > { %v5763_v52 = vmul.f32 %v11844_v49, %v11965_v44  ;;  %v6051_v58 = vmul.f32 %v11900_v35, %v11965_v44  ;;  %v5667_v31 = vmul.f32 %v11792_v56, %v11965_v44  ;;  %v5859_v42 = vmul.f32 %v11837_v51, %v11965_v44 }
 0xcfe   : > { %6169 = vrot.lane.b32.xlu0 %v6142_v27, %s7368_s16 }
 0xd02   : > { %v5542_v37 = vpop.permute.xlu2 %5541 }
 0xd03   : > { %v11929_v21 = vsel %vm5565_vm12, %v5542_v37, %v11881_v48  ;;  %v11932_v61 = vsel %vm5565_vm12, 0.0, %v5542_v37 }
 0xd04   : > { %v5659_v18 = vmul.f32 %v11815_v57, %v11932_v61  ;;  %v5755_v59 = vmul.f32 %v11796_v29, %v11932_v61  ;;  %v5660_v22 = vmul.f32 %v11815_v57, %v11929_v21  ;;  %v5756_v4 = vmul.f32 %v11796_v29, %v11929_v21 }
 0xd05   : > { %v5852_v24 = vmul.f32 %v11852_v1, %v11929_v21  ;;  %v5948_v53 = vmul.f32 %v11847_v16, %v11929_v21  ;;  %v5851_v26 = vmul.f32 %v11852_v1, %v11932_v61  ;;  %v6043_v32 = vmul.f32 %v11830_v10, %v11932_v61 }
 0xd06   : > { %5683 = vrot.lane.b32.xlu2 %v5659_v18, %s7359_s22  ;;  %5779 = vrot.lane.b32.xlu1 %v5755_v59, %s7360_s23  ;;  %v5947_v0 = vmul.f32 %v11847_v16, %v11932_v61  ;;  %v6140_v11 = vmul.f32 %v11911_v60, %v11929_v21  ;;  %v6044_v50 = vmul.f32 %v11830_v10, %v11929_v21 }
 0xd07   : > { %5685 = vrot.lane.b32.xlu0 %v5660_v22, %s7359_s22  ;;  %v6139_v22 = vmul.f32 %v11911_v60, %v11932_v61 }
 0xd0e   : > { %5781 = vrot.lane.b32.xlu2 %v5756_v4, %s7360_s23  ;;  %5877 = vrot.lane.b32.xlu1 %v5852_v24, %s7362_s24  ;;  %v5955_v4 = vmul.f32 %v11817_v25, %v11965_v44 }
 0xd0f   : > { %5973 = vrot.lane.b32.xlu0 %v5948_v53, %s7364_s25 }
 0xd16   : > { %5875 = vrot.lane.b32.xlu2 %v5851_v26, %s7362_s24  ;;  %6067 = vrot.lane.b32.xlu1 %v6043_v32, %s7366_s26 }
 0xd17   : > { %5795 = vrot.lane.b32.xlu0 %v5763_v52, %s7360_s23 }
 0xd1e   : > { %5971 = vrot.lane.b32.xlu2 %v5947_v0, %s7364_s25  ;;  %6165 = vrot.lane.b32.xlu1 %v6140_v11, %s7368_s16 }
 0xd1f   : > { %6083 = vrot.lane.b32.xlu0 %v6051_v58, %s7366_s26 }
 0xd22   : > { %v5554_v3 = vpop.permute.xlu2 %5553 }
 0xd26   : > { %v5515_v36 = vpop.f32.mrf.mxu1  ;;  %6069 = vrot.lane.b32.xlu2 %v6044_v50, %s7366_s26  ;;  %5699 = vrot.lane.b32.xlu1 %v5667_v31, %s7359_s22 }
 0xd27   : > { %v5516_v27 = vadd.f32 %v5515_v36, %v11798_v14 }
 0xd29   : > { %5525 = vst.msk [vmem:[%s11990_s27] sm:$0xff] %vm5267_vm9, %v5516_v27 }
 0xd2a   : > { %v5546_v37 = vpop.permute.xlu1 %5545 }
 0xd2b   : > { %v5567_v18 = vsel %vm5565_vm12, %v11881_v48, %v5546_v37  ;;  %v12012_v48 = vpop.permute.xlu2 %5559 }
 0xd2c   : > { %v12000_v59 = vsel %vm5590_vm10, %v5567_v18, 0.0 }
 0xd2d   : > { %v5757_v53 = vmul.f32 %v11796_v29, %v12000_v59  ;;  %v5661_v29 = vmul.f32 %v11815_v57, %v12000_v59  ;;  %v6045_v32 = vmul.f32 %v11830_v10, %v12000_v59  ;;  %v6147_v10 = vmul.f32 %v11866_v40, %v11965_v44 }
 0xd2e   : > { %v5517_v24 = vpop.f32.mrf.mxu1  ;;  %6163 = vrot.lane.b32.xlu2 %v6139_v22, %s7368_s16  ;;  %5987 = vrot.lane.b32.xlu1 %v5955_v4, %s7364_s25  ;;  %v5949_v58 = vmul.f32 %v11847_v16, %v12000_v59  ;;  %v5853_v36 = vmul.f32 %v11852_v1, %v12000_v59  ;;  %v6141_v27 = vmul.f32 %v11911_v60, %v12000_v59 }
 0xd2f   : > { %v5518_v14 = vadd.f32 %v5517_v24, %v11776_v30  ;;  %5783 = vrot.lane.b32.xlu0 %v5757_v53, %s7360_s23 }
 0xd31   : > { %5526 = vst.msk [vmem:[%s11990_s27 + $0x8] sm:$0xff] %vm5267_vm9, %v5518_v14 }
 0xd32   : > { %v12016_v15 = vpop.permute.xlu1 %5563 }
 0xd33   : > { %v12030_v52 = vpop.permute.xlu2 %5689 }
 0xd36   : > { %v5520_v26 = vpop.f32.mrf.mxu1  ;;  %5891 = vrot.lane.b32.xlu2 %v5859_v42, %s7362_s24  ;;  %5687 = vrot.lane.b32.xlu1 %v5661_v29, %s7359_s22 }
 0xd37   : > { %v5521_v30 = vadd.f32 %v5520_v26, %v11802_v55  ;;  %6071 = vrot.lane.b32.xlu0 %v6045_v32, %s7366_s26 }
 0xd39   : > { %5527 = vst.msk [vmem:[%s11990_s27 + $0x10] sm:$0xff] %vm5267_vm9, %v5521_v30 }
 0xd3a   : > { %v5552_v0 = vpop.permute.xlu1 %5551 }
 0xd3b   : > { %v5569_v57 = vsel %vm5565_vm12, %v11885_v19, %v5552_v0  ;;  %v12123_v0 = vsel %vm5565_vm12, 0.0, %v12012_v48 }
 0xd3c   : > { %v12035_v11 = vsel %vm5590_vm10, %v5569_v57, 0.0 }
 0xd3d   : > { %v5760_v50 = vmul.f32 %v11828_v9, %v12035_v11  ;;  %v5664_v16 = vmul.f32 %v11823_v63, %v12035_v11  ;;  %v6048_v9 = vmul.f32 %v11858_v23, %v12035_v11  ;;  %v5952_v1 = vmul.f32 %v11872_v7, %v12035_v11 }
 0xd3e   : > { %v5522_v55 = vpop.f32.mrf.mxu1  ;;  %6179 = vrot.lane.b32.xlu2 %v6147_v10, %s7368_s16  ;;  %5975 = vrot.lane.b32.xlu1 %v5949_v58, %s7364_s25  ;;  %v5856_v7 = vmul.f32 %v11811_v33, %v12035_v11  ;;  %v6144_v33 = vmul.f32 %v11850_v2, %v12035_v11  ;;  %v5860_v58 = vmul.f32 %v11862_v38, %v12123_v0 }
 0xd3f   : > { %v5523_v31 = vadd.f32 %v5522_v55, %v11806_v34  ;;  %5789 = vrot.lane.b32.xlu0 %v5760_v50, %s7360_s23  ;;  %v12049_v19 = vpop.permute.xlu2 %5787  ;;  %v12062_v34 = vsel %vm5565_vm12, %v5554_v3, %v11953_v43  ;;  %v12076_v43 = vsel %vm5565_vm12, 0.0, %v5554_v3 }
 0xd40   : > { %v5666_v63 = vmul.f32 %v11792_v56, %v12062_v34  ;;  %v5761_v18 = vmul.f32 %v11844_v49, %v12076_v43  ;;  %v5857_v22 = vmul.f32 %v11837_v51, %v12076_v43  ;;  %v5858_v53 = vmul.f32 %v11837_v51, %v12062_v34 }
 0xd41   : > { %5528 = vst.msk [vmem:[%s11990_s27 + $0x18] sm:$0xff] %vm5267_vm9, %v5523_v31  ;;  %v5954_v14 = vmul.f32 %v11817_v25, %v12062_v34  ;;  %v5665_v26 = vmul.f32 %v11792_v56, %v12076_v43  ;;  %v6049_v2 = vmul.f32 %v11900_v35, %v12076_v43  ;;  %v6145_v51 = vmul.f32 %v11866_v40, %v12076_v43  ;;  %s7382_s27 = smov 100  }
 0xd42   : > { %v5762_v57 = vmul.f32 %v11844_v49, %v12062_v34  ;;  %v6146_v10 = vmul.f32 %v11866_v40, %v12062_v34  ;;  %v5953_v49 = vmul.f32 %v11817_v25, %v12076_v43  ;;  %v5764_v40 = vmul.f32 %v11804_v39, %v12123_v0 }
 0xd43   : > { %v5619_v25 = vmul.f32 %v11780_v5, %v11932_v61 }
 0xd46   : > { %5879 = vrot.lane.b32.xlu2 %v5853_v36, %s7362_s24  ;;  %5693 = vrot.lane.b32.xlu1 %v5664_v16, %s7359_s22  ;;  %v6148_v36 = vmul.f32 %v11922_v20, %v12123_v0 }
 0xd47   : > { %6077 = vrot.lane.b32.xlu0 %v6048_v9, %s7366_s26  ;;  %v12070_v23 = vpop.permute.xlu2 %5977  ;;  %v12080_v60 = vpop.permute.xlu1 %5785 }
 0xd4a   : > { %v12078_v37 = vpop.permute.xlu0 %5561 }
 0xd4e   : > { %6167 = vrot.lane.b32.xlu2 %v6141_v27, %s7368_s16  ;;  %5981 = vrot.lane.b32.xlu1 %v5952_v1, %s7364_s25  ;;  %v12152_v27 = vsel %vm5565_vm12, %v12012_v48, %v12078_v37 }
 0xd4f   : > { %5697 = vrot.lane.b32.xlu0 %v5666_v63, %s7359_s22  ;;  %v12091_v3 = vpop.permute.xlu2 %6075  ;;  %v6050_v63 = vmul.f32 %v11900_v35, %v12062_v34 }
 0xd56   : > { %5885 = vrot.lane.b32.xlu2 %v5856_v7, %s7362_s24  ;;  %5791 = vrot.lane.b32.xlu1 %v5761_v18, %s7360_s23  ;;  %v6052_v7 = vmul.f32 %v11840_v47, %v12123_v0 }
 0xd57   : > { %5887 = vrot.lane.b32.xlu0 %v5857_v22, %s7362_s24  ;;  %v12093_v4 = vpop.permute.xlu1 %5883  ;;  %v5669_v22 = vmul.f32 %v11832_v17, %v12152_v27 }
 0xd58   : > { %v12095_v24 = vpop.permute.xlu0 %5691 }
 0xd5e   : > { %6173 = vrot.lane.b32.xlu2 %v6144_v33, %s7368_s16  ;;  %5889 = vrot.lane.b32.xlu1 %v5858_v53, %s7362_s24 }
 0xd5f   : > { %5985 = vrot.lane.b32.xlu0 %v5954_v14, %s7364_s25  ;;  %v12114_v32 = vpop.permute.xlu1 %6073 }
 0xd60   : > { %v5684_v42 = vpop.permute.xlu2 %5683  ;;  %v12106_v29 = vpop.permute.xlu0 %5881 }
 0xd66   : > { %5695 = vrot.lane.b32.xlu2 %v5665_v26, %s7359_s22  ;;  %6079 = vrot.lane.b32.xlu1 %v6049_v2, %s7366_s26 }
 0xd67   : > { %6175 = vrot.lane.b32.xlu0 %v6145_v51, %s7368_s16  ;;  %v12136_v55 = vpop.permute.xlu1 %6171  ;;  %v5668_v51 = vmul.f32 %v11832_v17, %v12123_v0 }
 0xd68   : > { %v12119_v30 = vpop.permute.xlu2 %5781  ;;  %v12125_v56 = vpop.permute.xlu0 %5979 }
 0xd6e   : > { %5793 = vrot.lane.b32.xlu2 %v5762_v57, %s7360_s23  ;;  %6177 = vrot.lane.b32.xlu1 %v6146_v10, %s7368_s16  ;;  %v5861_v57 = vmul.f32 %v11862_v38, %v12152_v27 }
 0xd6f   : > { %5893 = vrot.lane.b32.xlu0 %v5860_v58, %s7362_s24  ;;  %v5957_v58 = vmul.f32 %v11883_v28, %v12152_v27 }
 0xd70   : > { %v5876_v50 = vpop.permute.xlu2 %5875  ;;  %v12138_v31 = vpop.permute.xlu0 %6169 }
 0xd71   : > { %13589 = vst [vmem:[#allocation98_spill] sm:$0xff] %v12138_v31 }
 0xd76   : > { %5983 = vrot.lane.b32.xlu2 %v5953_v49, %s7364_s25  ;;  %5797 = vrot.lane.b32.xlu1 %v5764_v40, %s7360_s23  ;;  %v5573_v49 = vsel %vm5565_vm12, %v12078_v37, %v12016_v15  ;;  %vm6507_vm12 = vcmask 932864  }
 0xd77   : > { %6181 = vrot.lane.b32.xlu0 %v6148_v36, %s7368_s16 }
 0xd78   : > { %v5972_v16 = vpop.permute.xlu2 %5971  ;;  %v5780_v9 = vpop.permute.xlu1 %5779 }
 0xd79   : > { %v12156_v1 = vpop.permute.xlu0 %5685  ;;  %v5803_v48 = vsel %vm786_vm3, %v5780_v9, %v12119_v30  ;;  %v5956_v9 = vmul.f32 %v11883_v28, %v12123_v0 }
 0xd7a   : > { %v5707_v18 = vsel %vm593_vm2, %v5684_v42, %v12156_v1 }
 0xd7b   : > { %v5727_v33 = vadd.f32 %v5707_v18, %v5619_v25  ;;  %v6149_v25 = vmul.f32 %v11922_v20, %v12152_v27  ;;  %v5765_v18 = vmul.f32 %v11804_v39, %v12152_v27 }
 0xd7d   : > { %v5823_v35 = vadd.f32 %v5803_v48, %v5727_v33  ;;  %v5627_v48 = vmul.f32 %v11813_v6, %v11965_v44 }
 0xd7e   : > { %6081 = vrot.lane.b32.xlu2 %v6050_v63, %s7366_s26  ;;  %6085 = vrot.lane.b32.xlu1 %v6052_v7, %s7366_s26 }
 0xd7f   : > { %5703 = vrot.lane.b32.xlu0 %v5669_v22, %s7359_s22 }
 0xd80   : > { %v12171_v53 = vpop.permute.xlu2 %6069  ;;  %v12173_v14 = vpop.permute.xlu1 %5877 }
 0xd81   : > { %v5899_v42 = vsel %vm979_vm4, %v5876_v50, %v12173_v14  ;;  %v12177_v2 = vpop.permute.xlu0 %5973 }
 0xd82   : > { %v5919_v26 = vadd.f32 %v5899_v42, %v5823_v35  ;;  %v5995_v10 = vsel %vm1172_vm0, %v5972_v16, %v12177_v2  ;;  %v12200_v16 = vsel %vm5590_vm10, %v5573_v49, 0.0 }
 0xd83   : > { %v5766_v63 = vmul.f32 %v11804_v39, %v12200_v16  ;;  %v5670_v22 = vmul.f32 %v11832_v17, %v12200_v16  ;;  %v6054_v33 = vmul.f32 %v11840_v47, %v12200_v16 }
 0xd84   : > { %v12189_v50 = vadd.f32 %v5995_v10, %v5919_v26 }
 0xd86   : > { %5701 = vrot.lane.b32.xlu2 %v5668_v51, %s7359_s22  ;;  %5895 = vrot.lane.b32.xlu1 %v5861_v57, %s7362_s24  ;;  %v6053_v51 = vmul.f32 %v11840_v47, %v12152_v27  ;;  %v5958_v57 = vmul.f32 %v11883_v28, %v12200_v16  ;;  %v5862_v28 = vmul.f32 %v11862_v38, %v12200_v16 }
 0xd87   : > { %5991 = vrot.lane.b32.xlu0 %v5957_v58, %s7364_s25  ;;  %v7344_v58 = vld [vmem:[%s12719_s8 + $0x8] sm:$0xff] }
 0xd88   : > { %v12195_v40 = vpop.permute.xlu2 %6163  ;;  %v12197_v36 = vpop.permute.xlu1 %6067 }
 0xd89   : > { %v12210_v15 = vpop.permute.xlu0 %5795 }
 0xd8e   : > { %5989 = vrot.lane.b32.xlu2 %v5956_v9, %s7364_s25  ;;  %6183 = vrot.lane.b32.xlu1 %v6149_v25, %s7368_s16 }
 0xd8f   : > { %5801 = vrot.lane.b32.xlu0 %v5766_v63, %s7360_s23 }
 0xd90   : > { %v12213_v37 = vpop.permute.xlu2 %5891  ;;  %v12215_v7 = vpop.permute.xlu1 %6165 }
 0xd91   : > { %v12232_v39 = vpop.permute.xlu0 %6083 }
 0xd96   : > { %5799 = vrot.lane.b32.xlu2 %v5765_v18, %s7360_s23  ;;  %5705 = vrot.lane.b32.xlu1 %v5670_v22, %s7359_s22  ;;  %v6237_v18 = vmul.f32 %v11938_v62, %v12000_v59  ;;  %v7345_v22 = vld [vmem:[%s12719_s8 + $0x18] sm:$0xff]  ;;  %s7383_s22 = smov 116  }
 0xd97   : > { %6089 = vrot.lane.b32.xlu0 %v6054_v33, %s7366_s26  ;;  %v5621_v33 = vmul.f32 %v11780_v5, %v12000_v59 }
 0xd98   : > { %v12228_v35 = vpop.permute.xlu2 %6179  ;;  %v12230_v42 = vpop.permute.xlu1 %5699 }
 0xd99   : > { %v5735_v17 = vadd.f32 %v12230_v42, %v5627_v48 }
 0xd9b   : > { %v5831_v26 = vadd.f32 %v12210_v15, %v5735_v17  ;;  %v5620_v17 = vmul.f32 %v11780_v5, %v11929_v21  ;;  %v6240_v5 = vmul.f32 %v11944_v46, %v12035_v11 }
 0xd9d   : > { %v5927_v10 = vadd.f32 %v12213_v37, %v5831_v26 }
 0xd9e   : > { %6087 = vrot.lane.b32.xlu2 %v6053_v51, %s7366_s26  ;;  %5993 = vrot.lane.b32.xlu1 %v5958_v57, %s7364_s25  ;;  %s7385_s25 = smov 98  }
 0xd9f   : > { %6320 = vperm.xlu0 %7096, %v7344_v58  }
 0xda0   : > { %v5880_v49 = vpop.permute.xlu2 %5879  ;;  %v12246_v9 = vpop.permute.xlu1 %5987 }
 0xda1   : > { %v6023_v25 = vadd.f32 %v12246_v9, %v5927_v10  ;;  %v5784_v47 = vpop.permute.xlu0 %5783 }
 0xda2   : > { %v5804_v58 = vsel %vm786_vm3, %v12119_v30, %v5784_v47  ;;  %v7346_v30 = vld [vmem:[%s12719_s8 + $0x10] sm:$0xff] }
 0xda3   : > { %v12250_v63 = vadd.f32 %v12232_v39, %v6023_v25 }
 0xda5   : > { %13590 = vst [vmem:[#allocation97_spill] sm:$0xff] %v12250_v63  ;;  %v5900_v63 = vsel %vm979_vm4, %v12173_v14, %v5880_v49 }
 0xda6   : > { %5897 = vrot.lane.b32.xlu2 %v5862_v28, %s7362_s24  ;;  %6232 = vperm.xlu1 %7093, %v7345_v22  }
 0xda7   : > { %6263 = vrot.lane.b32.xlu0 %v6237_v18, %s7370_s14  ;;  %v6150_v18 = vmul.f32 %v11922_v20, %v12200_v16 }
 0xda8   : > { %v6168_v48 = vpop.permute.xlu2 %6167  ;;  %v5688_v38 = vpop.permute.xlu1 %5687 }
 0xda9   : > { %v5708_v26 = vsel %vm593_vm2, %v12156_v1, %v5688_v38  ;;  %v5729_v51 = vadd.f32 %v5688_v38, %v5621_v33  ;;  %v6072_v57 = vpop.permute.xlu0 %6071 }
 0xdaa   : > { %v5728_v10 = vadd.f32 %v5708_v26, %v5620_v17  ;;  %v6092_v38 = vsel %vm1365_vm1, %v12171_v53, %v6072_v57  ;;  %v6243_v26 = vmul.f32 %v11860_v13, %v11965_v44 }
 0xdab   : > { %v5825_v25 = vadd.f32 %v5784_v47, %v5729_v51  ;;  %v6235_v51 = vmul.f32 %v11938_v62, %v11932_v61 }
 0xdac   : > { %v5824_v28 = vadd.f32 %v5804_v58, %v5728_v10  ;;  %v7347_v10 = vld [vmem:[%s12719_s8] sm:$0xff] }
 0xdad   : > { %v5921_v31 = vadd.f32 %v5880_v49, %v5825_v25 }
 0xdae   : > { %6185 = vrot.lane.b32.xlu2 %v6150_v18, %s7368_s16  ;;  %7097 = vset.pattern.permute.xlu1 %v13585_v41  ;;  %v5920_v1 = vadd.f32 %v5900_v63, %v5824_v28  ;;  %s12667_s16 = scalar_lea.vmem %s12721_s10, %s6959_s28 }
 0xdaf   : > { %6269 = vrot.lane.b32.xlu0 %v6240_v5, %s7370_s14  ;;  %6324 = vperm.xlu1 %7097, %v7346_v30  }
 0xdb0   : > { %v5886_v20 = vpop.permute.xlu2 %5885  ;;  %v5976_v47 = vpop.permute.xlu1 %5975 }
 0xdb1   : > { %v5996_v14 = vsel %vm1172_vm0, %v12177_v2, %v5976_v47  ;;  %v6017_v33 = vadd.f32 %v5976_v47, %v5921_v31  ;;  %v5790_v17 = vpop.permute.xlu0 %5789  ;;  %v5624_v31 = vmul.f32 %v11809_v54, %v12035_v11 }
 0xdb2   : > { %v6016_v49 = vadd.f32 %v5996_v14, %v5920_v1  ;;  %v5806_v1 = vsel %vm786_vm3, %v12049_v19, %v5790_v17  ;;  %v6238_v14 = vmul.f32 %v11944_v46, %v11869_v12 }
 0xdb3   : > { %v6113_v41 = vadd.f32 %v6072_v57, %v6017_v33  ;;  %v5623_v57 = vmul.f32 %v11809_v54, %v11889_v8  ;;  %v5902_v33 = vsel %vm979_vm4, %v12093_v4, %v5886_v20 }
 0xdb4   : > { %v6112_v63 = vadd.f32 %v6092_v38, %v6016_v49 }
 0xdb6   : > { %6316 = vperm.xlu2 %7095, %v7347_v10   ;;  %v6188_v10 = vsel %vm1558_vm6, %v12215_v7, %v6168_v48 }
 0xdb7   : > { %6275 = vrot.lane.b32.xlu0 %v6243_v26, %s7370_s14  ;;  %6259 = vrot.lane.b32.xlu1 %v6235_v51, %s7370_s14 }
 0xdb8   : > { %v6174_v2 = vpop.permute.xlu2 %6173  ;;  %v5694_v58 = vpop.permute.xlu1 %5693 }
 0xdb9   : > { %v5710_v25 = vsel %vm593_vm2, %v12095_v24, %v5694_v58  ;;  %v5732_v28 = vadd.f32 %v5694_v58, %v5624_v31  ;;  %v6078_v18 = vpop.permute.xlu0 %6077  ;;  %v12311_v58 = vadd.f32 %v6168_v48, %v6113_v41  ;;  %v6241_v48 = vmul.f32 %v11860_v13, %v12076_v43 }
 0xdba   : > { %v5731_v5 = vadd.f32 %v5710_v25, %v5623_v57  ;;  %v5625_v41 = vmul.f32 %v11813_v6, %v12076_v43 }
 0xdbb   : > { %v5828_v30 = vadd.f32 %v5790_v17, %v5732_v28 }
 0xdbc   : > { %v5827_v47 = vadd.f32 %v5806_v1, %v5731_v5  ;;  %v6094_v5 = vsel %vm1365_vm1, %v12091_v3, %v6078_v18 }
 0xdbd   : > { %v5924_v49 = vadd.f32 %v5886_v20, %v5828_v30  ;;  %v12316_v20 = vadd.f32 %v6188_v10, %v6112_v63  ;;  %v6239_v10 = vmul.f32 %v11944_v46, %v11889_v8 }
 0xdbe   : > { %6328 = vperm.xlu2 %7095, %v7345_v22   ;;  %v5923_v38 = vadd.f32 %v5902_v33, %v5827_v47  ;;  %v6236_v47 = vmul.f32 %v11938_v62, %v11929_v21 }
 0xdbf   : > { %6265 = vrot.lane.b32.xlu1 %v6238_v14, %s7370_s14  ;;  %v5626_v14 = vmul.f32 %v11813_v6, %v12062_v34 }
 0xdc0   : > { %v5696_v26 = vpop.permute.xlu2 %5695  ;;  %v5982_v51 = vpop.permute.xlu1 %5981 }
 0xdc1   : > { %v5998_v17 = vsel %vm1172_vm0, %v12125_v56, %v5982_v51  ;;  %v6020_v31 = vadd.f32 %v5982_v51, %v5924_v49  ;;  %v5698_v57 = vpop.permute.xlu0 %5697 }
 0xdc2   : > { %v6019_v25 = vadd.f32 %v5998_v17, %v5923_v38  ;;  %v5711_v28 = vsel %vm593_vm2, %v5696_v26, %v5698_v57  ;;  %v5712_v22 = vsel %vm593_vm2, %v5698_v57, %v12230_v42 }
 0xdc3   : > { %v6116_v1 = vadd.f32 %v6078_v18, %v6020_v31  ;;  %v5733_v42 = vadd.f32 %v5711_v28, %v5625_v41  ;;  %v5734_v63 = vadd.f32 %v5712_v22, %v5626_v14  ;;  %v6190_v31 = vsel %vm1558_vm6, %v12136_v55, %v6174_v2 }
 0xdc4   : > { %v6115_v30 = vadd.f32 %v6094_v5, %v6019_v25 }
 0xdc5   : > { %v12341_v28 = vadd.f32 %v6174_v2, %v6116_v1 }
 0xdc6   : > { %6261 = vrot.lane.b32.xlu2 %v6236_v47, %s7370_s14 }
 0xdc7   : > { %6271 = vrot.lane.b32.xlu1 %v6241_v48, %s7370_s14  ;;  %v12346_v48 = vadd.f32 %v6190_v31, %v6115_v30 }
 0xdc8   : > { %v5794_v18 = vpop.permute.xlu2 %5793  ;;  %v5792_v33 = vpop.permute.xlu1 %5791 }
 0xdc9   : > { %v5808_v62 = vsel %vm786_vm3, %v5794_v18, %v12210_v15  ;;  %v5807_v49 = vsel %vm786_vm3, %v5792_v33, %v5794_v18  ;;  %v5888_v38 = vpop.permute.xlu0 %5887 }
 0xdca   : > { %v5830_v26 = vadd.f32 %v5808_v62, %v5734_v63  ;;  %v5829_v51 = vadd.f32 %v5807_v49, %v5733_v42  ;;  %v6242_v42 = vmul.f32 %v11860_v13, %v12062_v34 }
 0xdce   : > { %6267 = vrot.lane.b32.xlu2 %v6239_v10, %s7370_s14 }
 0xdd0   : > { %v5984_v6 = vpop.permute.xlu2 %5983  ;;  %v5890_v17 = vpop.permute.xlu1 %5889 }
 0xdd1   : > { %v5903_v57 = vsel %vm979_vm4, %v5888_v38, %v5890_v17  ;;  %v5904_v15 = vsel %vm979_vm4, %v5890_v17, %v12213_v37  ;;  %v5986_v25 = vpop.permute.xlu0 %5985 }
 0xdd2   : > { %v5925_v22 = vadd.f32 %v5903_v57, %v5829_v51  ;;  %v5926_v5 = vadd.f32 %v5904_v15, %v5830_v26  ;;  %v5999_v47 = vsel %vm1172_vm0, %v5984_v6, %v5986_v25  ;;  %v6000_v46 = vsel %vm1172_vm0, %v5986_v25, %v12246_v9 }
 0xdd3   : > { %v5628_v15 = vmul.f32 %v11785_v45, %v12123_v0 }
 0xdd4   : > { %v6021_v41 = vadd.f32 %v5999_v47, %v5925_v22  ;;  %v6022_v14 = vadd.f32 %v6000_v46, %v5926_v5 }
 0xdd6   : > { %6273 = vrot.lane.b32.xlu2 %v6242_v42, %s7370_s14 }
 0xdd8   : > { %v6082_v37 = vpop.permute.xlu2 %6081  ;;  %v6080_v63 = vpop.permute.xlu1 %6079 }
 0xdd9   : > { %v6096_v2 = vsel %vm1365_vm1, %v6082_v37, %v12232_v39  ;;  %v6095_v1 = vsel %vm1365_vm1, %v6080_v63, %v6082_v37  ;;  %v6176_v18 = vpop.permute.xlu0 %6175 }
 0xdda   : > { %v6118_v33 = vadd.f32 %v6096_v2, %v6022_v14  ;;  %v6117_v62 = vadd.f32 %v6095_v1, %v6021_v41 }
 0xde0   : > { %v5702_v9 = vpop.permute.xlu2 %5701  ;;  %v6178_v30 = vpop.permute.xlu1 %6177 }
 0xde1   : > { %v6191_v49 = vsel %vm1558_vm6, %v6176_v18, %v6178_v30  ;;  %v6192_v38 = vsel %vm1558_vm6, %v6178_v30, %v12228_v35  ;;  %v5894_v13 = vpop.permute.xlu0 %5893 }
 0xde2   : > { %v12357_v26 = vadd.f32 %v6191_v49, %v6117_v62  ;;  %v12359_v51 = vadd.f32 %v6192_v38, %v6118_v33 }
 0xde4   : > { %13591 = vst [vmem:[#allocation113_spill] sm:$0xff] %v12359_v51 }
 0xde8   : > { %v5990_v10 = vpop.permute.xlu2 %5989  ;;  %v5798_v6 = vpop.permute.xlu1 %5797 }
 0xde9   : > { %v6182_v39 = vpop.permute.xlu0 %6181 }
 0xdf0   : > { %v5800_v17 = vpop.permute.xlu2 %5799  ;;  %v6086_v31 = vpop.permute.xlu1 %6085 }
 0xdf1   : > { %v5809_v57 = vsel %vm786_vm3, %v5798_v6, %v5800_v17  ;;  %v5704_v25 = vpop.permute.xlu0 %5703 }
 0xdf2   : > { %v5713_v22 = vsel %vm593_vm2, %v5702_v9, %v5704_v25 }
 0xdf3   : > { %v5736_v5 = vadd.f32 %v5713_v22, %v5628_v15 }
 0xdf5   : > { %v5832_v47 = vadd.f32 %v5809_v57, %v5736_v5 }
 0xdf8   : > { %v6088_v46 = vpop.permute.xlu2 %6087  ;;  %v5896_v41 = vpop.permute.xlu1 %5895 }
 0xdf9   : > { %v6097_v14 = vsel %vm1365_vm1, %v6086_v31, %v6088_v46  ;;  %v5905_v42 = vsel %vm979_vm4, %v5894_v13, %v5896_v41  ;;  %v5992_v37 = vpop.permute.xlu0 %5991  ;;  %v5630_v13 = vmul.f32 %v11785_v45, %v12200_v16 }
 0xdfa   : > { %v5928_v63 = vadd.f32 %v5905_v42, %v5832_v47  ;;  %v6001_v2 = vsel %vm1172_vm0, %v5990_v10, %v5992_v37  ;;  %v5629_v10 = vmul.f32 %v11785_v45, %v12152_v27 }
 0xdfc   : > { %v6024_v1 = vadd.f32 %v6001_v2, %v5928_v63 }
 0xdfe   : > { %v6120_v18 = vadd.f32 %v6097_v14, %v6024_v1 }
 0xe00   : > { %v5898_v33 = vpop.permute.xlu2 %5897  ;;  %v6184_v62 = vpop.permute.xlu1 %6183 }
 0xe01   : > { %v5906_v30 = vsel %vm979_vm4, %v5896_v41, %v5898_v33  ;;  %v6193_v9 = vsel %vm1558_vm6, %v6182_v39, %v6184_v62  ;;  %v5802_v49 = vpop.permute.xlu0 %5801 }
 0xe02   : > { %v12370_v38 = vadd.f32 %v6193_v9, %v6120_v18  ;;  %v5810_v6 = vsel %vm786_vm3, %v5800_v17, %v5802_v49 }
 0xe04   : > { %13592 = vst [vmem:[#allocation56_spill] sm:$0xff] %v12370_v38 }
 0xe08   : > { %v6186_v31 = vpop.permute.xlu2 %6185  ;;  %v5706_v57 = vpop.permute.xlu1 %5705 }
 0xe09   : > { %v6194_v15 = vsel %vm1558_vm6, %v6184_v62, %v6186_v31  ;;  %v5714_v22 = vsel %vm593_vm2, %v5704_v25, %v5706_v57  ;;  %v5738_v5 = vadd.f32 %v5706_v57, %v5630_v13  ;;  %v6090_v47 = vpop.permute.xlu0 %6089 }
 0xe0a   : > { %v5737_v39 = vadd.f32 %v5714_v22, %v5629_v10  ;;  %v6098_v41 = vsel %vm1365_vm1, %v6088_v46, %v6090_v47 }
 0xe0b   : > { %v5834_v14 = vadd.f32 %v5802_v49, %v5738_v5 }
 0xe0c   : > { %v5833_v42 = vadd.f32 %v5810_v6, %v5737_v39 }
 0xe0d   : > { %v5930_v17 = vadd.f32 %v5898_v33, %v5834_v14 }
 0xe0e   : > { %v5929_v63 = vadd.f32 %v5906_v30, %v5833_v42 }
 0xe10   : > { %v5994_v2 = vpop.permute.xlu1 %5993 }
 0xe11   : > { %v6002_v1 = vsel %vm1172_vm0, %v5992_v37, %v5994_v2  ;;  %v6321_v18 = vpop.permute.xlu0 %6320  ;;  %v6026_v45 = vadd.f32 %v5994_v2, %v5930_v17  ;;  %v6317_v37 = vpop.permute.xlu2 %6316  ;;  %v6091_v2 = vsel %vm1365_vm1, %v12197_v36, %v12171_v53  ;;  %v5997_v36 = vsel %vm1172_vm0, %v12070_v23, %v12125_v56 }
 0xe12   : > { %v6025_v9 = vadd.f32 %v6002_v1, %v5929_v63  ;;  %v6331_v30 = vmul.f32 %v6317_v37, %v11932_v61  ;;  %v6332_v57 = vmul.f32 %v6317_v37, %v11929_v21  ;;  %v6333_v22 = vmul.f32 %v6317_v37, %v12000_v59 }
 0xe13   : > { %v6122_v51 = vadd.f32 %v6090_v47, %v6026_v45  ;;  %v6334_v61 = vmul.f32 %v6321_v18, %v11869_v12  ;;  %v6336_v21 = vmul.f32 %v6321_v18, %v12035_v11  ;;  %v6093_v56 = vsel %vm1365_vm1, %v12114_v32, %v12091_v3 }
 0xe14   : > { %v6121_v38 = vadd.f32 %v6098_v41, %v6025_v9  ;;  %v5805_v9 = vsel %vm786_vm3, %v12080_v60, %v12049_v19 }
 0xe15   : > { %v6218_v6 = vadd.f32 %v6186_v31, %v6122_v51  ;;  %v6335_v51 = vmul.f32 %v6321_v18, %v11889_v8 }
 0xe16   : > { %v12403_v5 = vadd.f32 %v6194_v15, %v6121_v38 }
 0xe18   : > { %v6233_v62 = vpop.permute.xlu1 %6232 }
 0xe19   : > { %v6244_v25 = vmul.f32 %v6233_v62, %v12123_v0  ;;  %v12382_v13 = vpop.permute.xlu0 %6263  ;;  %v6245_v10 = vmul.f32 %v6233_v62, %v12152_v27  ;;  %v6246_v46 = vmul.f32 %v6233_v62, %v12200_v16  ;;  %v6329_v8 = vpop.permute.xlu2 %6328 }
 0xe1a   : > { %v12388_v33 = vadd.f32 %v12382_v13, %v12311_v58  ;;  %v6340_v11 = vmul.f32 %v6329_v8, %v12123_v0  ;;  %v6341_v15 = vmul.f32 %v6329_v8, %v12152_v27  ;;  %v6342_v47 = vmul.f32 %v6329_v8, %v12200_v16 }
 0xe1b   : > { %6277 = vrot.lane.b32.xlu1 %v6244_v25, %s7370_s14  ;;  %6281 = vrot.lane.b32.xlu0 %v6246_v46, %s7370_s14  ;;  %v5709_v27 = vsel %vm593_vm2, %v12030_v52, %v12095_v24  ;;  %v5622_v16 = vmul.f32 %v11809_v54, %v11869_v12  ;;  %v5901_v54 = vsel %vm979_vm4, %v12106_v29, %v12093_v4  ;;  %vm13593_vm2 = vcmask 736256  }
 0xe1c   : > { %6279 = vrot.lane.b32.xlu2 %v6245_v10, %s7370_s14  ;;  %v6187_v12 = vsel %vm1558_vm6, %v12195_v40, %v12215_v7  ;;  %v6111_v24 = vadd.f32 %v6091_v2, %v12189_v50  ;;  %vm13594_vm3 = vmmov %vm13593_vm2  ;;  %s7374_s14 = smov 124   ;;  %v13603_v2 = vld [vmem:[#allocation56_spill] sm:$0xff] }
 0xe1d   : > { %v5730_v17 = vadd.f32 %v5709_v27, %v5622_v16  ;;  %vm13596_vm0 = vmmov %vm13593_vm2 }
 0xe1e   : > { %v6207_v19 = vadd.f32 %v6187_v12, %v6111_v24  ;;  %vm13597_vm1 = vmmov %vm13596_vm0 }
 0xe1f   : > { %v5826_v52 = vadd.f32 %v5805_v9, %v5730_v17  ;;  %vm13599_vm4 = vmmov %vm13596_vm0 }
 0xe20   : > { %vm13602_vm11 = vmmov %vm13596_vm0 }
 0xe21   : > { %v12394_v49 = vpop.permute.xlu0 %6269  ;;  %v6325_v59 = vpop.permute.xlu1 %6324  ;;  %v5922_v62 = vadd.f32 %v5901_v54, %v5826_v52  ;;  %vm13604_vm14 = vmmov %vm13596_vm0 }
 0xe22   : > { %v12400_v58 = vadd.f32 %v12394_v49, %v12341_v28  ;;  %v6337_v28 = vmul.f32 %v6325_v59, %v12076_v43  ;;  %v6338_v38 = vmul.f32 %v6325_v59, %v12062_v34  ;;  %v6339_v31 = vmul.f32 %v6325_v59, %v11965_v44  ;;  %v6262_v44 = vpop.permute.xlu2 %6261 }
 0xe23   : > { %6355 = vrot.lane.b32.xlu1 %v6331_v30, %s7372_s13  ;;  %6359 = vrot.lane.b32.xlu0 %v6333_v22, %s7372_s13  ;;  %v6284_v60 = vsel %vm1751_vm7, %v6262_v44, %v12382_v13  ;;  %v6018_v4 = vadd.f32 %v5997_v36, %v5922_v62  ;;  %v13595_v13 = vld [vmem:[#allocation98_spill] sm:$0xff] }
 0xe24   : > { %6357 = vrot.lane.b32.xlu2 %v6332_v57, %s7372_s13  ;;  %v6304_v40 = vadd.f32 %v6284_v60, %v12316_v20  ;;  %v6189_v37 = vsel %vm1558_vm6, %v13595_v13, %v12136_v55  ;;  %vm13600_vm6 = vmmov %vm13596_vm0 }
 0xe25   : > { %v6114_v20 = vadd.f32 %v6093_v56, %v6018_v4 }
 0xe29   : > { %v6260_v34 = vpop.permute.xlu1 %6259  ;;  %v12427_v42 = vpop.permute.xlu0 %6275 }
 0xe2a   : > { %v6268_v43 = vpop.permute.xlu2 %6267  ;;  %v6283_v45 = vsel %vm1751_vm7, %v6260_v34, %v6262_v44 }
 0xe2b   : > { %6361 = vrot.lane.b32.xlu1 %v6334_v61, %s7372_s13  ;;  %6365 = vrot.lane.b32.xlu0 %v6336_v21, %s7372_s13  ;;  %v6303_v29 = vadd.f32 %v6283_v45, %v6207_v19  ;;  %v6286_v57 = vsel %vm1751_vm7, %v6268_v43, %v12394_v49  ;;  %v13598_v49 = vld [vmem:[#allocation97_spill] sm:$0xff] }
 0xe2c   : > { %6363 = vrot.lane.b32.xlu2 %v6335_v51, %s7372_s13  ;;  %v6307_v55 = vadd.f32 %v6286_v57, %v12346_v48 }
 0xe31   : > { %v6266_v39 = vpop.permute.xlu1 %6265 }
 0xe32   : > { %v12425_v41 = vpop.permute.xlu2 %6273 }
 0xe33   : > { %6367 = vrot.lane.b32.xlu1 %v6337_v28, %s7372_s13  ;;  %6371 = vrot.lane.b32.xlu0 %v6339_v31, %s7372_s13 }
 0xe34   : > { %6369 = vrot.lane.b32.xlu2 %v6338_v38, %s7372_s13 }
 0xe39   : > { %v6272_v14 = vpop.permute.xlu1 %6271 }
 0xe3a   : > { %v6287_v48 = vsel %vm1751_vm7, %v6272_v14, %v12425_v41 }
 0xe3b   : > { %6373 = vrot.lane.b32.xlu1 %v6340_v11, %s7372_s13  ;;  %6377 = vrot.lane.b32.xlu0 %v6342_v47, %s7372_s13  ;;  %v6309_v8 = vadd.f32 %v6287_v48, %v12357_v26 }
 0xe3c   : > { %6375 = vrot.lane.b32.xlu2 %v6341_v15, %s7372_s13  ;;  %s7375_s13 = smov 112  }
 0xe76   : > { %v12429_v0 = vpop.permute.xlu2 %6279 }
 0xe7e   : > { %v6358_v53 = vpop.permute.xlu2 %6357 }
 0xe86   : > { %v6364_v3 = vpop.permute.xlu2 %6363 }
 0xe8d   : > { %v12436_v63 = vpop.permute.xlu1 %6277  ;;  %v12441_v1 = vpop.permute.xlu0 %6281 }
 0xe8e   : > { %v12444_v18 = vadd.f32 %v12441_v1, %v6218_v6  ;;  %v6285_v6 = vsel %vm1751_vm7, %v6266_v39, %v6268_v43  ;;  %v6370_v11 = vpop.permute.xlu2 %6369  ;;  %v13601_v39 = vld [vmem:[#allocation113_spill] sm:$0xff] }
 0xe95   : > { %v6356_v25 = vpop.permute.xlu1 %6355  ;;  %v6360_v7 = vpop.permute.xlu0 %6359 }
 0xe96   : > { %v6379_v50 = vsel %vm13593_vm2, %v6356_v25, %v6358_v53  ;;  %v6380_v10 = vsel %vm13594_vm3, %v6358_v53, %v6360_v7  ;;  %v12466_v46 = vadd.f32 %v6360_v7, %v12388_v33  ;;  %v6210_v33 = vadd.f32 %v6189_v37, %v6114_v20 }
 0xe97   : > { %v12468_v23 = vadd.f32 %v6379_v50, %v6303_v29  ;;  %v12476_v30 = vadd.f32 %v6380_v10, %v6304_v40 }
 0xe98   : > { %v6306_v32 = vadd.f32 %v6285_v6, %v6210_v33 }
 0xe99   : > { %6415 = vrot.lane.b32.xlu1 %v12468_v23, %s7360_s23  ;;  %6528 = vrot.lane.b32.xlu0 %v12476_v30, %s7362_s24 }
 0xe9d   : > { %v6362_v22 = vpop.permute.xlu1 %6361  ;;  %v6366_v61 = vpop.permute.xlu0 %6365 }
 0xe9e   : > { %v6381_v51 = vsel %vm13596_vm0, %v6362_v22, %v6364_v3  ;;  %v6382_v21 = vsel %vm13597_vm1, %v6364_v3, %v6366_v61  ;;  %v12489_v59 = vadd.f32 %v6366_v61, %v12400_v58  ;;  %v6215_v58 = vadd.f32 %v12228_v35, %v13598_v49 }
 0xe9f   : > { %v12491_v28 = vadd.f32 %v6381_v51, %v6306_v32  ;;  %v12493_v38 = vadd.f32 %v6382_v21, %v6307_v55  ;;  %v6288_v35 = vsel %vm1751_vm7, %v12425_v41, %v12427_v42  ;;  %v6289_v41 = vsel %vm1751_vm7, %v12436_v63, %v12429_v0 }
 0xea0   : > { %v6311_v31 = vadd.f32 %v12427_v42, %v6215_v58  ;;  %v6310_v14 = vadd.f32 %v6288_v35, %v13601_v39  ;;  %v6376_v42 = vpop.permute.xlu2 %6375  ;;  %v6312_v9 = vadd.f32 %v6289_v41, %v13603_v2  ;;  %v6290_v63 = vsel %vm1751_vm7, %v12429_v0, %v12441_v1 }
 0xea1   : > { %6427 = vrot.lane.b32.xlu1 %v12468_v23, %s7374_s14  ;;  %6417 = vrot.lane.b32.xlu2 %v12491_v28, %s7360_s23  ;;  %v6313_v24 = vadd.f32 %v6290_v63, %v12403_v5  ;;  %vm6629_vm7 = vcmask 130048  }
 0xea2   : > { %6518 = vrot.lane.b32.xlu0 %v12493_v38, %s7375_s13 }
 0xea5   : > { %v6368_v15 = vpop.permute.xlu1 %6367  ;;  %v6372_v47 = vpop.permute.xlu0 %6371 }
 0xea6   : > { %v6383_v44 = vsel %vm13599_vm4, %v6368_v15, %v6370_v11  ;;  %v12508_v34 = vadd.f32 %v6372_v47, %v6311_v31  ;;  %v6384_v26 = vsel %vm13600_vm6, %v6370_v11, %v6372_v47 }
 0xea7   : > { %v12510_v43 = vadd.f32 %v6383_v44, %v6309_v8  ;;  %v12523_v27 = vadd.f32 %v6384_v26, %v6310_v14 }
 0xea9   : > { %6530 = vrot.lane.b32.xlu1 %v12493_v38, %s7362_s24  ;;  %6516 = vrot.lane.b32.xlu2 %v12476_v30, %s7375_s13 }
 0xeaa   : > { %6419 = vrot.lane.b32.xlu0 %v12510_v43, %s7360_s23 }
 0xead   : > { %v6374_v16 = vpop.permute.xlu1 %6373  ;;  %v12542_v12 = vpop.permute.xlu0 %6377 }
 0xeae   : > { %v6385_v17 = vsel %vm13602_vm11, %v6374_v16, %v6376_v42  ;;  %v6386_v52 = vsel %vm13604_vm14, %v6376_v42, %v12542_v12  ;;  %v6410_v20 = vadd.f32 %v12542_v12, %v12444_v18 }
 0xeaf   : > { %v12536_v54 = vadd.f32 %v6385_v17, %v6312_v9  ;;  %v12552_v53 = vadd.f32 %v6386_v52, %v6313_v24 }
 0xeb1   : > { %6520 = vrot.lane.b32.xlu1 %v12523_v27, %s7375_s13  ;;  %6429 = vrot.lane.b32.xlu2 %v12491_v28, %s7374_s14 }
 0xeb2   : > { %6431 = vrot.lane.b32.xlu0 %v12510_v43, %s7374_s14 }
 0xeb9   : > { %6532 = vrot.lane.b32.xlu2 %v12523_v27, %s7362_s24  ;;  %6421 = vrot.lane.b32.xlu1 %v12536_v54, %s7360_s23  ;;  %s7376_s23 = smov 122  }
 0xeba   : > { %6542 = vrot.lane.b32.xlu0 %v12493_v38, %s7366_s26 }
 0xec1   : > { %6540 = vrot.lane.b32.xlu2 %v12476_v30, %s7366_s26  ;;  %6433 = vrot.lane.b32.xlu1 %v12536_v54, %s7374_s14 }
 0xec2   : > { %6534 = vrot.lane.b32.xlu0 %v12552_v53, %s7362_s24  ;;  %s7378_s24 = smov 120  }
 0xec9   : > { %6522 = vrot.lane.b32.xlu2 %v12552_v53, %s7375_s13  ;;  %6544 = vrot.lane.b32.xlu1 %v12523_v27, %s7366_s26 }
 0xeca   : > { %6439 = vrot.lane.b32.xlu0 %v12468_v23, %s7376_s23 }
 0xed1   : > { %6546 = vrot.lane.b32.xlu2 %v12552_v53, %s7366_s26  ;;  %6441 = vrot.lane.b32.xlu1 %v12491_v28, %s7376_s23  ;;  %s7379_s26 = smov 104  }
 0xed2   : > { %6445 = vrot.lane.b32.xlu0 %v12536_v54, %s7376_s23 }
 0xed9   : > { %6443 = vrot.lane.b32.xlu2 %v12510_v43, %s7376_s23  ;;  %6552 = vrot.lane.b32.xlu1 %v12476_v30, %s7377_s21 }
 0xeda   : > { %6556 = vrot.lane.b32.xlu0 %v12523_v27, %s7377_s21 }
 0xee1   : > { %6554 = vrot.lane.b32.xlu2 %v12493_v38, %s7377_s21  ;;  %6558 = vrot.lane.b32.xlu1 %v12552_v53, %s7377_s21 }
 0xee2   : > { %6453 = vrot.lane.b32.xlu0 %v12491_v28, %s7378_s24 }
 0xee9   : > { %6451 = vrot.lane.b32.xlu2 %v12468_v23, %s7378_s24  ;;  %6455 = vrot.lane.b32.xlu1 %v12510_v43, %s7378_s24 }
 0xeea   : > { %6564 = vrot.lane.b32.xlu0 %v12476_v30, %s7379_s26 }
 0xef1   : > { %6457 = vrot.lane.b32.xlu2 %v12536_v54, %s7378_s24  ;;  %6566 = vrot.lane.b32.xlu1 %v12493_v38, %s7379_s26 }
 0xef2   : > { %6570 = vrot.lane.b32.xlu0 %v12552_v53, %s7379_s26 }
 0xef9   : > { %6568 = vrot.lane.b32.xlu2 %v12523_v27, %s7379_s26  ;;  %6463 = vrot.lane.b32.xlu1 %v12468_v23, %s7380_s19 }
 0xefa   : > { %6467 = vrot.lane.b32.xlu0 %v12510_v43, %s7380_s19 }
 0xefb   : > { %v6418_v5 = vpop.permute.xlu2 %6417 }
 0xefc   : > { %v6631_v1 = vsel %vm6629_vm7, %v12491_v28, %v6418_v5 }
 0xf01   : > { %6465 = vrot.lane.b32.xlu2 %v12491_v28, %s7380_s19  ;;  %6469 = vrot.lane.b32.xlu1 %v12536_v54, %s7380_s19 }
 0xf02   : > { %6578 = vrot.lane.b32.xlu0 %v12493_v38, %s7381_s20 }
 0xf03   : > { %v6517_v0 = vpop.permute.xlu2 %6516 }
 0xf09   : > { %6576 = vrot.lane.b32.xlu2 %v12476_v30, %s7381_s20  ;;  %6580 = vrot.lane.b32.xlu1 %v12523_v27, %s7381_s20 }
 0xf0a   : > { %6592 = vrot.lane.b32.xlu0 %v12476_v30, %s7382_s27 }
 0xf0b   : > { %v6430_v36 = vpop.permute.xlu2 %6429  ;;  %v6416_v45 = vpop.permute.xlu1 %6415 }
 0xf0c   : > { %v6529_v62 = vpop.permute.xlu0 %6528  ;;  %v12593_v19 = vsel %vm2412_vm5, %v6631_v1, %v6430_v36  ;;  %v6630_v4 = vsel %vm6629_vm7, %v12468_v23, %v6416_v45 }
 0xf0d   : > { %v6662_v60 = vsel %vm6629_vm7, %v6517_v0, %v6529_v62 }
 0xf11   : > { %6582 = vrot.lane.b32.xlu2 %v12552_v53, %s7381_s20  ;;  %6594 = vrot.lane.b32.xlu1 %v12466_v46, %s7382_s27 }
 0xf12   : > { %6598 = vrot.lane.b32.xlu0 %v12489_v59, %s7382_s27 }
 0xf13   : > { %v6533_v29 = vpop.permute.xlu2 %6532  ;;  %v6428_v25 = vpop.permute.xlu1 %6427 }
 0xf14   : > { %v6519_v40 = vpop.permute.xlu0 %6518  ;;  %v6634_v7 = vsel %vm2412_vm5, %v6630_v4, %v6428_v25 }
 0xf19   : > { %6596 = vrot.lane.b32.xlu2 %v12493_v38, %s7382_s27  ;;  %6600 = vrot.lane.b32.xlu1 %v12523_v27, %s7382_s27 }
 0xf1a   : > { %6604 = vrot.lane.b32.xlu0 %v12552_v53, %s7382_s27 }
 0xf1b   : > { %v6541_v50 = vpop.permute.xlu2 %6540  ;;  %v6531_v10 = vpop.permute.xlu1 %6530 }
 0xf1c   : > { %v6666_v56 = vsel %vm2412_vm5, %v6662_v60, %v6541_v50  ;;  %v6420_v13 = vpop.permute.xlu0 %6419  ;;  %v6663_v37 = vsel %vm6629_vm7, %v6519_v40, %v6531_v10 }
 0xf1d   : > { %v6632_v57 = vsel %vm6629_vm7, %v12510_v43, %v6420_v13 }
 0xf21   : > { %6602 = vrot.lane.b32.xlu2 %v12508_v34, %s7382_s27  ;;  %6606 = vrot.lane.b32.xlu1 %v6410_v20, %s7382_s27 }
 0xf22   : > { %6477 = vrot.lane.b32.xlu0 %v12491_v28, %s7383_s22 }
 0xf23   : > { %v6523_v6 = vpop.permute.xlu2 %6522  ;;  %v6521_v33 = vpop.permute.xlu1 %6520 }
 0xf24   : > { %v6432_v3 = vpop.permute.xlu0 %6431  ;;  %v6664_v32 = vsel %vm6629_vm7, %v6521_v33, %v6533_v29 }
 0xf25   : > { %v6636_v22 = vsel %vm2412_vm5, %v6632_v57, %v6432_v3 }
 0xf29   : > { %6475 = vrot.lane.b32.xlu2 %v12468_v23, %s7383_s22  ;;  %6479 = vrot.lane.b32.xlu1 %v12510_v43, %s7383_s22 }
 0xf2a   : > { %6491 = vrot.lane.b32.xlu0 %v12468_v23, %s7384_s15 }
 0xf2b   : > { %v6547_v18 = vpop.permute.xlu2 %6546  ;;  %v6422_v55 = vpop.permute.xlu1 %6421 }
 0xf2c   : > { %v6543_v61 = vpop.permute.xlu0 %6542  ;;  %v6633_v21 = vsel %vm6629_vm7, %v12536_v54, %v6422_v55 }
 0xf2d   : > { %v6667_v51 = vsel %vm2412_vm5, %v6663_v37, %v6543_v61 }
 0xf31   : > { %6481 = vrot.lane.b32.xlu2 %v12536_v54, %s7383_s22  ;;  %6493 = vrot.lane.b32.xlu1 %v12476_v30, %s7384_s15 }
 0xf32   : > { %6497 = vrot.lane.b32.xlu0 %v12493_v38, %s7384_s15 }
 0xf33   : > { %v6444_v48 = vpop.permute.xlu2 %6443  ;;  %v6434_v49 = vpop.permute.xlu1 %6433 }
 0xf34   : > { %v6641_v58 = vsel %vm6638_vm13, %v6636_v22, %v6444_v48  ;;  %v6535_v23 = vpop.permute.xlu0 %6534  ;;  %v6637_v31 = vsel %vm2412_vm5, %v6633_v21, %v6434_v49 }
 0xf35   : > { %v6665_v8 = vsel %vm6629_vm7, %v6523_v6, %v6535_v23 }
 0xf36   : > { %v6669_v11 = vsel %vm2412_vm5, %v6665_v8, %v6547_v18 }
 0xf39   : > { %6495 = vrot.lane.b32.xlu2 %v12491_v28, %s7384_s15  ;;  %6499 = vrot.lane.b32.xlu1 %v12510_v43, %s7384_s15 }
 0xf3a   : > { %6503 = vrot.lane.b32.xlu0 %v12536_v54, %s7384_s15 }
 0xf3b   : > { %v6555_v30 = vpop.permute.xlu2 %6554  ;;  %v6545_v38 = vpop.permute.xlu1 %6544 }
 0xf3c   : > { %v6671_v15 = vsel %vm6638_vm13, %v6667_v51, %v6555_v30  ;;  %v6440_v47 = vpop.permute.xlu0 %6439  ;;  %v6668_v44 = vsel %vm2412_vm5, %v6664_v32, %v6545_v38  ;;  %vm6647_vm5 = vcmask 654336  }
 0xf3d   : > { %v6639_v35 = vsel %vm6638_vm13, %v6634_v7, %v6440_v47 }
 0xf41   : > { %6501 = vrot.lane.b32.xlu2 %v12523_v27, %s7384_s15  ;;  %6505 = vrot.lane.b32.xlu1 %v12552_v53, %s7384_s15 }
 0xf42   : > { %6619 = vrot.lane.b32.xlu0 %v12489_v59, %s7385_s25 }
 0xf43   : > { %v6452_v28 = vpop.permute.xlu2 %6451  ;;  %v6442_v43 = vpop.permute.xlu1 %6441 }
 0xf44   : > { %v6643_v26 = vsel %vm5267_vm9, %v6639_v35, %v6452_v28  ;;  %v6446_v39 = vpop.permute.xlu0 %6445  ;;  %v6640_v14 = vsel %vm6638_vm13, %v12593_v19, %v6442_v43 }
 0xf45   : > { %v6642_v16 = vsel %vm6638_vm13, %v6637_v31, %v6446_v39 }
 0xf49   : > { %6617 = vrot.lane.b32.xlu2 %v12466_v46, %s7385_s25  ;;  %6621 = vrot.lane.b32.xlu1 %v12508_v34, %s7385_s25 }
 0xf4b   : > { %v6458_v27 = vpop.permute.xlu2 %6457  ;;  %v6553_v41 = vpop.permute.xlu1 %6552 }
 0xf4c   : > { %v6646_v42 = vsel %vm5267_vm9, %v6642_v16, %v6458_v27  ;;  %v6557_v17 = vpop.permute.xlu0 %6556  ;;  %v6670_v59 = vsel %vm6638_vm13, %v6666_v56, %v6553_v41 }
 0xf4d   : > { %v6672_v2 = vsel %vm6638_vm13, %v6668_v44, %v6557_v17 }
 0xf51   : > { %6623 = vrot.lane.b32.xlu2 %v6410_v20, %s7385_s25 }
 0xf53   : > { %v6569_v9 = vpop.permute.xlu2 %6568  ;;  %v6559_v54 = vpop.permute.xlu1 %6558 }
 0xf54   : > { %v12647_v12 = vsel %vm5267_vm9, %v6672_v2, %v6569_v9  ;;  %v6454_v63 = vpop.permute.xlu0 %6453  ;;  %v6673_v46 = vsel %vm6638_vm13, %v6669_v11, %v6559_v54 }
 0xf55   : > { %v6644_v34 = vsel %vm5267_vm9, %v6640_v14, %v6454_v63 }
 0xf5b   : > { %v6466_v52 = vpop.permute.xlu2 %6465  ;;  %v6456_v24 = vpop.permute.xlu1 %6455 }
 0xf5c   : > { %v6649_v53 = vsel %vm6647_vm5, %v6644_v34, %v6466_v52  ;;  %v6565_v5 = vpop.permute.xlu0 %6564  ;;  %v6645_v0 = vsel %vm5267_vm9, %v6641_v58, %v6456_v24 }
 0xf5d   : > { %v6674_v1 = vsel %vm5267_vm9, %v6670_v59, %v6565_v5 }
 0xf63   : > { %v6577_v36 = vpop.permute.xlu2 %6576  ;;  %v6567_v45 = vpop.permute.xlu1 %6566 }
 0xf64   : > { %v6571_v62 = vpop.permute.xlu0 %6570  ;;  %v6675_v19 = vsel %vm5267_vm9, %v6671_v15, %v6567_v45  ;;  %v6678_v49 = vsel %vm6647_vm5, %v6674_v1, %v6577_v36 }
 0xf65   : > { %v6677_v60 = vsel %vm5267_vm9, %v6673_v46, %v6571_v62  ;;  %vm6657_vm9 = vcmask 916480  }
 0xf6b   : > { %v6583_v4 = vpop.permute.xlu2 %6582  ;;  %v6464_v29 = vpop.permute.xlu1 %6463 }
 0xf6c   : > { %v6468_v25 = vpop.permute.xlu0 %6467  ;;  %v6648_v58 = vsel %vm6647_vm5, %v6643_v26, %v6464_v29  ;;  %v6681_v26 = vsel %vm6647_vm5, %v6677_v60, %v6583_v4 }
 0xf6d   : > { %v6650_v39 = vsel %vm6647_vm5, %v6645_v0, %v6468_v25 }
 0xf73   : > { %v6597_v40 = vpop.permute.xlu2 %6596  ;;  %v6470_v7 = vpop.permute.xlu1 %6469 }
 0xf74   : > { %v6579_v50 = vpop.permute.xlu0 %6578  ;;  %v6651_v10 = vsel %vm6647_vm5, %v6646_v42, %v6470_v7 }
 0xf75   : > { %v6679_v54 = vsel %vm6647_vm5, %v6675_v19, %v6579_v50 }
 0xf7b   : > { %v12657_v56 = vpop.permute.xlu2 %6602  ;;  %v12659_v13 = vpop.permute.xlu1 %6580 }
 0xf7c   : > { %v6593_v37 = vpop.permute.xlu0 %6592  ;;  %v6680_v1 = vsel %vm6647_vm5, %v12647_v12, %v12659_v13 }
 0xf83   : > { %v6476_v20 = vpop.permute.xlu2 %6475  ;;  %v6595_v6 = vpop.permute.xlu1 %6594 }
 0xf84   : > { %v6599_v33 = vpop.permute.xlu0 %6598  ;;  %v6609_v48 = vsel %vm6608_vm8, %v6593_v37, %v6595_v6  ;;  %v6653_v11 = vsel %vm6652_vm15, %v6648_v58, %v6476_v20 }
 0xf85   : > { %v6682_v31 = vsel %vm6652_vm15, %v6678_v49, %v6609_v48  ;;  %v6610_v9 = vsel %vm6608_vm8, %v6597_v40, %v6599_v33 }
 0xf86   : > { %v6683_v52 = vsel %vm6652_vm15, %v6679_v54, %v6610_v9 }
 0xf8b   : > { %v6482_v57 = vpop.permute.xlu2 %6481  ;;  %v6601_v3 = vpop.permute.xlu1 %6600 }
 0xf8c   : > { %v6605_v32 = vpop.permute.xlu0 %6604  ;;  %v6656_v46 = vsel %vm6652_vm15, %v6651_v10, %v6482_v57  ;;  %v6611_v0 = vsel %vm6608_vm8, %v6601_v3, %v12657_v56 }
 0xf8d   : > { %v6684_v36 = vsel %vm6652_vm15, %v6680_v1, %v6611_v0 }
 0xf93   : > { %v6496_v22 = vpop.permute.xlu2 %6495  ;;  %v6607_v18 = vpop.permute.xlu1 %6606 }
 0xf94   : > { %v6478_v55 = vpop.permute.xlu0 %6477  ;;  %v6612_v43 = vsel %vm6608_vm8, %v6605_v32, %v6607_v18 }
 0xf95   : > { %v6654_v47 = vsel %vm6652_vm15, %v6649_v53, %v6478_v55  ;;  %v6685_v16 = vsel %vm6652_vm15, %v6681_v26, %v6612_v43 }
 0xf9b   : > { %v6502_v61 = vpop.permute.xlu2 %6501  ;;  %v6480_v51 = vpop.permute.xlu1 %6479 }
 0xf9c   : > { %v6492_v21 = vpop.permute.xlu0 %6491  ;;  %v6655_v41 = vsel %vm6652_vm15, %v6650_v39, %v6480_v51 }
 0xfa3   : > { %v6618_v23 = vpop.permute.xlu2 %6617  ;;  %v6494_v8 = vpop.permute.xlu1 %6493 }
 0xfa4   : > { %v6686_v30 = vsel %vm6657_vm9, %v6682_v31, %v6618_v23  ;;  %v6498_v38 = vpop.permute.xlu0 %6497  ;;  %v6508_v15 = vsel %vm6507_vm12, %v6492_v21, %v6494_v8 }
 0xfa5   : > { %6691 = vst [vmem:[%s12667_s16 + $0x8] sm:$0xff] %v6686_v30  ;;  %v6509_v44 = vsel %vm6507_vm12, %v6496_v22, %v6498_v38  ;;  %v6658_v35 = vsel %vm6657_vm9, %v6653_v11, %v6508_v15 }
 0xfa6   : > { %v6659_v28 = vsel %vm6657_vm9, %v6654_v47, %v6509_v44  ;;  %6690 = vst [vmem:[%s12667_s16] sm:$0xff] %v6658_v35 }
 0xfa7   : > { %6692 = vst [vmem:[%s12667_s16 + $0x10] sm:$0xff] %v6659_v28 }
 0xfab   : > { %v6624_v14 = vpop.permute.xlu2 %6623  ;;  %v6500_v27 = vpop.permute.xlu1 %6499 }
 0xfac   : > { %v6689_v42 = vsel %vm6657_vm9, %v6685_v16, %v6624_v14  ;;  %v6504_v17 = vpop.permute.xlu0 %6503  ;;  %v6510_v59 = vsel %vm6507_vm12, %v6500_v27, %v6502_v61 }
 0xfad   : > { %6697 = vst [vmem:[%s12667_s16 + $0x38] sm:$0xff] %v6689_v42  ;;  %v6660_v2 = vsel %vm6657_vm9, %v6655_v41, %v6510_v59 }
 0xfae   : > { %6694 = vst [vmem:[%s12667_s16 + $0x20] sm:$0xff] %v6660_v2 }
 0xfb3   : > { %v6506_v63 = vpop.permute.xlu1 %6505 }
 0xfb4   : > { %v6620_v34 = vpop.permute.xlu0 %6619  ;;  %v6511_v24 = vsel %vm6507_vm12, %v6504_v17, %v6506_v63 }
 0xfb5   : > { %v6687_v53 = vsel %vm6657_vm9, %v6683_v52, %v6620_v34  ;;  %v6661_v5 = vsel %vm6657_vm9, %v6656_v46, %v6511_v24 }
 0xfb6   : > { %6693 = vst [vmem:[%s12667_s16 + $0x18] sm:$0xff] %v6687_v53 }
 0xfb7   : > { %6696 = vst [vmem:[%s12667_s16 + $0x30] sm:$0xff] %v6661_v5 }
 0xfbb   : > { %v6622_v45 = vpop.permute.xlu1 %6621 }
 0xfbc   : > { %v6688_v62 = vsel %vm6657_vm9, %v6684_v36, %v6622_v45 }
 0xfbd   : > { %6695 = vst [vmem:[%s12667_s16 + $0x28] sm:$0xff] %v6688_v62 }
 0xfbe PF: > { %s22_s17 = sadd.s32 1, %s7354_s17  }
 0xfbf   : > { %p19_p4 = scmp.ge.s32.totalorder %s22_s17, 4  }
 0xfc1   :  { %21 = sbr.rel (!%p19_p4) target bundleno = 1 (0x1), region = 123 }

</bundles_post_ra>
